<compile_context>
chip_gen: v7x
topology: tpu7x:2x2x1
jax: 0.10.0
libtpu: 0.0.40
codegen_flags: <defaults>
</compile_context>

<pallas_src>
import functools

import jax
import jax.numpy as jnp
from jax.experimental import pallas as pl
from jax.experimental.pallas import tpu as pltpu


def topdown_kernel(xt_ref, fc_ref, h_state_ref, c_state_ref, attf_ref, pattf_ref,
                   w1_ref, b1_ref, w2_ref, b2_ref, w3_ref, w_alpha_ref,
                   h_state_out, c_state_out, *, attn_dtype):
    Bt, A, H = pattf_ref.shape
    R = h_state_ref.shape[2]
    f32 = jnp.float32
    bf16 = jnp.bfloat16

    h_att_prev = h_state_ref[0]                        # [Bt, R] f32
    h_lang_prev = h_state_ref[1]                       # [Bt, R] f32
    h_lang_prev_bf = h_lang_prev.astype(bf16)          # hoisted: reused in x1 and x2

    # ---------------- att_lstm: one fused MXU dot ----------------
    # x1 = [prev_h_lang | fc_feats | xt | h_att_prev]  (matches torch.cat order + hh term)
    x1 = jnp.concatenate([h_lang_prev_bf,
                          fc_ref[...].astype(bf16),
                          xt_ref[...].astype(bf16),
                          h_att_prev.astype(bf16)], axis=1)            # [Bt, 3R+E] bf16
    gates1 = jnp.dot(x1, w1_ref[...], preferred_element_type=f32) + b1_ref[...]   # [Bt, 4R]
    i1 = jax.nn.sigmoid(gates1[:, 0 * R:1 * R])
    f1 = jax.nn.sigmoid(gates1[:, 1 * R:2 * R])
    g1 = jnp.tanh(gates1[:, 2 * R:3 * R])
    o1 = jax.nn.sigmoid(gates1[:, 3 * R:4 * R])
    c_att = f1 * c_state_ref[0] + i1 * g1
    h_att = o1 * jnp.tanh(c_att)

    # ---------------- fused h2att + h_att/h_lang part of lang_lstm ----------------
    x2 = jnp.concatenate([h_att.astype(bf16), h_lang_prev_bf], axis=1)  # [Bt, 2R] bf16
    y2 = jnp.dot(x2, w2_ref[...], preferred_element_type=f32) + b2_ref[...]        # [Bt, H+4R]
    att_h = y2[:, :H]                                  # h2att(h_att)
    lang_partial = y2[:, H:]                           # lang gates minus att term

    # ---------------- attention (VPU / XLU / EUP path) ----------------
    # tanh block in attn_dtype (bf16 on v6e/v7x); alpha_net as multiply + f32 lane reduce.
    dot = jnp.tanh((pattf_ref[...] + att_h[:, None, :]).astype(attn_dtype))   # [Bt, A, H]
    score = jnp.sum(dot * w_alpha_ref[...][None, :, :], axis=-1, dtype=f32)   # [Bt, A]
    score = score - jnp.max(score, axis=1, keepdims=True)
    e = jnp.exp(score)
    weight = e / jnp.sum(e, axis=1, keepdims=True)     # exact softmax (weights sum to 1)
    # keep the weighted sum on the VPU (an M=1 batched matmul would starve the MXU)
    att_res = jnp.sum(weight[:, :, None] * attf_ref[...], axis=1)             # [Bt, F==R]

    # ---------------- lang_lstm ----------------
    gates2 = lang_partial + jnp.dot(att_res.astype(bf16), w3_ref[...],
                                    preferred_element_type=f32)               # [Bt, 4R]
    i2 = jax.nn.sigmoid(gates2[:, 0 * R:1 * R])
    f2 = jax.nn.sigmoid(gates2[:, 1 * R:2 * R])
    g2 = jnp.tanh(gates2[:, 2 * R:3 * R])
    o2 = jax.nn.sigmoid(gates2[:, 3 * R:4 * R])
    c_lang = f2 * c_state_ref[1] + i2 * g2
    h_lang = o2 * jnp.tanh(c_lang)

    # Stacked state written directly (no wrapper-side jnp.stack).
    h_state_out[0] = h_att
    h_state_out[1] = h_lang
    c_state_out[0] = c_att
    c_state_out[1] = c_lang


def _fuse_params(params, matmul_dtype=jnp.bfloat16, attn_dtype=jnp.bfloat16):
    """Pre-concatenate weights (done once, outside the decode loop)."""
    R = params["w_att_hh"].shape[0]
    H = params["w_h2att"].shape[1]
    f32 = jnp.float32

    # W1: rows = [prev_h_lang | fc | xt] (= w_att_ih) then h_att_prev (= w_att_hh)
    w1 = jnp.concatenate([params["w_att_ih"], params["w_att_hh"]], axis=0).astype(matmul_dtype)
    b1 = (params["b_att_ih"] + params["b_att_hh"]).reshape(1, -1).astype(f32)

    # W2: input rows = [h_att | prev_h_lang], output cols = [att_h (H) | lang gates (4R)]
    # lang_lstm input is cat([att_res, h_att]) -> h_att uses w_lang_ih rows R:2R.
    w2_top = jnp.concatenate([params["w_h2att"], params["w_lang_ih"][R:2 * R, :]], axis=1)
    w2_bot = jnp.concatenate([jnp.zeros((R, H), f32), params["w_lang_hh"]], axis=1)
    w2 = jnp.concatenate([w2_top, w2_bot], axis=0).astype(matmul_dtype)
    b2 = jnp.concatenate([params["b_h2att"],
                          params["b_lang_ih"] + params["b_lang_hh"]]).reshape(1, -1).astype(f32)

    # W3: att_res part of lang_lstm input (rows 0:R of w_lang_ih)
    w3 = params["w_lang_ih"][:R, :].astype(matmul_dtype)

    # alpha_net weight as a (1, H) row vector for the multiply+reduce.
    # params["b_alpha"] is intentionally dropped: a scalar added to every attention
    # score cancels in the softmax.
    w_alpha_row = params["w_alpha"].reshape(1, -1).astype(attn_dtype)
    return w1, b1, w2, b2, w3, w_alpha_row


def topdown_core(xt, fc_feats, att_feats, p_att_feats, state, params,
                 att_masks=None, batch_tile=None, attn_compute_dtype=jnp.bfloat16):
    # TODO(synk): att_masks renormalization path not implemented.
    assert att_masks is None, "att_masks path not implemented in the Pallas kernel"
    h_state_in, c_state_in = state
    assert h_state_in.ndim == 3 and h_state_in.shape[0] == 2
    assert c_state_in.shape == h_state_in.shape
    _, B, R = h_state_in.shape
    E = xt.shape[1]
    A, F = att_feats.shape[1], att_feats.shape[2]
    H = params["w_h2att"].shape[1]

    # Loud checks of the layout the fused weights assume.
    assert F == R, "att_feat dim must equal rnn_size (lang_lstm input is 2R wide)"
    assert params["w_att_ih"].shape == (E + 2 * R, 4 * R), "w_att_ih rows must be [prev_h|fc|xt]"
    assert params["w_att_hh"].shape == (R, 4 * R)
    assert params["w_lang_ih"].shape == (2 * R, 4 * R), "w_lang_ih rows must be [att_res|h_att]"
    assert params["w_lang_hh"].shape == (R, 4 * R)
    assert params["w_h2att"].shape == (R, H)
    assert params["w_alpha"].shape == (H, 1)

    w1, b1, w2, b2, w3, w_alpha_row = _fuse_params(params, attn_dtype=attn_compute_dtype)

    if batch_tile is None:
        # Full batch in one grid step: largest MXU M-dim, full bf16 sublane packing,
        # no per-step overhead on single-TC chips (v5e/v6e). On v7x (2 TensorCores)
        # pass batch_tile = B // 2 so the "parallel" axis shards across cores.
        batch_tile = B if B <= 256 else 256
    Bt = batch_tile
    assert B % Bt == 0, "batch must be divisible by the batch tile"
    grid = (B // Bt,)

    operands = (xt, fc_feats, h_state_in, c_state_in, att_feats, p_att_feats,
                w1, b1, w2, b2, w3, w_alpha_row)

    flops = 2 * B * ((3 * R + E) * 4 * R + 2 * R * (H + 4 * R) + R * 4 * R + A * H + A * F)
    transcendentals = B * (A * H + A + 12 * R)
    bytes_accessed = (sum(int(a.size) * a.dtype.itemsize for a in operands)
                      + 2 * 2 * B * R * 4)

    def build_call(weight_mode):
        def row_spec(feat):          # batch-tiled 2-D activations
            return pl.BlockSpec((Bt, feat), lambda b: (b, 0))

        def att_spec(a, feat):       # batch-tiled 3-D attention tensors
            return pl.BlockSpec((Bt, a, feat), lambda b: (b, 0, 0))

        state_spec = pl.BlockSpec((2, Bt, R), lambda b: (0, b, 0))

        def weight_spec(arr):        # constant block index -> DMA'd once, stays resident
            if weight_mode is None:
                return pl.BlockSpec(arr.shape, lambda b: (0, 0))
            return pl.BlockSpec(arr.shape, lambda b: (0, 0), pipeline_mode=weight_mode)

        in_specs = [
            row_spec(E),              # xt
            row_spec(R),              # fc_feats
            state_spec,               # h_state (2, B, R)
            state_spec,               # c_state (2, B, R)
            att_spec(A, F),           # att_feats
            att_spec(A, H),           # p_att_feats
            weight_spec(w1), weight_spec(b1),
            weight_spec(w2), weight_spec(b2),
            weight_spec(w3), weight_spec(w_alpha_row),
        ]
        out_specs = (state_spec, state_spec)
        out_shape = (jax.ShapeDtypeStruct((2, B, R), jnp.float32),
                     jax.ShapeDtypeStruct((2, B, R), jnp.float32))

        return pl.pallas_call(
            functools.partial(topdown_kernel, attn_dtype=attn_compute_dtype),
            grid=grid,
            in_specs=in_specs,
            out_specs=out_specs,
            out_shape=out_shape,
            compiler_params=pltpu.CompilerParams(
                dimension_semantics=("parallel",),
                # TODO(synk): at production rnn_size (~1024) on v7x (64 MiB VMEM), stream
                # W1 from HBM (memory_space=pl.ANY + pltpu.emit_pipeline) instead of
                # keeping it fully resident, and raise this limit accordingly.
                vmem_limit_bytes=32 * 1024 * 1024,
            ),
            cost_estimate=pl.CostEstimate(flops=flops,
                                          transcendentals=transcendentals,
                                          bytes_accessed=bytes_accessed),
        )

    try:
        # Weights have a constant index_map: single-buffer them (double-buffering buys
        # nothing for a constant block and doubles their VMEM footprint).
        h_state_new, c_state_new = build_call(pl.Buffered(1))(*operands)
    except Exception:
        # Fallback for environments where Buffered(1) on a pallas_call input is rejected;
        # a genuine kernel bug would fail identically on this path and still surface.
        h_state_new, c_state_new = build_call(None)(*operands)

    # TODO(synk): training-mode dropout not implemented; output == h_lang in eval mode.
    output = h_state_new[1]
    return output, (h_state_new, c_state_new)


def reference_forward(xt, fc_feats, att_feats, p_att_feats, state, params):
    """Pure-JAX (f32) mirror of the PyTorch TopDownCore forward."""
    h_att_prev, h_lang_prev = state[0][0], state[0][1]
    c_att_prev, c_lang_prev = state[1][0], state[1][1]
    prev_h = state[0][-1]
    R = h_att_prev.shape[1]

    def lstm_cell(x, h, c, w_ih, b_ih, w_hh, b_hh):
        gates = x @ w_ih + b_ih + h @ w_hh + b_hh
        i = jax.nn.sigmoid(gates[:, :R])
        f = jax.nn.sigmoid(gates[:, R:2 * R])
        g = jnp.tanh(gates[:, 2 * R:3 * R])
        o = jax.nn.sigmoid(gates[:, 3 * R:4 * R])
        c_new = f * c + i * g
        return o * jnp.tanh(c_new), c_new

    att_in = jnp.concatenate([prev_h, fc_feats, xt], axis=1)
    h_att, c_att = lstm_cell(att_in, h_att_prev, c_att_prev,
                             params["w_att_ih"], params["b_att_ih"],
                             params["w_att_hh"], params["b_att_hh"])

    att_h = h_att @ params["w_h2att"] + params["b_h2att"]
    dot = jnp.tanh(p_att_feats + att_h[:, None, :])
    score = jnp.einsum("bah,h->ba", dot, params["w_alpha"][:, 0]) + params["b_alpha"]
    weight = jax.nn.softmax(score, axis=1)
    att_res = jnp.einsum("ba,baf->bf", weight, att_feats)

    lang_in = jnp.concatenate([att_res, h_att], axis=1)
    h_lang, c_lang = lstm_cell(lang_in, h_lang_prev, c_lang_prev,
                               params["w_lang_ih"], params["b_lang_ih"],
                               params["w_lang_hh"], params["b_lang_hh"])
    return h_lang, (jnp.stack([h_att, h_lang]), jnp.stack([c_att, c_lang]))


if __name__ == "__main__":
    B = 16          # batch (single grid step: Bt = B)
    E = 128         # input_encoding_size
    R = 128         # rnn_size
    H = 128         # att_hid_size
    A = 16          # attention regions
    F = R           # att_feat_size must equal rnn_size (lang_lstm input is 2R wide)

    key = jax.random.PRNGKey(0)
    ks = jax.random.split(key, 18)

    def w(k, shape, scale=0.02):
        return (scale * jax.random.normal(k, shape)).astype(jnp.float32)

    params = {
        "w_att_ih": w(ks[0], (E + 2 * R, 4 * R)),   # rows: [prev_h_lang | fc | xt]
        "b_att_ih": w(ks[1], (4 * R,)),
        "w_att_hh": w(ks[2], (R, 4 * R)),
        "b_att_hh": w(ks[3], (4 * R,)),
        "w_lang_ih": w(ks[4], (2 * R, 4 * R)),      # rows: [att_res | h_att]
        "b_lang_ih": w(ks[5], (4 * R,)),
        "w_lang_hh": w(ks[6], (R, 4 * R)),
        "b_lang_hh": w(ks[7], (4 * R,)),
        "w_h2att":  w(ks[8], (R, H)),
        "b_h2att":  w(ks[9], (H,)),
        "w_alpha":  w(ks[10], (H, 1)),
        "b_alpha":  w(ks[11], ()),
    }

    xt = w(ks[12], (B, E), scale=1.0)
    fc_feats = w(ks[13], (B, R), scale=1.0)
    att_feats = w(ks[14], (B, A, F), scale=1.0)
    p_att_feats = w(ks[15], (B, A, H), scale=1.0)
    h0 = w(ks[16], (2, B, R), scale=1.0)
    c0 = w(ks[17], (2, B, R), scale=1.0)
    state = (h0, c0)

    out, new_state = topdown_core(xt, fc_feats, att_feats, p_att_feats, state, params)
    out = jax.block_until_ready(out)
    new_state = jax.tree_util.tree_map(jax.block_until_ready, new_state)

    ref_out, ref_state = reference_forward(xt, fc_feats, att_feats, p_att_feats, state, params)

    assert out.shape == (B, R)
    assert new_state[0].shape == (2, B, R) and new_state[1].shape == (2, B, R)
    # bf16 matmul operands / bf16 attention tanh + f32 accumulation -> loosened tolerance
    # vs. pure-f32 reference.
    assert jnp.allclose(out, ref_out, atol=2e-2, rtol=2e-2)
    assert jnp.allclose(new_state[0], ref_state[0], atol=2e-2, rtol=2e-2)
    assert jnp.allclose(new_state[1], ref_state[1], atol=2e-2, rtol=2e-2)

    print("KERNEL_OK")
</pallas_src>

<mosaic_0001>
module attributes {stable_mosaic.version = 11 : i64} {
  func.func @topdown_kernel(%arg0: i32, %arg1: memref<16x128xf32, #tpu.memory_space<vmem>>, %arg2: memref<16x128xf32, #tpu.memory_space<vmem>>, %arg3: memref<2x16x128xf32, #tpu.memory_space<vmem>>, %arg4: memref<2x16x128xf32, #tpu.memory_space<vmem>>, %arg5: memref<16x16x128xf32, #tpu.memory_space<vmem>>, %arg6: memref<16x16x128xf32, #tpu.memory_space<vmem>>, %arg7: memref<512x512xbf16, #tpu.memory_space<vmem>>, %arg8: memref<1x512xf32, #tpu.memory_space<vmem>>, %arg9: memref<256x640xbf16, #tpu.memory_space<vmem>>, %arg10: memref<1x640xf32, #tpu.memory_space<vmem>>, %arg11: memref<128x512xbf16, #tpu.memory_space<vmem>>, %arg12: memref<1x128xbf16, #tpu.memory_space<vmem>>, %arg13: memref<2x16x128xf32, #tpu.memory_space<vmem>>, %arg14: memref<2x16x128xf32, #tpu.memory_space<vmem>>) attributes {dimension_semantics = [#tpu.dimension_semantics<parallel>], iteration_bounds = array<i64: 1>, scalar_prefetch = 0 : i64, scratch_operands = 0 : i64, tpu.core_type = #tpu.core_type<tc>, window_params = [{transform_indices = @transform_0, window_bounds = array<i64: 16, 128>}, {transform_indices = @transform_1, window_bounds = array<i64: 16, 128>}, {transform_indices = @transform_2, window_bounds = array<i64: 2, 16, 128>}, {transform_indices = @transform_3, window_bounds = array<i64: 2, 16, 128>}, {transform_indices = @transform_4, window_bounds = array<i64: 16, 16, 128>}, {transform_indices = @transform_5, window_bounds = array<i64: 16, 16, 128>}, {pipeline_mode = #tpu.pipeline_mode<synchronous>, transform_indices = @transform_6, window_bounds = array<i64: 512, 512>}, {pipeline_mode = #tpu.pipeline_mode<synchronous>, transform_indices = @transform_7, window_bounds = array<i64: 1, 512>}, {pipeline_mode = #tpu.pipeline_mode<synchronous>, transform_indices = @transform_8, window_bounds = array<i64: 256, 640>}, {pipeline_mode = #tpu.pipeline_mode<synchronous>, transform_indices = @transform_9, window_bounds = array<i64: 1, 640>}, {pipeline_mode = #tpu.pipeline_mode<synchronous>, transform_indices = @transform_10, window_bounds = array<i64: 128, 512>}, {pipeline_mode = #tpu.pipeline_mode<synchronous>, transform_indices = @transform_11, window_bounds = array<i64: 1, 128>}, {transform_indices = @transform_12, window_bounds = array<i64: 2, 16, 128>}, {transform_indices = @transform_13, window_bounds = array<i64: 2, 16, 128>}]} {
    %c0 = arith.constant 0 : index
    %c0_0 = arith.constant 0 : index
    %c0_1 = arith.constant 0 : index
    %0 = vector.load %arg3[%c0, %c0_0, %c0_1] : memref<2x16x128xf32, #tpu.memory_space<vmem>>, vector<1x16x128xf32>
    %1 = vector.shape_cast %0 : vector<1x16x128xf32> to vector<16x128xf32>
    %c1 = arith.constant 1 : index
    %c0_2 = arith.constant 0 : index
    %c0_3 = arith.constant 0 : index
    %2 = vector.load %arg3[%c1, %c0_2, %c0_3] : memref<2x16x128xf32, #tpu.memory_space<vmem>>, vector<1x16x128xf32>
    %3 = vector.shape_cast %2 : vector<1x16x128xf32> to vector<16x128xf32>
    %4 = arith.truncf %3 : vector<16x128xf32> to vector<16x128xbf16>
    %c0_4 = arith.constant 0 : index
    %c0_5 = arith.constant 0 : index
    %5 = vector.load %arg2[%c0_4, %c0_5] : memref<16x128xf32, #tpu.memory_space<vmem>>, vector<16x128xf32>
    %6 = arith.truncf %5 : vector<16x128xf32> to vector<16x128xbf16>
    %c0_6 = arith.constant 0 : index
    %c0_7 = arith.constant 0 : index
    %7 = vector.load %arg1[%c0_6, %c0_7] : memref<16x128xf32, #tpu.memory_space<vmem>>, vector<16x128xf32>
    %8 = arith.truncf %7 : vector<16x128xf32> to vector<16x128xbf16>
    %9 = arith.truncf %1 : vector<16x128xf32> to vector<16x128xbf16>
    %10 = tpu.concatenate %4, %6, %8, %9 in 1 : vector<16x128xbf16>, vector<16x128xbf16>, vector<16x128xbf16>, vector<16x128xbf16> -> vector<16x512xbf16>
    %c0_8 = arith.constant 0 : index
    %c0_9 = arith.constant 0 : index
    %11 = vector.load %arg7[%c0_8, %c0_9] : memref<512x512xbf16, #tpu.memory_space<vmem>>, vector<512x512xbf16>
    %cst = arith.constant dense<0.000000e+00> : vector<16x512xf32>
    %12 = tpu.matmul %10, %11, %cst {dimension_numbers = #tpu.dot_dimension_numbers<[1], [0], [0], [1], [0, 0, 1, 1], [], []>} : vector<16x512xbf16>, vector<512x512xbf16>, vector<16x512xf32> -> vector<16x512xf32>
    %c0_10 = arith.constant 0 : index
    %c0_11 = arith.constant 0 : index
    %13 = vector.load %arg8[%c0_10, %c0_11] : memref<1x512xf32, #tpu.memory_space<vmem>>, vector<1x512xf32>
    %14 = vector.broadcast %13 : vector<1x512xf32> to vector<16x512xf32>
    %15 = arith.addf %12, %14 : vector<16x512xf32>
    %16 = vector.extract_strided_slice %15 {offsets = [0, 0], sizes = [16, 128], strides = [1, 1]} : vector<16x512xf32> to vector<16x128xf32>
    %17 = arith.negf %16 : vector<16x128xf32>
    %18 = math.exp %17 : vector<16x128xf32>
    %cst_12 = arith.constant 1.000000e+00 : f32
    %19 = vector.broadcast %cst_12 : f32 to vector<16x128xf32>
    %20 = arith.addf %19, %18 : vector<16x128xf32>
    %21 = arith.divf %19, %20 : vector<16x128xf32>
    %22 = vector.extract_strided_slice %15 {offsets = [0, 128], sizes = [16, 128], strides = [1, 1]} : vector<16x512xf32> to vector<16x128xf32>
    %23 = arith.negf %22 : vector<16x128xf32>
    %24 = math.exp %23 : vector<16x128xf32>
    %cst_13 = arith.constant 1.000000e+00 : f32
    %25 = vector.broadcast %cst_13 : f32 to vector<16x128xf32>
    %26 = arith.addf %25, %24 : vector<16x128xf32>
    %27 = arith.divf %25, %26 : vector<16x128xf32>
    %28 = vector.extract_strided_slice %15 {offsets = [0, 256], sizes = [16, 128], strides = [1, 1]} : vector<16x512xf32> to vector<16x128xf32>
    %29 = math.tanh %28 : vector<16x128xf32>
    %30 = vector.extract_strided_slice %15 {offsets = [0, 384], sizes = [16, 128], strides = [1, 1]} : vector<16x512xf32> to vector<16x128xf32>
    %31 = arith.negf %30 : vector<16x128xf32>
    %32 = math.exp %31 : vector<16x128xf32>
    %cst_14 = arith.constant 1.000000e+00 : f32
    %33 = vector.broadcast %cst_14 : f32 to vector<16x128xf32>
    %34 = arith.addf %33, %32 : vector<16x128xf32>
    %35 = arith.divf %33, %34 : vector<16x128xf32>
    %c0_15 = arith.constant 0 : index
    %c0_16 = arith.constant 0 : index
    %c0_17 = arith.constant 0 : index
    %36 = vector.load %arg4[%c0_15, %c0_16, %c0_17] : memref<2x16x128xf32, #tpu.memory_space<vmem>>, vector<1x16x128xf32>
    %37 = vector.shape_cast %36 : vector<1x16x128xf32> to vector<16x128xf32>
    %38 = arith.mulf %27, %37 : vector<16x128xf32>
    %39 = arith.mulf %21, %29 : vector<16x128xf32>
    %40 = arith.addf %38, %39 : vector<16x128xf32>
    %41 = math.tanh %40 : vector<16x128xf32>
    %42 = arith.mulf %35, %41 : vector<16x128xf32>
    %43 = arith.truncf %42 : vector<16x128xf32> to vector<16x128xbf16>
    %44 = tpu.concatenate %43, %4 in 1 : vector<16x128xbf16>, vector<16x128xbf16> -> vector<16x256xbf16>
    %c0_18 = arith.constant 0 : index
    %c0_19 = arith.constant 0 : index
    %45 = vector.load %arg9[%c0_18, %c0_19] : memref<256x640xbf16, #tpu.memory_space<vmem>>, vector<256x640xbf16>
    %cst_20 = arith.constant dense<0.000000e+00> : vector<16x640xf32>
    %46 = tpu.matmul %44, %45, %cst_20 {dimension_numbers = #tpu.dot_dimension_numbers<[1], [0], [0], [1], [0, 0, 1, 1], [], []>} : vector<16x256xbf16>, vector<256x640xbf16>, vector<16x640xf32> -> vector<16x640xf32>
    %c0_21 = arith.constant 0 : index
    %c0_22 = arith.constant 0 : index
    %47 = vector.load %arg10[%c0_21, %c0_22] : memref<1x640xf32, #tpu.memory_space<vmem>>, vector<1x640xf32>
    %48 = vector.broadcast %47 : vector<1x640xf32> to vector<16x640xf32>
    %49 = arith.addf %46, %48 : vector<16x640xf32>
    %50 = vector.extract_strided_slice %49 {offsets = [0, 0], sizes = [16, 128], strides = [1, 1]} : vector<16x640xf32> to vector<16x128xf32>
    %51 = vector.extract_strided_slice %49 {offsets = [0, 128], sizes = [16, 512], strides = [1, 1]} : vector<16x640xf32> to vector<16x512xf32>
    %c0_23 = arith.constant 0 : index
    %c0_24 = arith.constant 0 : index
    %c0_25 = arith.constant 0 : index
    %52 = vector.load %arg6[%c0_23, %c0_24, %c0_25] : memref<16x16x128xf32, #tpu.memory_space<vmem>>, vector<16x16x128xf32>
    %53 = vector.shape_cast %50 : vector<16x128xf32> to vector<16x1x128xf32>
    %54 = vector.broadcast %53 : vector<16x1x128xf32> to vector<16x16x128xf32>
    %55 = arith.addf %52, %54 : vector<16x16x128xf32>
    %56 = arith.truncf %55 : vector<16x16x128xf32> to vector<16x16x128xbf16>
    %57 = math.tanh %56 : vector<16x16x128xbf16>
    %c0_26 = arith.constant 0 : index
    %c0_27 = arith.constant 0 : index
    %58 = vector.load %arg12[%c0_26, %c0_27] : memref<1x128xbf16, #tpu.memory_space<vmem>>, vector<1x128xbf16>
    %59 = vector.shape_cast %58 : vector<1x128xbf16> to vector<1x1x128xbf16>
    %60 = vector.broadcast %59 : vector<1x1x128xbf16> to vector<16x16x128xbf16>
    %61 = arith.mulf %57, %60 : vector<16x16x128xbf16>
    %62 = arith.extf %61 : vector<16x16x128xbf16> to vector<16x16x128xf32>
    %cst_28 = arith.constant dense<0.000000e+00> : vector<16x16xf32>
    %63 = vector.multi_reduction <add>, %62, %cst_28 [2] : vector<16x16x128xf32> to vector<16x16xf32>
    %cst_29 = arith.constant dense<0xFF800000> : vector<16xf32>
    %64 = vector.multi_reduction <maximumf>, %63, %cst_29 [1] : vector<16x16xf32> to vector<16xf32>
    %65 = vector.shape_cast %64 : vector<16xf32> to vector<16x1xf32>
    %66 = vector.broadcast %65 : vector<16x1xf32> to vector<16x16xf32>
    %67 = arith.subf %63, %66 : vector<16x16xf32>
    %68 = math.exp %67 : vector<16x16xf32>
    %cst_30 = arith.constant dense<0.000000e+00> : vector<16xf32>
    %69 = vector.multi_reduction <add>, %68, %cst_30 [1] : vector<16x16xf32> to vector<16xf32>
    %70 = vector.shape_cast %69 : vector<16xf32> to vector<16x1xf32>
    %71 = vector.broadcast %70 : vector<16x1xf32> to vector<16x16xf32>
    %72 = arith.divf %68, %71 : vector<16x16xf32>
    %73 = vector.shape_cast %72 : vector<16x16xf32> to vector<16x16x1xf32>
    %c0_31 = arith.constant 0 : index
    %c0_32 = arith.constant 0 : index
    %c0_33 = arith.constant 0 : index
    %74 = vector.load %arg5[%c0_31, %c0_32, %c0_33] : memref<16x16x128xf32, #tpu.memory_space<vmem>>, vector<16x16x128xf32>
    %75 = vector.broadcast %73 : vector<16x16x1xf32> to vector<16x16x128xf32>
    %76 = arith.mulf %75, %74 : vector<16x16x128xf32>
    %cst_34 = arith.constant dense<0.000000e+00> : vector<16x128xf32>
    %77 = vector.multi_reduction <add>, %76, %cst_34 [1] : vector<16x16x128xf32> to vector<16x128xf32>
    %78 = arith.truncf %77 : vector<16x128xf32> to vector<16x128xbf16>
    %c0_35 = arith.constant 0 : index
    %c0_36 = arith.constant 0 : index
    %79 = vector.load %arg11[%c0_35, %c0_36] : memref<128x512xbf16, #tpu.memory_space<vmem>>, vector<128x512xbf16>
    %cst_37 = arith.constant dense<0.000000e+00> : vector<16x512xf32>
    %80 = tpu.matmul %78, %79, %cst_37 {dimension_numbers = #tpu.dot_dimension_numbers<[1], [0], [0], [1], [0, 0, 1, 1], [], []>} : vector<16x128xbf16>, vector<128x512xbf16>, vector<16x512xf32> -> vector<16x512xf32>
    %81 = arith.addf %51, %80 : vector<16x512xf32>
    %82 = vector.extract_strided_slice %81 {offsets = [0, 0], sizes = [16, 128], strides = [1, 1]} : vector<16x512xf32> to vector<16x128xf32>
    %83 = arith.negf %82 : vector<16x128xf32>
    %84 = math.exp %83 : vector<16x128xf32>
    %cst_38 = arith.constant 1.000000e+00 : f32
    %85 = vector.broadcast %cst_38 : f32 to vector<16x128xf32>
    %86 = arith.addf %85, %84 : vector<16x128xf32>
    %87 = arith.divf %85, %86 : vector<16x128xf32>
    %88 = vector.extract_strided_slice %81 {offsets = [0, 128], sizes = [16, 128], strides = [1, 1]} : vector<16x512xf32> to vector<16x128xf32>
    %89 = arith.negf %88 : vector<16x128xf32>
    %90 = math.exp %89 : vector<16x128xf32>
    %cst_39 = arith.constant 1.000000e+00 : f32
    %91 = vector.broadcast %cst_39 : f32 to vector<16x128xf32>
    %92 = arith.addf %91, %90 : vector<16x128xf32>
    %93 = arith.divf %91, %92 : vector<16x128xf32>
    %94 = vector.extract_strided_slice %81 {offsets = [0, 256], sizes = [16, 128], strides = [1, 1]} : vector<16x512xf32> to vector<16x128xf32>
    %95 = math.tanh %94 : vector<16x128xf32>
    %96 = vector.extract_strided_slice %81 {offsets = [0, 384], sizes = [16, 128], strides = [1, 1]} : vector<16x512xf32> to vector<16x128xf32>
    %97 = arith.negf %96 : vector<16x128xf32>
    %98 = math.exp %97 : vector<16x128xf32>
    %cst_40 = arith.constant 1.000000e+00 : f32
    %99 = vector.broadcast %cst_40 : f32 to vector<16x128xf32>
    %100 = arith.addf %99, %98 : vector<16x128xf32>
    %101 = arith.divf %99, %100 : vector<16x128xf32>
    %c1_41 = arith.constant 1 : index
    %c0_42 = arith.constant 0 : index
    %c0_43 = arith.constant 0 : index
    %102 = vector.load %arg4[%c1_41, %c0_42, %c0_43] : memref<2x16x128xf32, #tpu.memory_space<vmem>>, vector<1x16x128xf32>
    %103 = vector.shape_cast %102 : vector<1x16x128xf32> to vector<16x128xf32>
    %104 = arith.mulf %93, %103 : vector<16x128xf32>
    %105 = arith.mulf %87, %95 : vector<16x128xf32>
    %106 = arith.addf %104, %105 : vector<16x128xf32>
    %107 = math.tanh %106 : vector<16x128xf32>
    %108 = arith.mulf %101, %107 : vector<16x128xf32>
    %c0_44 = arith.constant 0 : index
    %c0_45 = arith.constant 0 : index
    %c0_46 = arith.constant 0 : index
    %109 = vector.load %arg13[%c0_44, %c0_45, %c0_46] : memref<2x16x128xf32, #tpu.memory_space<vmem>>, vector<1x16x128xf32>
    %110 = vector.shape_cast %109 : vector<1x16x128xf32> to vector<16x128xf32>
    %111 = vector.shape_cast %42 : vector<16x128xf32> to vector<1x16x128xf32>
    tpu.vector_store %arg13[%c0_44, %c0_45, %c0_46], %111 {strides = array<i32>} : memref<2x16x128xf32, #tpu.memory_space<vmem>>, vector<1x16x128xf32>,
    %c1_47 = arith.constant 1 : index
    %c0_48 = arith.constant 0 : index
    %c0_49 = arith.constant 0 : index
    %112 = vector.load %arg13[%c1_47, %c0_48, %c0_49] : memref<2x16x128xf32, #tpu.memory_space<vmem>>, vector<1x16x128xf32>
    %113 = vector.shape_cast %112 : vector<1x16x128xf32> to vector<16x128xf32>
    %114 = vector.shape_cast %108 : vector<16x128xf32> to vector<1x16x128xf32>
    tpu.vector_store %arg13[%c1_47, %c0_48, %c0_49], %114 {strides = array<i32>} : memref<2x16x128xf32, #tpu.memory_space<vmem>>, vector<1x16x128xf32>,
    %c0_50 = arith.constant 0 : index
    %c0_51 = arith.constant 0 : index
    %c0_52 = arith.constant 0 : index
    %115 = vector.load %arg14[%c0_50, %c0_51, %c0_52] : memref<2x16x128xf32, #tpu.memory_space<vmem>>, vector<1x16x128xf32>
    %116 = vector.shape_cast %115 : vector<1x16x128xf32> to vector<16x128xf32>
    %117 = vector.shape_cast %40 : vector<16x128xf32> to vector<1x16x128xf32>
    tpu.vector_store %arg14[%c0_50, %c0_51, %c0_52], %117 {strides = array<i32>} : memref<2x16x128xf32, #tpu.memory_space<vmem>>, vector<1x16x128xf32>,
    %c1_53 = arith.constant 1 : index
    %c0_54 = arith.constant 0 : index
    %c0_55 = arith.constant 0 : index
    %118 = vector.load %arg14[%c1_53, %c0_54, %c0_55] : memref<2x16x128xf32, #tpu.memory_space<vmem>>, vector<1x16x128xf32>
    %119 = vector.shape_cast %118 : vector<1x16x128xf32> to vector<16x128xf32>
    %120 = vector.shape_cast %106 : vector<16x128xf32> to vector<1x16x128xf32>
    tpu.vector_store %arg14[%c1_53, %c0_54, %c0_55], %120 {strides = array<i32>} : memref<2x16x128xf32, #tpu.memory_space<vmem>>, vector<1x16x128xf32>,
    return
  }
  func.func @transform_0(%arg0: i32) -> (i32, i32) {
    %c0_i32 = arith.constant 0 : i32
    %c0_i32_0 = arith.constant 0 : i32
    return %arg0, %c0_i32 : i32, i32
  }
  func.func @transform_1(%arg0: i32) -> (i32, i32) {
    %c0_i32 = arith.constant 0 : i32
    %c0_i32_0 = arith.constant 0 : i32
    return %arg0, %c0_i32 : i32, i32
  }
  func.func @transform_2(%arg0: i32) -> (i32, i32, i32) {
    %c0_i32 = arith.constant 0 : i32
    %c0_i32_0 = arith.constant 0 : i32
    %c0_i32_1 = arith.constant 0 : i32
    return %c0_i32, %arg0, %c0_i32_0 : i32, i32, i32
  }
  func.func @transform_3(%arg0: i32) -> (i32, i32, i32) {
    %c0_i32 = arith.constant 0 : i32
    %c0_i32_0 = arith.constant 0 : i32
    %c0_i32_1 = arith.constant 0 : i32
    return %c0_i32, %arg0, %c0_i32_0 : i32, i32, i32
  }
  func.func @transform_4(%arg0: i32) -> (i32, i32, i32) {
    %c0_i32 = arith.constant 0 : i32
    %c0_i32_0 = arith.constant 0 : i32
    %c0_i32_1 = arith.constant 0 : i32
    return %arg0, %c0_i32, %c0_i32_0 : i32, i32, i32
  }
  func.func @transform_5(%arg0: i32) -> (i32, i32, i32) {
    %c0_i32 = arith.constant 0 : i32
    %c0_i32_0 = arith.constant 0 : i32
    %c0_i32_1 = arith.constant 0 : i32
    return %arg0, %c0_i32, %c0_i32_0 : i32, i32, i32
  }
  func.func @transform_6(%arg0: i32) -> (i32, i32) {
    %c0_i32 = arith.constant 0 : i32
    %c0_i32_0 = arith.constant 0 : i32
    %c0_i32_1 = arith.constant 0 : i32
    return %c0_i32, %c0_i32_0 : i32, i32
  }
  func.func @transform_7(%arg0: i32) -> (i32, i32) {
    %c0_i32 = arith.constant 0 : i32
    %c0_i32_0 = arith.constant 0 : i32
    %c0_i32_1 = arith.constant 0 : i32
    return %c0_i32, %c0_i32_0 : i32, i32
  }
  func.func @transform_8(%arg0: i32) -> (i32, i32) {
    %c0_i32 = arith.constant 0 : i32
    %c0_i32_0 = arith.constant 0 : i32
    %c0_i32_1 = arith.constant 0 : i32
    return %c0_i32, %c0_i32_0 : i32, i32
  }
  func.func @transform_9(%arg0: i32) -> (i32, i32) {
    %c0_i32 = arith.constant 0 : i32
    %c0_i32_0 = arith.constant 0 : i32
    %c0_i32_1 = arith.constant 0 : i32
    return %c0_i32, %c0_i32_0 : i32, i32
  }
  func.func @transform_10(%arg0: i32) -> (i32, i32) {
    %c0_i32 = arith.constant 0 : i32
    %c0_i32_0 = arith.constant 0 : i32
    %c0_i32_1 = arith.constant 0 : i32
    return %c0_i32, %c0_i32_0 : i32, i32
  }
  func.func @transform_11(%arg0: i32) -> (i32, i32) {
    %c0_i32 = arith.constant 0 : i32
    %c0_i32_0 = arith.constant 0 : i32
    %c0_i32_1 = arith.constant 0 : i32
    return %c0_i32, %c0_i32_0 : i32, i32
  }
  func.func @transform_12(%arg0: i32) -> (i32, i32, i32) {
    %c0_i32 = arith.constant 0 : i32
    %c0_i32_0 = arith.constant 0 : i32
    %c0_i32_1 = arith.constant 0 : i32
    return %c0_i32, %arg0, %c0_i32_0 : i32, i32, i32
  }
  func.func @transform_13(%arg0: i32) -> (i32, i32, i32) {
    %c0_i32 = arith.constant 0 : i32
    %c0_i32_0 = arith.constant 0 : i32
    %c0_i32_1 = arith.constant 0 : i32
    return %c0_i32, %arg0, %c0_i32_0 : i32, i32, i32
  }
}

module attributes {stable_mosaic.version = 11 : i64} {
  func.func @topdown_kernel(%arg0: i32, %arg1: memref<16x128xf32, #tpu.memory_space<vmem>>, %arg2: memref<16x128xf32, #tpu.memory_space<vmem>>, %arg3: memref<2x16x128xf32, #tpu.memory_space<vmem>>, %arg4: memref<2x16x128xf32, #tpu.memory_space<vmem>>, %arg5: memref<16x16x128xf32, #tpu.memory_space<vmem>>, %arg6: memref<16x16x128xf32, #tpu.memory_space<vmem>>, %arg7: memref<512x512xbf16, #tpu.memory_space<vmem>>, %arg8: memref<1x512xf32, #tpu.memory_space<vmem>>, %arg9: memref<256x640xbf16, #tpu.memory_space<vmem>>, %arg10: memref<1x640xf32, #tpu.memory_space<vmem>>, %arg11: memref<128x512xbf16, #tpu.memory_space<vmem>>, %arg12: memref<1x128xbf16, #tpu.memory_space<vmem>>, %arg13: memref<2x16x128xf32, #tpu.memory_space<vmem>>, %arg14: memref<2x16x128xf32, #tpu.memory_space<vmem>>) attributes {dimension_semantics = [#tpu.dimension_semantics<parallel>], iteration_bounds = array<i64: 1>, scalar_prefetch = 0 : i64, scratch_operands = 0 : i64, tpu.core_type = #tpu.core_type<tc>, window_params = [{transform_indices = @transform_0, window_bounds = array<i64: 16, 128>}, {transform_indices = @transform_1, window_bounds = array<i64: 16, 128>}, {transform_indices = @transform_2, window_bounds = array<i64: 2, 16, 128>}, {transform_indices = @transform_3, window_bounds = array<i64: 2, 16, 128>}, {transform_indices = @transform_4, window_bounds = array<i64: 16, 16, 128>}, {transform_indices = @transform_5, window_bounds = array<i64: 16, 16, 128>}, {pipeline_mode = #tpu.pipeline_mode<synchronous>, transform_indices = @transform_6, window_bounds = array<i64: 512, 512>}, {pipeline_mode = #tpu.pipeline_mode<synchronous>, transform_indices = @transform_7, window_bounds = array<i64: 1, 512>}, {pipeline_mode = #tpu.pipeline_mode<synchronous>, transform_indices = @transform_8, window_bounds = array<i64: 256, 640>}, {pipeline_mode = #tpu.pipeline_mode<synchronous>, transform_indices = @transform_9, window_bounds = array<i64: 1, 640>}, {pipeline_mode = #tpu.pipeline_mode<synchronous>, transform_indices = @transform_10, window_bounds = array<i64: 128, 512>}, {pipeline_mode = #tpu.pipeline_mode<synchronous>, transform_indices = @transform_11, window_bounds = array<i64: 1, 128>}, {transform_indices = @transform_12, window_bounds = array<i64: 2, 16, 128>}, {transform_indices = @transform_13, window_bounds = array<i64: 2, 16, 128>}]} {
    %c0 = arith.constant 0 : index
    %c0_0 = arith.constant 0 : index
    %c0_1 = arith.constant 0 : index
    %0 = vector.load %arg3[%c0, %c0_0, %c0_1] : memref<2x16x128xf32, #tpu.memory_space<vmem>>, vector<1x16x128xf32>
    %1 = vector.shape_cast %0 : vector<1x16x128xf32> to vector<16x128xf32>
    %c1 = arith.constant 1 : index
    %c0_2 = arith.constant 0 : index
    %c0_3 = arith.constant 0 : index
    %2 = vector.load %arg3[%c1, %c0_2, %c0_3] : memref<2x16x128xf32, #tpu.memory_space<vmem>>, vector<1x16x128xf32>
    %3 = vector.shape_cast %2 : vector<1x16x128xf32> to vector<16x128xf32>
    %4 = arith.truncf %3 : vector<16x128xf32> to vector<16x128xbf16>
    %c0_4 = arith.constant 0 : index
    %c0_5 = arith.constant 0 : index
    %5 = vector.load %arg2[%c0_4, %c0_5] : memref<16x128xf32, #tpu.memory_space<vmem>>, vector<16x128xf32>
    %6 = arith.truncf %5 : vector<16x128xf32> to vector<16x128xbf16>
    %c0_6 = arith.constant 0 : index
    %c0_7 = arith.constant 0 : index
    %7 = vector.load %arg1[%c0_6, %c0_7] : memref<16x128xf32, #tpu.memory_space<vmem>>, vector<16x128xf32>
    %8 = arith.truncf %7 : vector<16x128xf32> to vector<16x128xbf16>
    %9 = arith.truncf %1 : vector<16x128xf32> to vector<16x128xbf16>
    %10 = tpu.concatenate %4, %6, %8, %9 in 1 : vector<16x128xbf16>, vector<16x128xbf16>, vector<16x128xbf16>, vector<16x128xbf16> -> vector<16x512xbf16>
    %c0_8 = arith.constant 0 : index
    %c0_9 = arith.constant 0 : index
    %11 = vector.load %arg7[%c0_8, %c0_9] : memref<512x512xbf16, #tpu.memory_space<vmem>>, vector<512x512xbf16>
    %cst = arith.constant dense<0.000000e+00> : vector<16x512xf32>
    %12 = tpu.matmul %10, %11, %cst {dimension_numbers = #tpu.dot_dimension_numbers<[1], [0], [0], [1], [0, 0, 1, 1], [], []>} : vector<16x512xbf16>, vector<512x512xbf16>, vector<16x512xf32> -> vector<16x512xf32>
    %c0_10 = arith.constant 0 : index
    %c0_11 = arith.constant 0 : index
    %13 = vector.load %arg8[%c0_10, %c0_11] : memref<1x512xf32, #tpu.memory_space<vmem>>, vector<1x512xf32>
    %14 = vector.broadcast %13 : vector<1x512xf32> to vector<16x512xf32>
    %15 = arith.addf %12, %14 : vector<16x512xf32>
    %16 = vector.extract_strided_slice %15 {offsets = [0, 0], sizes = [16, 128], strides = [1, 1]} : vector<16x512xf32> to vector<16x128xf32>
    %17 = arith.negf %16 : vector<16x128xf32>
    %18 = math.exp %17 : vector<16x128xf32>
    %cst_12 = arith.constant 1.000000e+00 : f32
    %19 = vector.broadcast %cst_12 : f32 to vector<16x128xf32>
    %20 = arith.addf %19, %18 : vector<16x128xf32>
    %21 = arith.divf %19, %20 : vector<16x128xf32>
    %22 = vector.extract_strided_slice %15 {offsets = [0, 128], sizes = [16, 128], strides = [1, 1]} : vector<16x512xf32> to vector<16x128xf32>
    %23 = arith.negf %22 : vector<16x128xf32>
    %24 = math.exp %23 : vector<16x128xf32>
    %cst_13 = arith.constant 1.000000e+00 : f32
    %25 = vector.broadcast %cst_13 : f32 to vector<16x128xf32>
    %26 = arith.addf %25, %24 : vector<16x128xf32>
    %27 = arith.divf %25, %26 : vector<16x128xf32>
    %28 = vector.extract_strided_slice %15 {offsets = [0, 256], sizes = [16, 128], strides = [1, 1]} : vector<16x512xf32> to vector<16x128xf32>
    %29 = math.tanh %28 : vector<16x128xf32>
    %30 = vector.extract_strided_slice %15 {offsets = [0, 384], sizes = [16, 128], strides = [1, 1]} : vector<16x512xf32> to vector<16x128xf32>
    %31 = arith.negf %30 : vector<16x128xf32>
    %32 = math.exp %31 : vector<16x128xf32>
    %cst_14 = arith.constant 1.000000e+00 : f32
    %33 = vector.broadcast %cst_14 : f32 to vector<16x128xf32>
    %34 = arith.addf %33, %32 : vector<16x128xf32>
    %35 = arith.divf %33, %34 : vector<16x128xf32>
    %c0_15 = arith.constant 0 : index
    %c0_16 = arith.constant 0 : index
    %c0_17 = arith.constant 0 : index
    %36 = vector.load %arg4[%c0_15, %c0_16, %c0_17] : memref<2x16x128xf32, #tpu.memory_space<vmem>>, vector<1x16x128xf32>
    %37 = vector.shape_cast %36 : vector<1x16x128xf32> to vector<16x128xf32>
    %38 = arith.mulf %27, %37 : vector<16x128xf32>
    %39 = arith.mulf %21, %29 : vector<16x128xf32>
    %40 = arith.addf %38, %39 : vector<16x128xf32>
    %41 = math.tanh %40 : vector<16x128xf32>
    %42 = arith.mulf %35, %41 : vector<16x128xf32>
    %43 = arith.truncf %42 : vector<16x128xf32> to vector<16x128xbf16>
    %44 = tpu.concatenate %43, %4 in 1 : vector<16x128xbf16>, vector<16x128xbf16> -> vector<16x256xbf16>
    %c0_18 = arith.constant 0 : index
    %c0_19 = arith.constant 0 : index
    %45 = vector.load %arg9[%c0_18, %c0_19] : memref<256x640xbf16, #tpu.memory_space<vmem>>, vector<256x640xbf16>
    %cst_20 = arith.constant dense<0.000000e+00> : vector<16x640xf32>
    %46 = tpu.matmul %44, %45, %cst_20 {dimension_numbers = #tpu.dot_dimension_numbers<[1], [0], [0], [1], [0, 0, 1, 1], [], []>} : vector<16x256xbf16>, vector<256x640xbf16>, vector<16x640xf32> -> vector<16x640xf32>
    %c0_21 = arith.constant 0 : index
    %c0_22 = arith.constant 0 : index
    %47 = vector.load %arg10[%c0_21, %c0_22] : memref<1x640xf32, #tpu.memory_space<vmem>>, vector<1x640xf32>
    %48 = vector.broadcast %47 : vector<1x640xf32> to vector<16x640xf32>
    %49 = arith.addf %46, %48 : vector<16x640xf32>
    %50 = vector.extract_strided_slice %49 {offsets = [0, 0], sizes = [16, 128], strides = [1, 1]} : vector<16x640xf32> to vector<16x128xf32>
    %51 = vector.extract_strided_slice %49 {offsets = [0, 128], sizes = [16, 512], strides = [1, 1]} : vector<16x640xf32> to vector<16x512xf32>
    %c0_23 = arith.constant 0 : index
    %c0_24 = arith.constant 0 : index
    %c0_25 = arith.constant 0 : index
    %52 = vector.load %arg6[%c0_23, %c0_24, %c0_25] : memref<16x16x128xf32, #tpu.memory_space<vmem>>, vector<16x16x128xf32>
    %53 = vector.shape_cast %50 : vector<16x128xf32> to vector<16x1x128xf32>
    %54 = vector.broadcast %53 : vector<16x1x128xf32> to vector<16x16x128xf32>
    %55 = arith.addf %52, %54 : vector<16x16x128xf32>
    %56 = arith.truncf %55 : vector<16x16x128xf32> to vector<16x16x128xbf16>
    %57 = math.tanh %56 : vector<16x16x128xbf16>
    %c0_26 = arith.constant 0 : index
    %c0_27 = arith.constant 0 : index
    %58 = vector.load %arg12[%c0_26, %c0_27] : memref<1x128xbf16, #tpu.memory_space<vmem>>, vector<1x128xbf16>
    %59 = vector.shape_cast %58 : vector<1x128xbf16> to vector<1x1x128xbf16>
    %60 = vector.broadcast %59 : vector<1x1x128xbf16> to vector<16x16x128xbf16>
    %61 = arith.mulf %57, %60 : vector<16x16x128xbf16>
    %62 = arith.extf %61 : vector<16x16x128xbf16> to vector<16x16x128xf32>
    %cst_28 = arith.constant dense<0.000000e+00> : vector<16x16xf32>
    %63 = vector.multi_reduction <add>, %62, %cst_28 [2] : vector<16x16x128xf32> to vector<16x16xf32>
    %cst_29 = arith.constant dense<0xFF800000> : vector<16xf32>
    %64 = vector.multi_reduction <maximumf>, %63, %cst_29 [1] : vector<16x16xf32> to vector<16xf32>
    %65 = vector.shape_cast %64 : vector<16xf32> to vector<16x1xf32>
    %66 = vector.broadcast %65 : vector<16x1xf32> to vector<16x16xf32>
    %67 = arith.subf %63, %66 : vector<16x16xf32>
    %68 = math.exp %67 : vector<16x16xf32>
    %cst_30 = arith.constant dense<0.000000e+00> : vector<16xf32>
    %69 = vector.multi_reduction <add>, %68, %cst_30 [1] : vector<16x16xf32> to vector<16xf32>
    %70 = vector.shape_cast %69 : vector<16xf32> to vector<16x1xf32>
    %71 = vector.broadcast %70 : vector<16x1xf32> to vector<16x16xf32>
    %72 = arith.divf %68, %71 : vector<16x16xf32>
    %73 = vector.shape_cast %72 : vector<16x16xf32> to vector<16x16x1xf32>
    %c0_31 = arith.constant 0 : index
    %c0_32 = arith.constant 0 : index
    %c0_33 = arith.constant 0 : index
    %74 = vector.load %arg5[%c0_31, %c0_32, %c0_33] : memref<16x16x128xf32, #tpu.memory_space<vmem>>, vector<16x16x128xf32>
    %75 = vector.broadcast %73 : vector<16x16x1xf32> to vector<16x16x128xf32>
    %76 = arith.mulf %75, %74 : vector<16x16x128xf32>
    %cst_34 = arith.constant dense<0.000000e+00> : vector<16x128xf32>
    %77 = vector.multi_reduction <add>, %76, %cst_34 [1] : vector<16x16x128xf32> to vector<16x128xf32>
    %78 = arith.truncf %77 : vector<16x128xf32> to vector<16x128xbf16>
    %c0_35 = arith.constant 0 : index
    %c0_36 = arith.constant 0 : index
    %79 = vector.load %arg11[%c0_35, %c0_36] : memref<128x512xbf16, #tpu.memory_space<vmem>>, vector<128x512xbf16>
    %cst_37 = arith.constant dense<0.000000e+00> : vector<16x512xf32>
    %80 = tpu.matmul %78, %79, %cst_37 {dimension_numbers = #tpu.dot_dimension_numbers<[1], [0], [0], [1], [0, 0, 1, 1], [], []>} : vector<16x128xbf16>, vector<128x512xbf16>, vector<16x512xf32> -> vector<16x512xf32>
    %81 = arith.addf %51, %80 : vector<16x512xf32>
    %82 = vector.extract_strided_slice %81 {offsets = [0, 0], sizes = [16, 128], strides = [1, 1]} : vector<16x512xf32> to vector<16x128xf32>
    %83 = arith.negf %82 : vector<16x128xf32>
    %84 = math.exp %83 : vector<16x128xf32>
    %cst_38 = arith.constant 1.000000e+00 : f32
    %85 = vector.broadcast %cst_38 : f32 to vector<16x128xf32>
    %86 = arith.addf %85, %84 : vector<16x128xf32>
    %87 = arith.divf %85, %86 : vector<16x128xf32>
    %88 = vector.extract_strided_slice %81 {offsets = [0, 128], sizes = [16, 128], strides = [1, 1]} : vector<16x512xf32> to vector<16x128xf32>
    %89 = arith.negf %88 : vector<16x128xf32>
    %90 = math.exp %89 : vector<16x128xf32>
    %cst_39 = arith.constant 1.000000e+00 : f32
    %91 = vector.broadcast %cst_39 : f32 to vector<16x128xf32>
    %92 = arith.addf %91, %90 : vector<16x128xf32>
    %93 = arith.divf %91, %92 : vector<16x128xf32>
    %94 = vector.extract_strided_slice %81 {offsets = [0, 256], sizes = [16, 128], strides = [1, 1]} : vector<16x512xf32> to vector<16x128xf32>
    %95 = math.tanh %94 : vector<16x128xf32>
    %96 = vector.extract_strided_slice %81 {offsets = [0, 384], sizes = [16, 128], strides = [1, 1]} : vector<16x512xf32> to vector<16x128xf32>
    %97 = arith.negf %96 : vector<16x128xf32>
    %98 = math.exp %97 : vector<16x128xf32>
    %cst_40 = arith.constant 1.000000e+00 : f32
    %99 = vector.broadcast %cst_40 : f32 to vector<16x128xf32>
    %100 = arith.addf %99, %98 : vector<16x128xf32>
    %101 = arith.divf %99, %100 : vector<16x128xf32>
    %c1_41 = arith.constant 1 : index
    %c0_42 = arith.constant 0 : index
    %c0_43 = arith.constant 0 : index
    %102 = vector.load %arg4[%c1_41, %c0_42, %c0_43] : memref<2x16x128xf32, #tpu.memory_space<vmem>>, vector<1x16x128xf32>
    %103 = vector.shape_cast %102 : vector<1x16x128xf32> to vector<16x128xf32>
    %104 = arith.mulf %93, %103 : vector<16x128xf32>
    %105 = arith.mulf %87, %95 : vector<16x128xf32>
    %106 = arith.addf %104, %105 : vector<16x128xf32>
    %107 = math.tanh %106 : vector<16x128xf32>
    %108 = arith.mulf %101, %107 : vector<16x128xf32>
    %c0_44 = arith.constant 0 : index
    %c0_45 = arith.constant 0 : index
    %c0_46 = arith.constant 0 : index
    %109 = vector.load %arg13[%c0_44, %c0_45, %c0_46] : memref<2x16x128xf32, #tpu.memory_space<vmem>>, vector<1x16x128xf32>
    %110 = vector.shape_cast %109 : vector<1x16x128xf32> to vector<16x128xf32>
    %111 = vector.shape_cast %42 : vector<16x128xf32> to vector<1x16x128xf32>
    tpu.vector_store %arg13[%c0_44, %c0_45, %c0_46], %111 {strides = array<i32>} : memref<2x16x128xf32, #tpu.memory_space<vmem>>, vector<1x16x128xf32>,
    %c1_47 = arith.constant 1 : index
    %c0_48 = arith.constant 0 : index
    %c0_49 = arith.constant 0 : index
    %112 = vector.load %arg13[%c1_47, %c0_48, %c0_49] : memref<2x16x128xf32, #tpu.memory_space<vmem>>, vector<1x16x128xf32>
    %113 = vector.shape_cast %112 : vector<1x16x128xf32> to vector<16x128xf32>
    %114 = vector.shape_cast %108 : vector<16x128xf32> to vector<1x16x128xf32>
    tpu.vector_store %arg13[%c1_47, %c0_48, %c0_49], %114 {strides = array<i32>} : memref<2x16x128xf32, #tpu.memory_space<vmem>>, vector<1x16x128xf32>,
    %c0_50 = arith.constant 0 : index
    %c0_51 = arith.constant 0 : index
    %c0_52 = arith.constant 0 : index
    %115 = vector.load %arg14[%c0_50, %c0_51, %c0_52] : memref<2x16x128xf32, #tpu.memory_space<vmem>>, vector<1x16x128xf32>
    %116 = vector.shape_cast %115 : vector<1x16x128xf32> to vector<16x128xf32>
    %117 = vector.shape_cast %40 : vector<16x128xf32> to vector<1x16x128xf32>
    tpu.vector_store %arg14[%c0_50, %c0_51, %c0_52], %117 {strides = array<i32>} : memref<2x16x128xf32, #tpu.memory_space<vmem>>, vector<1x16x128xf32>,
    %c1_53 = arith.constant 1 : index
    %c0_54 = arith.constant 0 : index
    %c0_55 = arith.constant 0 : index
    %118 = vector.load %arg14[%c1_53, %c0_54, %c0_55] : memref<2x16x128xf32, #tpu.memory_space<vmem>>, vector<1x16x128xf32>
    %119 = vector.shape_cast %118 : vector<1x16x128xf32> to vector<16x128xf32>
    %120 = vector.shape_cast %106 : vector<16x128xf32> to vector<1x16x128xf32>
    tpu.vector_store %arg14[%c1_53, %c0_54, %c0_55], %120 {strides = array<i32>} : memref<2x16x128xf32, #tpu.memory_space<vmem>>, vector<1x16x128xf32>,
    return
  }
  func.func @transform_0(%arg0: i32) -> (i32, i32) {
    %c0_i32 = arith.constant 0 : i32
    %c0_i32_0 = arith.constant 0 : i32
    return %arg0, %c0_i32 : i32, i32
  }
  func.func @transform_1(%arg0: i32) -> (i32, i32) {
    %c0_i32 = arith.constant 0 : i32
    %c0_i32_0 = arith.constant 0 : i32
    return %arg0, %c0_i32 : i32, i32
  }
  func.func @transform_2(%arg0: i32) -> (i32, i32, i32) {
    %c0_i32 = arith.constant 0 : i32
    %c0_i32_0 = arith.constant 0 : i32
    %c0_i32_1 = arith.constant 0 : i32
    return %c0_i32, %arg0, %c0_i32_0 : i32, i32, i32
  }
  func.func @transform_3(%arg0: i32) -> (i32, i32, i32) {
    %c0_i32 = arith.constant 0 : i32
    %c0_i32_0 = arith.constant 0 : i32
    %c0_i32_1 = arith.constant 0 : i32
    return %c0_i32, %arg0, %c0_i32_0 : i32, i32, i32
  }
  func.func @transform_4(%arg0: i32) -> (i32, i32, i32) {
    %c0_i32 = arith.constant 0 : i32
    %c0_i32_0 = arith.constant 0 : i32
    %c0_i32_1 = arith.constant 0 : i32
    return %arg0, %c0_i32, %c0_i32_0 : i32, i32, i32
  }
  func.func @transform_5(%arg0: i32) -> (i32, i32, i32) {
    %c0_i32 = arith.constant 0 : i32
    %c0_i32_0 = arith.constant 0 : i32
    %c0_i32_1 = arith.constant 0 : i32
    return %arg0, %c0_i32, %c0_i32_0 : i32, i32, i32
  }
  func.func @transform_6(%arg0: i32) -> (i32, i32) {
    %c0_i32 = arith.constant 0 : i32
    %c0_i32_0 = arith.constant 0 : i32
    %c0_i32_1 = arith.constant 0 : i32
    return %c0_i32, %c0_i32_0 : i32, i32
  }
  func.func @transform_7(%arg0: i32) -> (i32, i32) {
    %c0_i32 = arith.constant 0 : i32
    %c0_i32_0 = arith.constant 0 : i32
    %c0_i32_1 = arith.constant 0 : i32
    return %c0_i32, %c0_i32_0 : i32, i32
  }
  func.func @transform_8(%arg0: i32) -> (i32, i32) {
    %c0_i32 = arith.constant 0 : i32
    %c0_i32_0 = arith.constant 0 : i32
    %c0_i32_1 = arith.constant 0 : i32
    return %c0_i32, %c0_i32_0 : i32, i32
  }
  func.func @transform_9(%arg0: i32) -> (i32, i32) {
    %c0_i32 = arith.constant 0 : i32
    %c0_i32_0 = arith.constant 0 : i32
    %c0_i32_1 = arith.constant 0 : i32
    return %c0_i32, %c0_i32_0 : i32, i32
  }
  func.func @transform_10(%arg0: i32) -> (i32, i32) {
    %c0_i32 = arith.constant 0 : i32
    %c0_i32_0 = arith.constant 0 : i32
    %c0_i32_1 = arith.constant 0 : i32
    return %c0_i32, %c0_i32_0 : i32, i32
  }
  func.func @transform_11(%arg0: i32) -> (i32, i32) {
    %c0_i32 = arith.constant 0 : i32
    %c0_i32_0 = arith.constant 0 : i32
    %c0_i32_1 = arith.constant 0 : i32
    return %c0_i32, %c0_i32_0 : i32, i32
  }
  func.func @transform_12(%arg0: i32) -> (i32, i32, i32) {
    %c0_i32 = arith.constant 0 : i32
    %c0_i32_0 = arith.constant 0 : i32
    %c0_i32_1 = arith.constant 0 : i32
    return %c0_i32, %arg0, %c0_i32_0 : i32, i32, i32
  }
  func.func @transform_13(%arg0: i32) -> (i32, i32, i32) {
    %c0_i32 = arith.constant 0 : i32
    %c0_i32_0 = arith.constant 0 : i32
    %c0_i32_1 = arith.constant 0 : i32
    return %c0_i32, %arg0, %c0_i32_0 : i32, i32, i32
  }
}

</mosaic_0001>

<bundles_post_ra>
// kernel: tpu_custom_call.1
= control target key start
LH: loop header
LB: loop body
LE: loop exit
PB: predicated region body
PF: predicated region fallthrough
CT: control target
= control target key end

     0   :  { %19 = vsyncpa [#allocation3], 0  ;;  %s5878_s0 = inlined_call_operand.hbm [shape: f32[16,128], index: 0, kind: input, shape index: {}]   ;;  %s5879_s1 = inlined_call_operand.hbm [shape: f32[16,128], index: 1, kind: input, shape index: {}]   ;;  %s5880_s2 = inlined_call_operand.hbm [shape: f32[2,16,128], index: 2, kind: input, shape index: {}]   ;;  %s5881_s3 = inlined_call_operand.hbm [shape: f32[2,16,128], index: 3, kind: input, shape index: {}]   ;;  %s5882_s4 = inlined_call_operand.hbm [shape: f32[16,16,128], index: 4, kind: input, shape index: {}]   ;;  %s5883_s5 = inlined_call_operand.hbm [shape: f32[16,16,128], index: 5, kind: input, shape index: {}]   ;;  %s5884_s6 = inlined_call_operand.hbm [shape: bf16[512,512], index: 6, kind: input, shape index: {}]   ;;  %s5885_s7 = inlined_call_operand.vmem [shape: f32[1,512], index: 7, kind: input, shape index: {}]   ;;  %s5886_s8 = inlined_call_operand.hbm [shape: bf16[256,640], index: 8, kind: input, shape index: {}]   ;;  %s5887_s9 = inlined_call_operand.vmem [shape: f32[1,640], index: 9, kind: input, shape index: {}]   ;;  %s5888_s10 = inlined_call_operand.hbm [shape: bf16[128,512], index: 10, kind: input, shape index: {}]   ;;  %s5889_s11 = inlined_call_operand.vmem [shape: bf16[1,128], index: 11, kind: input, shape index: {}]   ;;  %s5890_s12 = inlined_call_operand.hbm [shape: f32[2,16,128], index: 12, kind: output, shape index: {0}]   ;;  %s5891_s13 = inlined_call_operand.hbm [shape: f32[2,16,128], index: 13, kind: output, shape index: {1}]  }
   0x1   :  { %20 = vsyncpa [#allocation6], 0 }
   0x2   :  { %21 = vsyncpa [#allocation9], 0 }
   0x3   :  { %22 = vsyncpa [#allocation12], 0 }
   0x4   :  { %23 = vsyncpa [#allocation15], 0 }
   0x5   :  { %24 = vsyncpa [#allocation4], 0 }
   0x6   :  { %25 = vsyncpa [#allocation19], 0  ;;  %s4964_s25 = smov [#allocation5]   ;;  %s4965_s27 = smov [#allocation8]  }
   0x7   :  { %s43_s26 = sshll.u32 %s4964_s25, 4  ;;  %s67_s28 = sshll.u32 %s4965_s27, 4  ;;  %s44_s26 = int_to_ptr.vmem [resolvable:$true] %s43_s26  ;;  %s5053_s28 = int_to_ptr.vmem [resolvable:$true] %s67_s28 }
   0x8   :  { %s4708_s14 = scalar_lea.hbm %s5879_s1, 256 }
   0x9   :  { %p4709_p0 = scmp.ne.s32.totalorder %s5879_s1, %s4708_s14  ;;  %p4712_p1 = scmp.lt.u32.totalorder %s4708_s14, %s5879_s1 }
   0xb   :  { %p4714_p2 = pnand %p4712_p1, %p4709_p0 }
   0xd   :  { %4717 = shalt.err (!%p4714_p2)
}
   0xe   :  { %s4718_s19 = scalar_lea.vmem %s44_s26, 256  ;;  %p4723_p4 = scmp.lt.s32.totalorder %s44_s26, %s44_s26 }
   0xf   :  { %p4719_p3 = scmp.ne.s32.totalorder %s44_s26, %s4718_s19  ;;  %p4724_p5 = scmp.lt.s32.totalorder %s4718_s19, %s4718_s19 }
  0x11   :  { %p4725_p6 = por %p4724_p5, %p4723_p4 }
  0x13   :  { %p4726_p7 = pnand %p4725_p6, %p4719_p3 }
  0x15   :  { %4729 = shalt.err (!%p4726_p7)
}
  0x16   :  { %s4966_s20 = smov 128   ;;  %s4967_s21 = smov 8  }
  0x17   :  { %49 = dma.hbm_to_vmem [thread:$0]  %s5879_s1, 256, %s44_s26, [#allocation6], %s4966_s20, %s4966_s20, %s4967_s21  }
  0x18   :  { %s4730_s27 = scalar_lea.hbm %s5881_s3, 512 }
  0x19   :  { %p4731_p8 = scmp.ne.s32.totalorder %s5881_s3, %s4730_s27  ;;  %p4734_p9 = scmp.lt.u32.totalorder %s4730_s27, %s5881_s3 }
  0x1b   :  { %p4736_p10 = pnand %p4734_p9, %p4731_p8 }
  0x1d   :  { %4739 = shalt.err (!%p4736_p10)
}
  0x1e   :  { %s4740_s16 = scalar_lea.vmem %s5053_s28, 512  ;;  %p4745_p12 = scmp.lt.s32.totalorder %s5053_s28, %s5053_s28 }
  0x1f   :  { %p4741_p11 = scmp.ne.s32.totalorder %s5053_s28, %s4740_s16  ;;  %p4746_p13 = scmp.lt.s32.totalorder %s4740_s16, %s4740_s16 }
  0x21   :  { %p4747_p0 = por %p4746_p13, %p4745_p12 }
  0x23   :  { %p4748_p1 = pnand %p4747_p0, %p4741_p11 }
  0x25   :  { %4751 = shalt.err (!%p4748_p1)
}
  0x26   :  { %73 = dma.hbm_to_vmem [thread:$0]  %s5881_s3, 512, %s5053_s28, [#allocation9], %s4966_s20, %s4966_s20, %s4967_s21  }
  0x27   :  { %s4968_s17 = smov [#allocation11]   ;;  %s4969_s19 = smov [#allocation14]  }
  0x28   :  { %s91_s18 = sshll.u32 %s4968_s17, 4  ;;  %s117_s22 = sshll.u32 %s4969_s19, 4  ;;  %s92_s18 = int_to_ptr.vmem [resolvable:$true] %s91_s18  ;;  %s5090_s22 = int_to_ptr.vmem [resolvable:$true] %s117_s22 }
  0x29   :  { %s4752_s25 = scalar_lea.hbm %s5883_s5, 4096 }
  0x2a   :  { %p4753_p2 = scmp.ne.s32.totalorder %s5883_s5, %s4752_s25  ;;  %p4756_p3 = scmp.lt.u32.totalorder %s4752_s25, %s5883_s5 }
  0x2c   :  { %p4758_p4 = pnand %p4756_p3, %p4753_p2 }
  0x2e   :  { %4761 = shalt.err (!%p4758_p4)
}
  0x2f   :  { %s4762_s3 = scalar_lea.vmem %s92_s18, 4096  ;;  %p4767_p6 = scmp.lt.s32.totalorder %s92_s18, %s92_s18 }
  0x30   :  { %p4763_p5 = scmp.ne.s32.totalorder %s92_s18, %s4762_s3  ;;  %p4768_p7 = scmp.lt.s32.totalorder %s4762_s3, %s4762_s3 }
  0x32   :  { %p4769_p8 = por %p4768_p7, %p4767_p6 }
  0x34   :  { %p4770_p9 = pnand %p4769_p8, %p4763_p5 }
  0x36   :  { %4773 = shalt.err (!%p4770_p9)
}
  0x37   :  { %97 = dma.hbm_to_vmem [thread:$0]  %s5883_s5, 4096, %s92_s18, [#allocation12], %s4966_s20, %s4966_s20, %s4967_s21  }
  0x38   :  { %s4774_s26 = scalar_lea.hbm %s5886_s8, 10240 }
  0x39   :  { %p4775_p10 = scmp.ne.s32.totalorder %s5886_s8, %s4774_s26  ;;  %p4778_p11 = scmp.lt.u32.totalorder %s4774_s26, %s5886_s8 }
  0x3b   :  { %p4780_p12 = pnand %p4778_p11, %p4775_p10 }
  0x3d   :  { %4783 = shalt.err (!%p4780_p12)
}
  0x3e   :  { %s4784_s25 = scalar_lea.vmem %s5090_s22, 10240  ;;  %p4789_p0 = scmp.lt.s32.totalorder %s5090_s22, %s5090_s22 }
  0x3f   :  { %p4785_p13 = scmp.ne.s32.totalorder %s5090_s22, %s4784_s25  ;;  %p4790_p1 = scmp.lt.s32.totalorder %s4784_s25, %s4784_s25 }
  0x41   :  { %p4791_p2 = por %p4790_p1, %p4789_p0 }
  0x43   :  { %p4792_p3 = pnand %p4791_p2, %p4785_p13 }
  0x45   :  { %4795 = shalt.err (!%p4792_p3)
}
  0x46   :  { %s4970_s5 = smov 320   ;;  %s4971_s18 = smov 20  }
  0x47   :  { %123 = dma.hbm_to_vmem [thread:$0]  %s5886_s8, 10240, %s5090_s22, [#allocation15], %s4970_s5, %s4970_s5, %s4971_s18  }
  0x48   :  { %s4972_s30 = smov [#allocation2]   ;;  %s4973_s3 = smov [#allocation7]  }
  0x49   :  { %s31_s14 = sshll.u32 %s4972_s30, 4  ;;  %s55_s28 = sshll.u32 %s4973_s3, 4  ;;  %s32_s14 = int_to_ptr.vmem [resolvable:$true] %s31_s14  ;;  %s5124_s28 = int_to_ptr.vmem [resolvable:$true] %s55_s28 }
  0x4a   :  { %s4796_s1 = scalar_lea.hbm %s5878_s0, 256 }
  0x4b   :  { %p4797_p4 = scmp.ne.s32.totalorder %s5878_s0, %s4796_s1  ;;  %p4800_p5 = scmp.lt.u32.totalorder %s4796_s1, %s5878_s0 }
  0x4d   :  { %p4802_p6 = pnand %p4800_p5, %p4797_p4 }
  0x4f   :  { %4805 = shalt.err (!%p4802_p6)
}
  0x50   :  { %s4806_s8 = scalar_lea.vmem %s32_s14, 256  ;;  %p4811_p8 = scmp.lt.s32.totalorder %s32_s14, %s32_s14 }
  0x51   :  { %p4807_p7 = scmp.ne.s32.totalorder %s32_s14, %s4806_s8  ;;  %p4812_p9 = scmp.lt.s32.totalorder %s4806_s8, %s4806_s8 }
  0x53   :  { %p4813_p10 = por %p4812_p9, %p4811_p8 }
  0x55   :  { %p4814_p11 = pnand %p4813_p10, %p4807_p7 }
  0x57   :  { %4817 = shalt.err (!%p4814_p11)
}
  0x58   :  { %37 = dma.hbm_to_vmem [thread:$0]  %s5878_s0, 256, %s32_s14, [#allocation3], %s4966_s20, %s4966_s20, %s4967_s21  }
  0x59   :  { %s4818_s18 = scalar_lea.hbm %s5880_s2, 512 }
  0x5a   :  { %p4819_p12 = scmp.ne.s32.totalorder %s5880_s2, %s4818_s18  ;;  %p4822_p13 = scmp.lt.u32.totalorder %s4818_s18, %s5880_s2 }
  0x5c   :  { %p4824_p0 = pnand %p4822_p13, %p4819_p12 }
  0x5e   :  { %4827 = shalt.err (!%p4824_p0)
}
  0x5f   :  { %s4828_s15 = scalar_lea.vmem %s5124_s28, 512  ;;  %p4833_p2 = scmp.lt.s32.totalorder %s5124_s28, %s5124_s28 }
  0x60   :  { %p4829_p1 = scmp.ne.s32.totalorder %s5124_s28, %s4828_s15  ;;  %p4834_p3 = scmp.lt.s32.totalorder %s4828_s15, %s4828_s15 }
  0x62   :  { %p4835_p4 = por %p4834_p3, %p4833_p2 }
  0x64   :  { %p4836_p5 = pnand %p4835_p4, %p4829_p1 }
  0x66   :  { %4839 = shalt.err (!%p4836_p5)
}
  0x67   :  { %61 = dma.hbm_to_vmem [thread:$0]  %s5880_s2, 512, %s5124_s28, [#allocation6], %s4966_s20, %s4966_s20, %s4967_s21  }
  0x68   :  { %s4974_s16 = smov [#allocation10]   ;;  %s4975_s26 = smov [#allocation13]  }
  0x69   :  { %s79_s1 = sshll.u32 %s4974_s16, 4  ;;  %s103_s17 = sshll.u32 %s4975_s26, 4  ;;  %s80_s1 = int_to_ptr.vmem [resolvable:$true] %s79_s1  ;;  %s5161_s17 = int_to_ptr.vmem [resolvable:$true] %s103_s17 }
  0x6a   :  { %s4840_s8 = scalar_lea.hbm %s5882_s4, 4096 }
  0x6b   :  { %p4841_p6 = scmp.ne.s32.totalorder %s5882_s4, %s4840_s8  ;;  %p4844_p7 = scmp.lt.u32.totalorder %s4840_s8, %s5882_s4 }
  0x6d   :  { %p4846_p8 = pnand %p4844_p7, %p4841_p6 }
  0x6f   :  { %4849 = shalt.err (!%p4846_p8)
}
  0x70   :  { %s4850_s2 = scalar_lea.vmem %s80_s1, 4096  ;;  %p4855_p10 = scmp.lt.s32.totalorder %s80_s1, %s80_s1 }
  0x71   :  { %p4851_p9 = scmp.ne.s32.totalorder %s80_s1, %s4850_s2  ;;  %p4856_p11 = scmp.lt.s32.totalorder %s4850_s2, %s4850_s2 }
  0x73   :  { %p4857_p12 = por %p4856_p11, %p4855_p10 }
  0x75   :  { %p4858_p13 = pnand %p4857_p12, %p4851_p9 }
  0x77   :  { %4861 = shalt.err (!%p4858_p13)
}
  0x78   :  { %85 = dma.hbm_to_vmem [thread:$0]  %s5882_s4, 4096, %s80_s1, [#allocation9], %s4966_s20, %s4966_s20, %s4967_s21  }
  0x79   :  { %s4862_s30 = scalar_lea.hbm %s5884_s6, 16384 }
  0x7a   :  { %p4863_p0 = scmp.ne.s32.totalorder %s5884_s6, %s4862_s30  ;;  %p4866_p1 = scmp.lt.u32.totalorder %s4862_s30, %s5884_s6 }
  0x7c   :  { %p4868_p2 = pnand %p4866_p1, %p4863_p0 }
  0x7e   :  { %4871 = shalt.err (!%p4868_p2)
}
  0x7f   :  { %s4872_s16 = scalar_lea.vmem %s5161_s17, 16384  ;;  %p4877_p4 = scmp.lt.s32.totalorder %s5161_s17, %s5161_s17 }
  0x80   :  { %p4873_p3 = scmp.ne.s32.totalorder %s5161_s17, %s4872_s16  ;;  %p4878_p5 = scmp.lt.s32.totalorder %s4872_s16, %s4872_s16 }
  0x82   :  { %p4879_p6 = por %p4878_p5, %p4877_p4 }
  0x84   :  { %p4880_p7 = pnand %p4879_p6, %p4873_p3 }
  0x86   :  { %4883 = shalt.err (!%p4880_p7)
}
  0x87   :  { %s4976_s4 = smov 256   ;;  %s4977_s1 = smov 16  }
  0x88   :  { %109 = dma.hbm_to_vmem [thread:$0]  %s5884_s6, 16384, %s5161_s17, [#allocation12], %s4976_s4, %s4976_s4, %s4977_s1  }
  0x89   :  { %s4978_s23 = smov [#allocation16]   ;;  %s4884_s25 = scalar_lea.hbm %s5888_s10, 4096 }
  0x8a   :  { %s131_s8 = sshll.u32 %s4978_s23, 4  ;;  %p4885_p8 = scmp.ne.s32.totalorder %s5888_s10, %s4884_s25  ;;  %s132_s8 = int_to_ptr.vmem [resolvable:$true] %s131_s8 }
  0x8b   :  { %p4888_p9 = scmp.lt.u32.totalorder %s4884_s25, %s5888_s10 }
  0x8d   :  { %p4890_p10 = pnand %p4888_p9, %p4885_p8 }
  0x8f   :  { %4893 = shalt.err (!%p4890_p10)
}
  0x90   :  { %s4894_s27 = scalar_lea.vmem %s132_s8, 4096  ;;  %p4899_p12 = scmp.lt.s32.totalorder %s132_s8, %s132_s8 }
  0x91   :  { %p4895_p11 = scmp.ne.s32.totalorder %s132_s8, %s4894_s27  ;;  %p4900_p13 = scmp.lt.s32.totalorder %s4894_s27, %s4894_s27 }
  0x93   :  { %p4901_p0 = por %p4900_p13, %p4899_p12 }
  0x95   :  { %p4902_p1 = pnand %p4901_p0, %p4895_p11 }
  0x97   :  { %4905 = shalt.err (!%p4902_p1)
}
  0x98   :  { %137 = dma.hbm_to_vmem [thread:$0]  %s5888_s10, 4096, %s132_s8, [#allocation15], %s4976_s4, %s4976_s4, %s4977_s1  }
  0x99   :  { %4950 = dma.done.wait [#allocation3], 256  }
  0x9a   :  { %4951 = vsyncadd [#allocation3], 4294967040 }
  0x9b   :  { %4952 = dma.done.wait [#allocation6], 768  }
  0x9c   :  { %4953 = vsyncadd [#allocation6], 4294966528 }
  0x9d   :  { %4954 = dma.done.wait [#allocation9], 4608  }
  0x9e   :  { %4955 = vsyncadd [#allocation9], 4294962688 }
  0x9f   :  { %4956 = dma.done.wait [#allocation12], 20480  }
  0xa0   :  { %4957 = vsyncadd [#allocation12], 4294946816 }
  0xa1   :  { %4958 = dma.done.wait [#allocation15], 14336  }
  0xa2   :  { %4959 = vsyncadd [#allocation15], 4294952960  ;;  %v4163_v0 = vld [vmem:[#allocation13 + $0x4] ss:$16 sps:$4 sm:$0xff]   ;;  %v4165_v1 = vld [vmem:[#allocation13 + $0xc] ss:$16 sps:$4 sm:$0xff]  }
  0xa3   :  { %971 = vmatprep.subr.bf16.mxu0 %v4163_v0  ;;  %v4167_v2 = vld [vmem:[#allocation13] ss:$16 sps:$4 sm:$0xff]   ;;  %v4168_v3 = vld [vmem:[#allocation13 + $0x8] ss:$16 sps:$4 sm:$0xff]   ;;  %1057 = vmatprep.subr.bf16.mxu1 %v4165_v1  ;;  %v4169_v4 = vld [vmem:[#allocation13 + $0x24] ss:$16 sps:$4 sm:$0xff]  }
  0xa4   :  { %972 = vmatpush1.bf16.msra.mxu0 %v4167_v2  ;;  %1058 = vmatpush1.bf16.msra.mxu1 %v4168_v3  ;;  %v4171_v5 = vld [vmem:[#allocation13 + $0x2c] ss:$16 sps:$4 sm:$0xff]   ;;  %v4173_v6 = vld [vmem:[#allocation13 + $0x20] ss:$16 sps:$4 sm:$0xff]   ;;  %v4174_v7 = vld [vmem:[#allocation13 + $0x28] ss:$16 sps:$4 sm:$0xff]  }
  0xa5   :  { %973 = vmatprep.subr.bf16.mxu0 %v4169_v4  ;;  %1059 = vmatprep.subr.bf16.mxu1 %v4171_v5  ;;  %v4175_v8 = vld [vmem:[#allocation13 + $0x44] ss:$16 sps:$4 sm:$0xff]   ;;  %v4177_v9 = vld [vmem:[#allocation13 + $0x4c] ss:$16 sps:$4 sm:$0xff]   ;;  %v4179_v10 = vld [vmem:[#allocation13 + $0x40] ss:$16 sps:$4 sm:$0xff]  }
  0xa6   :  { %v4180_v11 = vld [vmem:[#allocation13 + $0x48] ss:$16 sps:$4 sm:$0xff]   ;;  %v4181_v12 = vld [vmem:[#allocation13 + $0x64] ss:$16 sps:$4 sm:$0xff]   ;;  %v4183_v13 = vld [vmem:[#allocation13 + $0x6c] ss:$16 sps:$4 sm:$0xff]  }
  0xa7   :  { %v4185_v14 = vld [vmem:[#allocation13 + $0x60] ss:$16 sps:$4 sm:$0xff]   ;;  %v4186_v15 = vld [vmem:[#allocation13 + $0x68] ss:$16 sps:$4 sm:$0xff]   ;;  %v4187_v16 = vld [vmem:[#allocation13 + $0x84] ss:$16 sps:$4 sm:$0xff]  }
  0xa8   :  { %974 = vmatpush1.bf16.msra.mxu0 %v4173_v6  ;;  %1060 = vmatpush1.bf16.msra.mxu1 %v4174_v7  ;;  %v4189_v17 = vld [vmem:[#allocation13 + $0x8c] ss:$16 sps:$4 sm:$0xff]   ;;  %v4191_v18 = vld [vmem:[#allocation13 + $0x80] ss:$16 sps:$4 sm:$0xff]   ;;  %v4192_v19 = vld [vmem:[#allocation13 + $0x88] ss:$16 sps:$4 sm:$0xff]  }
  0xa9   :  { %975 = vmatprep.subr.bf16.mxu0 %v4175_v8  ;;  %1061 = vmatprep.subr.bf16.mxu1 %v4177_v9  ;;  %v4193_v20 = vld [vmem:[#allocation13 + $0xa4] ss:$16 sps:$4 sm:$0xff]   ;;  %v4195_v21 = vld [vmem:[#allocation13 + $0xac] ss:$16 sps:$4 sm:$0xff]   ;;  %v4197_v22 = vld [vmem:[#allocation13 + $0xa0] ss:$16 sps:$4 sm:$0xff]  }
  0xaa   :  { %v4198_v23 = vld [vmem:[#allocation13 + $0xa8] ss:$16 sps:$4 sm:$0xff]   ;;  %v4199_v24 = vld [vmem:[#allocation13 + $0xc4] ss:$16 sps:$4 sm:$0xff]   ;;  %v4201_v25 = vld [vmem:[#allocation13 + $0xcc] ss:$16 sps:$4 sm:$0xff]  }
  0xab   :  { %v4203_v26 = vld [vmem:[#allocation13 + $0xc0] ss:$16 sps:$4 sm:$0xff]   ;;  %v4204_v27 = vld [vmem:[#allocation13 + $0xc8] ss:$16 sps:$4 sm:$0xff]   ;;  %v4205_v28 = vld [vmem:[#allocation13 + $0xe4] ss:$16 sps:$4 sm:$0xff]  }
  0xac   :  { %976 = vmatpush1.bf16.msra.mxu0 %v4179_v10  ;;  %1062 = vmatpush1.bf16.msra.mxu1 %v4180_v11  ;;  %v4207_v29 = vld [vmem:[#allocation13 + $0xec] ss:$16 sps:$4 sm:$0xff]   ;;  %v4209_v30 = vld [vmem:[#allocation13 + $0xe0] ss:$16 sps:$4 sm:$0xff]   ;;  %v4210_v31 = vld [vmem:[#allocation13 + $0xe8] ss:$16 sps:$4 sm:$0xff]  }
  0xad   :  { %977 = vmatprep.subr.bf16.mxu0 %v4181_v12  ;;  %1063 = vmatprep.subr.bf16.mxu1 %v4183_v13  ;;  %v4211_v32 = vld [vmem:[#allocation13 + $0x104] ss:$16 sps:$4 sm:$0xff]   ;;  %v4213_v33 = vld [vmem:[#allocation13 + $0x10c] ss:$16 sps:$4 sm:$0xff]   ;;  %v4215_v34 = vld [vmem:[#allocation13 + $0x100] ss:$16 sps:$4 sm:$0xff]  }
  0xae   :  { %v4216_v35 = vld [vmem:[#allocation13 + $0x108] ss:$16 sps:$4 sm:$0xff]   ;;  %v4217_v36 = vld [vmem:[#allocation13 + $0x124] ss:$16 sps:$4 sm:$0xff]   ;;  %v4219_v37 = vld [vmem:[#allocation13 + $0x12c] ss:$16 sps:$4 sm:$0xff]  }
  0xaf   :  { %v4221_v38 = vld [vmem:[#allocation13 + $0x120] ss:$16 sps:$4 sm:$0xff]   ;;  %v4222_v39 = vld [vmem:[#allocation13 + $0x128] ss:$16 sps:$4 sm:$0xff]   ;;  %v4223_v40 = vld [vmem:[#allocation13 + $0x144] ss:$16 sps:$4 sm:$0xff]  }
  0xb0   :  { %978 = vmatpush1.bf16.msra.mxu0 %v4185_v14  ;;  %1064 = vmatpush1.bf16.msra.mxu1 %v4186_v15  ;;  %v4225_v41 = vld [vmem:[#allocation13 + $0x14c] ss:$16 sps:$4 sm:$0xff]   ;;  %v4227_v42 = vld [vmem:[#allocation13 + $0x140] ss:$16 sps:$4 sm:$0xff]   ;;  %v4228_v43 = vld [vmem:[#allocation13 + $0x148] ss:$16 sps:$4 sm:$0xff]  }
  0xb1   :  { %979 = vmatprep.subr.bf16.mxu0 %v4187_v16  ;;  %1065 = vmatprep.subr.bf16.mxu1 %v4189_v17  ;;  %v4229_v44 = vld [vmem:[#allocation13 + $0x164] ss:$16 sps:$4 sm:$0xff]   ;;  %v4231_v45 = vld [vmem:[#allocation13 + $0x16c] ss:$16 sps:$4 sm:$0xff]   ;;  %v4233_v48 = vld [vmem:[#allocation13 + $0x160] ss:$16 sps:$4 sm:$0xff]  }
  0xb2   :  { %v174_v46 = vld [vmem:[#allocation5] sm:$0xff]  ;;  %v175_v47 = vld [vmem:[#allocation5 + $0x8] sm:$0xff]  ;;  %vm2299_vm0 = vcmask 130112   ;;  %vm2436_vm1 = vcmask 1041409   ;;  %vm2438_vm2 = vcmask 1042434   ;;  %vm2440_vm3 = vcmask 1043459  }
  0xb3   :  { %v4234_v49 = vld [vmem:[#allocation13 + $0x168] ss:$16 sps:$4 sm:$0xff]   ;;  %v176_v50 = vpack.c.bf16 %v175_v47, %v174_v46  ;;  %v4235_v51 = vld [vmem:[#allocation13 + $0x184] ss:$16 sps:$4 sm:$0xff]   ;;  %v4237_v52 = vld [vmem:[#allocation13 + $0x18c] ss:$16 sps:$4 sm:$0xff]  }
  0xb4   :  { %980 = vmatpush1.bf16.msra.mxu0 %v4191_v18  ;;  %1066 = vmatpush1.bf16.msra.mxu1 %v4192_v19  ;;  %v4239_v53 = vld [vmem:[#allocation13 + $0x180] ss:$16 sps:$4 sm:$0xff]   ;;  %v4240_v54 = vld [vmem:[#allocation13 + $0x188] ss:$16 sps:$4 sm:$0xff]   ;;  %v4241_v55 = vld [vmem:[#allocation13 + $0x1a4] ss:$16 sps:$4 sm:$0xff]  }
  0xb5   :  { %981 = vmatprep.subr.bf16.mxu0 %v4193_v20  ;;  %1067 = vmatprep.subr.bf16.mxu1 %v4195_v21  ;;  %v4243_v56 = vld [vmem:[#allocation13 + $0x1ac] ss:$16 sps:$4 sm:$0xff]   ;;  %v4245_v57 = vld [vmem:[#allocation13 + $0x1a0] ss:$16 sps:$4 sm:$0xff]   ;;  %v4246_v58 = vld [vmem:[#allocation13 + $0x1a8] ss:$16 sps:$4 sm:$0xff]  }
  0xb6   :  { %1003 = vmatprep.mubr.bf16.mxu0 %v176_v50  ;;  %1089 = vmatprep.mubr.bf16.mxu1 %v176_v50  ;;  %v4247_v59 = vld [vmem:[#allocation13 + $0x1c4] ss:$16 sps:$4 sm:$0xff]   ;;  %v4249_v60 = vld [vmem:[#allocation13 + $0x1cc] ss:$16 sps:$4 sm:$0xff]   ;;  %v4251_v61 = vld [vmem:[#allocation13 + $0x1c0] ss:$16 sps:$4 sm:$0xff]  }
  0xb7   :  { %v4252_v62 = vld [vmem:[#allocation13 + $0x1c8] ss:$16 sps:$4 sm:$0xff]   ;;  %v4253_v63 = vld [vmem:[#allocation13 + $0x1e4] ss:$16 sps:$4 sm:$0xff]   ;;  %v4255_v0 = vld [vmem:[#allocation13 + $0x1ec] ss:$16 sps:$4 sm:$0xff]  }
  0xb8   :  { %982 = vmatpush1.bf16.msra.mxu0 %v4197_v22  ;;  %1068 = vmatpush1.bf16.msra.mxu1 %v4198_v23  ;;  %v4257_v1 = vld [vmem:[#allocation13 + $0x1e0] ss:$16 sps:$4 sm:$0xff]   ;;  %v4258_v2 = vld [vmem:[#allocation13 + $0x1e8] ss:$16 sps:$4 sm:$0xff]   ;;  %v4261_v3 = vld [vmem:[#allocation13 + $0x204] ss:$16 sps:$4 sm:$0xff]  }
  0xb9   :  { %983 = vmatprep.subr.bf16.mxu0 %v4199_v24  ;;  %1069 = vmatprep.subr.bf16.mxu1 %v4201_v25  ;;  %v171_v4 = vld [vmem:[#allocation7 + $0x10] sm:$0xff]  ;;  %v172_v5 = vld [vmem:[#allocation7 + $0x18] sm:$0xff]  ;;  %vm2442_vm4 = vcmask 1044484   ;;  %vm2444_vm5 = vcmask 1045509   ;;  %vm2446_vm6 = vcmask 1046534   ;;  %vm2448_vm7 = vcmask 1047559  }
  0xba   :  { %v4264_v6 = vld [vmem:[#allocation13 + $0x20c] ss:$16 sps:$4 sm:$0xff]   ;;  %v4259_v7 = vld [vmem:[#allocation13 + $0x200] ss:$16 sps:$4 sm:$0xff]   ;;  %v4262_v8 = vld [vmem:[#allocation13 + $0x208] ss:$16 sps:$4 sm:$0xff]   ;;  %v5207_v9 = vpack.c.bf16 %v172_v5, %v171_v4 }
  0xbb   :  { %v4267_v10 = vld [vmem:[#allocation13 + $0x224] ss:$16 sps:$4 sm:$0xff]   ;;  %v4270_v11 = vld [vmem:[#allocation13 + $0x22c] ss:$16 sps:$4 sm:$0xff]   ;;  %v4265_v12 = vld [vmem:[#allocation13 + $0x220] ss:$16 sps:$4 sm:$0xff]  }
  0xbc   :  { %984 = vmatpush1.bf16.msra.mxu0 %v4203_v26  ;;  %1070 = vmatpush1.bf16.msra.mxu1 %v4204_v27  ;;  %v4268_v13 = vld [vmem:[#allocation13 + $0x228] ss:$16 sps:$4 sm:$0xff]   ;;  %v4273_v14 = vld [vmem:[#allocation13 + $0x244] ss:$16 sps:$4 sm:$0xff]   ;;  %v4276_v15 = vld [vmem:[#allocation13 + $0x24c] ss:$16 sps:$4 sm:$0xff]  }
  0xbd   :  { %985 = vmatprep.subr.bf16.mxu0 %v4205_v28  ;;  %1071 = vmatprep.subr.bf16.mxu1 %v4207_v29  ;;  %v4271_v16 = vld [vmem:[#allocation13 + $0x240] ss:$16 sps:$4 sm:$0xff]   ;;  %v4274_v17 = vld [vmem:[#allocation13 + $0x248] ss:$16 sps:$4 sm:$0xff]   ;;  %v4279_v18 = vld [vmem:[#allocation13 + $0x264] ss:$16 sps:$4 sm:$0xff]  }
  0xbe   :  { %v4282_v19 = vld [vmem:[#allocation13 + $0x26c] ss:$16 sps:$4 sm:$0xff]   ;;  %v4277_v20 = vld [vmem:[#allocation13 + $0x260] ss:$16 sps:$4 sm:$0xff]   ;;  %v4280_v21 = vld [vmem:[#allocation13 + $0x268] ss:$16 sps:$4 sm:$0xff]  }
  0xbf   :  { %v4285_v22 = vld [vmem:[#allocation13 + $0x284] ss:$16 sps:$4 sm:$0xff]   ;;  %v4288_v23 = vld [vmem:[#allocation13 + $0x28c] ss:$16 sps:$4 sm:$0xff]   ;;  %v4283_v24 = vld [vmem:[#allocation13 + $0x280] ss:$16 sps:$4 sm:$0xff]  }
  0xc0   :  { %986 = vmatpush1.bf16.msra.mxu0 %v4209_v30  ;;  %1072 = vmatpush1.bf16.msra.mxu1 %v4210_v31  ;;  %v4286_v25 = vld [vmem:[#allocation13 + $0x288] ss:$16 sps:$4 sm:$0xff]   ;;  %v4291_v26 = vld [vmem:[#allocation13 + $0x2a4] ss:$16 sps:$4 sm:$0xff]   ;;  %v4294_v27 = vld [vmem:[#allocation13 + $0x2ac] ss:$16 sps:$4 sm:$0xff]  }
  0xc1   :  { %987 = vmatprep.subr.bf16.mxu0 %v4211_v32  ;;  %1073 = vmatprep.subr.bf16.mxu1 %v4213_v33  ;;  %v4289_v28 = vld [vmem:[#allocation13 + $0x2a0] ss:$16 sps:$4 sm:$0xff]   ;;  %v4292_v29 = vld [vmem:[#allocation13 + $0x2a8] ss:$16 sps:$4 sm:$0xff]   ;;  %v4297_v30 = vld [vmem:[#allocation13 + $0x2c4] ss:$16 sps:$4 sm:$0xff]  }
  0xc2   :  { %v4300_v31 = vld [vmem:[#allocation13 + $0x2cc] ss:$16 sps:$4 sm:$0xff]   ;;  %v168_v32 = vld [vmem:[#allocation7] sm:$0xff]  ;;  %v4346_v4 = vld [vmem:[#allocation13 + $0x3c8] ss:$16 sps:$4 sm:$0xff]   ;;  %vm2459_vm8 = vcmask 130048  }
  0xc3   :  { %v4295_v33 = vld [vmem:[#allocation13 + $0x2c0] ss:$16 sps:$4 sm:$0xff]   ;;  %v4318_v46 = vld [vmem:[#allocation13 + $0x32c] ss:$16 sps:$4 sm:$0xff]   ;;  %v4351_v5 = vld [vmem:[#allocation13 + $0x3e4] ss:$16 sps:$4 sm:$0xff]  }
  0xc4   :  { %988 = vmatpush1.bf16.msra.mxu0 %v4215_v34  ;;  %1074 = vmatpush1.bf16.msra.mxu1 %v4216_v35  ;;  %v4298_v34 = vld [vmem:[#allocation13 + $0x2c8] ss:$16 sps:$4 sm:$0xff]   ;;  %v4313_v47 = vld [vmem:[#allocation13 + $0x320] ss:$16 sps:$4 sm:$0xff]   ;;  %v4324_v50 = vld [vmem:[#allocation13 + $0x34c] ss:$16 sps:$4 sm:$0xff]  }
  0xc5   :  { %989 = vmatprep.subr.bf16.mxu0 %v4217_v36  ;;  %1075 = vmatprep.subr.bf16.mxu1 %v4219_v37  ;;  %v169_v35 = vld [vmem:[#allocation7 + $0x8] sm:$0xff]  ;;  %v4303_v36 = vld [vmem:[#allocation13 + $0x2e4] ss:$16 sps:$4 sm:$0xff]  }
  0xc6   :  { %v180_v37 = vpack.c.bf16 %v169_v35, %v168_v32  ;;  %v4382_v32 = vld [vmem:[#allocation14 + $0xa8] ss:$20 sps:$4 sm:$0xff]  }
  0xc7   :  { %v4390_v35 = vld [vmem:[#allocation14 + $0xd4] ss:$20 sps:$4 sm:$0xff]  }
  0xc8   :  { %990 = vmatpush1.bf16.msra.mxu0 %v4221_v38  ;;  %1076 = vmatpush1.bf16.msra.mxu1 %v4222_v39  ;;  %v4306_v38 = vld [vmem:[#allocation13 + $0x2ec] ss:$16 sps:$4 sm:$0xff]   ;;  %v4301_v39 = vld [vmem:[#allocation13 + $0x2e0] ss:$16 sps:$4 sm:$0xff]  }
  0xc9   :  { %991 = vmatprep.subr.bf16.mxu0 %v4223_v40  ;;  %1077 = vmatprep.subr.bf16.mxu1 %v4225_v41  ;;  %v4304_v40 = vld [vmem:[#allocation13 + $0x2e8] ss:$16 sps:$4 sm:$0xff]   ;;  %v4309_v41 = vld [vmem:[#allocation13 + $0x304] ss:$16 sps:$4 sm:$0xff]  }
  0xcc   :  { %992 = vmatpush1.bf16.msra.mxu0 %v4227_v42  ;;  %1078 = vmatpush1.bf16.msra.mxu1 %v4228_v43  ;;  %v4312_v42 = vld [vmem:[#allocation13 + $0x30c] ss:$16 sps:$4 sm:$0xff]   ;;  %v4307_v43 = vld [vmem:[#allocation13 + $0x300] ss:$16 sps:$4 sm:$0xff]  }
  0xcd   :  { %993 = vmatprep.subr.bf16.mxu0 %v4229_v44  ;;  %1079 = vmatprep.subr.bf16.mxu1 %v4231_v45  ;;  %v4310_v44 = vld [vmem:[#allocation13 + $0x308] ss:$16 sps:$4 sm:$0xff]   ;;  %v4315_v45 = vld [vmem:[#allocation13 + $0x324] ss:$16 sps:$4 sm:$0xff]  }
  0xd0   :  { %994 = vmatpush1.bf16.msra.mxu0 %v4233_v48  ;;  %1080 = vmatpush1.bf16.msra.mxu1 %v4234_v49  ;;  %v4316_v48 = vld [vmem:[#allocation13 + $0x328] ss:$16 sps:$4 sm:$0xff]   ;;  %v4321_v49 = vld [vmem:[#allocation13 + $0x344] ss:$16 sps:$4 sm:$0xff]  }
  0xd1   :  { %995 = vmatprep.subr.bf16.mxu0 %v4235_v51  ;;  %1081 = vmatprep.subr.bf16.mxu1 %v4237_v52  ;;  %v4319_v51 = vld [vmem:[#allocation13 + $0x340] ss:$16 sps:$4 sm:$0xff]   ;;  %v4322_v52 = vld [vmem:[#allocation13 + $0x348] ss:$16 sps:$4 sm:$0xff]  }
  0xd4   :  { %996 = vmatpush1.bf16.msra.mxu0 %v4239_v53  ;;  %1082 = vmatpush1.bf16.msra.mxu1 %v4240_v54  ;;  %v4327_v53 = vld [vmem:[#allocation13 + $0x364] ss:$16 sps:$4 sm:$0xff]   ;;  %v4330_v54 = vld [vmem:[#allocation13 + $0x36c] ss:$16 sps:$4 sm:$0xff]  }
  0xd5   :  { %997 = vmatprep.subr.bf16.mxu0 %v4241_v55  ;;  %1083 = vmatprep.subr.bf16.mxu1 %v4243_v56  ;;  %v4325_v55 = vld [vmem:[#allocation13 + $0x360] ss:$16 sps:$4 sm:$0xff]   ;;  %v4328_v56 = vld [vmem:[#allocation13 + $0x368] ss:$16 sps:$4 sm:$0xff]  }
  0xd8   :  { %998 = vmatpush1.bf16.msra.mxu0 %v4245_v57  ;;  %1084 = vmatpush1.bf16.msra.mxu1 %v4246_v58  ;;  %v4333_v57 = vld [vmem:[#allocation13 + $0x384] ss:$16 sps:$4 sm:$0xff]   ;;  %v4336_v58 = vld [vmem:[#allocation13 + $0x38c] ss:$16 sps:$4 sm:$0xff]  }
  0xd9   :  { %999 = vmatprep.subr.bf16.mxu0 %v4247_v59  ;;  %1085 = vmatprep.subr.bf16.mxu1 %v4249_v60  ;;  %v4331_v59 = vld [vmem:[#allocation13 + $0x380] ss:$16 sps:$4 sm:$0xff]   ;;  %v4334_v60 = vld [vmem:[#allocation13 + $0x388] ss:$16 sps:$4 sm:$0xff]  }
  0xdc   :  { %1000 = vmatpush1.bf16.msra.mxu0 %v4251_v61  ;;  %1086 = vmatpush1.bf16.msra.mxu1 %v4252_v62  ;;  %v4339_v61 = vld [vmem:[#allocation13 + $0x3a4] ss:$16 sps:$4 sm:$0xff]   ;;  %v4342_v62 = vld [vmem:[#allocation13 + $0x3ac] ss:$16 sps:$4 sm:$0xff]  }
  0xdd   :  { %1001 = vmatprep.subr.bf16.mxu0 %v4253_v63  ;;  %1087 = vmatprep.subr.bf16.mxu1 %v4255_v0  ;;  %v4337_v63 = vld [vmem:[#allocation13 + $0x3a0] ss:$16 sps:$4 sm:$0xff]   ;;  %v4340_v0 = vld [vmem:[#allocation13 + $0x3a8] ss:$16 sps:$4 sm:$0xff]  }
  0xe0   :  { %1002 = vmatpush1.bf16.msra.mxu0 %v4257_v1  ;;  %1088 = vmatpush1.bf16.msra.mxu1 %v4258_v2  ;;  %v4345_v1 = vld [vmem:[#allocation13 + $0x3c4] ss:$16 sps:$4 sm:$0xff]   ;;  %v4348_v2 = vld [vmem:[#allocation13 + $0x3cc] ss:$16 sps:$4 sm:$0xff]  }
  0xe1   :  { %1014 = vmatprep.subr.bf16.mxu0 %v4261_v3  ;;  %1100 = vmatprep.subr.bf16.mxu1 %v4264_v6  ;;  %v4343_v3 = vld [vmem:[#allocation13 + $0x3c0] ss:$16 sps:$4 sm:$0xff]   ;;  %v4354_v6 = vld [vmem:[#allocation13 + $0x3ec] ss:$16 sps:$4 sm:$0xff]  }
  0xe3   :  { %1004 = vmatmul.mubr.bf16.vlgmr.msra.gmra.mrb[0].mxu0 %v5207_v9  ;;  %1090 = vmatmul.mubr.bf16.vlgmr.msra.gmra.mrb[0].mxu1 %v5207_v9 }
  0xe4   :  { %1015 = vmatpush1.bf16.msra.mxu0 %v4259_v7  ;;  %1101 = vmatpush1.bf16.msra.mxu1 %v4262_v8  ;;  %v4349_v7 = vld [vmem:[#allocation13 + $0x3e0] ss:$16 sps:$4 sm:$0xff]   ;;  %v4352_v8 = vld [vmem:[#allocation13 + $0x3e8] ss:$16 sps:$4 sm:$0xff]  }
  0xe5   :  { %1016 = vmatprep.subr.bf16.mxu0 %v4267_v10  ;;  %1102 = vmatprep.subr.bf16.mxu1 %v4270_v11  ;;  %v177_v10 = vld [vmem:[#allocation2] sm:$0xff]  ;;  %v178_v11 = vld [vmem:[#allocation2 + $0x8] sm:$0xff] }
  0xe6   :  { %1046 = vmatprep.mubr.bf16.mxu0 %v180_v37  ;;  %1132 = vmatprep.mubr.bf16.mxu1 %v180_v37  ;;  %v4393_v37 = vld [vmem:[#allocation14 + $0xf4] ss:$20 sps:$4 sm:$0xff]  }
  0xe8   :  { %1017 = vmatpush1.bf16.msra.mxu0 %v4265_v12  ;;  %1103 = vmatpush1.bf16.msra.mxu1 %v4268_v13  ;;  %v4357_v12 = vld [vmem:[#allocation14 + $0x4] ss:$20 sps:$4 sm:$0xff]   ;;  %v4360_v13 = vld [vmem:[#allocation14 + $0xc] ss:$20 sps:$4 sm:$0xff]  }
  0xe9   :  { %1018 = vmatprep.subr.bf16.mxu0 %v4273_v14  ;;  %1104 = vmatprep.subr.bf16.mxu1 %v4276_v15  ;;  %v4355_v14 = vld [vmem:[#allocation14] ss:$20 sps:$4 sm:$0xff]   ;;  %v4358_v15 = vld [vmem:[#allocation14 + $0x8] ss:$20 sps:$4 sm:$0xff]  }
  0xec   :  { %1019 = vmatpush1.bf16.msra.mxu0 %v4271_v16  ;;  %1105 = vmatpush1.bf16.msra.mxu1 %v4274_v17  ;;  %v179_v16 = vpack.c.bf16 %v178_v11, %v177_v10  ;;  %v4363_v17 = vld [vmem:[#allocation14 + $0x2c] ss:$20 sps:$4 sm:$0xff]   ;;  %v4447_v10 = vld [vmem:[#allocation14 + $0x25c] ss:$20 sps:$4 sm:$0xff]   ;;  %v4450_v11 = vld [vmem:[#allocation14 + $0x264] ss:$20 sps:$4 sm:$0xff]  }
  0xed   :  { %1020 = vmatprep.subr.bf16.mxu0 %v4279_v18  ;;  %1106 = vmatprep.subr.bf16.mxu1 %v4282_v19  ;;  %v4366_v18 = vld [vmem:[#allocation14 + $0x34] ss:$20 sps:$4 sm:$0xff]  }
  0xee   :  { %v4361_v19 = vld [vmem:[#allocation14 + $0x28] ss:$20 sps:$4 sm:$0xff]  }
  0xf0   :  { %1021 = vmatpush1.bf16.msra.mxu0 %v4277_v20  ;;  %1107 = vmatpush1.bf16.msra.mxu1 %v4280_v21  ;;  %v4364_v20 = vld [vmem:[#allocation14 + $0x30] ss:$20 sps:$4 sm:$0xff]   ;;  %v4369_v21 = vld [vmem:[#allocation14 + $0x54] ss:$20 sps:$4 sm:$0xff]  }
  0xf1   :  { %1022 = vmatprep.subr.bf16.mxu0 %v4285_v22  ;;  %1108 = vmatprep.subr.bf16.mxu1 %v4288_v23  ;;  %v4372_v22 = vld [vmem:[#allocation14 + $0x5c] ss:$20 sps:$4 sm:$0xff]  }
  0xf2   :  { %v4367_v23 = vld [vmem:[#allocation14 + $0x50] ss:$20 sps:$4 sm:$0xff]  }
  0xf4   :  { %1023 = vmatpush1.bf16.msra.mxu0 %v4283_v24  ;;  %1109 = vmatpush1.bf16.msra.mxu1 %v4286_v25  ;;  %v4370_v24 = vld [vmem:[#allocation14 + $0x58] ss:$20 sps:$4 sm:$0xff]   ;;  %v4375_v25 = vld [vmem:[#allocation14 + $0x7c] ss:$20 sps:$4 sm:$0xff]  }
  0xf5   :  { %1024 = vmatprep.subr.bf16.mxu0 %v4291_v26  ;;  %1110 = vmatprep.subr.bf16.mxu1 %v4294_v27  ;;  %v4378_v26 = vld [vmem:[#allocation14 + $0x84] ss:$20 sps:$4 sm:$0xff]  }
  0xf6   :  { %v4373_v27 = vld [vmem:[#allocation14 + $0x78] ss:$20 sps:$4 sm:$0xff]  }
  0xf8   :  { %1025 = vmatpush1.bf16.msra.mxu0 %v4289_v28  ;;  %1111 = vmatpush1.bf16.msra.mxu1 %v4292_v29  ;;  %v4376_v28 = vld [vmem:[#allocation14 + $0x80] ss:$20 sps:$4 sm:$0xff]   ;;  %v4381_v29 = vld [vmem:[#allocation14 + $0xa4] ss:$20 sps:$4 sm:$0xff]  }
  0xf9   :  { %1026 = vmatprep.subr.bf16.mxu0 %v4297_v30  ;;  %1112 = vmatprep.subr.bf16.mxu1 %v4300_v31  ;;  %v4379_v30 = vld [vmem:[#allocation14 + $0xa0] ss:$20 sps:$4 sm:$0xff]  }
  0xfa   :  { %v4384_v31 = vld [vmem:[#allocation14 + $0xac] ss:$20 sps:$4 sm:$0xff]  }
  0xfc   :  { %1027 = vmatpush1.bf16.msra.mxu0 %v4295_v33  ;;  %1113 = vmatpush1.bf16.msra.mxu1 %v4298_v34  ;;  %v4387_v33 = vld [vmem:[#allocation14 + $0xcc] ss:$20 sps:$4 sm:$0xff]   ;;  %v4385_v34 = vld [vmem:[#allocation14 + $0xc8] ss:$20 sps:$4 sm:$0xff]  }
  0xfd   :  { %1028 = vmatprep.subr.bf16.mxu0 %v4303_v36  ;;  %1114 = vmatprep.subr.bf16.mxu1 %v4306_v38  ;;  %v4388_v36 = vld [vmem:[#allocation14 + $0xd0] ss:$20 sps:$4 sm:$0xff]  }
  0xfe   :  { %v4391_v38 = vld [vmem:[#allocation14 + $0xf0] ss:$20 sps:$4 sm:$0xff]  }
 0x100   :  { %1029 = vmatpush1.bf16.msra.mxu0 %v4301_v39  ;;  %1115 = vmatpush1.bf16.msra.mxu1 %v4304_v40  ;;  %v4396_v39 = vld [vmem:[#allocation14 + $0xfc] ss:$20 sps:$4 sm:$0xff]   ;;  %v4394_v40 = vld [vmem:[#allocation14 + $0xf8] ss:$20 sps:$4 sm:$0xff]  }
 0x101   :  { %1030 = vmatprep.subr.bf16.mxu0 %v4309_v41  ;;  %1116 = vmatprep.subr.bf16.mxu1 %v4312_v42  ;;  %v4399_v41 = vld [vmem:[#allocation14 + $0x11c] ss:$20 sps:$4 sm:$0xff]   ;;  %v4397_v42 = vld [vmem:[#allocation14 + $0x118] ss:$20 sps:$4 sm:$0xff]  }
 0x104   :  { %1031 = vmatpush1.bf16.msra.mxu0 %v4307_v43  ;;  %1117 = vmatpush1.bf16.msra.mxu1 %v4310_v44  ;;  %v4402_v43 = vld [vmem:[#allocation14 + $0x124] ss:$20 sps:$4 sm:$0xff]   ;;  %v4400_v44 = vld [vmem:[#allocation14 + $0x120] ss:$20 sps:$4 sm:$0xff]  }
 0x105   :  { %1032 = vmatprep.subr.bf16.mxu0 %v4315_v45  ;;  %1118 = vmatprep.subr.bf16.mxu1 %v4318_v46  ;;  %v4405_v45 = vld [vmem:[#allocation14 + $0x144] ss:$20 sps:$4 sm:$0xff]   ;;  %v4403_v46 = vld [vmem:[#allocation14 + $0x140] ss:$20 sps:$4 sm:$0xff]  }
 0x108   :  { %1033 = vmatpush1.bf16.msra.mxu0 %v4313_v47  ;;  %1119 = vmatpush1.bf16.msra.mxu1 %v4316_v48  ;;  %v4408_v47 = vld [vmem:[#allocation14 + $0x14c] ss:$20 sps:$4 sm:$0xff]   ;;  %v4406_v48 = vld [vmem:[#allocation14 + $0x148] ss:$20 sps:$4 sm:$0xff]  }
 0x109   :  { %1034 = vmatprep.subr.bf16.mxu0 %v4321_v49  ;;  %1120 = vmatprep.subr.bf16.mxu1 %v4324_v50  ;;  %v4411_v49 = vld [vmem:[#allocation14 + $0x16c] ss:$20 sps:$4 sm:$0xff]   ;;  %v4409_v50 = vld [vmem:[#allocation14 + $0x168] ss:$20 sps:$4 sm:$0xff]  }
 0x10c   :  { %1035 = vmatpush1.bf16.msra.mxu0 %v4319_v51  ;;  %1121 = vmatpush1.bf16.msra.mxu1 %v4322_v52  ;;  %v4414_v51 = vld [vmem:[#allocation14 + $0x174] ss:$20 sps:$4 sm:$0xff]   ;;  %v4412_v52 = vld [vmem:[#allocation14 + $0x170] ss:$20 sps:$4 sm:$0xff]  }
 0x10d   :  { %1036 = vmatprep.subr.bf16.mxu0 %v4327_v53  ;;  %1122 = vmatprep.subr.bf16.mxu1 %v4330_v54  ;;  %v4417_v53 = vld [vmem:[#allocation14 + $0x194] ss:$20 sps:$4 sm:$0xff]   ;;  %v4415_v54 = vld [vmem:[#allocation14 + $0x190] ss:$20 sps:$4 sm:$0xff]  }
 0x110   :  { %1037 = vmatpush1.bf16.msra.mxu0 %v4325_v55  ;;  %1123 = vmatpush1.bf16.msra.mxu1 %v4328_v56  ;;  %v4420_v55 = vld [vmem:[#allocation14 + $0x19c] ss:$20 sps:$4 sm:$0xff]   ;;  %v4418_v56 = vld [vmem:[#allocation14 + $0x198] ss:$20 sps:$4 sm:$0xff]  }
 0x111   :  { %1038 = vmatprep.subr.bf16.mxu0 %v4333_v57  ;;  %1124 = vmatprep.subr.bf16.mxu1 %v4336_v58  ;;  %v4423_v57 = vld [vmem:[#allocation14 + $0x1bc] ss:$20 sps:$4 sm:$0xff]   ;;  %v4421_v58 = vld [vmem:[#allocation14 + $0x1b8] ss:$20 sps:$4 sm:$0xff]  }
 0x114   :  { %1039 = vmatpush1.bf16.msra.mxu0 %v4331_v59  ;;  %1125 = vmatpush1.bf16.msra.mxu1 %v4334_v60  ;;  %v4426_v59 = vld [vmem:[#allocation14 + $0x1c4] ss:$20 sps:$4 sm:$0xff]   ;;  %v4424_v60 = vld [vmem:[#allocation14 + $0x1c0] ss:$20 sps:$4 sm:$0xff]  }
 0x115   :  { %1040 = vmatprep.subr.bf16.mxu0 %v4339_v61  ;;  %1126 = vmatprep.subr.bf16.mxu1 %v4342_v62  ;;  %v4429_v61 = vld [vmem:[#allocation14 + $0x1e4] ss:$20 sps:$4 sm:$0xff]   ;;  %v4427_v62 = vld [vmem:[#allocation14 + $0x1e0] ss:$20 sps:$4 sm:$0xff]  }
 0x118   :  { %1041 = vmatpush1.bf16.msra.mxu0 %v4337_v63  ;;  %1127 = vmatpush1.bf16.msra.mxu1 %v4340_v0  ;;  %v4432_v63 = vld [vmem:[#allocation14 + $0x1ec] ss:$20 sps:$4 sm:$0xff]   ;;  %v4430_v0 = vld [vmem:[#allocation14 + $0x1e8] ss:$20 sps:$4 sm:$0xff]  }
 0x119   :  { %1042 = vmatprep.subr.bf16.mxu0 %v4345_v1  ;;  %1128 = vmatprep.subr.bf16.mxu1 %v4348_v2  ;;  %v4435_v1 = vld [vmem:[#allocation14 + $0x20c] ss:$20 sps:$4 sm:$0xff]   ;;  %v4433_v2 = vld [vmem:[#allocation14 + $0x208] ss:$20 sps:$4 sm:$0xff]  }
 0x11c   :  { %1043 = vmatpush1.bf16.msra.mxu0 %v4343_v3  ;;  %1129 = vmatpush1.bf16.msra.mxu1 %v4346_v4  ;;  %v4438_v3 = vld [vmem:[#allocation14 + $0x214] ss:$20 sps:$4 sm:$0xff]   ;;  %v4436_v4 = vld [vmem:[#allocation14 + $0x210] ss:$20 sps:$4 sm:$0xff]  }
 0x11d   :  { %1044 = vmatprep.subr.bf16.mxu0 %v4351_v5  ;;  %1130 = vmatprep.subr.bf16.mxu1 %v4354_v6  ;;  %v4441_v5 = vld [vmem:[#allocation14 + $0x234] ss:$20 sps:$4 sm:$0xff]   ;;  %v4444_v6 = vld [vmem:[#allocation14 + $0x23c] ss:$20 sps:$4 sm:$0xff]  }
 0x120   :  { %1045 = vmatpush1.bf16.msra.mxu0 %v4349_v7  ;;  %1131 = vmatpush1.bf16.msra.mxu1 %v4352_v8  ;;  %v4439_v7 = vld [vmem:[#allocation14 + $0x230] ss:$20 sps:$4 sm:$0xff]   ;;  %v4442_v8 = vld [vmem:[#allocation14 + $0x238] ss:$20 sps:$4 sm:$0xff]  }
 0x121   :  { %1733 = vmatprep.subr.bf16.mxu0 %v4357_v12  ;;  %1776 = vmatprep.subr.bf16.mxu1 %v4360_v13  ;;  %v4445_v12 = vld [vmem:[#allocation14 + $0x258] ss:$20 sps:$4 sm:$0xff]   ;;  %v4448_v13 = vld [vmem:[#allocation14 + $0x260] ss:$20 sps:$4 sm:$0xff]  }
 0x123   :  { %1047 = vmatmul.mubr.bf16.vlgmr.msra.gmra.mrb[0].mxu0 %v179_v16  ;;  %1133 = vmatmul.mubr.bf16.vlgmr.msra.gmra.mrb[0].mxu1 %v179_v16 }
 0x124   :  { %1734 = vmatpush1.bf16.msra.mxu0 %v4355_v14  ;;  %1777 = vmatpush1.bf16.msra.mxu1 %v4358_v15  ;;  %v4451_v14 = vld [vmem:[#allocation14 + $0x150] ss:$20 sps:$4 sm:$0xff]   ;;  %v311_v15 = vlaneseq }
 0x125   :  { %1735 = vmatprep.subr.bf16.mxu0 %v4363_v17  ;;  %1778 = vmatprep.subr.bf16.mxu1 %v4366_v18  ;;  %v309_v18 = vld [vmem:[%s5885_s7] sm:$0xf] }
 0x126   :  { %1765 = vmatprep.mubr.bf16.mxu0 %v5207_v9  ;;  %1808 = vmatprep.mubr.bf16.mxu1 %v5207_v9  ;;  %v5214_v16 = vshrl.u32 %v311_v15, 7 }
 0x128   :  { %1736 = vmatpush1.bf16.msra.mxu0 %v4361_v19  ;;  %1779 = vmatpush1.bf16.msra.mxu1 %v4364_v20  ;;  %v5217_v17 = vsub.s32 0, %v5214_v16  ;;  %v5223_v19 = vsub.s32 1, %v5214_v16 }
 0x129   :  { %1737 = vmatprep.subr.bf16.mxu0 %v4369_v21  ;;  %1780 = vmatprep.subr.bf16.mxu1 %v4372_v22 }
 0x12a   :  { %v314_v20 = vrot.slane %v309_v18, %v5217_v17  ;;  %v318_v21 = vrot.slane %v309_v18, %v5223_v19 }
 0x12c   :  { %1738 = vmatpush1.bf16.msra.mxu0 %v4367_v23  ;;  %1781 = vmatpush1.bf16.msra.mxu1 %v4370_v24  ;;  %v5228_v24 = vsub.s32 3, %v5214_v16 }
 0x12d   :  { %1739 = vmatprep.subr.bf16.mxu0 %v4375_v25  ;;  %1782 = vmatprep.subr.bf16.mxu1 %v4378_v26 }
 0x130   :  { %1740 = vmatpush1.bf16.msra.mxu0 %v4373_v27  ;;  %1783 = vmatpush1.bf16.msra.mxu1 %v4376_v28 }
 0x131   :  { %1741 = vmatprep.subr.bf16.mxu0 %v4381_v29  ;;  %1784 = vmatprep.subr.bf16.mxu1 %v4384_v31 }
 0x134   :  { %1742 = vmatpush1.bf16.msra.mxu0 %v4379_v30  ;;  %1785 = vmatpush1.bf16.msra.mxu1 %v4382_v32  ;;  %v5231_v32 = vsub.s32 2, %v5214_v16 }
 0x135   :  { %1743 = vmatprep.subr.bf16.mxu0 %v4387_v33  ;;  %1786 = vmatprep.subr.bf16.mxu1 %v4390_v35 }
 0x138   :  { %1744 = vmatpush1.bf16.msra.mxu0 %v4385_v34  ;;  %1787 = vmatpush1.bf16.msra.mxu1 %v4388_v36 }
 0x139   :  { %1745 = vmatprep.subr.bf16.mxu0 %v4393_v37  ;;  %1788 = vmatprep.subr.bf16.mxu1 %v4396_v39  ;;  %v326_v37 = vrot.slane %v309_v18, %v5228_v24 }
 0x13c   :  { %1746 = vmatpush1.bf16.msra.mxu0 %v4391_v38  ;;  %1789 = vmatpush1.bf16.msra.mxu1 %v4394_v40 }
 0x13d   :  { %1747 = vmatprep.subr.bf16.mxu0 %v4399_v41  ;;  %1790 = vmatprep.subr.bf16.mxu1 %v4402_v43  ;;  %v322_v41 = vrot.slane %v309_v18, %v5231_v32 }
 0x140   :  { %1748 = vmatpush1.bf16.msra.mxu0 %v4397_v42  ;;  %1791 = vmatpush1.bf16.msra.mxu1 %v4400_v44 }
 0x141   :  { %1749 = vmatprep.subr.bf16.mxu0 %v4405_v45  ;;  %1792 = vmatprep.subr.bf16.mxu1 %v4408_v47 }
 0x144   :  { %1750 = vmatpush1.bf16.msra.mxu0 %v4403_v46  ;;  %1793 = vmatpush1.bf16.msra.mxu1 %v4406_v48 }
 0x145   :  { %1751 = vmatprep.subr.bf16.mxu0 %v4411_v49  ;;  %1794 = vmatprep.subr.bf16.mxu1 %v4414_v51 }
 0x148   :  { %1752 = vmatpush1.bf16.msra.mxu0 %v4409_v50  ;;  %1795 = vmatpush1.bf16.msra.mxu1 %v4412_v52 }
 0x149   :  { %1753 = vmatprep.subr.bf16.mxu0 %v4417_v53  ;;  %1796 = vmatprep.subr.bf16.mxu1 %v4420_v55 }
 0x14c   :  { %1754 = vmatpush1.bf16.msra.mxu0 %v4415_v54  ;;  %1797 = vmatpush1.bf16.msra.mxu1 %v4418_v56 }
 0x14d   :  { %1755 = vmatprep.subr.bf16.mxu0 %v4423_v57  ;;  %1798 = vmatprep.subr.bf16.mxu1 %v4426_v59  ;;  %v1181_v59 = vld [vmem:[#allocation8] sm:$0xff] }
 0x150   :  { %1756 = vmatpush1.bf16.msra.mxu0 %v4421_v58  ;;  %1799 = vmatpush1.bf16.msra.mxu1 %v4424_v60 }
 0x151   :  { %1757 = vmatprep.subr.bf16.mxu0 %v4429_v61  ;;  %1800 = vmatprep.subr.bf16.mxu1 %v4432_v63 }
 0x154   :  { %1758 = vmatpush1.bf16.msra.mxu0 %v4427_v62  ;;  %1801 = vmatpush1.bf16.msra.mxu1 %v4430_v0 }
 0x155   :  { %1759 = vmatprep.subr.bf16.mxu0 %v4435_v1  ;;  %1802 = vmatprep.subr.bf16.mxu1 %v4438_v3  ;;  %v1182_v3 = vld [vmem:[#allocation8 + $0x8] sm:$0xff] }
 0x158   :  { %1760 = vmatpush1.bf16.msra.mxu0 %v4433_v2  ;;  %1803 = vmatpush1.bf16.msra.mxu1 %v4436_v4 }
 0x159   :  { %1761 = vmatprep.subr.bf16.mxu0 %v4441_v5  ;;  %1804 = vmatprep.subr.bf16.mxu1 %v4444_v6 }
 0x15c   :  { %1762 = vmatpush1.bf16.msra.mxu0 %v4439_v7  ;;  %1805 = vmatpush1.bf16.msra.mxu1 %v4442_v8 }
 0x15d   :  { %1763 = vmatprep.subr.bf16.mxu0 %v4447_v10  ;;  %1806 = vmatprep.subr.bf16.mxu1 %v4450_v11 }
 0x160   :  { %1764 = vmatpush1.bf16.msra.mxu0 %v4445_v12  ;;  %1807 = vmatpush1.bf16.msra.mxu1 %v4448_v13 }
 0x161   :  { %4104 = vmatprep.subr.bf16.mxu0 %v4451_v14 }
 0x1f6   :  { %v1048_v22 = vpop.f32.mrb[0].mxu0  ;;  %v1134_v23 = vpop.f32.mrb[0].mxu1 }
 0x1f7   :  { %v4126_v25 = vadd.f32 %v1048_v22, %v314_v20  ;;  %v1050_v26 = vpop.f32.mrb[1].mxu0  ;;  %v1136_v27 = vpop.f32.mrb[1].mxu1  ;;  %v4130_v43 = vadd.f32 %v1134_v23, %v322_v41  ;;  %v4453_v23 = vld [vmem:[#allocation14 + $0x178] ss:$20 sps:$4 sm:$0xff]  }
 0x1f8   :  { %v4127_v28 = vadd.f32 %v1050_v26, %v318_v21  ;;  %v1052_v29 = vpop.f32.mrb[2].mxu0  ;;  %v1138_v30 = vpop.f32.mrb[2].mxu1  ;;  %v4131_v42 = vadd.f32 %v1136_v27, %v326_v37  ;;  %v4455_v26 = vld [vmem:[#allocation14 + $0x1a0] ss:$20 sps:$4 sm:$0xff]  }
 0x1f9   :  { %v3980_v31 = vmul.f32 -1.442695, %v4126_v25  ;;  %v4128_v33 = vadd.f32 %v1052_v29, %v314_v20  ;;  %v1054_v34 = vpop.f32.mrb[3].mxu0  ;;  %v1140_v35 = vpop.f32.mrb[3].mxu1  ;;  %v4132_v46 = vadd.f32 %v1138_v30, %v322_v41  ;;  %v4454_v25 = vld [vmem:[#allocation14 + $0x38] ss:$20 sps:$4 sm:$0xff]  }
 0x1fa   :  { %v3982_v36 = vmul.f32 -1.442695, %v4127_v28  ;;  %v4129_v38 = vadd.f32 %v1054_v34, %v318_v21  ;;  %v3984_v44 = vmul.f32 -1.442695, %v4131_v42  ;;  %v4133_v45 = vadd.f32 %v1140_v35, %v326_v37  ;;  %v4452_v21 = vld [vmem:[#allocation14 + $0x10] ss:$20 sps:$4 sm:$0xff]  }
 0x1fb   :  { %4515 = vpow2.f32 %v3980_v31  ;;  %v3981_v39 = vmul.f32 -1.442695, %v4128_v33  ;;  %v4456_v27 = vld [vmem:[#allocation14 + $0x60] ss:$20 sps:$4 sm:$0xff]   ;;  %v4457_v28 = vld [vmem:[#allocation14 + $0x1c8] ss:$20 sps:$4 sm:$0xff]  }
 0x1fc   :  { %4517 = vpow2.f32 %v3982_v36  ;;  %v3983_v40 = vmul.f32 -1.442695, %v4129_v38  ;;  %v3985_v50 = vmul.f32 -1.442695, %v4133_v45  ;;  %v4458_v29 = vld [vmem:[#allocation14 + $0x88] ss:$20 sps:$4 sm:$0xff]  }
 0x1fd   :  { %4519 = vpow2.f32 %v3981_v39  ;;  %v4459_v30 = vld [vmem:[#allocation14 + $0x1f0] ss:$20 sps:$4 sm:$0xff]   ;;  %v4461_v33 = vld [vmem:[#allocation14 + $0x218] ss:$20 sps:$4 sm:$0xff]   ;;  %v4463_v35 = vld [vmem:[#allocation14 + $0x240] ss:$20 sps:$4 sm:$0xff]  }
 0x1fe   :  { %4521 = vpow2.f32 %v3983_v40  ;;  %v4460_v31 = vld [vmem:[#allocation14 + $0xb0] ss:$20 sps:$4 sm:$0xff]   ;;  %v4462_v34 = vld [vmem:[#allocation14 + $0xd8] ss:$20 sps:$4 sm:$0xff]   ;;  %v4465_v36 = vld [vmem:[#allocation14 + $0x268] ss:$20 sps:$4 sm:$0xff]  }
 0x1ff   :  { %4523 = vtanh.f32 %v4130_v43  ;;  %v4466_v37 = vld [vmem:[#allocation14 + $0x128] ss:$20 sps:$4 sm:$0xff]   ;;  %v4979_v38 = vmov 1966171168   ;;  %v1290_v40 = vld [vmem:[%s5887_s9] sm:$0x1f] }
 0x200   :  { %4525 = vpow2.f32 %v3984_v44  ;;  %v1896_v39 = vunpack.c.l.s4 %v4979_v38  ;;  %v1295_v42 = vrot.slane %v1290_v40, %v5217_v17 }
 0x201   :  { %4527 = vtanh.f32 %v4132_v46 }
 0x202   :  { %v1897_v41 = vunpack.c.0.s8 %v1896_v39 }
 0x204   :  { %v5241_v43 = vsub.s32 %v1897_v41, %v5214_v16 }
 0x205   :  { %v4516_v47 = vpop.eup %4515 }
 0x206   :  { %v4518_v48 = vpop.eup %4517  ;;  %v1149_v49 = vadd.f32 1.0, %v4516_v47 }
 0x207   :  { %v1161_v51 = vadd.f32 1.0, %v4518_v48  ;;  %v4520_v52 = vpop.eup %4519 }
 0x208   :  { %4529 = vrcp.f32 %v1149_v49  ;;  %v1150_v53 = vadd.f32 1.0, %v4520_v52  ;;  %v4522_v54 = vpop.eup %4521 }
 0x209   :  { %4531 = vrcp.f32 %v1161_v51  ;;  %v1162_v55 = vadd.f32 1.0, %v4522_v54  ;;  %v4524_v56 = vpop.eup %4523 }
 0x20a   :  { %4533 = vpow2.f32 %v3985_v50  ;;  %v4526_v57 = vpop.eup %4525 }
 0x20b   :  { %4535 = vrcp.f32 %v1150_v53  ;;  %v4528_v58 = vpop.eup %4527  ;;  %v1175_v63 = vadd.f32 1.0, %v4526_v57 }
 0x20c   :  { %4537 = vrcp.f32 %v1162_v55 }
 0x20d   :  { %4539 = vrcp.f32 %v1175_v63  ;;  %v1863_v63 = vld [vmem:[#allocation11 + $0x18] sm:$0xff] }
 0x212   :  { %v4530_v60 = vpop.eup %4529 }
 0x213   :  { %v4532_v61 = vpop.eup %4531  ;;  %v1185_v62 = vmul.f32 %v4530_v60, %v4524_v56  ;;  %v1861_v60 = vld [vmem:[#allocation11 + $0x8] sm:$0xff] }
 0x214   :  { %v4534_v0 = vpop.eup %4533  ;;  %v1183_v1 = vmul.f32 %v4532_v61, %v1181_v59  ;;  %v1860_v59 = vld [vmem:[#allocation11] sm:$0xff] }
 0x215   :  { %v4536_v2 = vpop.eup %4535  ;;  %v1176_v7 = vadd.f32 1.0, %v4534_v0 }
 0x216   :  { %v1187_v4 = vadd.f32 %v1185_v62, %v1183_v1  ;;  %v1186_v5 = vmul.f32 %v4536_v2, %v4528_v58  ;;  %v4538_v6 = vpop.eup %4537  ;;  %v1862_v62 = vld [vmem:[#allocation11 + $0x10] sm:$0xff] }
 0x217   :  { %v1184_v8 = vmul.f32 %v4538_v6, %v1182_v3  ;;  %v4540_v11 = vpop.eup %4539 }
 0x218   :  { %4541 = vtanh.f32 %v1187_v4  ;;  %3810 = vst [vmem:[#allocation18] sm:$0xff] %v1187_v4 }
 0x219   :  { %v1188_v10 = vadd.f32 %v1186_v5, %v1184_v8  ;;  %4543 = vrcp.f32 %v1176_v7 }
 0x21b   :  { %4545 = vtanh.f32 %v1188_v10  ;;  %3811 = vst [vmem:[#allocation18 + $0x8] sm:$0xff] %v1188_v10 }
 0x222   :  { %v4542_v12 = vpop.eup %4541 }
 0x223   :  { %v1191_v13 = vmul.f32 %v4542_v12, %v4540_v11  ;;  %v4544_v14 = vpop.eup %4543 }
 0x225   :  { %3805 = vst [vmem:[#allocation17] sm:$0xff] %v1191_v13  ;;  %v4546_v18 = vpop.eup %4545 }
 0x226   :  { %v1192_v20 = vmul.f32 %v4546_v18, %v4544_v14 }
 0x228   :  { %v1193_v22 = vpack.c.bf16 %v1192_v20, %v1191_v13  ;;  %3806 = vst [vmem:[#allocation17 + $0x8] sm:$0xff] %v1192_v20 }
 0x22a   :  { %1766 = vmatmul.mubr.bf16.vlgmr.msra.gmra.mrb[4].mxu0 %v1193_v22  ;;  %1809 = vmatmul.mubr.bf16.vlgmr.msra.gmra.mrb[4].mxu1 %v1193_v22 }
 0x22b   :  { %4105 = vmatpush3.bf16.msra.mxu0 %v4452_v21  ;;  %1851 = vmatprep.mubr.bf16.mxu0 %v5207_v9  ;;  %v4464_v9 = vld [vmem:[#allocation14 + $0x100] ss:$20 sps:$4 sm:$0xff]  }
 0x22c   :  { %4106 = vmatprep.subr.bf16.mxu0 %v4453_v23  ;;  %v1864_v21 = vld [vmem:[#allocation11 + $0x20] sm:$0xff] }
 0x22f   :  { %4107 = vmatpush3.bf16.msra.mxu0 %v4454_v25  ;;  %v2136_v25 = vld [vmem:[%s5889_s11] sm:$0x1] }
 0x230   :  { %4108 = vmatprep.subr.bf16.mxu0 %v4455_v26  ;;  %v1868_v26 = vld [vmem:[#allocation11 + $0x40] sm:$0xff] }
 0x233   :  { %4109 = vmatpush3.bf16.msra.mxu0 %v4456_v27 }
 0x234   :  { %4110 = vmatprep.subr.bf16.mxu0 %v4457_v28 }
 0x237   :  { %4111 = vmatpush3.bf16.msra.mxu0 %v4458_v29 }
 0x238   :  { %4112 = vmatprep.subr.bf16.mxu0 %v4459_v30  ;;  %v1869_v30 = vld [vmem:[#allocation11 + $0x48] sm:$0xff] }
 0x23b   :  { %4113 = vmatpush3.bf16.msra.mxu0 %v4460_v31 }
 0x23c   :  { %4114 = vmatprep.subr.bf16.mxu0 %v4461_v33 }
 0x23f   :  { %4115 = vmatpush3.bf16.msra.mxu0 %v4462_v34  ;;  %v1876_v34 = vld [vmem:[#allocation11 + $0x80] sm:$0xff] }
 0x240   :  { %4116 = vmatprep.subr.bf16.mxu0 %v4463_v35  ;;  %v1877_v35 = vld [vmem:[#allocation11 + $0x88] sm:$0xff] }
 0x243   :  { %4117 = vmatpush3.bf16.msra.mxu0 %v4464_v9 }
 0x244   :  { %4118 = vmatprep.subr.bf16.mxu0 %v4465_v36 }
 0x247   :  { %4119 = vmatpush3.bf16.msra.mxu0 %v4466_v37  ;;  %v2138_v37 = vpack.i.b16 %v2136_v25, %v2136_v25  ;;  %v1867_v25 = vld [vmem:[#allocation11 + $0x38] sm:$0xff] }
 0x24a   :  { %1852 = vmatmul.mubr.bf16.vlgmr.msra.gmra.mrb[8].mxu0 %v1193_v22  ;;  %v1865_v22 = vld [vmem:[#allocation11 + $0x28] sm:$0xff] }
 0x2fd   :  { %v1767_v44 = vpop.f32.mrb[4].mxu0  ;;  %v5243_v45 = vpop.f32.mrb[4].mxu1 }
 0x2fe   :  { %5894 = vst [vmem:[#allocation27_spill] sm:$0xff] %v5243_v45  ;;  %v1768_v46 = vadd.f32 %v1767_v44, %v1295_v42  ;;  %v5245_v47 = vpop.f32.mrb[5].mxu0  ;;  %v5247_v48 = vpop.f32.mrb[5].mxu1 }
 0x2ff   :  { %5895 = vst [vmem:[#allocation28_spill] sm:$0xff] %v5245_v47  ;;  %5896 = vst [vmem:[#allocation29_spill] sm:$0xff] %v5247_v48  ;;  %v1771_v49 = vpop.f32.mrb[6].mxu0  ;;  %v5249_v50 = vpop.f32.mrb[6].mxu1 }
 0x300   :  { %5897 = vst [vmem:[#allocation30_spill] sm:$0xff] %v5249_v50  ;;  %v1901_v51 = vrot.slane %v1768_v46, %v5241_v43  ;;  %v5252_v52 = vpop.f32.mrb[7].mxu0  ;;  %v5254_v53 = vpop.f32.mrb[7].mxu1  ;;  %v1772_v56 = vadd.f32 %v1771_v49, %v1295_v42  ;;  %v1894_v57 = vcombine.high %v1768_v46, %v1768_v46  ;;  %v1878_v49 = vld [vmem:[#allocation11 + $0x90] sm:$0xff] }
 0x301   :  { %5898 = vst [vmem:[#allocation31_spill] sm:$0xff] %v5252_v52  ;;  %5899 = vst [vmem:[#allocation32_spill] sm:$0xff] %v5254_v53 }
 0x302   :  { %v1909_v54 = vcombine.high %v1901_v51, %v1901_v51  ;;  %v1917_v55 = vrot.slane %v1901_v51, %v5241_v43  ;;  %v1943_v1 = vcombine.high %v1772_v56, %v1772_v56  ;;  %v5264_v2 = vrot.slane %v1894_v57, %v5241_v43  ;;  %v1879_v51 = vld [vmem:[#allocation11 + $0x98] sm:$0xff] }
 0x303   :  { %v1950_v5 = vrot.slane %v1772_v56, %v5241_v43  ;;  %v1890_v56 = vld [vmem:[#allocation11 + $0xf0] sm:$0xff]  ;;  %v1891_v57 = vld [vmem:[#allocation11 + $0xf8] sm:$0xff] }
 0x304   :  { %v5258_v58 = vrot.slane %v1909_v54, %v5241_v43  ;;  %v1995_v61 = vrot.slane %v1917_v55, %v5217_v17  ;;  %v1939_v6 = vcombine.high %v1917_v55, %v1917_v55  ;;  %v1957_v10 = vrot.slane %v1943_v1, %v5241_v43 }
 0x305   :  { %v5270_v11 = vrot.slane %v5264_v2, %v5241_v43  ;;  %v1966_v13 = vrot.slane %v1950_v5, %v5241_v43  ;;  %v1958_v20 = vcombine.high %v1950_v5, %v1950_v5  ;;  %v5292_v55 = vrot.slane %v2138_v37, %v5217_v17 }
 0x306   :  { %v1999_v0 = vrot.slane %v5258_v58, %v5217_v17  ;;  %v2072_v3 = vadd.f32 %v1995_v61, %v1860_v59  ;;  %v2073_v4 = vadd.f32 %v1995_v61, %v1861_v60  ;;  %v2003_v14 = vrot.slane %v1939_v6, %v5217_v17 }
 0x307   :  { %v1959_v23 = vcombine.high %v1957_v10, %v1957_v10  ;;  %v2011_v27 = vrot.slane %v5270_v11, %v5217_v17  ;;  %v2027_v29 = vrot.slane %v1966_v13, %v5217_v17  ;;  %v5284_v9 = vrot.slane %v1958_v20, %v5241_v43 }
 0x308   :  { %v2074_v7 = vadd.f32 %v1999_v0, %v1862_v62  ;;  %v2075_v8 = vadd.f32 %v1999_v0, %v1863_v63  ;;  %v2104_v12 = vpack.c.bf16 %v2073_v4, %v2072_v3  ;;  %v2076_v31 = vadd.f32 %v2003_v14, %v1864_v21 }
 0x309   :  { %v5280_v28 = vrot.slane %v1959_v23, %v5241_v43  ;;  %v2077_v33 = vadd.f32 %v2003_v14, %v1865_v22  ;;  %v2080_v38 = vadd.f32 %v2011_v27, %v1868_v26  ;;  %v2081_v39 = vadd.f32 %v2011_v27, %v1869_v30 }
 0x30a   :  { %v2105_v18 = vpack.c.bf16 %v2075_v8, %v2074_v7  ;;  %4547 = vtanh.bf16 %v2104_v12  ;;  %v2088_v40 = vadd.f32 %v2027_v29, %v1876_v34  ;;  %v2089_v41 = vadd.f32 %v2027_v29, %v1877_v35  ;;  %v1880_v7 = vld [vmem:[#allocation11 + $0xa0] sm:$0xff]  ;;  %v1881_v8 = vld [vmem:[#allocation11 + $0xa8] sm:$0xff] }
 0x30b   :  { %v1991_v36 = vcombine.high %v5280_v28, %v5280_v28  ;;  %v2106_v42 = vpack.c.bf16 %v2077_v33, %v2076_v31  ;;  %v1988_v44 = vcombine.high %v1966_v13, %v1966_v13  ;;  %v2031_v46 = vrot.slane %v5284_v9, %v5217_v17 }
 0x30c   :  { %4549 = vtanh.bf16 %v2105_v18  ;;  %v1941_v59 = vcombine.high %v5258_v58, %v5258_v58  ;;  %v2108_v60 = vpack.c.bf16 %v2081_v39, %v2080_v38  ;;  %v2112_v61 = vpack.c.bf16 %v2089_v41, %v2088_v40  ;;  %v1866_v18 = vld [vmem:[#allocation11 + $0x30] sm:$0xff]  ;;  %v1884_v41 = vld [vmem:[#allocation11 + $0xc0] sm:$0xff] }
 0x30d   :  { %v2055_v54 = vrot.slane %v1991_v36, %v5217_v17  ;;  %4551 = vtanh.bf16 %v2106_v42  ;;  %v2035_v63 = vrot.slane %v1988_v44, %v5217_v17  ;;  %v2090_v0 = vadd.f32 %v2031_v46, %v1878_v49  ;;  %v1885_v42 = vld [vmem:[#allocation11 + $0xc8] sm:$0xff] }
 0x30e   :  { %v2091_v1 = vadd.f32 %v2031_v46, %v1879_v51  ;;  %4553 = vtanh.bf16 %v2112_v61  ;;  %v1910_v58 = vcombine.high %v5264_v2, %v5264_v2  ;;  %v2007_v13 = vrot.slane %v1941_v59, %v5217_v17 }
 0x30f   :  { %v2102_v4 = vadd.f32 %v2055_v54, %v1890_v56  ;;  %v2103_v5 = vadd.f32 %v2055_v54, %v1891_v57  ;;  %v5303_v20 = vrot.slane %v1957_v10, %v5241_v43  ;;  %4555 = vtanh.bf16 %v2108_v60  ;;  %v1870_v54 = vld [vmem:[#allocation11 + $0x50] sm:$0xff]  ;;  %v1871_v60 = vld [vmem:[#allocation11 + $0x58] sm:$0xff] }
 0x310   :  { %v2113_v21 = vpack.c.bf16 %v2091_v1, %v2090_v0  ;;  %v2092_v26 = vadd.f32 %v2035_v63, %v1880_v7  ;;  %v2093_v27 = vadd.f32 %v2035_v63, %v1881_v8  ;;  %v5308_v33 = vrot.slane %v1910_v58, %v5241_v43 }
 0x311   :  { %v2119_v30 = vpack.c.bf16 %v2103_v5, %v2102_v4  ;;  %v2078_v34 = vadd.f32 %v2007_v13, %v1866_v18  ;;  %v2079_v36 = vadd.f32 %v2007_v13, %v1867_v25  ;;  %v2043_v39 = vrot.slane %v5303_v20, %v5217_v17  ;;  %v1873_v4 = vld [vmem:[#allocation11 + $0x68] sm:$0xff] }
 0x312   :  { %4557 = vtanh.bf16 %v2113_v21  ;;  %v2114_v40 = vpack.c.bf16 %v2093_v27, %v2092_v26  ;;  %v1940_v46 = vcombine.high %v5270_v11, %v5270_v11  ;;  %v2015_v49 = vrot.slane %v5308_v33, %v5217_v17  ;;  %v1872_v11 = vld [vmem:[#allocation11 + $0x60] sm:$0xff]  ;;  %v1883_v26 = vld [vmem:[#allocation11 + $0xb8] sm:$0xff] }
 0x313   :  { %4559 = vtanh.bf16 %v2119_v30  ;;  %v2107_v51 = vpack.c.bf16 %v2079_v36, %v2078_v34  ;;  %v2096_v56 = vadd.f32 %v2043_v39, %v1884_v41  ;;  %v2097_v57 = vadd.f32 %v2043_v39, %v1885_v42  ;;  %v1886_v39 = vld [vmem:[#allocation11 + $0xd0] sm:$0xff] }
 0x314   :  { %4561 = vtanh.bf16 %v2114_v40  ;;  %v2019_v1 = vrot.slane %v1940_v46, %v5217_v17  ;;  %v2083_v5 = vadd.f32 %v2015_v49, %v1871_v60  ;;  %v1887_v40 = vld [vmem:[#allocation11 + $0xd8] sm:$0xff]  ;;  %v1942_v46 = vcombine.high %v5308_v33, %v5308_v33 }
 0x315   :  { %v4548_v62 = vpop.eup %4547  ;;  %4563 = vtanh.bf16 %v2107_v51  ;;  %v2116_v7 = vpack.c.bf16 %v2097_v57, %v2096_v56  ;;  %v1889_v56 = vld [vmem:[#allocation11 + $0xe8] sm:$0xff] }
 0x316   :  { %v2144_v6 = vmul.bf16 %v4548_v62, %v5292_v55  ;;  %v2084_v18 = vadd.f32 %v2019_v1, %v1872_v11  ;;  %v2085_v21 = vadd.f32 %v2019_v1, %v1873_v4  ;;  %v1874_v1 = vld [vmem:[#allocation11 + $0x70] sm:$0xff] }
 0x317   :  { %v4550_v3 = vpop.eup %4549  ;;  %4565 = vtanh.bf16 %v2116_v7 }
 0x318   :  { %v2145_v12 = vmul.bf16 %v4550_v3, %v5292_v55  ;;  %v2160_v14 = vunpack.c.l.bf16 %v2144_v6  ;;  %v2161_v10 = vunpack.c.h.bf16 %v2144_v6  ;;  %v4552_v44 = vpop.eup %4551  ;;  %v2082_v3 = vadd.f32 %v2015_v49, %v1870_v54  ;;  %v1888_v54 = vld [vmem:[#allocation11 + $0xe0] sm:$0xff] }
 0x319   :  { %v4554_v43 = vpop.eup %4553  ;;  %v2146_v63 = vmul.bf16 %v4552_v44, %v5292_v55  ;;  %v1990_v6 = vcombine.high %v5284_v9, %v5284_v9  ;;  %v1882_v9 = vld [vmem:[#allocation11 + $0xb0] sm:$0xff]  ;;  %v2110_v34 = vpack.c.bf16 %v2085_v21, %v2084_v18 }
 0x31a   :  { %v2162_v23 = vunpack.c.l.bf16 %v2145_v12  ;;  %2192 = vadd.xlane.f32.xlu0 %v2160_v14  ;;  %v2163_v38 = vunpack.c.h.bf16 %v2145_v12  ;;  %v2152_v59 = vmul.bf16 %v4554_v43, %v5292_v55  ;;  %v4556_v0 = vpop.eup %4555 }
 0x31b   :  { %v2164_v12 = vunpack.c.l.bf16 %v2146_v63  ;;  %v2165_v58 = vunpack.c.h.bf16 %v2146_v63  ;;  %v2148_v13 = vmul.bf16 %v4556_v0, %v5292_v55 }
 0x31c   :  { %2196 = vadd.xlane.f32.xlu1 %v2162_v23  ;;  %v2176_v61 = vunpack.c.l.bf16 %v2152_v59  ;;  %v2177_v62 = vunpack.c.h.bf16 %v2152_v59  ;;  %v2039_v23 = vrot.slane %v1990_v6, %v5217_v17 }
 0x31d   :  { %v4120_v22 = vpop.f32.mrb[8].mxu0  ;;  %v4558_v8 = vpop.eup %4557  ;;  %v2168_v27 = vunpack.c.l.bf16 %v2148_v13 }
 0x31e   :  { %v4121_v29 = vpop.f32.mrb[9].mxu0  ;;  %2194 = vadd.xlane.f32.xlu0 %v2161_v10  ;;  %v4560_v14 = vpop.eup %4559  ;;  %v2153_v30 = vmul.bf16 %v4558_v8, %v5292_v55  ;;  %v1989_v10 = vcombine.high %v5303_v20, %v5303_v20  ;;  %v2094_v36 = vadd.f32 %v2039_v23, %v1882_v9 }
 0x31f   :  { %v5305_v31 = vadd.f32 %v4121_v29, %v4120_v22  ;;  %v4123_v2 = vpop.f32.mrb[10].mxu0  ;;  %v2109_v22 = vpack.c.bf16 %v2083_v5, %v2082_v3  ;;  %v5326_v25 = vmul.bf16 %v4560_v14, %v5292_v55  ;;  %v2169_v29 = vunpack.c.h.bf16 %v2148_v13  ;;  %v1875_v3 = vld [vmem:[#allocation11 + $0x78] sm:$0xff] }
 0x320   :  { %v4124_v35 = vpop.f32.mrb[11].mxu0  ;;  %2198 = vadd.xlane.f32.xlu1 %v2163_v38  ;;  %v2095_v38 = vadd.f32 %v2039_v23, %v1883_v26  ;;  %v2178_v41 = vunpack.c.l.bf16 %v2153_v30  ;;  %v2179_v42 = vunpack.c.h.bf16 %v2153_v30  ;;  %v2051_v20 = vrot.slane %v1989_v10, %v5217_v17 }
 0x321   :  { %5900 = vst [vmem:[#allocation33_spill] sm:$0xff] %v5305_v31  ;;  %v5310_v37 = vadd.f32 %v4124_v35, %v4123_v2  ;;  %v4562_v2 = vpop.eup %4561  ;;  %4567 = vtanh.bf16 %v2109_v22  ;;  %v2047_v35 = vrot.slane %v5280_v28, %v5217_v17 }
 0x322   :  { %2224 = vadd.xlane.f32.xlu0 %v2176_v61  ;;  %v2154_v44 = vmul.bf16 %v4562_v2, %v5292_v55  ;;  %v4564_v43 = vpop.eup %4563  ;;  %4569 = vtanh.bf16 %v2110_v34  ;;  %v2115_v28 = vpack.c.bf16 %v2095_v38, %v2094_v36  ;;  %v2100_v63 = vadd.f32 %v2051_v20, %v1888_v54 }
 0x323   :  { %5901 = vst [vmem:[#allocation34_spill] sm:$0xff] %v5310_v37  ;;  %v2098_v49 = vadd.f32 %v2047_v35, %v1886_v39  ;;  %v2099_v51 = vadd.f32 %v2047_v35, %v1887_v40  ;;  %v2147_v60 = vmul.bf16 %v4564_v43, %v5292_v55  ;;  %v4566_v61 = vpop.eup %4565  ;;  %v2101_v0 = vadd.f32 %v2051_v20, %v1889_v56 }
 0x324   :  { %2226 = vadd.xlane.f32.xlu1 %v2177_v62  ;;  %v2180_v57 = vunpack.c.l.bf16 %v2154_v44  ;;  %v2181_v59 = vunpack.c.h.bf16 %v2154_v44  ;;  %v2023_v62 = vrot.slane %v1942_v46, %v5217_v17  ;;  %4571 = vtanh.bf16 %v2115_v28 }
 0x325   :  { %v2117_v33 = vpack.c.bf16 %v2099_v51, %v2098_v49  ;;  %v2166_v11 = vunpack.c.l.bf16 %v2147_v60  ;;  %v2167_v4 = vunpack.c.h.bf16 %v2147_v60  ;;  %v2156_v5 = vmul.bf16 %v4566_v61, %v5292_v55 }
 0x326   :  { %2200 = vadd.xlane.f32.xlu0 %v2164_v12  ;;  %v2086_v7 = vadd.f32 %v2023_v62, %v1874_v1  ;;  %v2087_v8 = vadd.f32 %v2023_v62, %v1875_v3  ;;  %v2118_v12 = vpack.c.bf16 %v2101_v0, %v2100_v63  ;;  %v2190_v49 = vunpack.c.l.bf16 %v5326_v25 }
 0x327   :  { %4573 = vtanh.bf16 %v2117_v33  ;;  %v2185_v13 = vunpack.c.h.bf16 %v2156_v5  ;;  %v2191_v51 = vunpack.c.h.bf16 %v5326_v25 }
 0x328   :  { %2202 = vadd.xlane.f32.xlu1 %v2165_v58  ;;  %v2184_v58 = vunpack.c.l.bf16 %v2156_v5  ;;  %4575 = vtanh.bf16 %v2118_v12  ;;  %v2111_v21 = vpack.c.bf16 %v2087_v8, %v2086_v7 }
 0x32a   :  { %2208 = vadd.xlane.f32.xlu0 %v2168_v27  ;;  %4577 = vtanh.bf16 %v2111_v21 }
 0x32c   :  { %2210 = vadd.xlane.f32.xlu1 %v2169_v29  ;;  %v4568_v6 = vpop.eup %4567 }
 0x32d   :  { %v2149_v14 = vmul.bf16 %v4568_v6, %v5292_v55  ;;  %v4570_v18 = vpop.eup %4569  ;;  %v2289_v6 = vand.u32 127, %v311_v15 }
 0x32e   :  { %2228 = vadd.xlane.f32.xlu0 %v2178_v41  ;;  %v2150_v9 = vmul.bf16 %v4570_v18, %v5292_v55 }
 0x32f   :  { %v2170_v22 = vunpack.c.l.bf16 %v2149_v14  ;;  %v2171_v23 = vunpack.c.h.bf16 %v2149_v14  ;;  %v4572_v26 = vpop.eup %4571  ;;  %v2294_v7 = vadd.s32 4294967288, %v2289_v6  ;;  %v5397_v18 = vsub.s32 %v2289_v6, %v5214_v16 }
 0x330   :  { %2230 = vadd.xlane.f32.xlu1 %v2179_v42  ;;  %v2172_v27 = vunpack.c.l.bf16 %v2150_v9  ;;  %v2173_v29 = vunpack.c.h.bf16 %v2150_v9  ;;  %v2155_v30 = vmul.bf16 %v4572_v26, %v5292_v55 }
 0x332   :  { %2232 = vadd.xlane.f32.xlu0 %v2180_v57  ;;  %v4574_v2 = vpop.eup %4573  ;;  %v2182_v34 = vunpack.c.l.bf16 %v2155_v30  ;;  %v2183_v10 = vunpack.c.h.bf16 %v2155_v30 }
 0x333   :  { %v2157_v35 = vmul.bf16 %v4574_v2, %v5292_v55  ;;  %v4576_v36 = vpop.eup %4575 }
 0x334   :  { %2234 = vadd.xlane.f32.xlu1 %v2181_v59  ;;  %v2158_v40 = vmul.bf16 %v4576_v36, %v5292_v55 }
 0x335   :  { %v2186_v38 = vunpack.c.l.bf16 %v2157_v35  ;;  %v2187_v39 = vunpack.c.h.bf16 %v2157_v35  ;;  %v4578_v41 = vpop.eup %4577 }
 0x336   :  { %2204 = vadd.xlane.f32.xlu0 %v2166_v11  ;;  %v2188_v42 = vunpack.c.l.bf16 %v2158_v40  ;;  %v2189_v44 = vunpack.c.h.bf16 %v2158_v40  ;;  %v2151_v43 = vmul.bf16 %v4578_v41, %v5292_v55 }
 0x338   :  { %2206 = vadd.xlane.f32.xlu1 %v2167_v4  ;;  %v2174_v46 = vunpack.c.l.bf16 %v2151_v43  ;;  %v2175_v20 = vunpack.c.h.bf16 %v2151_v43 }
 0x33a   :  { %2240 = vadd.xlane.f32.xlu0 %v2184_v58  ;;  %v5390_v58 = vsub.s32 %v2294_v7, %v5214_v16 }
 0x33c   :  { %2242 = vadd.xlane.f32.xlu1 %v2185_v13 }
 0x33e   :  { %2212 = vadd.xlane.f32.xlu0 %v2170_v22 }
 0x340   :  { %2214 = vadd.xlane.f32.xlu1 %v2171_v23 }
 0x342   :  { %2216 = vadd.xlane.f32.xlu0 %v2172_v27 }
 0x344   :  { %2218 = vadd.xlane.f32.xlu1 %v2173_v29 }
 0x346   :  { %2236 = vadd.xlane.f32.xlu0 %v2182_v34 }
 0x348   :  { %2238 = vadd.xlane.f32.xlu1 %v2183_v10 }
 0x34a   :  { %2244 = vadd.xlane.f32.xlu0 %v2186_v38 }
 0x34c   :  { %2246 = vadd.xlane.f32.xlu1 %v2187_v39 }
 0x34e   :  { %2248 = vadd.xlane.f32.xlu0 %v2188_v42 }
 0x350   :  { %2250 = vadd.xlane.f32.xlu1 %v2189_v44 }
 0x352   :  { %2220 = vadd.xlane.f32.xlu0 %v2174_v46 }
 0x354   :  { %2222 = vadd.xlane.f32.xlu1 %v2175_v20 }
 0x356   :  { %2252 = vadd.xlane.f32.xlu0 %v2190_v49 }
 0x358   :  { %2254 = vadd.xlane.f32.xlu1 %v2191_v51 }
 0x3a7   :  { %v5348_v28 = vpop.xlane.xlu0 %2192 }
 0x3a8   :  { %v2293_v26 = vrot.slane %v5348_v28, %v5397_v18 }
 0x3a9   :  { %v5350_v54 = vpop.xlane.xlu1 %2196 }
 0x3aa   :  { %v2304_v15 = vrot.slane %v5350_v54, %v5397_v18 }
 0x3ab   :  { %v5352_v56 = vpop.xlane.xlu0 %2194 }
 0x3ac   :  { %v2298_v22 = vrot.slane %v5352_v56, %v5390_v58 }
 0x3ad   :  { %v5354_v57 = vpop.xlane.xlu1 %2198 }
 0x3ae   :  { %v2308_v21 = vrot.slane %v5354_v57, %v5390_v58  ;;  %v2300_v2 = vsel %vm2299_vm0, %v2298_v22, %v2293_v26 }
 0x3af   :  { %v5356_v55 = vpop.xlane.xlu0 %2224 }
 0x3b0   :  { %v2309_v27 = vsel %vm2299_vm0, %v2308_v21, %v2304_v15  ;;  %v2367_v6 = vrot.slane %v5356_v55, %v5397_v18 }
 0x3b1   :  { %v5358_v59 = vpop.xlane.xlu1 %2226  ;;  %v2437_v38 = vsel %vm2436_vm1, %v2309_v27, %v2300_v2 }
 0x3b2   :  { %v2371_v41 = vrot.slane %v5358_v59, %v5390_v58 }
 0x3b3   :  { %v5360_v60 = vpop.xlane.xlu0 %2200 }
 0x3b4   :  { %v2313_v34 = vrot.slane %v5360_v60, %v5397_v18 }
 0x3b5   :  { %v5362_v61 = vpop.xlane.xlu1 %2202 }
 0x3b6   :  { %v2317_v29 = vrot.slane %v5362_v61, %v5390_v58 }
 0x3b7   :  { %v5364_v62 = vpop.xlane.xlu0 %2208 }
 0x3b8   :  { %v2318_v42 = vsel %vm2299_vm0, %v2317_v29, %v2313_v34  ;;  %v2331_v7 = vrot.slane %v5364_v62, %v5397_v18  ;;  %v2372_v34 = vsel %vm2299_vm0, %v2371_v41, %v2367_v6 }
 0x3b9   :  { %v5366_v25 = vpop.xlane.xlu1 %2210  ;;  %v2439_v27 = vsel %vm2438_vm2, %v2318_v42, %v2437_v38 }
 0x3ba   :  { %v2335_v44 = vrot.slane %v5366_v25, %v5390_v58 }
 0x3bb   :  { %v5368_v63 = vpop.xlane.xlu0 %2228 }
 0x3bc   :  { %v2376_v43 = vrot.slane %v5368_v63, %v5397_v18 }
 0x3bd   :  { %v5370_v0 = vpop.xlane.xlu1 %2230 }
 0x3be   :  { %v2380_v10 = vrot.slane %v5370_v0, %v5390_v58 }
 0x3bf   :  { %v5372_v33 = vpop.xlane.xlu0 %2232 }
 0x3c0   :  { %v2385_v46 = vrot.slane %v5372_v33, %v5397_v18  ;;  %v2381_v21 = vsel %vm2299_vm0, %v2380_v10, %v2376_v43  ;;  %v2336_v10 = vsel %vm2299_vm0, %v2335_v44, %v2331_v7 }
 0x3c1   :  { %v5374_v1 = vpop.xlane.xlu1 %2234  ;;  %v2450_v37 = vsel %vm2436_vm1, %v2381_v21, %v2372_v34 }
 0x3c2   :  { %v2389_v39 = vrot.slane %v5374_v1, %v5390_v58 }
 0x3c3   :  { %v5376_v3 = vpop.xlane.xlu0 %2204 }
 0x3c4   :  { %v2322_v40 = vrot.slane %v5376_v3, %v5397_v18  ;;  %v2390_v29 = vsel %vm2299_vm0, %v2389_v39, %v2385_v46 }
 0x3c5   :  { %v5378_v11 = vpop.xlane.xlu1 %2206  ;;  %v2451_v46 = vsel %vm2438_vm2, %v2390_v29, %v2450_v37 }
 0x3c6   :  { %v2326_v30 = vrot.slane %v5378_v11, %v5390_v58 }
 0x3c7   :  { %v5380_v4 = vpop.xlane.xlu0 %2240 }
 0x3c8   :  { %v2327_v20 = vsel %vm2299_vm0, %v2326_v30, %v2322_v40 }
 0x3c9   :  { %v5382_v5 = vpop.xlane.xlu1 %2242  ;;  %v2441_v40 = vsel %vm2440_vm3, %v2327_v20, %v2439_v27  ;;  %v2403_v27 = vrot.slane %v5380_v4, %v5397_v18 }
 0x3ca   :  { %v2407_v41 = vrot.slane %v5382_v5, %v5390_v58  ;;  %v2443_v21 = vsel %vm2442_vm4, %v2336_v10, %v2441_v40 }
 0x3cb   :  { %v5385_v8 = vpop.xlane.xlu0 %2212 }
 0x3cc   :  { %v2340_v30 = vrot.slane %v5385_v8, %v5397_v18  ;;  %v2408_v50 = vsel %vm2299_vm0, %v2407_v41, %v2403_v27 }
 0x3cd   :  { %v5387_v12 = vpop.xlane.xlu1 %2214 }
 0x3ce   :  { %v2344_v49 = vrot.slane %v5387_v12, %v5390_v58 }
 0x3cf   :  { %v5392_v13 = vpop.xlane.xlu0 %2216 }
 0x3d0   :  { %v2349_v43 = vrot.slane %v5392_v13, %v5397_v18  ;;  %v2345_v38 = vsel %vm2299_vm0, %v2344_v49, %v2340_v30 }
 0x3d1   :  { %v5394_v14 = vpop.xlane.xlu1 %2218 }
 0x3d2   :  { %v2353_v15 = vrot.slane %v5394_v14, %v5390_v58 }
 0x3d3   :  { %v5405_v23 = vpop.xlane.xlu0 %2236 }
 0x3d4   :  { %v2394_v2 = vrot.slane %v5405_v23, %v5397_v18  ;;  %v2354_v7 = vsel %vm2299_vm0, %v2353_v15, %v2349_v43  ;;  %v2445_v15 = vsel %vm2444_vm5, %v2345_v38, %v2443_v21  ;;  %v4980_v21 = vmov 0  }
 0x3d5   :  { %v5407_v9 = vpop.xlane.xlu1 %2238  ;;  %v2447_v43 = vsel %vm2446_vm6, %v2354_v7, %v2445_v15  ;;  %4162 = vset.pattern.permute.xlu1 %v4980_v21  ;;  %4161 = vset.pattern.permute.xlu0 %v4980_v21 }
 0x3d6   :  { %v2398_v51 = vrot.slane %v5407_v9, %v5390_v58  ;;  %3692 = vmatprep.mubr.bf16.mxu1 %v4980_v21  ;;  %3735 = vmatprep.mubr.bf16.mxu0 %v4980_v21  ;;  %v5539_v21 = vsub.s32 7, %v5214_v16 }
 0x3d7   :  { %v5421_v35 = vpop.xlane.xlu0 %2244 }
 0x3d8   :  { %v2399_v39 = vsel %vm2299_vm0, %v2398_v51, %v2394_v2  ;;  %v2412_v49 = vrot.slane %v5421_v35, %v5397_v18 }
 0x3d9   :  { %v5423_v36 = vpop.xlane.xlu1 %2246  ;;  %v2452_v29 = vsel %vm2440_vm3, %v2399_v39, %v2451_v46 }
 0x3da   :  { %v2416_v42 = vrot.slane %v5423_v36, %v5390_v58  ;;  %v2453_v7 = vsel %vm2442_vm4, %v2408_v50, %v2452_v29 }
 0x3db   :  { %v5451_v22 = vpop.xlane.xlu0 %2248 }
 0x3dc   :  { %v2421_v30 = vrot.slane %v5451_v22, %v5397_v18  ;;  %v2417_v2 = vsel %vm2299_vm0, %v2416_v42, %v2412_v49 }
 0x3dd   :  { %v5453_v26 = vpop.xlane.xlu1 %2250  ;;  %v2454_v41 = vsel %vm2444_vm5, %v2417_v2, %v2453_v7 }
 0x3de   :  { %v2425_v44 = vrot.slane %v5453_v26, %v5390_v58 }
 0x3df   :  { %v5476_v20 = vpop.xlane.xlu0 %2220 }
 0x3e0   :  { %v2358_v51 = vrot.slane %v5476_v20, %v5397_v18  ;;  %v2426_v39 = vsel %vm2299_vm0, %v2425_v44, %v2421_v30 }
 0x3e1   :  { %v5478_v6 = vpop.xlane.xlu1 %2222 }
 0x3e2   :  { %v2362_v37 = vrot.slane %v5478_v6, %v5390_v58 }
 0x3e3   :  { %v5498_v53 = vpop.xlane.xlu0 %2252 }
 0x3e4   :  { %v2363_v34 = vsel %vm2299_vm0, %v2362_v37, %v2358_v51  ;;  %v2430_v46 = vrot.slane %v5498_v53, %v5397_v18  ;;  %v2455_v51 = vsel %vm2446_vm6, %v2426_v39, %v2454_v41 }
 0x3e5   :  { %v5500_v10 = vpop.xlane.xlu1 %2254  ;;  %v2449_v40 = vsel %vm2448_vm7, %v2363_v34, %v2447_v43 }
 0x3e6   :  { %v2434_v38 = vrot.slane %v5500_v10, %v5390_v58  ;;  %v2460_v42 = vsel %vm2459_vm8, %v2449_v40, -inf }
 0x3e7   :  { %2461 = vmax.xlane.f32.xlu0 %v2460_v42  ;;  %v5527_v42 = vsub.s32 5, %v5214_v16 }
 0x3e8   :  { %v2435_v49 = vsel %vm2299_vm0, %v2434_v38, %v2430_v46  ;;  %v5524_v38 = vsub.s32 4, %v5214_v16 }
 0x3e9   :  { %v2456_v37 = vsel %vm2448_vm7, %v2435_v49, %v2455_v51 }
 0x3ea   :  { %v2463_v44 = vsel %vm2459_vm8, %v2456_v37, -inf }
 0x3eb   :  { %2464 = vmax.xlane.f32.xlu1 %v2463_v44 }
 0x474   :  { %v2462_v27 = vpop.xlane.xlu0 %2461 }
 0x475   :  { %v2471_v50 = vrot.slane %v2462_v27, %v5217_v17  ;;  %v2475_v29 = vrot.slane %v2462_v27, %v5223_v19  ;;  %v2479_v30 = vrot.slane %v2462_v27, %v5231_v32  ;;  %v2483_v43 = vrot.slane %v2462_v27, %v5228_v24 }
 0x476   :  { %v2491_v37 = vrot.slane %v2462_v27, %v5527_v42 }
 0x477   :  { %v2548_v15 = vsub.f32 %v5348_v28, %v2471_v50  ;;  %v2549_v2 = vsub.f32 %v5352_v56, %v2471_v50  ;;  %v2550_v34 = vsub.f32 %v5350_v54, %v2475_v29  ;;  %v2553_v40 = vsub.f32 %v5362_v61, %v2479_v30 }
 0x478   :  { %v2551_v7 = vsub.f32 %v5354_v57, %v2475_v29  ;;  %v2487_v56 = vrot.slane %v2462_v27, %v5524_v38  ;;  %v2555_v54 = vsub.f32 %v5378_v11, %v2483_v43  ;;  %v5533_v61 = vsub.s32 6, %v5214_v16 }
 0x479   :  { %v2580_v39 = vmul.f32 1.442695, %v2548_v15  ;;  %v2582_v46 = vmul.f32 1.442695, %v2549_v2  ;;  %v2584_v28 = vmul.f32 1.442695, %v2550_v34  ;;  %v2552_v49 = vsub.f32 %v5360_v60, %v2479_v30 }
 0x47a   :  { %v2590_v41 = vmul.f32 1.442695, %v2553_v40  ;;  %v2586_v51 = vmul.f32 1.442695, %v2551_v7  ;;  %v2557_v44 = vsub.f32 %v5366_v25, %v2487_v56  ;;  %v2594_v57 = vmul.f32 1.442695, %v2555_v54  ;;  %v5555_v40 = vpop.xlane.xlu1 %2464 }
 0x47b   :  { %4579 = vpow2.f32 %v2580_v39  ;;  %v2554_v11 = vsub.f32 %v5376_v3, %v2483_v43  ;;  %v2588_v50 = vmul.f32 1.442695, %v2552_v49  ;;  %v2495_v29 = vrot.slane %v2462_v27, %v5533_v61 }
 0x47c   :  { %4581 = vpow2.f32 %v2582_v46  ;;  %v2559_v15 = vsub.f32 %v5387_v12, %v2491_v37  ;;  %v2598_v60 = vmul.f32 1.442695, %v2557_v44  ;;  %v2556_v25 = vsub.f32 %v5364_v62, %v2487_v56 }
 0x47d   :  { %4583 = vpow2.f32 %v2584_v28  ;;  %v2592_v16 = vmul.f32 1.442695, %v2554_v11  ;;  %v2499_v3 = vrot.slane %v2462_v27, %v5539_v21  ;;  %v2561_v34 = vsub.f32 %v5394_v14, %v2495_v29 }
 0x47e   :  { %4585 = vpow2.f32 %v2590_v41  ;;  %v2602_v12 = vmul.f32 1.442695, %v2559_v15  ;;  %v2558_v46 = vsub.f32 %v5385_v8, %v2491_v37  ;;  %v2596_v62 = vmul.f32 1.442695, %v2556_v25 }
 0x47f   :  { %4587 = vpow2.f32 %v2586_v51  ;;  %v2563_v27 = vsub.f32 %v5478_v6, %v2499_v3  ;;  %v2606_v14 = vmul.f32 1.442695, %v2561_v34  ;;  %v5565_v7 = vrot.slane %v5555_v40, %v5231_v32 }
 0x480   :  { %4589 = vpow2.f32 %v2594_v57  ;;  %v2560_v8 = vsub.f32 %v5392_v13, %v2495_v29  ;;  %v2600_v54 = vmul.f32 1.442695, %v2558_v46  ;;  %v5576_v41 = vrot.slane %v5555_v40, %v5228_v24 }
 0x481   :  { %4591 = vpow2.f32 %v2588_v50  ;;  %v2610_v6 = vmul.f32 1.442695, %v2563_v27  ;;  %v2569_v49 = vsub.f32 %v5374_v1, %v5565_v7  ;;  %v2562_v13 = vsub.f32 %v5476_v20, %v2499_v3 }
 0x482   :  { %4593 = vpow2.f32 %v2598_v60  ;;  %v2604_v44 = vmul.f32 1.442695, %v2560_v8  ;;  %v2503_v57 = vrot.slane %v5555_v40, %v5217_v17  ;;  %v5591_v11 = vrot.slane %v5555_v40, %v5524_v38 }
 0x483   :  { %4595 = vpow2.f32 %v2592_v16  ;;  %v2571_v1 = vsub.f32 %v5407_v9, %v5576_v41  ;;  %v2622_v50 = vmul.f32 1.442695, %v2569_v49  ;;  %v2608_v15 = vmul.f32 1.442695, %v2562_v13 }
 0x484   :  { %4597 = vpow2.f32 %v2602_v12  ;;  %v2564_v60 = vsub.f32 %v5356_v55, %v2503_v57  ;;  %v5604_v25 = vrot.slane %v5555_v40, %v5527_v42  ;;  %v2573_v9 = vsub.f32 %v5382_v5, %v5591_v11 }
 0x485   :  { %v5544_v30 = vpop.eup %4579  ;;  %4599 = vpow2.f32 %v2596_v62  ;;  %v2626_v16 = vmul.f32 1.442695, %v2571_v1  ;;  %v2507_v55 = vrot.slane %v5555_v40, %v5223_v19  ;;  %v2565_v12 = vsub.f32 %v5358_v59, %v2503_v57 }
 0x486   :  { %v5546_v2 = vpop.eup %4581  ;;  %2677 = vperm.xlu0 %4161, %v5544_v30   ;;  %4601 = vpow2.f32 %v2606_v14  ;;  %v2612_v46 = vmul.f32 1.442695, %v2564_v60  ;;  %v5619_v5 = vrot.slane %v5555_v40, %v5533_v61  ;;  %v2575_v62 = vsub.f32 %v5423_v36, %v5604_v25 }
 0x487   :  { %2680 = vperm.xlu1 %4162, %v5546_v2   ;;  %v5553_v43 = vpop.eup %4583  ;;  %4603 = vpow2.f32 %v2600_v54  ;;  %v2630_v27 = vmul.f32 1.442695, %v2573_v9  ;;  %v2566_v59 = vsub.f32 %v5368_v63, %v2507_v55  ;;  %v2614_v54 = vmul.f32 1.442695, %v2565_v12 }
 0x488   :  { %v5557_v39 = vpop.eup %4585  ;;  %4605 = vpow2.f32 %v2610_v6  ;;  %v2531_v6 = vrot.slane %v5555_v40, %v5539_v21  ;;  %v2577_v36 = vsub.f32 %v5453_v26, %v5619_v5  ;;  %v2634_v49 = vmul.f32 1.442695, %v2575_v62 }
 0x489   :  { %v5567_v28 = vpop.eup %4587  ;;  %4607 = vpow2.f32 %v2604_v44  ;;  %v2567_v63 = vsub.f32 %v5370_v0, %v2507_v55  ;;  %v2616_v57 = vmul.f32 1.442695, %v2566_v59  ;;  %v2568_v0 = vsub.f32 %v5372_v33, %v5565_v7 }
 0x48a   :  { %2692 = vperm.xlu0 %4161, %v5557_v39   ;;  %v5569_v56 = vpop.eup %4589  ;;  %4609 = vpow2.f32 %v2622_v50  ;;  %v2579_v1 = vsub.f32 %v5500_v10, %v2531_v6  ;;  %v2638_v40 = vmul.f32 1.442695, %v2577_v36  ;;  %v2572_v33 = vsub.f32 %v5380_v4, %v5591_v11 }
 0x48b   :  { %2683 = vperm.xlu1 %4162, %v5553_v43   ;;  %v5580_v51 = vpop.eup %4591  ;;  %4611 = vpow2.f32 %v2608_v15  ;;  %v2618_v15 = vmul.f32 1.442695, %v2567_v63  ;;  %v2620_v55 = vmul.f32 1.442695, %v2568_v0  ;;  %v2576_v4 = vsub.f32 %v5451_v22, %v5619_v5 }
 0x48c   :  { %v5582_v37 = vpop.eup %4593  ;;  %4613 = vpow2.f32 %v2626_v16  ;;  %v2642_v60 = vmul.f32 1.442695, %v2579_v1  ;;  %v2570_v16 = vsub.f32 %v5405_v23, %v5576_v41  ;;  %v2574_v23 = vsub.f32 %v5421_v35, %v5604_v25 }
 0x48d   :  { %v5595_v29 = vpop.eup %4595  ;;  %4615 = vpow2.f32 %v2612_v46  ;;  %v2628_v41 = vmul.f32 1.442695, %v2572_v33  ;;  %v2578_v35 = vsub.f32 %v5498_v53, %v2531_v6  ;;  %v2636_v25 = vmul.f32 1.442695, %v2576_v4 }
 0x48e   :  { %2698 = vperm.xlu0 %4161, %v5569_v56   ;;  %v5597_v20 = vpop.eup %4597  ;;  %4617 = vpow2.f32 %v2630_v27  ;;  %v2624_v7 = vmul.f32 1.442695, %v2570_v16  ;;  %v2632_v11 = vmul.f32 1.442695, %v2574_v23 }
 0x48f   :  { %2686 = vperm.xlu1 %4162, %v5567_v28   ;;  %v5608_v3 = vpop.eup %4599  ;;  %4619 = vpow2.f32 %v2614_v54  ;;  %v2640_v63 = vmul.f32 1.442695, %v2578_v35 }
 0x490   :  { %v5610_v34 = vpop.eup %4601  ;;  %4621 = vpow2.f32 %v2634_v49 }
 0x491   :  { %v5623_v14 = vpop.eup %4603  ;;  %4623 = vpow2.f32 %v2616_v57 }
 0x492   :  { %2704 = vperm.xlu0 %4161, %v5582_v37   ;;  %v5625_v8 = vpop.eup %4605  ;;  %4625 = vpow2.f32 %v2638_v40 }
 0x493   :  { %2689 = vperm.xlu1 %4162, %v5580_v51   ;;  %v5634_v13 = vpop.eup %4607  ;;  %4627 = vpow2.f32 %v2618_v15 }
 0x494   :  { %v5636_v44 = vpop.eup %4609  ;;  %4629 = vpow2.f32 %v2642_v60 }
 0x495   :  { %v5642_v50 = vpop.eup %4611  ;;  %4631 = vpow2.f32 %v2620_v55 }
 0x496   :  { %2710 = vperm.xlu0 %4161, %v5597_v20   ;;  %v5644_v26 = vpop.eup %4613  ;;  %4633 = vpow2.f32 %v2624_v7 }
 0x497   :  { %2695 = vperm.xlu1 %4162, %v5595_v29   ;;  %v5650_v9 = vpop.eup %4615  ;;  %4635 = vpow2.f32 %v2628_v41 }
 0x498   :  { %v5652_v10 = vpop.eup %4617  ;;  %4637 = vpow2.f32 %v2632_v11 }
 0x499   :  { %v5658_v12 = vpop.eup %4619  ;;  %4639 = vpow2.f32 %v2636_v25 }
 0x49a   :  { %2716 = vperm.xlu0 %4161, %v5610_v34   ;;  %v5660_v46 = vpop.eup %4621  ;;  %4641 = vpow2.f32 %v2640_v63 }
 0x49b   :  { %2701 = vperm.xlu1 %4162, %v5608_v3   ;;  %v5666_v62 = vpop.eup %4623 }
 0x49c   :  { %v5668_v27 = vpop.eup %4625 }
 0x49d   :  { %v5674_v59 = vpop.eup %4627 }
 0x49e   :  { %2722 = vperm.xlu0 %4161, %v5625_v8   ;;  %v5676_v54 = vpop.eup %4629 }
 0x49f   :  { %2707 = vperm.xlu1 %4162, %v5623_v14   ;;  %5902 = vst [vmem:[#allocation35_spill] sm:$0xff] %v5676_v54  ;;  %v5682_v36 = vpop.eup %4631 }
 0x4a0   :  { %v5686_v49 = vpop.eup %4633 }
 0x4a1   :  { %v5689_v57 = vpop.eup %4635 }
 0x4a2   :  { %2740 = vperm.xlu0 %4161, %v5636_v44   ;;  %v5692_v22 = vpop.eup %4637 }
 0x4a3   :  { %2713 = vperm.xlu1 %4162, %v5634_v13   ;;  %v5695_v5 = vpop.eup %4639 }
 0x4a4   :  { %v5698_v53 = vpop.eup %4641 }
 0x4a5   :  { %5903 = vst [vmem:[#allocation36_spill] sm:$0xff] %v5698_v53 }
 0x4a6   :  { %2746 = vperm.xlu0 %4161, %v5644_v26  }
 0x4a7   :  { %2719 = vperm.xlu1 %4162, %v5642_v50  }
 0x4aa   :  { %2752 = vperm.xlu0 %4161, %v5652_v10  }
 0x4ab   :  { %2725 = vperm.xlu1 %4162, %v5650_v9  }
 0x4ae   :  { %2758 = vperm.xlu0 %4161, %v5660_v46  }
 0x4af   :  { %2728 = vperm.xlu1 %4162, %v5658_v12  }
 0x4b2   :  { %2764 = vperm.xlu0 %4161, %v5668_v27  }
 0x4b3   :  { %2731 = vperm.xlu1 %4162, %v5666_v62  }
 0x4b6   :  { %2770 = vperm.xlu0 %4161, %v5676_v54  }
 0x4b7   :  { %2734 = vperm.xlu1 %4162, %v5674_v59  }
 0x4bb   :  { %2737 = vperm.xlu1 %4162, %v5682_v36  }
 0x4bf   :  { %2743 = vperm.xlu1 %4162, %v5686_v49  }
 0x4c3   :  { %2749 = vperm.xlu1 %4162, %v5689_v57  }
 0x4c7   :  { %2755 = vperm.xlu1 %4162, %v5692_v22  }
 0x4cb   :  { %2761 = vperm.xlu1 %4162, %v5695_v5  }
 0x4cf   :  { %2767 = vperm.xlu1 %4162, %v5698_v53  }
 0x505   :  { %v2678_v6 = vpop.permute.xlu0 %2677 }
 0x506   :  { %v2681_v1 = vpop.permute.xlu1 %2680  ;;  %v2775_v63 = vrot.slane %v2678_v6, %v5397_v18 }
 0x507   :  { %v2779_v25 = vrot.slane %v2681_v1, %v5390_v58 }
 0x509   :  { %v2693_v15 = vpop.permute.xlu0 %2692  ;;  %v2780_v6 = vsel %vm2299_vm0, %v2779_v25, %v2775_v63 }
 0x50a   :  { %v2684_v40 = vpop.permute.xlu1 %2683  ;;  %v2797_v45 = vrot.slane %v2693_v15, %v5390_v58 }
 0x50b   :  { %v2784_v52 = vrot.slane %v2684_v40, %v5397_v18 }
 0x50d   :  { %v2699_v60 = vpop.permute.xlu0 %2698 }
 0x50e   :  { %v2687_v0 = vpop.permute.xlu1 %2686 }
 0x50f   :  { %v2788_v41 = vrot.slane %v2687_v0, %v5390_v58  ;;  %v2806_v0 = vrot.slane %v2699_v60, %v5390_v58 }
 0x511   :  { %v2705_v55 = vpop.permute.xlu0 %2704  ;;  %v2789_v47 = vsel %vm2299_vm0, %v2788_v41, %v2784_v52 }
 0x512   :  { %v2690_v16 = vpop.permute.xlu1 %2689  ;;  %v2815_v1 = vrot.slane %v2705_v55, %v5390_v58 }
 0x513   :  { %v2793_v4 = vrot.slane %v2690_v16, %v5397_v18 }
 0x515   :  { %v2711_v7 = vpop.permute.xlu0 %2710  ;;  %v2798_v53 = vsel %vm2299_vm0, %v2797_v45, %v2793_v4 }
 0x516   :  { %v2696_v33 = vpop.permute.xlu1 %2695 }
 0x517   :  { %v2802_v31 = vrot.slane %v2696_v33, %v5397_v18  ;;  %v2824_v33 = vrot.slane %v2711_v7, %v5390_v58 }
 0x519   :  { %v2717_v11 = vpop.permute.xlu0 %2716  ;;  %v2807_v40 = vsel %vm2299_vm0, %v2806_v0, %v2802_v31 }
 0x51a   :  { %v2702_v23 = vpop.permute.xlu1 %2701  ;;  %v2833_v60 = vrot.slane %v2717_v11, %v5390_v58 }
 0x51b   :  { %v2811_v48 = vrot.slane %v2702_v23, %v5397_v18  ;;  %v2916_v23 = vsel %vm2436_vm1, %v2789_v47, %v2780_v6 }
 0x51c   :  { %v2917_v45 = vsel %vm2438_vm2, %v2798_v53, %v2916_v23 }
 0x51d   :  { %v2816_v52 = vsel %vm2299_vm0, %v2815_v1, %v2811_v48  ;;  %v2723_v41 = vpop.permute.xlu0 %2722  ;;  %v2918_v4 = vsel %vm2440_vm3, %v2807_v40, %v2917_v45 }
 0x51e   :  { %v2708_v35 = vpop.permute.xlu1 %2707  ;;  %v2919_v7 = vsel %vm2442_vm4, %v2816_v52, %v2918_v4 }
 0x51f   :  { %v2820_v16 = vrot.slane %v2708_v35, %v5397_v18 }
 0x521   :  { %v2825_v55 = vsel %vm2299_vm0, %v2824_v33, %v2820_v16  ;;  %v2741_v16 = vpop.permute.xlu0 %2740 }
 0x522   :  { %v2714_v54 = vpop.permute.xlu1 %2713  ;;  %v2920_v48 = vsel %vm2444_vm5, %v2825_v55, %v2919_v7 }
 0x523   :  { %v2829_v15 = vrot.slane %v2714_v54, %v5397_v18  ;;  %v2842_v54 = vrot.slane %v2723_v41, %v5390_v58 }
 0x525   :  { %v2834_v35 = vsel %vm2299_vm0, %v2833_v60, %v2829_v15  ;;  %v2747_v40 = vpop.permute.xlu0 %2746 }
 0x526   :  { %v2720_v31 = vpop.permute.xlu1 %2719  ;;  %v2921_v25 = vsel %vm2446_vm6, %v2834_v35, %v2920_v48 }
 0x527   :  { %v2838_v47 = vrot.slane %v2720_v31, %v5397_v18 }
 0x529   :  { %v2843_v11 = vsel %vm2299_vm0, %v2842_v54, %v2838_v47  ;;  %v2753_v15 = vpop.permute.xlu0 %2752  ;;  %v2869_v47 = vrot.slane %v2741_v16, %v5390_v58 }
 0x52a   :  { %v2726_v53 = vpop.permute.xlu1 %2725  ;;  %v2922_v63 = vsel %vm2448_vm7, %v2843_v11, %v2921_v25  ;;  %v2878_v11 = vrot.slane %v2747_v40, %v5390_v58 }
 0x52b   :  { %v2932_v0 = vsel %vm2459_vm8, %v2922_v63, 0.0  ;;  %v2847_v25 = vrot.slane %v2726_v53, %v5397_v18 }
 0x52c   :  { %2933 = vadd.xlane.f32.xlu1 %v2932_v0 }
 0x52d   :  { %v2759_v60 = vpop.permute.xlu0 %2758 }
 0x52e   :  { %v2729_v1 = vpop.permute.xlu1 %2728 }
 0x52f   :  { %v2851_v31 = vrot.slane %v2729_v1, %v5390_v58 }
 0x531   :  { %v2765_v55 = vpop.permute.xlu0 %2764 }
 0x532   :  { %v2732_v6 = vpop.permute.xlu1 %2731  ;;  %v2905_v40 = vrot.slane %v2765_v55, %v5390_v58 }
 0x533   :  { %v2856_v7 = vrot.slane %v2732_v6, %v5397_v18  ;;  %v2852_v6 = vsel %vm2299_vm0, %v2851_v31, %v2847_v25 }
 0x536   :  { %v2735_v33 = vpop.permute.xlu1 %2734 }
 0x537   :  { %v2860_v45 = vrot.slane %v2735_v33, %v5390_v58  ;;  %v2887_v33 = vrot.slane %v2753_v15, %v5390_v58 }
 0x539   :  { %v2861_v63 = vsel %vm2299_vm0, %v2860_v45, %v2856_v7  ;;  %v2771_v45 = vpop.permute.xlu0 %2770 }
 0x53a   :  { %v2738_v23 = vpop.permute.xlu1 %2737  ;;  %v2923_v53 = vsel %vm2436_vm1, %v2861_v63, %v2852_v6 }
 0x53b   :  { %v2865_v4 = vrot.slane %v2738_v23, %v5397_v18 }
 0x53d   :  { %v2870_v1 = vsel %vm2299_vm0, %v2869_v47, %v2865_v4 }
 0x53e   :  { %v2744_v52 = vpop.permute.xlu1 %2743  ;;  %v2924_v15 = vsel %vm2438_vm2, %v2870_v1, %v2923_v53 }
 0x53f   :  { %v2874_v54 = vrot.slane %v2744_v52, %v5397_v18  ;;  %v2896_v52 = vrot.slane %v2759_v60, %v5390_v58 }
 0x541   :  { %v2879_v16 = vsel %vm2299_vm0, %v2878_v11, %v2874_v54  ;;  %v2914_v54 = vrot.slane %v2771_v45, %v5390_v58 }
 0x542   :  { %v2750_v41 = vpop.permute.xlu1 %2749  ;;  %v2925_v7 = vsel %vm2440_vm3, %v2879_v16, %v2924_v15 }
 0x543   :  { %v2883_v48 = vrot.slane %v2750_v41, %v5397_v18 }
 0x546   :  { %v2756_v35 = vpop.permute.xlu1 %2755 }
 0x547   :  { %v2892_v0 = vrot.slane %v2756_v35, %v5397_v18  ;;  %v2888_v35 = vsel %vm2299_vm0, %v2887_v33, %v2883_v48 }
 0x548   :  { %v2926_v47 = vsel %vm2442_vm4, %v2888_v35, %v2925_v7 }
 0x549   :  { %v2897_v4 = vsel %vm2299_vm0, %v2896_v52, %v2892_v0 }
 0x54a   :  { %v2762_v23 = vpop.permute.xlu1 %2761  ;;  %v2927_v11 = vsel %vm2444_vm5, %v2897_v4, %v2926_v47 }
 0x54b   :  { %v2901_v41 = vrot.slane %v2762_v23, %v5397_v18 }
 0x54d   :  { %v2906_v31 = vsel %vm2299_vm0, %v2905_v40, %v2901_v41 }
 0x54e   :  { %v2768_v60 = vpop.permute.xlu1 %2767  ;;  %v2928_v48 = vsel %vm2446_vm6, %v2906_v31, %v2927_v11 }
 0x54f   :  { %v2910_v55 = vrot.slane %v2768_v60, %v5397_v18 }
 0x551   :  { %v2915_v25 = vsel %vm2299_vm0, %v2914_v54, %v2910_v55 }
 0x552   :  { %v2929_v63 = vsel %vm2448_vm7, %v2915_v25, %v2928_v48 }
 0x553   :  { %v2935_v0 = vsel %vm2459_vm8, %v2929_v63, 0.0 }
 0x554   :  { %2936 = vadd.xlane.f32.xlu0 %v2935_v0 }
 0x5b9   :  { %v2934_v33 = vpop.xlane.xlu1 %2933 }
 0x5ba   :  { %v2943_v1 = vrot.slane %v2934_v33, %v5217_v17  ;;  %v2947_v58 = vrot.slane %v2934_v33, %v5223_v19  ;;  %v2951_v18 = vrot.slane %v2934_v33, %v5231_v32  ;;  %v2955_v23 = vrot.slane %v2934_v33, %v5228_v24 }
 0x5bb   :  { %v2959_v52 = vrot.slane %v2934_v33, %v5524_v38  ;;  %v2963_v53 = vrot.slane %v2934_v33, %v5527_v42  ;;  %v2967_v4 = vrot.slane %v2934_v33, %v5533_v61  ;;  %v2971_v31 = vrot.slane %v2934_v33, %v5539_v21 }
 0x5bc   :  { %4643 = vrcp.f32 %v2943_v1 }
 0x5bd   :  { %4645 = vrcp.f32 %v2947_v58 }
 0x5be   :  { %4647 = vrcp.f32 %v2951_v18 }
 0x5bf   :  { %4649 = vrcp.f32 %v2955_v23 }
 0x5c0   :  { %4651 = vrcp.f32 %v2959_v52 }
 0x5c1   :  { %4653 = vrcp.f32 %v2963_v53 }
 0x5c2   :  { %4655 = vrcp.f32 %v2967_v4  ;;  %v4475_v4 = vld [vmem:[#allocation16 + $0x24] ss:$16 sps:$4 sm:$0xff]  }
 0x5c3   :  { %4657 = vrcp.f32 %v2971_v31  ;;  %v4484_v31 = vld [vmem:[#allocation16 + $0x4c] ss:$16 sps:$4 sm:$0xff]  }
 0x5c6   :  { %v4644_v6 = vpop.eup %4643 }
 0x5c7   :  { %v3022_v16 = vmul.f32 %v4644_v6, %v5546_v2  ;;  %v3021_v41 = vmul.f32 %v4644_v6, %v5544_v30  ;;  %v4646_v40 = vpop.eup %4645 }
 0x5c8   :  { %v3024_v45 = vmul.f32 %v4646_v40, %v5553_v43  ;;  %v3025_v35 = vmul.f32 %v4646_v40, %v5567_v28  ;;  %v4648_v15 = vpop.eup %4647 }
 0x5c9   :  { %3107 = vperm.xlu1 %4162, %v3022_v16   ;;  %3102 = vperm.xlu0 %4161, %v3021_v41   ;;  %v3027_v2 = vmul.f32 %v4648_v15, %v5580_v51  ;;  %v3028_v30 = vmul.f32 %v4648_v15, %v5557_v39  ;;  %v4650_v7 = vpop.eup %4649  ;;  %v4470_v15 = vld [vmem:[#allocation16 + $0x8] ss:$16 sps:$4 sm:$0xff]  }
 0x5ca   :  { %v3030_v43 = vmul.f32 %v4650_v7, %v5595_v29  ;;  %v3031_v28 = vmul.f32 %v4650_v7, %v5569_v56  ;;  %v4652_v60 = vpop.eup %4651  ;;  %v4479_v7 = vld [vmem:[#allocation16 + $0x40] ss:$16 sps:$4 sm:$0xff]  }
 0x5cb   :  { %v3033_v54 = vmul.f32 %v4652_v60, %v5608_v3  ;;  %v3034_v51 = vmul.f32 %v4652_v60, %v5582_v37  ;;  %v4654_v47 = vpop.eup %4653  ;;  %v4490_v60 = vld [vmem:[#allocation16 + $0x6c] ss:$16 sps:$4 sm:$0xff]  }
 0x5cc   :  { %v3036_v39 = vmul.f32 %v4654_v47, %v5623_v14  ;;  %v3037_v55 = vmul.f32 %v4654_v47, %v5597_v20  ;;  %v4656_v11 = vpop.eup %4655  ;;  %v4493_v47 = vld [vmem:[#allocation16 + $0x84] ss:$16 sps:$4 sm:$0xff]  }
 0x5cd   :  { %3112 = vperm.xlu1 %4162, %v3024_v45   ;;  %3117 = vperm.xlu0 %4161, %v3025_v35   ;;  %v3039_v56 = vmul.f32 %v4656_v11, %v5634_v13  ;;  %v3040_v29 = vmul.f32 %v4656_v11, %v5610_v34  ;;  %v4658_v25 = vpop.eup %4657  ;;  %v4467_v35 = vld [vmem:[#allocation16] ss:$16 sps:$4 sm:$0xff]   ;;  %v4494_v11 = vld [vmem:[#allocation16 + $0x88] ss:$16 sps:$4 sm:$0xff]  }
 0x5ce   :  { %v3042_v63 = vmul.f32 %v4658_v25, %v5642_v50  ;;  %v3043_v14 = vmul.f32 %v4658_v25, %v5625_v8  ;;  %v4497_v25 = vld [vmem:[#allocation16 + $0xa0] ss:$16 sps:$4 sm:$0xff]  }
 0x5d1   :  { %3122 = vperm.xlu1 %4162, %v3027_v2   ;;  %3127 = vperm.xlu0 %4161, %v3028_v30   ;;  %v4478_v2 = vld [vmem:[#allocation16 + $0x2c] ss:$16 sps:$4 sm:$0xff]   ;;  %v4481_v30 = vld [vmem:[#allocation16 + $0x44] ss:$16 sps:$4 sm:$0xff]  }
 0x5d5   :  { %3132 = vperm.xlu1 %4162, %v3030_v43   ;;  %3137 = vperm.xlu0 %4161, %v3031_v28   ;;  %v4482_v43 = vld [vmem:[#allocation16 + $0x48] ss:$16 sps:$4 sm:$0xff]   ;;  %v4487_v28 = vld [vmem:[#allocation16 + $0x64] ss:$16 sps:$4 sm:$0xff]  }
 0x5d9   :  { %3142 = vperm.xlu1 %4162, %v3033_v54   ;;  %3147 = vperm.xlu0 %4161, %v3034_v51   ;;  %v4485_v54 = vld [vmem:[#allocation16 + $0x60] ss:$16 sps:$4 sm:$0xff]   ;;  %v4488_v51 = vld [vmem:[#allocation16 + $0x68] ss:$16 sps:$4 sm:$0xff]  }
 0x5dd   :  { %3152 = vperm.xlu1 %4162, %v3036_v39   ;;  %3157 = vperm.xlu0 %4161, %v3037_v55   ;;  %v4496_v39 = vld [vmem:[#allocation16 + $0x8c] ss:$16 sps:$4 sm:$0xff]   ;;  %v4491_v55 = vld [vmem:[#allocation16 + $0x80] ss:$16 sps:$4 sm:$0xff]  }
 0x5e1   :  { %3162 = vperm.xlu1 %4162, %v3039_v56   ;;  %3167 = vperm.xlu0 %4161, %v3040_v29   ;;  %v2937_v3 = vpop.xlane.xlu0 %2936  ;;  %v4499_v56 = vld [vmem:[#allocation16 + $0xa4] ss:$16 sps:$4 sm:$0xff]   ;;  %v4502_v29 = vld [vmem:[#allocation16 + $0xac] ss:$16 sps:$4 sm:$0xff]  }
 0x5e2   :  { %v2975_v37 = vrot.slane %v2937_v3, %v5217_v17  ;;  %v2979_v48 = vrot.slane %v2937_v3, %v5223_v19  ;;  %v2983_v20 = vrot.slane %v2937_v3, %v5231_v32  ;;  %v2987_v34 = vrot.slane %v2937_v3, %v5228_v24 }
 0x5e3   :  { %v2991_v0 = vrot.slane %v2937_v3, %v5524_v38  ;;  %v2995_v8 = vrot.slane %v2937_v3, %v5527_v42  ;;  %v2999_v23 = vrot.slane %v2937_v3, %v5533_v61  ;;  %v3003_v42 = vrot.slane %v2937_v3, %v5539_v21  ;;  %v4500_v3 = vld [vmem:[#allocation16 + $0xa8] ss:$16 sps:$4 sm:$0xff]  }
 0x5e4   :  { %4659 = vrcp.f32 %v2975_v37  ;;  %v4505_v37 = vld [vmem:[#allocation16 + $0xc4] ss:$16 sps:$4 sm:$0xff]  }
 0x5e5   :  { %3172 = vperm.xlu1 %4162, %v3042_v63   ;;  %3177 = vperm.xlu0 %4161, %v3043_v14   ;;  %4661 = vrcp.f32 %v2979_v48  ;;  %v4508_v48 = vld [vmem:[#allocation16 + $0xcc] ss:$16 sps:$4 sm:$0xff]   ;;  %v4503_v63 = vld [vmem:[#allocation16 + $0xc0] ss:$16 sps:$4 sm:$0xff]   ;;  %v4506_v14 = vld [vmem:[#allocation16 + $0xc8] ss:$16 sps:$4 sm:$0xff]  }
 0x5e6   :  { %4663 = vrcp.f32 %v2983_v20  ;;  %v4511_v20 = vld [vmem:[#allocation16 + $0xe4] ss:$16 sps:$4 sm:$0xff]  }
 0x5e7   :  { %4665 = vrcp.f32 %v2987_v34  ;;  %v4514_v34 = vld [vmem:[#allocation16 + $0xec] ss:$16 sps:$4 sm:$0xff]  }
 0x5e8   :  { %4667 = vrcp.f32 %v2991_v0  ;;  %v4512_v0 = vld [vmem:[#allocation16 + $0xe8] ss:$16 sps:$4 sm:$0xff]  }
 0x5e9   :  { %4669 = vrcp.f32 %v2995_v8 }
 0x5ea   :  { %4671 = vrcp.f32 %v2999_v23 }
 0x5eb   :  { %4673 = vrcp.f32 %v3003_v42 }
 0x5ee   :  { %v4660_v13 = vpop.eup %4659 }
 0x5ef   :  { %v3046_v17 = vmul.f32 %v4660_v13, %v5658_v12  ;;  %v3045_v33 = vmul.f32 %v4660_v13, %v5650_v9  ;;  %v4662_v50 = vpop.eup %4661  ;;  %v4509_v13 = vld [vmem:[#allocation16 + $0xe0] ss:$16 sps:$4 sm:$0xff]  }
 0x5f0   :  { %v3049_v1 = vmul.f32 %v4662_v50, %v5674_v59  ;;  %v3048_v58 = vmul.f32 %v4662_v50, %v5666_v62  ;;  %v4664_v18 = vpop.eup %4663 }
 0x5f1   :  { %3187 = vperm.xlu0 %4161, %v3046_v17   ;;  %3182 = vperm.xlu1 %4162, %v3045_v33   ;;  %v3052_v12 = vmul.f32 %v4664_v18, %v5636_v44  ;;  %v3051_v9 = vmul.f32 %v4664_v18, %v5682_v36  ;;  %v4666_v6 = vpop.eup %4665 }
 0x5f2   :  { %v3055_v59 = vmul.f32 %v4666_v6, %v5644_v26  ;;  %v3054_v62 = vmul.f32 %v4666_v6, %v5686_v49  ;;  %v4668_v52 = vpop.eup %4667 }
 0x5f3   :  { %v3058_v61 = vmul.f32 %v4668_v52, %v5652_v10  ;;  %v3057_v44 = vmul.f32 %v4668_v52, %v5689_v57  ;;  %v4670_v16 = vpop.eup %4669  ;;  %v5904_v10 = vld [vmem:[#allocation35_spill] sm:$0xff]  ;;  %v5905_v57 = vld [vmem:[#allocation36_spill] sm:$0xff]  ;;  %v3070_v52 = vld [vmem:[#allocation10 + $0x10] sm:$0xff] }
 0x5f4   :  { %v3061_v36 = vmul.f32 %v4670_v16, %v5660_v46  ;;  %v3060_v41 = vmul.f32 %v4670_v16, %v5692_v22  ;;  %v4672_v21 = vpop.eup %4671  ;;  %v4469_v46 = vld [vmem:[#allocation16 + $0x4] ss:$16 sps:$4 sm:$0xff]   ;;  %v4472_v22 = vld [vmem:[#allocation16 + $0xc] ss:$16 sps:$4 sm:$0xff]  }
 0x5f5   :  { %3197 = vperm.xlu0 %4161, %v3049_v1   ;;  %3192 = vperm.xlu1 %4162, %v3048_v58   ;;  %v3064_v26 = vmul.f32 %v4672_v21, %v5668_v27  ;;  %v3063_v49 = vmul.f32 %v4672_v21, %v5695_v5  ;;  %v4674_v40 = vpop.eup %4673  ;;  %v4473_v27 = vld [vmem:[#allocation16 + $0x20] ss:$16 sps:$4 sm:$0xff]   ;;  %v4476_v5 = vld [vmem:[#allocation16 + $0x28] ss:$16 sps:$4 sm:$0xff]  }
 0x5f6   :  { %v3067_v53 = vmul.f32 %v4674_v40, %v5904_v10  ;;  %v3066_v45 = vmul.f32 %v4674_v40, %v5905_v57  ;;  %3660 = vmatprep.subr.bf16.mxu1 %v4469_v46  ;;  %3703 = vmatprep.subr.bf16.mxu0 %v4472_v22  ;;  %v3072_v40 = vld [vmem:[#allocation10 + $0x20] sm:$0xff]  ;;  %v3073_v10 = vld [vmem:[#allocation10 + $0x28] sm:$0xff] }
 0x5f7   :  { %3661 = vmatpush1.bf16.msra.mxu1 %v4467_v35  ;;  %3704 = vmatpush1.bf16.msra.mxu0 %v4470_v15 }
 0x5f8   :  { %3662 = vmatprep.subr.bf16.mxu1 %v4475_v4  ;;  %3705 = vmatprep.subr.bf16.mxu0 %v4478_v2 }
 0x5f9   :  { %3207 = vperm.xlu0 %4161, %v3052_v12   ;;  %3202 = vperm.xlu1 %4162, %v3051_v9   ;;  %v3069_v12 = vld [vmem:[#allocation10 + $0x8] sm:$0xff]  ;;  %v3068_v9 = vld [vmem:[#allocation10] sm:$0xff] }
 0x5fb   :  { %3663 = vmatpush1.bf16.msra.mxu1 %v4473_v27  ;;  %3706 = vmatpush1.bf16.msra.mxu0 %v4476_v5 }
 0x5fc   :  { %3664 = vmatprep.subr.bf16.mxu1 %v4481_v30  ;;  %3707 = vmatprep.subr.bf16.mxu0 %v4484_v31  ;;  %v3074_v30 = vld [vmem:[#allocation10 + $0x30] sm:$0xff] }
 0x5fd   :  { %3217 = vperm.xlu0 %4161, %v3055_v59   ;;  %3212 = vperm.xlu1 %4162, %v3054_v62  }
 0x5ff   :  { %3665 = vmatpush1.bf16.msra.mxu1 %v4479_v7  ;;  %3708 = vmatpush1.bf16.msra.mxu0 %v4482_v43  ;;  %v3075_v7 = vld [vmem:[#allocation10 + $0x38] sm:$0xff] }
 0x600   :  { %3666 = vmatprep.subr.bf16.mxu1 %v4487_v28  ;;  %3709 = vmatprep.subr.bf16.mxu0 %v4490_v60 }
 0x601   :  { %3227 = vperm.xlu0 %4161, %v3058_v61   ;;  %3222 = vperm.xlu1 %4162, %v3057_v44   ;;  %v3071_v61 = vld [vmem:[#allocation10 + $0x18] sm:$0xff] }
 0x603   :  { %3667 = vmatpush1.bf16.msra.mxu1 %v4485_v54  ;;  %3710 = vmatpush1.bf16.msra.mxu0 %v4488_v51 }
 0x604   :  { %3668 = vmatprep.subr.bf16.mxu1 %v4493_v47  ;;  %3711 = vmatprep.subr.bf16.mxu0 %v4496_v39  ;;  %v3076_v39 = vld [vmem:[#allocation10 + $0x40] sm:$0xff] }
 0x605   :  { %3237 = vperm.xlu0 %4161, %v3061_v36   ;;  %3232 = vperm.xlu1 %4162, %v3060_v41  }
 0x607   :  { %3669 = vmatpush1.bf16.msra.mxu1 %v4491_v55  ;;  %3712 = vmatpush1.bf16.msra.mxu0 %v4494_v11  ;;  %v3084_v55 = vld [vmem:[#allocation10 + $0x80] sm:$0xff]  ;;  %v3085_v11 = vld [vmem:[#allocation10 + $0x88] sm:$0xff] }
 0x608   :  { %3670 = vmatprep.subr.bf16.mxu1 %v4499_v56  ;;  %3713 = vmatprep.subr.bf16.mxu0 %v4502_v29  ;;  %v3077_v56 = vld [vmem:[#allocation10 + $0x48] sm:$0xff]  ;;  %v3086_v29 = vld [vmem:[#allocation10 + $0x90] sm:$0xff] }
 0x609   :  { %3247 = vperm.xlu0 %4161, %v3064_v26   ;;  %3242 = vperm.xlu1 %4162, %v3063_v49  }
 0x60b   :  { %3671 = vmatpush1.bf16.msra.mxu1 %v4497_v25  ;;  %3714 = vmatpush1.bf16.msra.mxu0 %v4500_v3  ;;  %v3087_v25 = vld [vmem:[#allocation10 + $0x98] sm:$0xff] }
 0x60c   :  { %3672 = vmatprep.subr.bf16.mxu1 %v4505_v37  ;;  %3715 = vmatprep.subr.bf16.mxu0 %v4508_v48  ;;  %v3078_v37 = vld [vmem:[#allocation10 + $0x50] sm:$0xff]  ;;  %v3079_v48 = vld [vmem:[#allocation10 + $0x58] sm:$0xff] }
 0x60d   :  { %3257 = vperm.xlu0 %4161, %v3067_v53   ;;  %3252 = vperm.xlu1 %4162, %v3066_v45  }
 0x60f   :  { %3673 = vmatpush1.bf16.msra.mxu1 %v4503_v63  ;;  %3716 = vmatpush1.bf16.msra.mxu0 %v4506_v14  ;;  %v3080_v63 = vld [vmem:[#allocation10 + $0x60] sm:$0xff] }
 0x610   :  { %3674 = vmatprep.subr.bf16.mxu1 %v4511_v20  ;;  %3717 = vmatprep.subr.bf16.mxu0 %v4514_v34  ;;  %v3081_v34 = vld [vmem:[#allocation10 + $0x68] sm:$0xff] }
 0x613   :  { %3675 = vmatpush1.bf16.msra.mxu1 %v4509_v13  ;;  %3718 = vmatpush1.bf16.msra.mxu0 %v4512_v0  ;;  %v3082_v13 = vld [vmem:[#allocation10 + $0x70] sm:$0xff]  ;;  %v3083_v0 = vld [vmem:[#allocation10 + $0x78] sm:$0xff] }
 0x648   :  { %v3108_v17 = vpop.permute.xlu1 %3107  ;;  %v3103_v33 = vpop.permute.xlu0 %3102 }
 0x649   :  { %v3261_v59 = vmul.f32 %v3108_v17, %v3069_v12  ;;  %v3260_v62 = vmul.f32 %v3103_v33, %v3068_v9 }
 0x64b   :  { %v3292_v44 = vadd.f32 %v3261_v59, %v3260_v62 }
 0x64c   :  { %v3113_v50 = vpop.permute.xlu1 %3112  ;;  %v3118_v8 = vpop.permute.xlu0 %3117 }
 0x64d   :  { %v3262_v16 = vmul.f32 %v3113_v50, %v3070_v52  ;;  %v3263_v36 = vmul.f32 %v3118_v8, %v3071_v61  ;;  %v3293_v26 = vrot.slane %v3292_v44, 4  ;;  %v3088_v52 = vld [vmem:[#allocation10 + $0xa0] sm:$0xff]  ;;  %v3089_v61 = vld [vmem:[#allocation10 + $0xa8] sm:$0xff] }
 0x64f   :  { %v3299_v49 = vadd.f32 %v3263_v36, %v3262_v16  ;;  %v3294_v45 = vadd.f32 %v3293_v26, %v3292_v44 }
 0x650   :  { %v3123_v1 = vpop.permute.xlu1 %3122  ;;  %v3128_v58 = vpop.permute.xlu0 %3127 }
 0x651   :  { %v3300_v35 = vrot.slane %v3299_v49, 4  ;;  %v3264_v46 = vmul.f32 %v3123_v1, %v3072_v40  ;;  %v3265_v15 = vmul.f32 %v3128_v58, %v3073_v10  ;;  %v3295_v22 = vrot.slane %v3294_v45, 2 }
 0x653   :  { %v3301_v4 = vadd.f32 %v3300_v35, %v3299_v49  ;;  %v3306_v27 = vadd.f32 %v3265_v15, %v3264_v46  ;;  %v3296_v31 = vadd.f32 %v3295_v22, %v3294_v45 }
 0x654   :  { %v3133_v18 = vpop.permute.xlu1 %3132  ;;  %v3138_v23 = vpop.permute.xlu0 %3137 }
 0x655   :  { %v3302_v43 = vrot.slane %v3301_v4, 2  ;;  %v3307_v28 = vrot.slane %v3306_v27, 4  ;;  %v3266_v51 = vmul.f32 %v3133_v18, %v3074_v30  ;;  %v3267_v47 = vmul.f32 %v3138_v23, %v3075_v7 }
 0x656   :  { %v3297_v3 = vrot.slane %v3296_v31, 1 }
 0x657   :  { %v3303_v14 = vadd.f32 %v3302_v43, %v3301_v4  ;;  %v3308_v20 = vadd.f32 %v3307_v28, %v3306_v27  ;;  %v3313_v1 = vadd.f32 %v3267_v47, %v3266_v51 }
 0x658   :  { %v3143_v6 = vpop.permute.xlu1 %3142  ;;  %v3148_v42 = vpop.permute.xlu0 %3147  ;;  %v3298_v49 = vadd.f32 %v3297_v3, %v3296_v31  ;;  %v3093_v3 = vld [vmem:[#allocation10 + $0xc8] sm:$0xff] }
 0x659   :  { %v3268_v58 = vmul.f32 %v3143_v6, %v3076_v39  ;;  %v3269_v12 = vmul.f32 %v3148_v42, %v3077_v56  ;;  %v3304_v35 = vrot.slane %v3303_v14, 1  ;;  %v3314_v46 = vrot.slane %v3313_v1, 4 }
 0x65a   :  { %v3309_v22 = vrot.slane %v3308_v20, 2 }
 0x65b   :  { %v3320_v4 = vadd.f32 %v3269_v12, %v3268_v58  ;;  %v3305_v43 = vadd.f32 %v3304_v35, %v3303_v14  ;;  %v3315_v28 = vadd.f32 %v3314_v46, %v3313_v1 }
 0x65c   :  { %v3153_v41 = vpop.permute.xlu1 %3152  ;;  %v3158_v21 = vpop.permute.xlu0 %3157 }
 0x65d   :  { %v3270_v9 = vmul.f32 %v3153_v41, %v3078_v37  ;;  %v3271_v59 = vmul.f32 %v3158_v21, %v3079_v48  ;;  %v3090_v41 = vld [vmem:[#allocation10 + $0xb0] sm:$0xff]  ;;  %v3321_v51 = vrot.slane %v3320_v4, 4  ;;  %v3405_v14 = vpack.c.bf16 %v3305_v43, %v3305_v43 }
 0x65f   :  { %v3327_v42 = vadd.f32 %v3271_v59, %v3270_v9 }
 0x660   :  { %v3163_v53 = vpop.permute.xlu1 %3162  ;;  %v3168_v57 = vpop.permute.xlu0 %3167 }
 0x661   :  { %v3272_v62 = vmul.f32 %v3163_v53, %v3080_v63  ;;  %v3273_v44 = vmul.f32 %v3168_v57, %v3081_v34  ;;  %v3091_v57 = vld [vmem:[#allocation10 + $0xb8] sm:$0xff]  ;;  %v3328_v47 = vrot.slane %v3327_v42, 4 }
 0x663   :  { %v3334_v21 = vadd.f32 %v3273_v44, %v3272_v62 }
 0x664   :  { %v3173_v2 = vpop.permute.xlu1 %3172  ;;  %v3178_v5 = vpop.permute.xlu0 %3177 }
 0x665   :  { %v3274_v16 = vmul.f32 %v3173_v2, %v3082_v13  ;;  %v3275_v36 = vmul.f32 %v3178_v5, %v3083_v0  ;;  %v3404_v2 = vpack.c.bf16 %v3298_v49, %v3298_v49  ;;  %v3335_v56 = vrot.slane %v3334_v21, 4 }
 0x667   :  { %v3341_v53 = vadd.f32 %v3275_v36, %v3274_v16  ;;  %v5813_v0 = vunpack.c.l.b16 %v3404_v2  ;;  %v3336_v12 = vadd.f32 %v3335_v56, %v3334_v21  ;;  %v3097_v21 = vld [vmem:[#allocation10 + $0xe8] sm:$0xff] }
 0x670   :  { %v3183_v60 = vpop.permute.xlu1 %3182  ;;  %v3188_v54 = vpop.permute.xlu0 %3187 }
 0x671   :  { %v3276_v17 = vmul.f32 %v3183_v60, %v3084_v55  ;;  %v3277_v33 = vmul.f32 %v3188_v54, %v3085_v11  ;;  %v3092_v55 = vld [vmem:[#allocation10 + $0xc0] sm:$0xff]  ;;  %v3310_v11 = vadd.f32 %v3309_v22, %v3308_v20  ;;  %v3095_v20 = vld [vmem:[#allocation10 + $0xd8] sm:$0xff]  ;;  %v3337_v22 = vrot.slane %v3336_v12, 2 }
 0x673   :  { %v3348_v40 = vadd.f32 %v3277_v33, %v3276_v17  ;;  %v3316_v17 = vrot.slane %v3315_v28, 2  ;;  %v3338_v56 = vadd.f32 %v3337_v22, %v3336_v12 }
 0x674   :  { %v3193_v50 = vpop.permute.xlu1 %3192  ;;  %v3198_v8 = vpop.permute.xlu0 %3197 }
 0x675   :  { %v3278_v18 = vmul.f32 %v3193_v50, %v3086_v29  ;;  %v3279_v23 = vmul.f32 %v3198_v8, %v3087_v25  ;;  %v3349_v5 = vrot.slane %v3348_v40, 4  ;;  %v3342_v29 = vrot.slane %v3341_v53, 4 }
 0x676   :  { %v3322_v50 = vadd.f32 %v3321_v51, %v3320_v4  ;;  %v3329_v8 = vadd.f32 %v3328_v47, %v3327_v42  ;;  %v3317_v49 = vadd.f32 %v3316_v17, %v3315_v28 }
 0x677   :  { %v3355_v26 = vadd.f32 %v3279_v23, %v3278_v18  ;;  %v3350_v37 = vadd.f32 %v3349_v5, %v3348_v40  ;;  %v3094_v18 = vld [vmem:[#allocation10 + $0xd0] sm:$0xff]  ;;  %v3311_v23 = vrot.slane %v3310_v11, 1  ;;  %v3343_v9 = vadd.f32 %v3342_v29, %v3341_v53 }
 0x678   :  { %v3203_v10 = vpop.permute.xlu1 %3202  ;;  %v3208_v45 = vpop.permute.xlu0 %3207  ;;  %v3330_v35 = vrot.slane %v3329_v8, 2 }
 0x679   :  { %v3280_v15 = vmul.f32 %v3203_v10, %v3088_v52  ;;  %v3281_v6 = vmul.f32 %v3208_v45, %v3089_v61  ;;  %v3356_v27 = vrot.slane %v3355_v26, 4  ;;  %v3351_v62 = vrot.slane %v3350_v37, 2 }
 0x67a   :  { %v3323_v45 = vrot.slane %v3322_v50, 2  ;;  %v3344_v4 = vrot.slane %v3343_v9, 2  ;;  %v3312_v53 = vadd.f32 %v3311_v23, %v3310_v11 }
 0x67b   :  { %v3362_v30 = vadd.f32 %v3281_v6, %v3280_v15  ;;  %v3357_v25 = vadd.f32 %v3356_v27, %v3355_v26  ;;  %v5815_v26 = vunpack.c.l.b16 %v3405_v14  ;;  %v3096_v6 = vld [vmem:[#allocation10 + $0xe0] sm:$0xff]  ;;  %v3352_v27 = vadd.f32 %v3351_v62, %v3350_v37 }
 0x67c   :  { %v3213_v7 = vpop.permute.xlu1 %3212  ;;  %v3218_v31 = vpop.permute.xlu0 %3217  ;;  %v3345_v29 = vadd.f32 %v3344_v4, %v3343_v9 }
 0x67d   :  { %v3363_v60 = vrot.slane %v3362_v30, 4  ;;  %v3282_v54 = vmul.f32 %v3213_v7, %v3090_v41  ;;  %v3283_v39 = vmul.f32 %v3218_v31, %v3091_v57  ;;  %v3358_v59 = vrot.slane %v3357_v25, 2 }
 0x67e   :  { %v3318_v7 = vrot.slane %v3317_v49, 1  ;;  %v3353_v11 = vrot.slane %v3352_v27, 1  ;;  %v3346_v62 = vrot.slane %v3345_v29, 1 }
 0x67f   :  { %v3364_v48 = vadd.f32 %v3363_v60, %v3362_v30  ;;  %v3369_v63 = vadd.f32 %v3283_v39, %v3282_v54  ;;  %v3359_v42 = vadd.f32 %v3358_v59, %v3357_v25  ;;  %v3324_v60 = vadd.f32 %v3323_v45, %v3322_v50  ;;  %v3098_v39 = vld [vmem:[#allocation10 + $0xf0] sm:$0xff] }
 0x680   :  { %v3223_v34 = vpop.permute.xlu1 %3222  ;;  %v3228_v13 = vpop.permute.xlu0 %3227  ;;  %v3331_v54 = vadd.f32 %v3330_v35, %v3329_v8  ;;  %v3319_v50 = vadd.f32 %v3318_v7, %v3317_v49  ;;  %v3339_v59 = vrot.slane %v3338_v56, 1 }
 0x681   :  { %v3284_v33 = vmul.f32 %v3223_v34, %v3092_v55  ;;  %v3370_v1 = vrot.slane %v3369_v63, 4  ;;  %v3285_v58 = vmul.f32 %v3228_v13, %v3093_v3  ;;  %v3365_v52 = vrot.slane %v3364_v48, 2  ;;  %v3099_v55 = vld [vmem:[#allocation10 + $0xf8] sm:$0xff] }
 0x682   :  { %v3360_v25 = vrot.slane %v3359_v42, 1  ;;  %v3325_v8 = vrot.slane %v3324_v60, 1  ;;  %v3407_v4 = vpack.c.bf16 %v3319_v50, %v3319_v50 }
 0x683   :  { %v3371_v61 = vadd.f32 %v3370_v1, %v3369_v63  ;;  %v3376_v44 = vadd.f32 %v3285_v58, %v3284_v33  ;;  %v3366_v30 = vadd.f32 %v3365_v52, %v3364_v48 }
 0x684   :  { %v3233_v16 = vpop.permute.xlu1 %3232  ;;  %v3238_v36 = vpop.permute.xlu0 %3237  ;;  %v3361_v23 = vadd.f32 %v3360_v25, %v3359_v42  ;;  %v3326_v45 = vadd.f32 %v3325_v8, %v3324_v60  ;;  %v3340_v42 = vadd.f32 %v3339_v59, %v3338_v56 }
 0x685   :  { %v3286_v40 = vmul.f32 %v3233_v16, %v3094_v18  ;;  %v3287_v10 = vmul.f32 %v3238_v36, %v3095_v20  ;;  %v3372_v46 = vrot.slane %v3371_v61, 2  ;;  %v3377_v15 = vrot.slane %v3376_v44, 4 }
 0x686   :  { %v3367_v37 = vrot.slane %v3366_v30, 1  ;;  %v3332_v20 = vrot.slane %v3331_v54, 1  ;;  %v3408_v7 = vpack.c.bf16 %v3326_v45, %v3326_v45 }
 0x687   :  { %v3383_v41 = vadd.f32 %v3287_v10, %v3286_v40  ;;  %v3378_v57 = vadd.f32 %v3377_v15, %v3376_v44  ;;  %v3373_v31 = vadd.f32 %v3372_v46, %v3371_v61  ;;  %v3354_v44 = vadd.f32 %v3353_v11, %v3352_v27 }
 0x688   :  { %v3243_v2 = vpop.permute.xlu1 %3242  ;;  %v3248_v5 = vpop.permute.xlu0 %3247  ;;  %v3368_v52 = vadd.f32 %v3367_v37, %v3366_v30  ;;  %v3406_v10 = vpack.c.bf16 %v3312_v53, %v3312_v53  ;;  %v3333_v49 = vadd.f32 %v3332_v20, %v3331_v54  ;;  %v3413_v15 = vpack.c.bf16 %v3361_v23, %v3361_v23 }
 0x689   :  { %v3384_v43 = vrot.slane %v3383_v41, 4  ;;  %v3288_v28 = vmul.f32 %v3243_v2, %v3096_v6  ;;  %v3379_v51 = vrot.slane %v3378_v57, 2  ;;  %v3289_v47 = vmul.f32 %v3248_v5, %v3097_v21 }
 0x68a   :  { %v3374_v14 = vrot.slane %v3373_v31, 1  ;;  %v3412_v2 = vpack.c.bf16 %v3354_v44, %v3354_v44  ;;  %v3470_v27 = vunpack.c.l.b16 %v3406_v10  ;;  %v3409_v53 = vpack.c.bf16 %v3333_v49, %v3333_v49 }
 0x68b   :  { %v3385_v3 = vadd.f32 %v3384_v43, %v3383_v41  ;;  %v3380_v48 = vadd.f32 %v3379_v51, %v3378_v57  ;;  %v3390_v63 = vadd.f32 %v3289_v47, %v3288_v28  ;;  %v3414_v41 = vpack.c.bf16 %v3368_v52, %v3368_v52 }
 0x68c   :  { %v3253_v34 = vpop.permute.xlu1 %3252  ;;  %v3258_v13 = vpop.permute.xlu0 %3257  ;;  %v3375_v16 = vadd.f32 %v3374_v14, %v3373_v31  ;;  %v3347_v57 = vadd.f32 %v3346_v62, %v3345_v29  ;;  %v3477_v28 = vunpack.c.l.b16 %v3413_v15  ;;  %v3471_v54 = vunpack.c.l.b16 %v3407_v4  ;;  %v5907_v15 = vld [vmem:[#allocation29_spill] sm:$0xff] }
 0x68d   :  { %v3386_v17 = vrot.slane %v3385_v3, 2  ;;  %v3290_v33 = vmul.f32 %v3253_v34, %v3098_v39  ;;  %v3291_v1 = vmul.f32 %v3258_v13, %v3099_v55  ;;  %v3381_v58 = vrot.slane %v3380_v48, 1 }
 0x68e   :  { %v3391_v18 = vrot.slane %v3390_v63, 4  ;;  %v3415_v30 = vpack.c.bf16 %v3375_v16, %v3375_v16  ;;  %v3410_v47 = vpack.c.bf16 %v3340_v42, %v3340_v42  ;;  %v3478_v39 = vunpack.c.l.b16 %v3414_v41 }
 0x68f   :  { %v3387_v12 = vadd.f32 %v3386_v17, %v3385_v3  ;;  %v3397_v9 = vadd.f32 %v3291_v1, %v3290_v33  ;;  %v3382_v35 = vadd.f32 %v3381_v58, %v3380_v48  ;;  %v3411_v25 = vpack.c.bf16 %v3347_v57, %v3347_v57 }
 0x690   :  { %v3392_v61 = vadd.f32 %v3391_v18, %v3390_v63  ;;  %v3476_v56 = vunpack.c.l.b16 %v3412_v2  ;;  %v3479_v3 = vunpack.c.l.b16 %v3415_v30  ;;  %v3484_v29 = vsel %vm2436_vm1, %v5815_v26, %v5813_v0  ;;  %v5910_v2 = vld [vmem:[#allocation31_spill] sm:$0xff] }
 0x691   :  { %v3388_v36 = vrot.slane %v3387_v12, 1  ;;  %v3398_v40 = vrot.slane %v3397_v9, 4  ;;  %v3416_v31 = vpack.c.bf16 %v3382_v35, %v3382_v35  ;;  %v3472_v37 = vunpack.c.l.b16 %v3408_v7 }
 0x692   :  { %v3393_v46 = vrot.slane %v3392_v61, 2  ;;  %v3473_v34 = vunpack.c.l.b16 %v3409_v53  ;;  %v3491_v13 = vsel %vm2436_vm1, %v3477_v28, %v3476_v56  ;;  %v3485_v33 = vsel %vm2438_vm2, %v3470_v27, %v3484_v29 }
 0x693   :  { %v3389_v6 = vadd.f32 %v3388_v36, %v3387_v12  ;;  %v3399_v22 = vadd.f32 %v3398_v40, %v3397_v9  ;;  %v3480_v48 = vunpack.c.l.b16 %v3416_v31  ;;  %v3474_v1 = vunpack.c.l.b16 %v3410_v47  ;;  %v4707_v36 = vld [vmem:[%s5887_s9] sm:$0x1f]  ;;  %v5912_v31 = vld [vmem:[#allocation30_spill] sm:$0xff]  ;;  %s4981_s9 = smov [#allocation18]  }
 0x694   :  { %v3394_v21 = vadd.f32 %v3393_v46, %v3392_v61  ;;  %v3492_v50 = vsel %vm2438_vm2, %v3478_v39, %v3491_v13  ;;  %v3486_v58 = vsel %vm2440_vm3, %v3471_v54, %v3485_v33  ;;  %v3475_v18 = vunpack.c.l.b16 %v3411_v25  ;;  %v5906_v46 = vld [vmem:[#allocation28_spill] sm:$0xff]  ;;  %s3832_s14 = sshll.u32 %s4981_s9, 4  ;;  %s3833_s14 = int_to_ptr.vmem [resolvable:$true] %s3832_s14 }
 0x695   :  { %v3400_v5 = vrot.slane %v3399_v22, 2  ;;  %v3417_v60 = vpack.c.bf16 %v3389_v6, %v3389_v6  ;;  %v3493_v20 = vsel %vm2440_vm3, %v3479_v3, %v3492_v50  ;;  %v3487_v26 = vsel %vm2442_vm4, %v3472_v37, %v3486_v58  ;;  %s4906_s16 = scalar_lea.vmem %s3833_s14, 512  ;;  %p4911_p3 = scmp.lt.s32.totalorder %s3833_s14, %s3833_s14 }
 0x696   :  { %v3395_v43 = vrot.slane %v3394_v21, 1  ;;  %v3494_v23 = vsel %vm2442_vm4, %v3480_v48, %v3493_v20  ;;  %v3488_v9 = vsel %vm2444_vm5, %v3473_v34, %v3487_v26  ;;  %v1299_v40 = vrot.slane %v4707_v36, %v5223_v19  ;;  %v3793_v26 = vld [vmem:[#allocation8 + $0x10] sm:$0xff]  ;;  %p4907_p2 = scmp.ne.s32.totalorder %s3833_s14, %s4906_s16  ;;  %p4912_p4 = scmp.lt.s32.totalorder %s4906_s16, %s4906_s16 }
 0x697   :  { %v3401_v51 = vadd.f32 %v3400_v5, %v3399_v22  ;;  %v3481_v14 = vunpack.c.l.b16 %v3417_v60  ;;  %v3489_v62 = vsel %vm2446_vm6, %v3474_v1, %v3488_v9  ;;  %v1307_v10 = vrot.slane %v4707_v36, %v5228_v24  ;;  %v5908_v22 = vld [vmem:[#allocation27_spill] sm:$0xff]  ;;  %v5911_v5 = vld [vmem:[#allocation32_spill] sm:$0xff] }
 0x698   :  { %v3396_v55 = vadd.f32 %v3395_v43, %v3394_v21  ;;  %v3490_v61 = vsel %vm2448_vm7, %v3475_v18, %v3489_v62  ;;  %v1303_v45 = vrot.slane %v4707_v36, %v5231_v32  ;;  %v1311_v35 = vrot.slane %v4707_v36, %v5524_v38  ;;  %v5909_v21 = vld [vmem:[#allocation33_spill] sm:$0xff]  ;;  %p4913_p5 = por %p4912_p4, %p4911_p3 }
 0x699   :  { %v3402_v11 = vrot.slane %v3401_v51, 1  ;;  %v3495_v59 = vsel %vm2444_vm5, %v3481_v14, %v3494_v23  ;;  %v1770_v49 = vadd.f32 %v5906_v46, %v1299_v40  ;;  %v1813_v6 = vadd.f32 %v5907_v15, %v1307_v10 }
 0x69a   :  { %v3418_v63 = vpack.c.bf16 %v3396_v55, %v3396_v55  ;;  %v1811_v4 = vadd.f32 %v5908_v22, %v1303_v45  ;;  %v1854_v57 = vadd.f32 %v5909_v21, %v1311_v35  ;;  %v1774_v30 = vadd.f32 %v5910_v2, %v1299_v40  ;;  %p4914_p6 = pnand %p4913_p5, %p4907_p2 }
 0x69b   :  { %v3403_v17 = vadd.f32 %v3402_v11, %v3401_v51  ;;  %v1817_v19 = vadd.f32 %v5911_v5, %v1307_v10  ;;  %v1815_v38 = vadd.f32 %v5912_v31, %v1303_v45  ;;  %v5913_v51 = vld [vmem:[#allocation34_spill] sm:$0xff] }
 0x69c   :  { %v3482_v8 = vunpack.c.l.b16 %v3418_v63  ;;  %v1857_v54 = vadd.f32 %v5913_v51, %v1311_v35 }
 0x69d   :  { %v3419_v0 = vpack.c.bf16 %v3403_v17, %v3403_v17 }
 0x69e   :  { %v3496_v52 = vsel %vm2446_vm6, %v3482_v8, %v3495_v59 }
 0x69f   :  { %v3483_v12 = vunpack.c.l.b16 %v3419_v0 }
 0x6a1   :  { %v3497_v44 = vsel %vm2448_vm7, %v3483_v12, %v3496_v52 }
 0x6a2   :  { %v3498_v16 = vpack.c.b16 %v3497_v44, %v3490_v61  ;;  %v3794_v44 = vld [vmem:[#allocation8 + $0x18] sm:$0xff] }
 0x6a4   :  { %3693 = vmatmul.mubr.bf16.vlgmr.msra.gmra.mrb[8].mxu1 %v3498_v16  ;;  %3736 = vmatmul.mubr.bf16.vlgmr.msra.gmra.mrb[12].mxu0 %v3498_v16 }
 0x777   :  { %v3694_v42 = vpop.f32.mrb[8].mxu1  ;;  %v3737_v41 = vpop.f32.mrb[12].mxu0 }
 0x778   :  { %v3746_v27 = vadd.f32 %v3694_v42, %v1770_v49  ;;  %v3748_v24 = vadd.f32 %v3737_v41, %v1813_v6  ;;  %v3696_v7 = vpop.f32.mrb[9].mxu1  ;;  %v3739_v32 = vpop.f32.mrb[13].mxu0 }
 0x779   :  { %v3747_v43 = vadd.f32 %v3696_v7, %v1811_v4  ;;  %v3749_v53 = vadd.f32 %v3739_v32, %v1854_v57  ;;  %v3698_v28 = vpop.f32.mrb[10].mxu1  ;;  %v3741_v60 = vpop.f32.mrb[14].mxu0 }
 0x77a   :  { %v4098_v47 = vmul.f32 -1.442695, %v3746_v27  ;;  %v3750_v39 = vadd.f32 %v3698_v28, %v1774_v30  ;;  %v3752_v55 = vadd.f32 %v3741_v60, %v1817_v19  ;;  %v3700_v25 = vpop.f32.mrb[11].mxu1  ;;  %v3743_v56 = vpop.f32.mrb[15].mxu0 }
 0x77b   :  { %v4100_v3 = vmul.f32 -1.442695, %v3747_v43  ;;  %v3751_v11 = vadd.f32 %v3700_v25, %v1815_v38  ;;  %v3753_v29 = vadd.f32 %v3743_v56, %v1857_v54  ;;  %v4102_v63 = vmul.f32 -1.442695, %v3749_v53 }
 0x77c   :  { %4675 = vpow2.f32 %v4098_v47  ;;  %v4099_v37 = vmul.f32 -1.442695, %v3750_v39 }
 0x77d   :  { %4677 = vpow2.f32 %v4100_v3  ;;  %v4101_v48 = vmul.f32 -1.442695, %v3751_v11  ;;  %v4103_v17 = vmul.f32 -1.442695, %v3753_v29 }
 0x77e   :  { %4679 = vpow2.f32 %v4099_v37 }
 0x77f   :  { %4681 = vpow2.f32 %v4101_v48 }
 0x780   :  { %4683 = vtanh.f32 %v3748_v24 }
 0x781   :  { %4685 = vpow2.f32 %v4102_v63 }
 0x782   :  { %4687 = vtanh.f32 %v3752_v55 }
 0x786   :  { %v4676_v34 = vpop.eup %4675 }
 0x787   :  { %v4678_v13 = vpop.eup %4677  ;;  %v3760_v14 = vadd.f32 1.0, %v4676_v34 }
 0x788   :  { %v3772_v33 = vadd.f32 1.0, %v4678_v13  ;;  %v4680_v1 = vpop.eup %4679 }
 0x789   :  { %4689 = vrcp.f32 %v3760_v14  ;;  %v3761_v50 = vadd.f32 1.0, %v4680_v1  ;;  %v4682_v8 = vpop.eup %4681 }
 0x78a   :  { %4691 = vrcp.f32 %v3772_v33  ;;  %v3773_v58 = vadd.f32 1.0, %v4682_v8  ;;  %v4684_v18 = vpop.eup %4683 }
 0x78b   :  { %4693 = vpow2.f32 %v4103_v17  ;;  %v4686_v20 = vpop.eup %4685 }
 0x78c   :  { %4695 = vrcp.f32 %v3761_v50  ;;  %v4688_v0 = vpop.eup %4687  ;;  %v3786_v59 = vadd.f32 1.0, %v4686_v20 }
 0x78d   :  { %4697 = vrcp.f32 %v3773_v58 }
 0x78e   :  { %4699 = vrcp.f32 %v3786_v59 }
 0x793   :  { %v4690_v23 = vpop.eup %4689 }
 0x794   :  { %v4692_v12 = vpop.eup %4691  ;;  %v3797_v9 = vmul.f32 %v4690_v23, %v4684_v18 }
 0x795   :  { %v4694_v62 = vpop.eup %4693  ;;  %v3795_v52 = vmul.f32 %v4692_v12, %v3793_v26 }
 0x796   :  { %v4696_v61 = vpop.eup %4695  ;;  %v3787_v10 = vadd.f32 1.0, %v4694_v62 }
 0x797   :  { %v3799_v16 = vadd.f32 %v3797_v9, %v3795_v52  ;;  %v3798_v36 = vmul.f32 %v4696_v61, %v4688_v0  ;;  %v4698_v40 = vpop.eup %4697 }
 0x798   :  { %v3796_v45 = vmul.f32 %v4698_v40, %v3794_v44 }
 0x799   :  { %4701 = vtanh.f32 %v3799_v16  ;;  %3813 = vst [vmem:[#allocation18 + $0x10] sm:$0xff] %v3799_v16 }
 0x79a   :  { %v3800_v35 = vadd.f32 %v3798_v36, %v3796_v45  ;;  %4703 = vrcp.f32 %v3787_v10 }
 0x79c   :  { %4705 = vtanh.f32 %v3800_v35  ;;  %3814 = vst [vmem:[#allocation18 + $0x18] sm:$0xff] %v3800_v35 }
 0x79d   :  { %4917 = shalt.err (!%p4914_p6)
}
 0x79e   :  { %s4918_s26 = scalar_lea.hbm %s5891_s13, 512 }
 0x79f   :  { %p4919_p7 = scmp.ne.s32.totalorder %s5891_s13, %s4918_s26  ;;  %p4922_p8 = scmp.lt.u32.totalorder %s4918_s26, %s5891_s13 }
 0x7a1   :  { %p4924_p9 = pnand %p4922_p8, %p4919_p7 }
 0x7a3   :  { %4927 = shalt.err (!%p4924_p9)
}
 0x7a4   :  { %3838 = dma.vmem_to_hbm [thread:$0]  %s3833_s14, 512, %s5891_s13, [#allocation19], %s4966_s20, %s4966_s20, %s4967_s21   ;;  %v4700_v46 = vpop.eup %4699 }
 0x7a5   :  { %v4702_v49 = vpop.eup %4701  ;;  %s4982_s5 = smov [#allocation17]  }
 0x7a6   :  { %v3803_v15 = vmul.f32 %v4702_v49, %v4700_v46  ;;  %s3820_s2 = sshll.u32 %s4982_s5, 4  ;;  %v4704_v6 = vpop.eup %4703  ;;  %s3821_s2 = int_to_ptr.vmem [resolvable:$true] %s3820_s2 }
 0x7a7   :  { %v4706_v22 = vpop.eup %4705  ;;  %s4928_s28 = scalar_lea.vmem %s3821_s2, 512  ;;  %p4933_p11 = scmp.lt.s32.totalorder %s3821_s2, %s3821_s2 }
 0x7a8   :  { %3808 = vst [vmem:[#allocation17 + $0x10] sm:$0xff] %v3803_v15  ;;  %v3804_v4 = vmul.f32 %v4706_v22, %v4704_v6  ;;  %p4929_p10 = scmp.ne.s32.totalorder %s3821_s2, %s4928_s28  ;;  %p4934_p12 = scmp.lt.s32.totalorder %s4928_s28, %s4928_s28 }
 0x7aa   :  { %3809 = vst [vmem:[#allocation17 + $0x18] sm:$0xff] %v3804_v4  ;;  %p4935_p13 = por %p4934_p12, %p4933_p11 }
 0x7ac   :  { %p4936_p0 = pnand %p4935_p13, %p4929_p10 }
 0x7ae   :  { %4939 = shalt.err (!%p4936_p0)
}
 0x7af   :  { %s4940_s27 = scalar_lea.hbm %s5890_s12, 512 }
 0x7b0   :  { %p4941_p1 = scmp.ne.s32.totalorder %s5890_s12, %s4940_s27  ;;  %p4944_p2 = scmp.lt.u32.totalorder %s4940_s27, %s5890_s12 }
 0x7b2   :  { %p4946_p3 = pnand %p4944_p2, %p4941_p1 }
 0x7b4   :  { %4949 = shalt.err (!%p4946_p3)
}
 0x7b5   :  { %3826 = dma.vmem_to_hbm [thread:$0]  %s3821_s2, 512, %s5890_s12, [#allocation4], %s4966_s20, %s4966_s20, %s4967_s21  }
 0x7b6   :  { %4960 = dma.done.wait [#allocation4], 512  }
 0x7b7   :  { %4961 = vsyncadd [#allocation4], 4294966784 }
 0x7b8   :  { %4962 = dma.done.wait [#allocation19], 512  }
 0x7b9   :  { %4963 = vsyncadd [#allocation19], 4294966784 }
 0x7ba   :  { %3845 = vsyncpa [#allocation3], 1 }
 0x7bb   :  { %3846 = vsyncpa [#allocation6], 1 }
 0x7bc   :  { %3847 = vsyncpa [#allocation9], 1 }
 0x7bd   :  { %3848 = vsyncpa [#allocation12], 1 }
 0x7be   :  { %3849 = vsyncpa [#allocation15], 1 }
 0x7bf   :  { %3850 = vsyncpa [#allocation4], 1 }
 0x7c0   :  { %3851 = vsyncpa [#allocation19], 1 }

// kernel: tpu_custom_call.1
= control target key start
LH: loop header
LB: loop body
LE: loop exit
PB: predicated region body
PF: predicated region fallthrough
CT: control target
= control target key end

     0   :  { %19 = vsyncpa [#allocation3], 0  ;;  %s5878_s0 = inlined_call_operand.hbm [shape: f32[16,128], index: 0, kind: input, shape index: {}]   ;;  %s5879_s1 = inlined_call_operand.hbm [shape: f32[16,128], index: 1, kind: input, shape index: {}]   ;;  %s5880_s2 = inlined_call_operand.hbm [shape: f32[2,16,128], index: 2, kind: input, shape index: {}]   ;;  %s5881_s3 = inlined_call_operand.hbm [shape: f32[2,16,128], index: 3, kind: input, shape index: {}]   ;;  %s5882_s4 = inlined_call_operand.hbm [shape: f32[16,16,128], index: 4, kind: input, shape index: {}]   ;;  %s5883_s5 = inlined_call_operand.hbm [shape: f32[16,16,128], index: 5, kind: input, shape index: {}]   ;;  %s5884_s6 = inlined_call_operand.hbm [shape: bf16[512,512], index: 6, kind: input, shape index: {}]   ;;  %s5885_s7 = inlined_call_operand.vmem [shape: f32[1,512], index: 7, kind: input, shape index: {}]   ;;  %s5886_s8 = inlined_call_operand.hbm [shape: bf16[256,640], index: 8, kind: input, shape index: {}]   ;;  %s5887_s9 = inlined_call_operand.vmem [shape: f32[1,640], index: 9, kind: input, shape index: {}]   ;;  %s5888_s10 = inlined_call_operand.hbm [shape: bf16[128,512], index: 10, kind: input, shape index: {}]   ;;  %s5889_s11 = inlined_call_operand.vmem [shape: bf16[1,128], index: 11, kind: input, shape index: {}]   ;;  %s5890_s12 = inlined_call_operand.hbm [shape: f32[2,16,128], index: 12, kind: output, shape index: {0}]   ;;  %s5891_s13 = inlined_call_operand.hbm [shape: f32[2,16,128], index: 13, kind: output, shape index: {1}]  }
   0x1   :  { %20 = vsyncpa [#allocation6], 0 }
   0x2   :  { %21 = vsyncpa [#allocation9], 0 }
   0x3   :  { %22 = vsyncpa [#allocation12], 0 }
   0x4   :  { %23 = vsyncpa [#allocation15], 0 }
   0x5   :  { %24 = vsyncpa [#allocation4], 0 }
   0x6   :  { %25 = vsyncpa [#allocation19], 0  ;;  %s4964_s25 = smov [#allocation5]   ;;  %s4965_s27 = smov [#allocation8]  }
   0x7   :  { %s43_s26 = sshll.u32 %s4964_s25, 4  ;;  %s67_s28 = sshll.u32 %s4965_s27, 4  ;;  %s44_s26 = int_to_ptr.vmem [resolvable:$true] %s43_s26  ;;  %s5053_s28 = int_to_ptr.vmem [resolvable:$true] %s67_s28 }
   0x8   :  { %s4708_s14 = scalar_lea.hbm %s5879_s1, 256 }
   0x9   :  { %p4709_p0 = scmp.ne.s32.totalorder %s5879_s1, %s4708_s14  ;;  %p4712_p1 = scmp.lt.u32.totalorder %s4708_s14, %s5879_s1 }
   0xb   :  { %p4714_p2 = pnand %p4712_p1, %p4709_p0 }
   0xd   :  { %4717 = shalt.err (!%p4714_p2)
}
   0xe   :  { %s4718_s19 = scalar_lea.vmem %s44_s26, 256  ;;  %p4723_p4 = scmp.lt.s32.totalorder %s44_s26, %s44_s26 }
   0xf   :  { %p4719_p3 = scmp.ne.s32.totalorder %s44_s26, %s4718_s19  ;;  %p4724_p5 = scmp.lt.s32.totalorder %s4718_s19, %s4718_s19 }
  0x11   :  { %p4725_p6 = por %p4724_p5, %p4723_p4 }
  0x13   :  { %p4726_p7 = pnand %p4725_p6, %p4719_p3 }
  0x15   :  { %4729 = shalt.err (!%p4726_p7)
}
  0x16   :  { %s4966_s20 = smov 128   ;;  %s4967_s21 = smov 8  }
  0x17   :  { %49 = dma.hbm_to_vmem [thread:$0]  %s5879_s1, 256, %s44_s26, [#allocation6], %s4966_s20, %s4966_s20, %s4967_s21  }
  0x18   :  { %s4730_s27 = scalar_lea.hbm %s5881_s3, 512 }
  0x19   :  { %p4731_p8 = scmp.ne.s32.totalorder %s5881_s3, %s4730_s27  ;;  %p4734_p9 = scmp.lt.u32.totalorder %s4730_s27, %s5881_s3 }
  0x1b   :  { %p4736_p10 = pnand %p4734_p9, %p4731_p8 }
  0x1d   :  { %4739 = shalt.err (!%p4736_p10)
}
  0x1e   :  { %s4740_s16 = scalar_lea.vmem %s5053_s28, 512  ;;  %p4745_p12 = scmp.lt.s32.totalorder %s5053_s28, %s5053_s28 }
  0x1f   :  { %p4741_p11 = scmp.ne.s32.totalorder %s5053_s28, %s4740_s16  ;;  %p4746_p13 = scmp.lt.s32.totalorder %s4740_s16, %s4740_s16 }
  0x21   :  { %p4747_p0 = por %p4746_p13, %p4745_p12 }
  0x23   :  { %p4748_p1 = pnand %p4747_p0, %p4741_p11 }
  0x25   :  { %4751 = shalt.err (!%p4748_p1)
}
  0x26   :  { %73 = dma.hbm_to_vmem [thread:$0]  %s5881_s3, 512, %s5053_s28, [#allocation9], %s4966_s20, %s4966_s20, %s4967_s21  }
  0x27   :  { %s4968_s17 = smov [#allocation11]   ;;  %s4969_s19 = smov [#allocation14]  }
  0x28   :  { %s91_s18 = sshll.u32 %s4968_s17, 4  ;;  %s117_s22 = sshll.u32 %s4969_s19, 4  ;;  %s92_s18 = int_to_ptr.vmem [resolvable:$true] %s91_s18  ;;  %s5090_s22 = int_to_ptr.vmem [resolvable:$true] %s117_s22 }
  0x29   :  { %s4752_s25 = scalar_lea.hbm %s5883_s5, 4096 }
  0x2a   :  { %p4753_p2 = scmp.ne.s32.totalorder %s5883_s5, %s4752_s25  ;;  %p4756_p3 = scmp.lt.u32.totalorder %s4752_s25, %s5883_s5 }
  0x2c   :  { %p4758_p4 = pnand %p4756_p3, %p4753_p2 }
  0x2e   :  { %4761 = shalt.err (!%p4758_p4)
}
  0x2f   :  { %s4762_s3 = scalar_lea.vmem %s92_s18, 4096  ;;  %p4767_p6 = scmp.lt.s32.totalorder %s92_s18, %s92_s18 }
  0x30   :  { %p4763_p5 = scmp.ne.s32.totalorder %s92_s18, %s4762_s3  ;;  %p4768_p7 = scmp.lt.s32.totalorder %s4762_s3, %s4762_s3 }
  0x32   :  { %p4769_p8 = por %p4768_p7, %p4767_p6 }
  0x34   :  { %p4770_p9 = pnand %p4769_p8, %p4763_p5 }
  0x36   :  { %4773 = shalt.err (!%p4770_p9)
}
  0x37   :  { %97 = dma.hbm_to_vmem [thread:$0]  %s5883_s5, 4096, %s92_s18, [#allocation12], %s4966_s20, %s4966_s20, %s4967_s21  }
  0x38   :  { %s4774_s26 = scalar_lea.hbm %s5886_s8, 10240 }
  0x39   :  { %p4775_p10 = scmp.ne.s32.totalorder %s5886_s8, %s4774_s26  ;;  %p4778_p11 = scmp.lt.u32.totalorder %s4774_s26, %s5886_s8 }
  0x3b   :  { %p4780_p12 = pnand %p4778_p11, %p4775_p10 }
  0x3d   :  { %4783 = shalt.err (!%p4780_p12)
}
  0x3e   :  { %s4784_s25 = scalar_lea.vmem %s5090_s22, 10240  ;;  %p4789_p0 = scmp.lt.s32.totalorder %s5090_s22, %s5090_s22 }
  0x3f   :  { %p4785_p13 = scmp.ne.s32.totalorder %s5090_s22, %s4784_s25  ;;  %p4790_p1 = scmp.lt.s32.totalorder %s4784_s25, %s4784_s25 }
  0x41   :  { %p4791_p2 = por %p4790_p1, %p4789_p0 }
  0x43   :  { %p4792_p3 = pnand %p4791_p2, %p4785_p13 }
  0x45   :  { %4795 = shalt.err (!%p4792_p3)
}
  0x46   :  { %s4970_s5 = smov 320   ;;  %s4971_s18 = smov 20  }
  0x47   :  { %123 = dma.hbm_to_vmem [thread:$0]  %s5886_s8, 10240, %s5090_s22, [#allocation15], %s4970_s5, %s4970_s5, %s4971_s18  }
  0x48   :  { %s4972_s30 = smov [#allocation2]   ;;  %s4973_s3 = smov [#allocation7]  }
  0x49   :  { %s31_s14 = sshll.u32 %s4972_s30, 4  ;;  %s55_s28 = sshll.u32 %s4973_s3, 4  ;;  %s32_s14 = int_to_ptr.vmem [resolvable:$true] %s31_s14  ;;  %s5124_s28 = int_to_ptr.vmem [resolvable:$true] %s55_s28 }
  0x4a   :  { %s4796_s1 = scalar_lea.hbm %s5878_s0, 256 }
  0x4b   :  { %p4797_p4 = scmp.ne.s32.totalorder %s5878_s0, %s4796_s1  ;;  %p4800_p5 = scmp.lt.u32.totalorder %s4796_s1, %s5878_s0 }
  0x4d   :  { %p4802_p6 = pnand %p4800_p5, %p4797_p4 }
  0x4f   :  { %4805 = shalt.err (!%p4802_p6)
}
  0x50   :  { %s4806_s8 = scalar_lea.vmem %s32_s14, 256  ;;  %p4811_p8 = scmp.lt.s32.totalorder %s32_s14, %s32_s14 }
  0x51   :  { %p4807_p7 = scmp.ne.s32.totalorder %s32_s14, %s4806_s8  ;;  %p4812_p9 = scmp.lt.s32.totalorder %s4806_s8, %s4806_s8 }
  0x53   :  { %p4813_p10 = por %p4812_p9, %p4811_p8 }
  0x55   :  { %p4814_p11 = pnand %p4813_p10, %p4807_p7 }
  0x57   :  { %4817 = shalt.err (!%p4814_p11)
}
  0x58   :  { %37 = dma.hbm_to_vmem [thread:$0]  %s5878_s0, 256, %s32_s14, [#allocation3], %s4966_s20, %s4966_s20, %s4967_s21  }
  0x59   :  { %s4818_s18 = scalar_lea.hbm %s5880_s2, 512 }
  0x5a   :  { %p4819_p12 = scmp.ne.s32.totalorder %s5880_s2, %s4818_s18  ;;  %p4822_p13 = scmp.lt.u32.totalorder %s4818_s18, %s5880_s2 }
  0x5c   :  { %p4824_p0 = pnand %p4822_p13, %p4819_p12 }
  0x5e   :  { %4827 = shalt.err (!%p4824_p0)
}
  0x5f   :  { %s4828_s15 = scalar_lea.vmem %s5124_s28, 512  ;;  %p4833_p2 = scmp.lt.s32.totalorder %s5124_s28, %s5124_s28 }
  0x60   :  { %p4829_p1 = scmp.ne.s32.totalorder %s5124_s28, %s4828_s15  ;;  %p4834_p3 = scmp.lt.s32.totalorder %s4828_s15, %s4828_s15 }
  0x62   :  { %p4835_p4 = por %p4834_p3, %p4833_p2 }
  0x64   :  { %p4836_p5 = pnand %p4835_p4, %p4829_p1 }
  0x66   :  { %4839 = shalt.err (!%p4836_p5)
}
  0x67   :  { %61 = dma.hbm_to_vmem [thread:$0]  %s5880_s2, 512, %s5124_s28, [#allocation6], %s4966_s20, %s4966_s20, %s4967_s21  }
  0x68   :  { %s4974_s16 = smov [#allocation10]   ;;  %s4975_s26 = smov [#allocation13]  }
  0x69   :  { %s79_s1 = sshll.u32 %s4974_s16, 4  ;;  %s103_s17 = sshll.u32 %s4975_s26, 4  ;;  %s80_s1 = int_to_ptr.vmem [resolvable:$true] %s79_s1  ;;  %s5161_s17 = int_to_ptr.vmem [resolvable:$true] %s103_s17 }
  0x6a   :  { %s4840_s8 = scalar_lea.hbm %s5882_s4, 4096 }
  0x6b   :  { %p4841_p6 = scmp.ne.s32.totalorder %s5882_s4, %s4840_s8  ;;  %p4844_p7 = scmp.lt.u32.totalorder %s4840_s8, %s5882_s4 }
  0x6d   :  { %p4846_p8 = pnand %p4844_p7, %p4841_p6 }
  0x6f   :  { %4849 = shalt.err (!%p4846_p8)
}
  0x70   :  { %s4850_s2 = scalar_lea.vmem %s80_s1, 4096  ;;  %p4855_p10 = scmp.lt.s32.totalorder %s80_s1, %s80_s1 }
  0x71   :  { %p4851_p9 = scmp.ne.s32.totalorder %s80_s1, %s4850_s2  ;;  %p4856_p11 = scmp.lt.s32.totalorder %s4850_s2, %s4850_s2 }
  0x73   :  { %p4857_p12 = por %p4856_p11, %p4855_p10 }
  0x75   :  { %p4858_p13 = pnand %p4857_p12, %p4851_p9 }
  0x77   :  { %4861 = shalt.err (!%p4858_p13)
}
  0x78   :  { %85 = dma.hbm_to_vmem [thread:$0]  %s5882_s4, 4096, %s80_s1, [#allocation9], %s4966_s20, %s4966_s20, %s4967_s21  }
  0x79   :  { %s4862_s30 = scalar_lea.hbm %s5884_s6, 16384 }
  0x7a   :  { %p4863_p0 = scmp.ne.s32.totalorder %s5884_s6, %s4862_s30  ;;  %p4866_p1 = scmp.lt.u32.totalorder %s4862_s30, %s5884_s6 }
  0x7c   :  { %p4868_p2 = pnand %p4866_p1, %p4863_p0 }
  0x7e   :  { %4871 = shalt.err (!%p4868_p2)
}
  0x7f   :  { %s4872_s16 = scalar_lea.vmem %s5161_s17, 16384  ;;  %p4877_p4 = scmp.lt.s32.totalorder %s5161_s17, %s5161_s17 }
  0x80   :  { %p4873_p3 = scmp.ne.s32.totalorder %s5161_s17, %s4872_s16  ;;  %p4878_p5 = scmp.lt.s32.totalorder %s4872_s16, %s4872_s16 }
  0x82   :  { %p4879_p6 = por %p4878_p5, %p4877_p4 }
  0x84   :  { %p4880_p7 = pnand %p4879_p6, %p4873_p3 }
  0x86   :  { %4883 = shalt.err (!%p4880_p7)
}
  0x87   :  { %s4976_s4 = smov 256   ;;  %s4977_s1 = smov 16  }
  0x88   :  { %109 = dma.hbm_to_vmem [thread:$0]  %s5884_s6, 16384, %s5161_s17, [#allocation12], %s4976_s4, %s4976_s4, %s4977_s1  }
  0x89   :  { %s4978_s23 = smov [#allocation16]   ;;  %s4884_s25 = scalar_lea.hbm %s5888_s10, 4096 }
  0x8a   :  { %s131_s8 = sshll.u32 %s4978_s23, 4  ;;  %p4885_p8 = scmp.ne.s32.totalorder %s5888_s10, %s4884_s25  ;;  %s132_s8 = int_to_ptr.vmem [resolvable:$true] %s131_s8 }
  0x8b   :  { %p4888_p9 = scmp.lt.u32.totalorder %s4884_s25, %s5888_s10 }
  0x8d   :  { %p4890_p10 = pnand %p4888_p9, %p4885_p8 }
  0x8f   :  { %4893 = shalt.err (!%p4890_p10)
}
  0x90   :  { %s4894_s27 = scalar_lea.vmem %s132_s8, 4096  ;;  %p4899_p12 = scmp.lt.s32.totalorder %s132_s8, %s132_s8 }
  0x91   :  { %p4895_p11 = scmp.ne.s32.totalorder %s132_s8, %s4894_s27  ;;  %p4900_p13 = scmp.lt.s32.totalorder %s4894_s27, %s4894_s27 }
  0x93   :  { %p4901_p0 = por %p4900_p13, %p4899_p12 }
  0x95   :  { %p4902_p1 = pnand %p4901_p0, %p4895_p11 }
  0x97   :  { %4905 = shalt.err (!%p4902_p1)
}
  0x98   :  { %137 = dma.hbm_to_vmem [thread:$0]  %s5888_s10, 4096, %s132_s8, [#allocation15], %s4976_s4, %s4976_s4, %s4977_s1  }
  0x99   :  { %4950 = dma.done.wait [#allocation3], 256  }
  0x9a   :  { %4951 = vsyncadd [#allocation3], 4294967040 }
  0x9b   :  { %4952 = dma.done.wait [#allocation6], 768  }
  0x9c   :  { %4953 = vsyncadd [#allocation6], 4294966528 }
  0x9d   :  { %4954 = dma.done.wait [#allocation9], 4608  }
  0x9e   :  { %4955 = vsyncadd [#allocation9], 4294962688 }
  0x9f   :  { %4956 = dma.done.wait [#allocation12], 20480  }
  0xa0   :  { %4957 = vsyncadd [#allocation12], 4294946816 }
  0xa1   :  { %4958 = dma.done.wait [#allocation15], 14336  }
  0xa2   :  { %4959 = vsyncadd [#allocation15], 4294952960  ;;  %v4163_v0 = vld [vmem:[#allocation13 + $0x4] ss:$16 sps:$4 sm:$0xff]   ;;  %v4165_v1 = vld [vmem:[#allocation13 + $0xc] ss:$16 sps:$4 sm:$0xff]  }
  0xa3   :  { %971 = vmatprep.subr.bf16.mxu0 %v4163_v0  ;;  %v4167_v2 = vld [vmem:[#allocation13] ss:$16 sps:$4 sm:$0xff]   ;;  %v4168_v3 = vld [vmem:[#allocation13 + $0x8] ss:$16 sps:$4 sm:$0xff]   ;;  %1057 = vmatprep.subr.bf16.mxu1 %v4165_v1  ;;  %v4169_v4 = vld [vmem:[#allocation13 + $0x24] ss:$16 sps:$4 sm:$0xff]  }
  0xa4   :  { %972 = vmatpush1.bf16.msra.mxu0 %v4167_v2  ;;  %1058 = vmatpush1.bf16.msra.mxu1 %v4168_v3  ;;  %v4171_v5 = vld [vmem:[#allocation13 + $0x2c] ss:$16 sps:$4 sm:$0xff]   ;;  %v4173_v6 = vld [vmem:[#allocation13 + $0x20] ss:$16 sps:$4 sm:$0xff]   ;;  %v4174_v7 = vld [vmem:[#allocation13 + $0x28] ss:$16 sps:$4 sm:$0xff]  }
  0xa5   :  { %973 = vmatprep.subr.bf16.mxu0 %v4169_v4  ;;  %1059 = vmatprep.subr.bf16.mxu1 %v4171_v5  ;;  %v4175_v8 = vld [vmem:[#allocation13 + $0x44] ss:$16 sps:$4 sm:$0xff]   ;;  %v4177_v9 = vld [vmem:[#allocation13 + $0x4c] ss:$16 sps:$4 sm:$0xff]   ;;  %v4179_v10 = vld [vmem:[#allocation13 + $0x40] ss:$16 sps:$4 sm:$0xff]  }
  0xa6   :  { %v4180_v11 = vld [vmem:[#allocation13 + $0x48] ss:$16 sps:$4 sm:$0xff]   ;;  %v4181_v12 = vld [vmem:[#allocation13 + $0x64] ss:$16 sps:$4 sm:$0xff]   ;;  %v4183_v13 = vld [vmem:[#allocation13 + $0x6c] ss:$16 sps:$4 sm:$0xff]  }
  0xa7   :  { %v4185_v14 = vld [vmem:[#allocation13 + $0x60] ss:$16 sps:$4 sm:$0xff]   ;;  %v4186_v15 = vld [vmem:[#allocation13 + $0x68] ss:$16 sps:$4 sm:$0xff]   ;;  %v4187_v16 = vld [vmem:[#allocation13 + $0x84] ss:$16 sps:$4 sm:$0xff]  }
  0xa8   :  { %974 = vmatpush1.bf16.msra.mxu0 %v4173_v6  ;;  %1060 = vmatpush1.bf16.msra.mxu1 %v4174_v7  ;;  %v4189_v17 = vld [vmem:[#allocation13 + $0x8c] ss:$16 sps:$4 sm:$0xff]   ;;  %v4191_v18 = vld [vmem:[#allocation13 + $0x80] ss:$16 sps:$4 sm:$0xff]   ;;  %v4192_v19 = vld [vmem:[#allocation13 + $0x88] ss:$16 sps:$4 sm:$0xff]  }
  0xa9   :  { %975 = vmatprep.subr.bf16.mxu0 %v4175_v8  ;;  %1061 = vmatprep.subr.bf16.mxu1 %v4177_v9  ;;  %v4193_v20 = vld [vmem:[#allocation13 + $0xa4] ss:$16 sps:$4 sm:$0xff]   ;;  %v4195_v21 = vld [vmem:[#allocation13 + $0xac] ss:$16 sps:$4 sm:$0xff]   ;;  %v4197_v22 = vld [vmem:[#allocation13 + $0xa0] ss:$16 sps:$4 sm:$0xff]  }
  0xaa   :  { %v4198_v23 = vld [vmem:[#allocation13 + $0xa8] ss:$16 sps:$4 sm:$0xff]   ;;  %v4199_v24 = vld [vmem:[#allocation13 + $0xc4] ss:$16 sps:$4 sm:$0xff]   ;;  %v4201_v25 = vld [vmem:[#allocation13 + $0xcc] ss:$16 sps:$4 sm:$0xff]  }
  0xab   :  { %v4203_v26 = vld [vmem:[#allocation13 + $0xc0] ss:$16 sps:$4 sm:$0xff]   ;;  %v4204_v27 = vld [vmem:[#allocation13 + $0xc8] ss:$16 sps:$4 sm:$0xff]   ;;  %v4205_v28 = vld [vmem:[#allocation13 + $0xe4] ss:$16 sps:$4 sm:$0xff]  }
  0xac   :  { %976 = vmatpush1.bf16.msra.mxu0 %v4179_v10  ;;  %1062 = vmatpush1.bf16.msra.mxu1 %v4180_v11  ;;  %v4207_v29 = vld [vmem:[#allocation13 + $0xec] ss:$16 sps:$4 sm:$0xff]   ;;  %v4209_v30 = vld [vmem:[#allocation13 + $0xe0] ss:$16 sps:$4 sm:$0xff]   ;;  %v4210_v31 = vld [vmem:[#allocation13 + $0xe8] ss:$16 sps:$4 sm:$0xff]  }
  0xad   :  { %977 = vmatprep.subr.bf16.mxu0 %v4181_v12  ;;  %1063 = vmatprep.subr.bf16.mxu1 %v4183_v13  ;;  %v4211_v32 = vld [vmem:[#allocation13 + $0x104] ss:$16 sps:$4 sm:$0xff]   ;;  %v4213_v33 = vld [vmem:[#allocation13 + $0x10c] ss:$16 sps:$4 sm:$0xff]   ;;  %v4215_v34 = vld [vmem:[#allocation13 + $0x100] ss:$16 sps:$4 sm:$0xff]  }
  0xae   :  { %v4216_v35 = vld [vmem:[#allocation13 + $0x108] ss:$16 sps:$4 sm:$0xff]   ;;  %v4217_v36 = vld [vmem:[#allocation13 + $0x124] ss:$16 sps:$4 sm:$0xff]   ;;  %v4219_v37 = vld [vmem:[#allocation13 + $0x12c] ss:$16 sps:$4 sm:$0xff]  }
  0xaf   :  { %v4221_v38 = vld [vmem:[#allocation13 + $0x120] ss:$16 sps:$4 sm:$0xff]   ;;  %v4222_v39 = vld [vmem:[#allocation13 + $0x128] ss:$16 sps:$4 sm:$0xff]   ;;  %v4223_v40 = vld [vmem:[#allocation13 + $0x144] ss:$16 sps:$4 sm:$0xff]  }
  0xb0   :  { %978 = vmatpush1.bf16.msra.mxu0 %v4185_v14  ;;  %1064 = vmatpush1.bf16.msra.mxu1 %v4186_v15  ;;  %v4225_v41 = vld [vmem:[#allocation13 + $0x14c] ss:$16 sps:$4 sm:$0xff]   ;;  %v4227_v42 = vld [vmem:[#allocation13 + $0x140] ss:$16 sps:$4 sm:$0xff]   ;;  %v4228_v43 = vld [vmem:[#allocation13 + $0x148] ss:$16 sps:$4 sm:$0xff]  }
  0xb1   :  { %979 = vmatprep.subr.bf16.mxu0 %v4187_v16  ;;  %1065 = vmatprep.subr.bf16.mxu1 %v4189_v17  ;;  %v4229_v44 = vld [vmem:[#allocation13 + $0x164] ss:$16 sps:$4 sm:$0xff]   ;;  %v4231_v45 = vld [vmem:[#allocation13 + $0x16c] ss:$16 sps:$4 sm:$0xff]   ;;  %v4233_v48 = vld [vmem:[#allocation13 + $0x160] ss:$16 sps:$4 sm:$0xff]  }
  0xb2   :  { %v174_v46 = vld [vmem:[#allocation5] sm:$0xff]  ;;  %v175_v47 = vld [vmem:[#allocation5 + $0x8] sm:$0xff]  ;;  %vm2299_vm0 = vcmask 130112   ;;  %vm2436_vm1 = vcmask 1041409   ;;  %vm2438_vm2 = vcmask 1042434   ;;  %vm2440_vm3 = vcmask 1043459  }
  0xb3   :  { %v4234_v49 = vld [vmem:[#allocation13 + $0x168] ss:$16 sps:$4 sm:$0xff]   ;;  %v176_v50 = vpack.c.bf16 %v175_v47, %v174_v46  ;;  %v4235_v51 = vld [vmem:[#allocation13 + $0x184] ss:$16 sps:$4 sm:$0xff]   ;;  %v4237_v52 = vld [vmem:[#allocation13 + $0x18c] ss:$16 sps:$4 sm:$0xff]  }
  0xb4   :  { %980 = vmatpush1.bf16.msra.mxu0 %v4191_v18  ;;  %1066 = vmatpush1.bf16.msra.mxu1 %v4192_v19  ;;  %v4239_v53 = vld [vmem:[#allocation13 + $0x180] ss:$16 sps:$4 sm:$0xff]   ;;  %v4240_v54 = vld [vmem:[#allocation13 + $0x188] ss:$16 sps:$4 sm:$0xff]   ;;  %v4241_v55 = vld [vmem:[#allocation13 + $0x1a4] ss:$16 sps:$4 sm:$0xff]  }
  0xb5   :  { %981 = vmatprep.subr.bf16.mxu0 %v4193_v20  ;;  %1067 = vmatprep.subr.bf16.mxu1 %v4195_v21  ;;  %v4243_v56 = vld [vmem:[#allocation13 + $0x1ac] ss:$16 sps:$4 sm:$0xff]   ;;  %v4245_v57 = vld [vmem:[#allocation13 + $0x1a0] ss:$16 sps:$4 sm:$0xff]   ;;  %v4246_v58 = vld [vmem:[#allocation13 + $0x1a8] ss:$16 sps:$4 sm:$0xff]  }
  0xb6   :  { %1003 = vmatprep.mubr.bf16.mxu0 %v176_v50  ;;  %1089 = vmatprep.mubr.bf16.mxu1 %v176_v50  ;;  %v4247_v59 = vld [vmem:[#allocation13 + $0x1c4] ss:$16 sps:$4 sm:$0xff]   ;;  %v4249_v60 = vld [vmem:[#allocation13 + $0x1cc] ss:$16 sps:$4 sm:$0xff]   ;;  %v4251_v61 = vld [vmem:[#allocation13 + $0x1c0] ss:$16 sps:$4 sm:$0xff]  }
  0xb7   :  { %v4252_v62 = vld [vmem:[#allocation13 + $0x1c8] ss:$16 sps:$4 sm:$0xff]   ;;  %v4253_v63 = vld [vmem:[#allocation13 + $0x1e4] ss:$16 sps:$4 sm:$0xff]   ;;  %v4255_v0 = vld [vmem:[#allocation13 + $0x1ec] ss:$16 sps:$4 sm:$0xff]  }
  0xb8   :  { %982 = vmatpush1.bf16.msra.mxu0 %v4197_v22  ;;  %1068 = vmatpush1.bf16.msra.mxu1 %v4198_v23  ;;  %v4257_v1 = vld [vmem:[#allocation13 + $0x1e0] ss:$16 sps:$4 sm:$0xff]   ;;  %v4258_v2 = vld [vmem:[#allocation13 + $0x1e8] ss:$16 sps:$4 sm:$0xff]   ;;  %v4261_v3 = vld [vmem:[#allocation13 + $0x204] ss:$16 sps:$4 sm:$0xff]  }
  0xb9   :  { %983 = vmatprep.subr.bf16.mxu0 %v4199_v24  ;;  %1069 = vmatprep.subr.bf16.mxu1 %v4201_v25  ;;  %v171_v4 = vld [vmem:[#allocation7 + $0x10] sm:$0xff]  ;;  %v172_v5 = vld [vmem:[#allocation7 + $0x18] sm:$0xff]  ;;  %vm2442_vm4 = vcmask 1044484   ;;  %vm2444_vm5 = vcmask 1045509   ;;  %vm2446_vm6 = vcmask 1046534   ;;  %vm2448_vm7 = vcmask 1047559  }
  0xba   :  { %v4264_v6 = vld [vmem:[#allocation13 + $0x20c] ss:$16 sps:$4 sm:$0xff]   ;;  %v4259_v7 = vld [vmem:[#allocation13 + $0x200] ss:$16 sps:$4 sm:$0xff]   ;;  %v4262_v8 = vld [vmem:[#allocation13 + $0x208] ss:$16 sps:$4 sm:$0xff]   ;;  %v5207_v9 = vpack.c.bf16 %v172_v5, %v171_v4 }
  0xbb   :  { %v4267_v10 = vld [vmem:[#allocation13 + $0x224] ss:$16 sps:$4 sm:$0xff]   ;;  %v4270_v11 = vld [vmem:[#allocation13 + $0x22c] ss:$16 sps:$4 sm:$0xff]   ;;  %v4265_v12 = vld [vmem:[#allocation13 + $0x220] ss:$16 sps:$4 sm:$0xff]  }
  0xbc   :  { %984 = vmatpush1.bf16.msra.mxu0 %v4203_v26  ;;  %1070 = vmatpush1.bf16.msra.mxu1 %v4204_v27  ;;  %v4268_v13 = vld [vmem:[#allocation13 + $0x228] ss:$16 sps:$4 sm:$0xff]   ;;  %v4273_v14 = vld [vmem:[#allocation13 + $0x244] ss:$16 sps:$4 sm:$0xff]   ;;  %v4276_v15 = vld [vmem:[#allocation13 + $0x24c] ss:$16 sps:$4 sm:$0xff]  }
  0xbd   :  { %985 = vmatprep.subr.bf16.mxu0 %v4205_v28  ;;  %1071 = vmatprep.subr.bf16.mxu1 %v4207_v29  ;;  %v4271_v16 = vld [vmem:[#allocation13 + $0x240] ss:$16 sps:$4 sm:$0xff]   ;;  %v4274_v17 = vld [vmem:[#allocation13 + $0x248] ss:$16 sps:$4 sm:$0xff]   ;;  %v4279_v18 = vld [vmem:[#allocation13 + $0x264] ss:$16 sps:$4 sm:$0xff]  }
  0xbe   :  { %v4282_v19 = vld [vmem:[#allocation13 + $0x26c] ss:$16 sps:$4 sm:$0xff]   ;;  %v4277_v20 = vld [vmem:[#allocation13 + $0x260] ss:$16 sps:$4 sm:$0xff]   ;;  %v4280_v21 = vld [vmem:[#allocation13 + $0x268] ss:$16 sps:$4 sm:$0xff]  }
  0xbf   :  { %v4285_v22 = vld [vmem:[#allocation13 + $0x284] ss:$16 sps:$4 sm:$0xff]   ;;  %v4288_v23 = vld [vmem:[#allocation13 + $0x28c] ss:$16 sps:$4 sm:$0xff]   ;;  %v4283_v24 = vld [vmem:[#allocation13 + $0x280] ss:$16 sps:$4 sm:$0xff]  }
  0xc0   :  { %986 = vmatpush1.bf16.msra.mxu0 %v4209_v30  ;;  %1072 = vmatpush1.bf16.msra.mxu1 %v4210_v31  ;;  %v4286_v25 = vld [vmem:[#allocation13 + $0x288] ss:$16 sps:$4 sm:$0xff]   ;;  %v4291_v26 = vld [vmem:[#allocation13 + $0x2a4] ss:$16 sps:$4 sm:$0xff]   ;;  %v4294_v27 = vld [vmem:[#allocation13 + $0x2ac] ss:$16 sps:$4 sm:$0xff]  }
  0xc1   :  { %987 = vmatprep.subr.bf16.mxu0 %v4211_v32  ;;  %1073 = vmatprep.subr.bf16.mxu1 %v4213_v33  ;;  %v4289_v28 = vld [vmem:[#allocation13 + $0x2a0] ss:$16 sps:$4 sm:$0xff]   ;;  %v4292_v29 = vld [vmem:[#allocation13 + $0x2a8] ss:$16 sps:$4 sm:$0xff]   ;;  %v4297_v30 = vld [vmem:[#allocation13 + $0x2c4] ss:$16 sps:$4 sm:$0xff]  }
  0xc2   :  { %v4300_v31 = vld [vmem:[#allocation13 + $0x2cc] ss:$16 sps:$4 sm:$0xff]   ;;  %v168_v32 = vld [vmem:[#allocation7] sm:$0xff]  ;;  %v4346_v4 = vld [vmem:[#allocation13 + $0x3c8] ss:$16 sps:$4 sm:$0xff]   ;;  %vm2459_vm8 = vcmask 130048  }
  0xc3   :  { %v4295_v33 = vld [vmem:[#allocation13 + $0x2c0] ss:$16 sps:$4 sm:$0xff]   ;;  %v4318_v46 = vld [vmem:[#allocation13 + $0x32c] ss:$16 sps:$4 sm:$0xff]   ;;  %v4351_v5 = vld [vmem:[#allocation13 + $0x3e4] ss:$16 sps:$4 sm:$0xff]  }
  0xc4   :  { %988 = vmatpush1.bf16.msra.mxu0 %v4215_v34  ;;  %1074 = vmatpush1.bf16.msra.mxu1 %v4216_v35  ;;  %v4298_v34 = vld [vmem:[#allocation13 + $0x2c8] ss:$16 sps:$4 sm:$0xff]   ;;  %v4313_v47 = vld [vmem:[#allocation13 + $0x320] ss:$16 sps:$4 sm:$0xff]   ;;  %v4324_v50 = vld [vmem:[#allocation13 + $0x34c] ss:$16 sps:$4 sm:$0xff]  }
  0xc5   :  { %989 = vmatprep.subr.bf16.mxu0 %v4217_v36  ;;  %1075 = vmatprep.subr.bf16.mxu1 %v4219_v37  ;;  %v169_v35 = vld [vmem:[#allocation7 + $0x8] sm:$0xff]  ;;  %v4303_v36 = vld [vmem:[#allocation13 + $0x2e4] ss:$16 sps:$4 sm:$0xff]  }
  0xc6   :  { %v180_v37 = vpack.c.bf16 %v169_v35, %v168_v32  ;;  %v4382_v32 = vld [vmem:[#allocation14 + $0xa8] ss:$20 sps:$4 sm:$0xff]  }
  0xc7   :  { %v4390_v35 = vld [vmem:[#allocation14 + $0xd4] ss:$20 sps:$4 sm:$0xff]  }
  0xc8   :  { %990 = vmatpush1.bf16.msra.mxu0 %v4221_v38  ;;  %1076 = vmatpush1.bf16.msra.mxu1 %v4222_v39  ;;  %v4306_v38 = vld [vmem:[#allocation13 + $0x2ec] ss:$16 sps:$4 sm:$0xff]   ;;  %v4301_v39 = vld [vmem:[#allocation13 + $0x2e0] ss:$16 sps:$4 sm:$0xff]  }
  0xc9   :  { %991 = vmatprep.subr.bf16.mxu0 %v4223_v40  ;;  %1077 = vmatprep.subr.bf16.mxu1 %v4225_v41  ;;  %v4304_v40 = vld [vmem:[#allocation13 + $0x2e8] ss:$16 sps:$4 sm:$0xff]   ;;  %v4309_v41 = vld [vmem:[#allocation13 + $0x304] ss:$16 sps:$4 sm:$0xff]  }
  0xcc   :  { %992 = vmatpush1.bf16.msra.mxu0 %v4227_v42  ;;  %1078 = vmatpush1.bf16.msra.mxu1 %v4228_v43  ;;  %v4312_v42 = vld [vmem:[#allocation13 + $0x30c] ss:$16 sps:$4 sm:$0xff]   ;;  %v4307_v43 = vld [vmem:[#allocation13 + $0x300] ss:$16 sps:$4 sm:$0xff]  }
  0xcd   :  { %993 = vmatprep.subr.bf16.mxu0 %v4229_v44  ;;  %1079 = vmatprep.subr.bf16.mxu1 %v4231_v45  ;;  %v4310_v44 = vld [vmem:[#allocation13 + $0x308] ss:$16 sps:$4 sm:$0xff]   ;;  %v4315_v45 = vld [vmem:[#allocation13 + $0x324] ss:$16 sps:$4 sm:$0xff]  }
  0xd0   :  { %994 = vmatpush1.bf16.msra.mxu0 %v4233_v48  ;;  %1080 = vmatpush1.bf16.msra.mxu1 %v4234_v49  ;;  %v4316_v48 = vld [vmem:[#allocation13 + $0x328] ss:$16 sps:$4 sm:$0xff]   ;;  %v4321_v49 = vld [vmem:[#allocation13 + $0x344] ss:$16 sps:$4 sm:$0xff]  }
  0xd1   :  { %995 = vmatprep.subr.bf16.mxu0 %v4235_v51  ;;  %1081 = vmatprep.subr.bf16.mxu1 %v4237_v52  ;;  %v4319_v51 = vld [vmem:[#allocation13 + $0x340] ss:$16 sps:$4 sm:$0xff]   ;;  %v4322_v52 = vld [vmem:[#allocation13 + $0x348] ss:$16 sps:$4 sm:$0xff]  }
  0xd4   :  { %996 = vmatpush1.bf16.msra.mxu0 %v4239_v53  ;;  %1082 = vmatpush1.bf16.msra.mxu1 %v4240_v54  ;;  %v4327_v53 = vld [vmem:[#allocation13 + $0x364] ss:$16 sps:$4 sm:$0xff]   ;;  %v4330_v54 = vld [vmem:[#allocation13 + $0x36c] ss:$16 sps:$4 sm:$0xff]  }
  0xd5   :  { %997 = vmatprep.subr.bf16.mxu0 %v4241_v55  ;;  %1083 = vmatprep.subr.bf16.mxu1 %v4243_v56  ;;  %v4325_v55 = vld [vmem:[#allocation13 + $0x360] ss:$16 sps:$4 sm:$0xff]   ;;  %v4328_v56 = vld [vmem:[#allocation13 + $0x368] ss:$16 sps:$4 sm:$0xff]  }
  0xd8   :  { %998 = vmatpush1.bf16.msra.mxu0 %v4245_v57  ;;  %1084 = vmatpush1.bf16.msra.mxu1 %v4246_v58  ;;  %v4333_v57 = vld [vmem:[#allocation13 + $0x384] ss:$16 sps:$4 sm:$0xff]   ;;  %v4336_v58 = vld [vmem:[#allocation13 + $0x38c] ss:$16 sps:$4 sm:$0xff]  }
  0xd9   :  { %999 = vmatprep.subr.bf16.mxu0 %v4247_v59  ;;  %1085 = vmatprep.subr.bf16.mxu1 %v4249_v60  ;;  %v4331_v59 = vld [vmem:[#allocation13 + $0x380] ss:$16 sps:$4 sm:$0xff]   ;;  %v4334_v60 = vld [vmem:[#allocation13 + $0x388] ss:$16 sps:$4 sm:$0xff]  }
  0xdc   :  { %1000 = vmatpush1.bf16.msra.mxu0 %v4251_v61  ;;  %1086 = vmatpush1.bf16.msra.mxu1 %v4252_v62  ;;  %v4339_v61 = vld [vmem:[#allocation13 + $0x3a4] ss:$16 sps:$4 sm:$0xff]   ;;  %v4342_v62 = vld [vmem:[#allocation13 + $0x3ac] ss:$16 sps:$4 sm:$0xff]  }
  0xdd   :  { %1001 = vmatprep.subr.bf16.mxu0 %v4253_v63  ;;  %1087 = vmatprep.subr.bf16.mxu1 %v4255_v0  ;;  %v4337_v63 = vld [vmem:[#allocation13 + $0x3a0] ss:$16 sps:$4 sm:$0xff]   ;;  %v4340_v0 = vld [vmem:[#allocation13 + $0x3a8] ss:$16 sps:$4 sm:$0xff]  }
  0xe0   :  { %1002 = vmatpush1.bf16.msra.mxu0 %v4257_v1  ;;  %1088 = vmatpush1.bf16.msra.mxu1 %v4258_v2  ;;  %v4345_v1 = vld [vmem:[#allocation13 + $0x3c4] ss:$16 sps:$4 sm:$0xff]   ;;  %v4348_v2 = vld [vmem:[#allocation13 + $0x3cc] ss:$16 sps:$4 sm:$0xff]  }
  0xe1   :  { %1014 = vmatprep.subr.bf16.mxu0 %v4261_v3  ;;  %1100 = vmatprep.subr.bf16.mxu1 %v4264_v6  ;;  %v4343_v3 = vld [vmem:[#allocation13 + $0x3c0] ss:$16 sps:$4 sm:$0xff]   ;;  %v4354_v6 = vld [vmem:[#allocation13 + $0x3ec] ss:$16 sps:$4 sm:$0xff]  }
  0xe3   :  { %1004 = vmatmul.mubr.bf16.vlgmr.msra.gmra.mrb[0].mxu0 %v5207_v9  ;;  %1090 = vmatmul.mubr.bf16.vlgmr.msra.gmra.mrb[0].mxu1 %v5207_v9 }
  0xe4   :  { %1015 = vmatpush1.bf16.msra.mxu0 %v4259_v7  ;;  %1101 = vmatpush1.bf16.msra.mxu1 %v4262_v8  ;;  %v4349_v7 = vld [vmem:[#allocation13 + $0x3e0] ss:$16 sps:$4 sm:$0xff]   ;;  %v4352_v8 = vld [vmem:[#allocation13 + $0x3e8] ss:$16 sps:$4 sm:$0xff]  }
  0xe5   :  { %1016 = vmatprep.subr.bf16.mxu0 %v4267_v10  ;;  %1102 = vmatprep.subr.bf16.mxu1 %v4270_v11  ;;  %v177_v10 = vld [vmem:[#allocation2] sm:$0xff]  ;;  %v178_v11 = vld [vmem:[#allocation2 + $0x8] sm:$0xff] }
  0xe6   :  { %1046 = vmatprep.mubr.bf16.mxu0 %v180_v37  ;;  %1132 = vmatprep.mubr.bf16.mxu1 %v180_v37  ;;  %v4393_v37 = vld [vmem:[#allocation14 + $0xf4] ss:$20 sps:$4 sm:$0xff]  }
  0xe8   :  { %1017 = vmatpush1.bf16.msra.mxu0 %v4265_v12  ;;  %1103 = vmatpush1.bf16.msra.mxu1 %v4268_v13  ;;  %v4357_v12 = vld [vmem:[#allocation14 + $0x4] ss:$20 sps:$4 sm:$0xff]   ;;  %v4360_v13 = vld [vmem:[#allocation14 + $0xc] ss:$20 sps:$4 sm:$0xff]  }
  0xe9   :  { %1018 = vmatprep.subr.bf16.mxu0 %v4273_v14  ;;  %1104 = vmatprep.subr.bf16.mxu1 %v4276_v15  ;;  %v4355_v14 = vld [vmem:[#allocation14] ss:$20 sps:$4 sm:$0xff]   ;;  %v4358_v15 = vld [vmem:[#allocation14 + $0x8] ss:$20 sps:$4 sm:$0xff]  }
  0xec   :  { %1019 = vmatpush1.bf16.msra.mxu0 %v4271_v16  ;;  %1105 = vmatpush1.bf16.msra.mxu1 %v4274_v17  ;;  %v179_v16 = vpack.c.bf16 %v178_v11, %v177_v10  ;;  %v4363_v17 = vld [vmem:[#allocation14 + $0x2c] ss:$20 sps:$4 sm:$0xff]   ;;  %v4447_v10 = vld [vmem:[#allocation14 + $0x25c] ss:$20 sps:$4 sm:$0xff]   ;;  %v4450_v11 = vld [vmem:[#allocation14 + $0x264] ss:$20 sps:$4 sm:$0xff]  }
  0xed   :  { %1020 = vmatprep.subr.bf16.mxu0 %v4279_v18  ;;  %1106 = vmatprep.subr.bf16.mxu1 %v4282_v19  ;;  %v4366_v18 = vld [vmem:[#allocation14 + $0x34] ss:$20 sps:$4 sm:$0xff]  }
  0xee   :  { %v4361_v19 = vld [vmem:[#allocation14 + $0x28] ss:$20 sps:$4 sm:$0xff]  }
  0xf0   :  { %1021 = vmatpush1.bf16.msra.mxu0 %v4277_v20  ;;  %1107 = vmatpush1.bf16.msra.mxu1 %v4280_v21  ;;  %v4364_v20 = vld [vmem:[#allocation14 + $0x30] ss:$20 sps:$4 sm:$0xff]   ;;  %v4369_v21 = vld [vmem:[#allocation14 + $0x54] ss:$20 sps:$4 sm:$0xff]  }
  0xf1   :  { %1022 = vmatprep.subr.bf16.mxu0 %v4285_v22  ;;  %1108 = vmatprep.subr.bf16.mxu1 %v4288_v23  ;;  %v4372_v22 = vld [vmem:[#allocation14 + $0x5c] ss:$20 sps:$4 sm:$0xff]  }
  0xf2   :  { %v4367_v23 = vld [vmem:[#allocation14 + $0x50] ss:$20 sps:$4 sm:$0xff]  }
  0xf4   :  { %1023 = vmatpush1.bf16.msra.mxu0 %v4283_v24  ;;  %1109 = vmatpush1.bf16.msra.mxu1 %v4286_v25  ;;  %v4370_v24 = vld [vmem:[#allocation14 + $0x58] ss:$20 sps:$4 sm:$0xff]   ;;  %v4375_v25 = vld [vmem:[#allocation14 + $0x7c] ss:$20 sps:$4 sm:$0xff]  }
  0xf5   :  { %1024 = vmatprep.subr.bf16.mxu0 %v4291_v26  ;;  %1110 = vmatprep.subr.bf16.mxu1 %v4294_v27  ;;  %v4378_v26 = vld [vmem:[#allocation14 + $0x84] ss:$20 sps:$4 sm:$0xff]  }
  0xf6   :  { %v4373_v27 = vld [vmem:[#allocation14 + $0x78] ss:$20 sps:$4 sm:$0xff]  }
  0xf8   :  { %1025 = vmatpush1.bf16.msra.mxu0 %v4289_v28  ;;  %1111 = vmatpush1.bf16.msra.mxu1 %v4292_v29  ;;  %v4376_v28 = vld [vmem:[#allocation14 + $0x80] ss:$20 sps:$4 sm:$0xff]   ;;  %v4381_v29 = vld [vmem:[#allocation14 + $0xa4] ss:$20 sps:$4 sm:$0xff]  }
  0xf9   :  { %1026 = vmatprep.subr.bf16.mxu0 %v4297_v30  ;;  %1112 = vmatprep.subr.bf16.mxu1 %v4300_v31  ;;  %v4379_v30 = vld [vmem:[#allocation14 + $0xa0] ss:$20 sps:$4 sm:$0xff]  }
  0xfa   :  { %v4384_v31 = vld [vmem:[#allocation14 + $0xac] ss:$20 sps:$4 sm:$0xff]  }
  0xfc   :  { %1027 = vmatpush1.bf16.msra.mxu0 %v4295_v33  ;;  %1113 = vmatpush1.bf16.msra.mxu1 %v4298_v34  ;;  %v4387_v33 = vld [vmem:[#allocation14 + $0xcc] ss:$20 sps:$4 sm:$0xff]   ;;  %v4385_v34 = vld [vmem:[#allocation14 + $0xc8] ss:$20 sps:$4 sm:$0xff]  }
  0xfd   :  { %1028 = vmatprep.subr.bf16.mxu0 %v4303_v36  ;;  %1114 = vmatprep.subr.bf16.mxu1 %v4306_v38  ;;  %v4388_v36 = vld [vmem:[#allocation14 + $0xd0] ss:$20 sps:$4 sm:$0xff]  }
  0xfe   :  { %v4391_v38 = vld [vmem:[#allocation14 + $0xf0] ss:$20 sps:$4 sm:$0xff]  }
 0x100   :  { %1029 = vmatpush1.bf16.msra.mxu0 %v4301_v39  ;;  %1115 = vmatpush1.bf16.msra.mxu1 %v4304_v40  ;;  %v4396_v39 = vld [vmem:[#allocation14 + $0xfc] ss:$20 sps:$4 sm:$0xff]   ;;  %v4394_v40 = vld [vmem:[#allocation14 + $0xf8] ss:$20 sps:$4 sm:$0xff]  }
 0x101   :  { %1030 = vmatprep.subr.bf16.mxu0 %v4309_v41  ;;  %1116 = vmatprep.subr.bf16.mxu1 %v4312_v42  ;;  %v4399_v41 = vld [vmem:[#allocation14 + $0x11c] ss:$20 sps:$4 sm:$0xff]   ;;  %v4397_v42 = vld [vmem:[#allocation14 + $0x118] ss:$20 sps:$4 sm:$0xff]  }
 0x104   :  { %1031 = vmatpush1.bf16.msra.mxu0 %v4307_v43  ;;  %1117 = vmatpush1.bf16.msra.mxu1 %v4310_v44  ;;  %v4402_v43 = vld [vmem:[#allocation14 + $0x124] ss:$20 sps:$4 sm:$0xff]   ;;  %v4400_v44 = vld [vmem:[#allocation14 + $0x120] ss:$20 sps:$4 sm:$0xff]  }
 0x105   :  { %1032 = vmatprep.subr.bf16.mxu0 %v4315_v45  ;;  %1118 = vmatprep.subr.bf16.mxu1 %v4318_v46  ;;  %v4405_v45 = vld [vmem:[#allocation14 + $0x144] ss:$20 sps:$4 sm:$0xff]   ;;  %v4403_v46 = vld [vmem:[#allocation14 + $0x140] ss:$20 sps:$4 sm:$0xff]  }
 0x108   :  { %1033 = vmatpush1.bf16.msra.mxu0 %v4313_v47  ;;  %1119 = vmatpush1.bf16.msra.mxu1 %v4316_v48  ;;  %v4408_v47 = vld [vmem:[#allocation14 + $0x14c] ss:$20 sps:$4 sm:$0xff]   ;;  %v4406_v48 = vld [vmem:[#allocation14 + $0x148] ss:$20 sps:$4 sm:$0xff]  }
 0x109   :  { %1034 = vmatprep.subr.bf16.mxu0 %v4321_v49  ;;  %1120 = vmatprep.subr.bf16.mxu1 %v4324_v50  ;;  %v4411_v49 = vld [vmem:[#allocation14 + $0x16c] ss:$20 sps:$4 sm:$0xff]   ;;  %v4409_v50 = vld [vmem:[#allocation14 + $0x168] ss:$20 sps:$4 sm:$0xff]  }
 0x10c   :  { %1035 = vmatpush1.bf16.msra.mxu0 %v4319_v51  ;;  %1121 = vmatpush1.bf16.msra.mxu1 %v4322_v52  ;;  %v4414_v51 = vld [vmem:[#allocation14 + $0x174] ss:$20 sps:$4 sm:$0xff]   ;;  %v4412_v52 = vld [vmem:[#allocation14 + $0x170] ss:$20 sps:$4 sm:$0xff]  }
 0x10d   :  { %1036 = vmatprep.subr.bf16.mxu0 %v4327_v53  ;;  %1122 = vmatprep.subr.bf16.mxu1 %v4330_v54  ;;  %v4417_v53 = vld [vmem:[#allocation14 + $0x194] ss:$20 sps:$4 sm:$0xff]   ;;  %v4415_v54 = vld [vmem:[#allocation14 + $0x190] ss:$20 sps:$4 sm:$0xff]  }
 0x110   :  { %1037 = vmatpush1.bf16.msra.mxu0 %v4325_v55  ;;  %1123 = vmatpush1.bf16.msra.mxu1 %v4328_v56  ;;  %v4420_v55 = vld [vmem:[#allocation14 + $0x19c] ss:$20 sps:$4 sm:$0xff]   ;;  %v4418_v56 = vld [vmem:[#allocation14 + $0x198] ss:$20 sps:$4 sm:$0xff]  }
 0x111   :  { %1038 = vmatprep.subr.bf16.mxu0 %v4333_v57  ;;  %1124 = vmatprep.subr.bf16.mxu1 %v4336_v58  ;;  %v4423_v57 = vld [vmem:[#allocation14 + $0x1bc] ss:$20 sps:$4 sm:$0xff]   ;;  %v4421_v58 = vld [vmem:[#allocation14 + $0x1b8] ss:$20 sps:$4 sm:$0xff]  }
 0x114   :  { %1039 = vmatpush1.bf16.msra.mxu0 %v4331_v59  ;;  %1125 = vmatpush1.bf16.msra.mxu1 %v4334_v60  ;;  %v4426_v59 = vld [vmem:[#allocation14 + $0x1c4] ss:$20 sps:$4 sm:$0xff]   ;;  %v4424_v60 = vld [vmem:[#allocation14 + $0x1c0] ss:$20 sps:$4 sm:$0xff]  }
 0x115   :  { %1040 = vmatprep.subr.bf16.mxu0 %v4339_v61  ;;  %1126 = vmatprep.subr.bf16.mxu1 %v4342_v62  ;;  %v4429_v61 = vld [vmem:[#allocation14 + $0x1e4] ss:$20 sps:$4 sm:$0xff]   ;;  %v4427_v62 = vld [vmem:[#allocation14 + $0x1e0] ss:$20 sps:$4 sm:$0xff]  }
 0x118   :  { %1041 = vmatpush1.bf16.msra.mxu0 %v4337_v63  ;;  %1127 = vmatpush1.bf16.msra.mxu1 %v4340_v0  ;;  %v4432_v63 = vld [vmem:[#allocation14 + $0x1ec] ss:$20 sps:$4 sm:$0xff]   ;;  %v4430_v0 = vld [vmem:[#allocation14 + $0x1e8] ss:$20 sps:$4 sm:$0xff]  }
 0x119   :  { %1042 = vmatprep.subr.bf16.mxu0 %v4345_v1  ;;  %1128 = vmatprep.subr.bf16.mxu1 %v4348_v2  ;;  %v4435_v1 = vld [vmem:[#allocation14 + $0x20c] ss:$20 sps:$4 sm:$0xff]   ;;  %v4433_v2 = vld [vmem:[#allocation14 + $0x208] ss:$20 sps:$4 sm:$0xff]  }
 0x11c   :  { %1043 = vmatpush1.bf16.msra.mxu0 %v4343_v3  ;;  %1129 = vmatpush1.bf16.msra.mxu1 %v4346_v4  ;;  %v4438_v3 = vld [vmem:[#allocation14 + $0x214] ss:$20 sps:$4 sm:$0xff]   ;;  %v4436_v4 = vld [vmem:[#allocation14 + $0x210] ss:$20 sps:$4 sm:$0xff]  }
 0x11d   :  { %1044 = vmatprep.subr.bf16.mxu0 %v4351_v5  ;;  %1130 = vmatprep.subr.bf16.mxu1 %v4354_v6  ;;  %v4441_v5 = vld [vmem:[#allocation14 + $0x234] ss:$20 sps:$4 sm:$0xff]   ;;  %v4444_v6 = vld [vmem:[#allocation14 + $0x23c] ss:$20 sps:$4 sm:$0xff]  }
 0x120   :  { %1045 = vmatpush1.bf16.msra.mxu0 %v4349_v7  ;;  %1131 = vmatpush1.bf16.msra.mxu1 %v4352_v8  ;;  %v4439_v7 = vld [vmem:[#allocation14 + $0x230] ss:$20 sps:$4 sm:$0xff]   ;;  %v4442_v8 = vld [vmem:[#allocation14 + $0x238] ss:$20 sps:$4 sm:$0xff]  }
 0x121   :  { %1733 = vmatprep.subr.bf16.mxu0 %v4357_v12  ;;  %1776 = vmatprep.subr.bf16.mxu1 %v4360_v13  ;;  %v4445_v12 = vld [vmem:[#allocation14 + $0x258] ss:$20 sps:$4 sm:$0xff]   ;;  %v4448_v13 = vld [vmem:[#allocation14 + $0x260] ss:$20 sps:$4 sm:$0xff]  }
 0x123   :  { %1047 = vmatmul.mubr.bf16.vlgmr.msra.gmra.mrb[0].mxu0 %v179_v16  ;;  %1133 = vmatmul.mubr.bf16.vlgmr.msra.gmra.mrb[0].mxu1 %v179_v16 }
 0x124   :  { %1734 = vmatpush1.bf16.msra.mxu0 %v4355_v14  ;;  %1777 = vmatpush1.bf16.msra.mxu1 %v4358_v15  ;;  %v4451_v14 = vld [vmem:[#allocation14 + $0x150] ss:$20 sps:$4 sm:$0xff]   ;;  %v311_v15 = vlaneseq }
 0x125   :  { %1735 = vmatprep.subr.bf16.mxu0 %v4363_v17  ;;  %1778 = vmatprep.subr.bf16.mxu1 %v4366_v18  ;;  %v309_v18 = vld [vmem:[%s5885_s7] sm:$0xf] }
 0x126   :  { %1765 = vmatprep.mubr.bf16.mxu0 %v5207_v9  ;;  %1808 = vmatprep.mubr.bf16.mxu1 %v5207_v9  ;;  %v5214_v16 = vshrl.u32 %v311_v15, 7 }
 0x128   :  { %1736 = vmatpush1.bf16.msra.mxu0 %v4361_v19  ;;  %1779 = vmatpush1.bf16.msra.mxu1 %v4364_v20  ;;  %v5217_v17 = vsub.s32 0, %v5214_v16  ;;  %v5223_v19 = vsub.s32 1, %v5214_v16 }
 0x129   :  { %1737 = vmatprep.subr.bf16.mxu0 %v4369_v21  ;;  %1780 = vmatprep.subr.bf16.mxu1 %v4372_v22 }
 0x12a   :  { %v314_v20 = vrot.slane %v309_v18, %v5217_v17  ;;  %v318_v21 = vrot.slane %v309_v18, %v5223_v19 }
 0x12c   :  { %1738 = vmatpush1.bf16.msra.mxu0 %v4367_v23  ;;  %1781 = vmatpush1.bf16.msra.mxu1 %v4370_v24  ;;  %v5228_v24 = vsub.s32 3, %v5214_v16 }
 0x12d   :  { %1739 = vmatprep.subr.bf16.mxu0 %v4375_v25  ;;  %1782 = vmatprep.subr.bf16.mxu1 %v4378_v26 }
 0x130   :  { %1740 = vmatpush1.bf16.msra.mxu0 %v4373_v27  ;;  %1783 = vmatpush1.bf16.msra.mxu1 %v4376_v28 }
 0x131   :  { %1741 = vmatprep.subr.bf16.mxu0 %v4381_v29  ;;  %1784 = vmatprep.subr.bf16.mxu1 %v4384_v31 }
 0x134   :  { %1742 = vmatpush1.bf16.msra.mxu0 %v4379_v30  ;;  %1785 = vmatpush1.bf16.msra.mxu1 %v4382_v32  ;;  %v5231_v32 = vsub.s32 2, %v5214_v16 }
 0x135   :  { %1743 = vmatprep.subr.bf16.mxu0 %v4387_v33  ;;  %1786 = vmatprep.subr.bf16.mxu1 %v4390_v35 }
 0x138   :  { %1744 = vmatpush1.bf16.msra.mxu0 %v4385_v34  ;;  %1787 = vmatpush1.bf16.msra.mxu1 %v4388_v36 }
 0x139   :  { %1745 = vmatprep.subr.bf16.mxu0 %v4393_v37  ;;  %1788 = vmatprep.subr.bf16.mxu1 %v4396_v39  ;;  %v326_v37 = vrot.slane %v309_v18, %v5228_v24 }
 0x13c   :  { %1746 = vmatpush1.bf16.msra.mxu0 %v4391_v38  ;;  %1789 = vmatpush1.bf16.msra.mxu1 %v4394_v40 }
 0x13d   :  { %1747 = vmatprep.subr.bf16.mxu0 %v4399_v41  ;;  %1790 = vmatprep.subr.bf16.mxu1 %v4402_v43  ;;  %v322_v41 = vrot.slane %v309_v18, %v5231_v32 }
 0x140   :  { %1748 = vmatpush1.bf16.msra.mxu0 %v4397_v42  ;;  %1791 = vmatpush1.bf16.msra.mxu1 %v4400_v44 }
 0x141   :  { %1749 = vmatprep.subr.bf16.mxu0 %v4405_v45  ;;  %1792 = vmatprep.subr.bf16.mxu1 %v4408_v47 }
 0x144   :  { %1750 = vmatpush1.bf16.msra.mxu0 %v4403_v46  ;;  %1793 = vmatpush1.bf16.msra.mxu1 %v4406_v48 }
 0x145   :  { %1751 = vmatprep.subr.bf16.mxu0 %v4411_v49  ;;  %1794 = vmatprep.subr.bf16.mxu1 %v4414_v51 }
 0x148   :  { %1752 = vmatpush1.bf16.msra.mxu0 %v4409_v50  ;;  %1795 = vmatpush1.bf16.msra.mxu1 %v4412_v52 }
 0x149   :  { %1753 = vmatprep.subr.bf16.mxu0 %v4417_v53  ;;  %1796 = vmatprep.subr.bf16.mxu1 %v4420_v55 }
 0x14c   :  { %1754 = vmatpush1.bf16.msra.mxu0 %v4415_v54  ;;  %1797 = vmatpush1.bf16.msra.mxu1 %v4418_v56 }
 0x14d   :  { %1755 = vmatprep.subr.bf16.mxu0 %v4423_v57  ;;  %1798 = vmatprep.subr.bf16.mxu1 %v4426_v59  ;;  %v1181_v59 = vld [vmem:[#allocation8] sm:$0xff] }
 0x150   :  { %1756 = vmatpush1.bf16.msra.mxu0 %v4421_v58  ;;  %1799 = vmatpush1.bf16.msra.mxu1 %v4424_v60 }
 0x151   :  { %1757 = vmatprep.subr.bf16.mxu0 %v4429_v61  ;;  %1800 = vmatprep.subr.bf16.mxu1 %v4432_v63 }
 0x154   :  { %1758 = vmatpush1.bf16.msra.mxu0 %v4427_v62  ;;  %1801 = vmatpush1.bf16.msra.mxu1 %v4430_v0 }
 0x155   :  { %1759 = vmatprep.subr.bf16.mxu0 %v4435_v1  ;;  %1802 = vmatprep.subr.bf16.mxu1 %v4438_v3  ;;  %v1182_v3 = vld [vmem:[#allocation8 + $0x8] sm:$0xff] }
 0x158   :  { %1760 = vmatpush1.bf16.msra.mxu0 %v4433_v2  ;;  %1803 = vmatpush1.bf16.msra.mxu1 %v4436_v4 }
 0x159   :  { %1761 = vmatprep.subr.bf16.mxu0 %v4441_v5  ;;  %1804 = vmatprep.subr.bf16.mxu1 %v4444_v6 }
 0x15c   :  { %1762 = vmatpush1.bf16.msra.mxu0 %v4439_v7  ;;  %1805 = vmatpush1.bf16.msra.mxu1 %v4442_v8 }
 0x15d   :  { %1763 = vmatprep.subr.bf16.mxu0 %v4447_v10  ;;  %1806 = vmatprep.subr.bf16.mxu1 %v4450_v11 }
 0x160   :  { %1764 = vmatpush1.bf16.msra.mxu0 %v4445_v12  ;;  %1807 = vmatpush1.bf16.msra.mxu1 %v4448_v13 }
 0x161   :  { %4104 = vmatprep.subr.bf16.mxu0 %v4451_v14 }
 0x1f6   :  { %v1048_v22 = vpop.f32.mrb[0].mxu0  ;;  %v1134_v23 = vpop.f32.mrb[0].mxu1 }
 0x1f7   :  { %v4126_v25 = vadd.f32 %v1048_v22, %v314_v20  ;;  %v1050_v26 = vpop.f32.mrb[1].mxu0  ;;  %v1136_v27 = vpop.f32.mrb[1].mxu1  ;;  %v4130_v43 = vadd.f32 %v1134_v23, %v322_v41  ;;  %v4453_v23 = vld [vmem:[#allocation14 + $0x178] ss:$20 sps:$4 sm:$0xff]  }
 0x1f8   :  { %v4127_v28 = vadd.f32 %v1050_v26, %v318_v21  ;;  %v1052_v29 = vpop.f32.mrb[2].mxu0  ;;  %v1138_v30 = vpop.f32.mrb[2].mxu1  ;;  %v4131_v42 = vadd.f32 %v1136_v27, %v326_v37  ;;  %v4455_v26 = vld [vmem:[#allocation14 + $0x1a0] ss:$20 sps:$4 sm:$0xff]  }
 0x1f9   :  { %v3980_v31 = vmul.f32 -1.442695, %v4126_v25  ;;  %v4128_v33 = vadd.f32 %v1052_v29, %v314_v20  ;;  %v1054_v34 = vpop.f32.mrb[3].mxu0  ;;  %v1140_v35 = vpop.f32.mrb[3].mxu1  ;;  %v4132_v46 = vadd.f32 %v1138_v30, %v322_v41  ;;  %v4454_v25 = vld [vmem:[#allocation14 + $0x38] ss:$20 sps:$4 sm:$0xff]  }
 0x1fa   :  { %v3982_v36 = vmul.f32 -1.442695, %v4127_v28  ;;  %v4129_v38 = vadd.f32 %v1054_v34, %v318_v21  ;;  %v3984_v44 = vmul.f32 -1.442695, %v4131_v42  ;;  %v4133_v45 = vadd.f32 %v1140_v35, %v326_v37  ;;  %v4452_v21 = vld [vmem:[#allocation14 + $0x10] ss:$20 sps:$4 sm:$0xff]  }
 0x1fb   :  { %4515 = vpow2.f32 %v3980_v31  ;;  %v3981_v39 = vmul.f32 -1.442695, %v4128_v33  ;;  %v4456_v27 = vld [vmem:[#allocation14 + $0x60] ss:$20 sps:$4 sm:$0xff]   ;;  %v4457_v28 = vld [vmem:[#allocation14 + $0x1c8] ss:$20 sps:$4 sm:$0xff]  }
 0x1fc   :  { %4517 = vpow2.f32 %v3982_v36  ;;  %v3983_v40 = vmul.f32 -1.442695, %v4129_v38  ;;  %v3985_v50 = vmul.f32 -1.442695, %v4133_v45  ;;  %v4458_v29 = vld [vmem:[#allocation14 + $0x88] ss:$20 sps:$4 sm:$0xff]  }
 0x1fd   :  { %4519 = vpow2.f32 %v3981_v39  ;;  %v4459_v30 = vld [vmem:[#allocation14 + $0x1f0] ss:$20 sps:$4 sm:$0xff]   ;;  %v4461_v33 = vld [vmem:[#allocation14 + $0x218] ss:$20 sps:$4 sm:$0xff]   ;;  %v4463_v35 = vld [vmem:[#allocation14 + $0x240] ss:$20 sps:$4 sm:$0xff]  }
 0x1fe   :  { %4521 = vpow2.f32 %v3983_v40  ;;  %v4460_v31 = vld [vmem:[#allocation14 + $0xb0] ss:$20 sps:$4 sm:$0xff]   ;;  %v4462_v34 = vld [vmem:[#allocation14 + $0xd8] ss:$20 sps:$4 sm:$0xff]   ;;  %v4465_v36 = vld [vmem:[#allocation14 + $0x268] ss:$20 sps:$4 sm:$0xff]  }
 0x1ff   :  { %4523 = vtanh.f32 %v4130_v43  ;;  %v4466_v37 = vld [vmem:[#allocation14 + $0x128] ss:$20 sps:$4 sm:$0xff]   ;;  %v4979_v38 = vmov 1966171168   ;;  %v1290_v40 = vld [vmem:[%s5887_s9] sm:$0x1f] }
 0x200   :  { %4525 = vpow2.f32 %v3984_v44  ;;  %v1896_v39 = vunpack.c.l.s4 %v4979_v38  ;;  %v1295_v42 = vrot.slane %v1290_v40, %v5217_v17 }
 0x201   :  { %4527 = vtanh.f32 %v4132_v46 }
 0x202   :  { %v1897_v41 = vunpack.c.0.s8 %v1896_v39 }
 0x204   :  { %v5241_v43 = vsub.s32 %v1897_v41, %v5214_v16 }
 0x205   :  { %v4516_v47 = vpop.eup %4515 }
 0x206   :  { %v4518_v48 = vpop.eup %4517  ;;  %v1149_v49 = vadd.f32 1.0, %v4516_v47 }
 0x207   :  { %v1161_v51 = vadd.f32 1.0, %v4518_v48  ;;  %v4520_v52 = vpop.eup %4519 }
 0x208   :  { %4529 = vrcp.f32 %v1149_v49  ;;  %v1150_v53 = vadd.f32 1.0, %v4520_v52  ;;  %v4522_v54 = vpop.eup %4521 }
 0x209   :  { %4531 = vrcp.f32 %v1161_v51  ;;  %v1162_v55 = vadd.f32 1.0, %v4522_v54  ;;  %v4524_v56 = vpop.eup %4523 }
 0x20a   :  { %4533 = vpow2.f32 %v3985_v50  ;;  %v4526_v57 = vpop.eup %4525 }
 0x20b   :  { %4535 = vrcp.f32 %v1150_v53  ;;  %v4528_v58 = vpop.eup %4527  ;;  %v1175_v63 = vadd.f32 1.0, %v4526_v57 }
 0x20c   :  { %4537 = vrcp.f32 %v1162_v55 }
 0x20d   :  { %4539 = vrcp.f32 %v1175_v63  ;;  %v1863_v63 = vld [vmem:[#allocation11 + $0x18] sm:$0xff] }
 0x212   :  { %v4530_v60 = vpop.eup %4529 }
 0x213   :  { %v4532_v61 = vpop.eup %4531  ;;  %v1185_v62 = vmul.f32 %v4530_v60, %v4524_v56  ;;  %v1861_v60 = vld [vmem:[#allocation11 + $0x8] sm:$0xff] }
 0x214   :  { %v4534_v0 = vpop.eup %4533  ;;  %v1183_v1 = vmul.f32 %v4532_v61, %v1181_v59  ;;  %v1860_v59 = vld [vmem:[#allocation11] sm:$0xff] }
 0x215   :  { %v4536_v2 = vpop.eup %4535  ;;  %v1176_v7 = vadd.f32 1.0, %v4534_v0 }
 0x216   :  { %v1187_v4 = vadd.f32 %v1185_v62, %v1183_v1  ;;  %v1186_v5 = vmul.f32 %v4536_v2, %v4528_v58  ;;  %v4538_v6 = vpop.eup %4537  ;;  %v1862_v62 = vld [vmem:[#allocation11 + $0x10] sm:$0xff] }
 0x217   :  { %v1184_v8 = vmul.f32 %v4538_v6, %v1182_v3  ;;  %v4540_v11 = vpop.eup %4539 }
 0x218   :  { %4541 = vtanh.f32 %v1187_v4  ;;  %3810 = vst [vmem:[#allocation18] sm:$0xff] %v1187_v4 }
 0x219   :  { %v1188_v10 = vadd.f32 %v1186_v5, %v1184_v8  ;;  %4543 = vrcp.f32 %v1176_v7 }
 0x21b   :  { %4545 = vtanh.f32 %v1188_v10  ;;  %3811 = vst [vmem:[#allocation18 + $0x8] sm:$0xff] %v1188_v10 }
 0x222   :  { %v4542_v12 = vpop.eup %4541 }
 0x223   :  { %v1191_v13 = vmul.f32 %v4542_v12, %v4540_v11  ;;  %v4544_v14 = vpop.eup %4543 }
 0x225   :  { %3805 = vst [vmem:[#allocation17] sm:$0xff] %v1191_v13  ;;  %v4546_v18 = vpop.eup %4545 }
 0x226   :  { %v1192_v20 = vmul.f32 %v4546_v18, %v4544_v14 }
 0x228   :  { %v1193_v22 = vpack.c.bf16 %v1192_v20, %v1191_v13  ;;  %3806 = vst [vmem:[#allocation17 + $0x8] sm:$0xff] %v1192_v20 }
 0x22a   :  { %1766 = vmatmul.mubr.bf16.vlgmr.msra.gmra.mrb[4].mxu0 %v1193_v22  ;;  %1809 = vmatmul.mubr.bf16.vlgmr.msra.gmra.mrb[4].mxu1 %v1193_v22 }
 0x22b   :  { %4105 = vmatpush3.bf16.msra.mxu0 %v4452_v21  ;;  %1851 = vmatprep.mubr.bf16.mxu0 %v5207_v9  ;;  %v4464_v9 = vld [vmem:[#allocation14 + $0x100] ss:$20 sps:$4 sm:$0xff]  }
 0x22c   :  { %4106 = vmatprep.subr.bf16.mxu0 %v4453_v23  ;;  %v1864_v21 = vld [vmem:[#allocation11 + $0x20] sm:$0xff] }
 0x22f   :  { %4107 = vmatpush3.bf16.msra.mxu0 %v4454_v25  ;;  %v2136_v25 = vld [vmem:[%s5889_s11] sm:$0x1] }
 0x230   :  { %4108 = vmatprep.subr.bf16.mxu0 %v4455_v26  ;;  %v1868_v26 = vld [vmem:[#allocation11 + $0x40] sm:$0xff] }
 0x233   :  { %4109 = vmatpush3.bf16.msra.mxu0 %v4456_v27 }
 0x234   :  { %4110 = vmatprep.subr.bf16.mxu0 %v4457_v28 }
 0x237   :  { %4111 = vmatpush3.bf16.msra.mxu0 %v4458_v29 }
 0x238   :  { %4112 = vmatprep.subr.bf16.mxu0 %v4459_v30  ;;  %v1869_v30 = vld [vmem:[#allocation11 + $0x48] sm:$0xff] }
 0x23b   :  { %4113 = vmatpush3.bf16.msra.mxu0 %v4460_v31 }
 0x23c   :  { %4114 = vmatprep.subr.bf16.mxu0 %v4461_v33 }
 0x23f   :  { %4115 = vmatpush3.bf16.msra.mxu0 %v4462_v34  ;;  %v1876_v34 = vld [vmem:[#allocation11 + $0x80] sm:$0xff] }
 0x240   :  { %4116 = vmatprep.subr.bf16.mxu0 %v4463_v35  ;;  %v1877_v35 = vld [vmem:[#allocation11 + $0x88] sm:$0xff] }
 0x243   :  { %4117 = vmatpush3.bf16.msra.mxu0 %v4464_v9 }
 0x244   :  { %4118 = vmatprep.subr.bf16.mxu0 %v4465_v36 }
 0x247   :  { %4119 = vmatpush3.bf16.msra.mxu0 %v4466_v37  ;;  %v2138_v37 = vpack.i.b16 %v2136_v25, %v2136_v25  ;;  %v1867_v25 = vld [vmem:[#allocation11 + $0x38] sm:$0xff] }
 0x24a   :  { %1852 = vmatmul.mubr.bf16.vlgmr.msra.gmra.mrb[8].mxu0 %v1193_v22  ;;  %v1865_v22 = vld [vmem:[#allocation11 + $0x28] sm:$0xff] }
 0x2fd   :  { %v1767_v44 = vpop.f32.mrb[4].mxu0  ;;  %v5243_v45 = vpop.f32.mrb[4].mxu1 }
 0x2fe   :  { %5894 = vst [vmem:[#allocation27_spill] sm:$0xff] %v5243_v45  ;;  %v1768_v46 = vadd.f32 %v1767_v44, %v1295_v42  ;;  %v5245_v47 = vpop.f32.mrb[5].mxu0  ;;  %v5247_v48 = vpop.f32.mrb[5].mxu1 }
 0x2ff   :  { %5895 = vst [vmem:[#allocation28_spill] sm:$0xff] %v5245_v47  ;;  %5896 = vst [vmem:[#allocation29_spill] sm:$0xff] %v5247_v48  ;;  %v1771_v49 = vpop.f32.mrb[6].mxu0  ;;  %v5249_v50 = vpop.f32.mrb[6].mxu1 }
 0x300   :  { %5897 = vst [vmem:[#allocation30_spill] sm:$0xff] %v5249_v50  ;;  %v1901_v51 = vrot.slane %v1768_v46, %v5241_v43  ;;  %v5252_v52 = vpop.f32.mrb[7].mxu0  ;;  %v5254_v53 = vpop.f32.mrb[7].mxu1  ;;  %v1772_v56 = vadd.f32 %v1771_v49, %v1295_v42  ;;  %v1894_v57 = vcombine.high %v1768_v46, %v1768_v46  ;;  %v1878_v49 = vld [vmem:[#allocation11 + $0x90] sm:$0xff] }
 0x301   :  { %5898 = vst [vmem:[#allocation31_spill] sm:$0xff] %v5252_v52  ;;  %5899 = vst [vmem:[#allocation32_spill] sm:$0xff] %v5254_v53 }
 0x302   :  { %v1909_v54 = vcombine.high %v1901_v51, %v1901_v51  ;;  %v1917_v55 = vrot.slane %v1901_v51, %v5241_v43  ;;  %v1943_v1 = vcombine.high %v1772_v56, %v1772_v56  ;;  %v5264_v2 = vrot.slane %v1894_v57, %v5241_v43  ;;  %v1879_v51 = vld [vmem:[#allocation11 + $0x98] sm:$0xff] }
 0x303   :  { %v1950_v5 = vrot.slane %v1772_v56, %v5241_v43  ;;  %v1890_v56 = vld [vmem:[#allocation11 + $0xf0] sm:$0xff]  ;;  %v1891_v57 = vld [vmem:[#allocation11 + $0xf8] sm:$0xff] }
 0x304   :  { %v5258_v58 = vrot.slane %v1909_v54, %v5241_v43  ;;  %v1995_v61 = vrot.slane %v1917_v55, %v5217_v17  ;;  %v1939_v6 = vcombine.high %v1917_v55, %v1917_v55  ;;  %v1957_v10 = vrot.slane %v1943_v1, %v5241_v43 }
 0x305   :  { %v5270_v11 = vrot.slane %v5264_v2, %v5241_v43  ;;  %v1966_v13 = vrot.slane %v1950_v5, %v5241_v43  ;;  %v1958_v20 = vcombine.high %v1950_v5, %v1950_v5  ;;  %v5292_v55 = vrot.slane %v2138_v37, %v5217_v17 }
 0x306   :  { %v1999_v0 = vrot.slane %v5258_v58, %v5217_v17  ;;  %v2072_v3 = vadd.f32 %v1995_v61, %v1860_v59  ;;  %v2073_v4 = vadd.f32 %v1995_v61, %v1861_v60  ;;  %v2003_v14 = vrot.slane %v1939_v6, %v5217_v17 }
 0x307   :  { %v1959_v23 = vcombine.high %v1957_v10, %v1957_v10  ;;  %v2011_v27 = vrot.slane %v5270_v11, %v5217_v17  ;;  %v2027_v29 = vrot.slane %v1966_v13, %v5217_v17  ;;  %v5284_v9 = vrot.slane %v1958_v20, %v5241_v43 }
 0x308   :  { %v2074_v7 = vadd.f32 %v1999_v0, %v1862_v62  ;;  %v2075_v8 = vadd.f32 %v1999_v0, %v1863_v63  ;;  %v2104_v12 = vpack.c.bf16 %v2073_v4, %v2072_v3  ;;  %v2076_v31 = vadd.f32 %v2003_v14, %v1864_v21 }
 0x309   :  { %v5280_v28 = vrot.slane %v1959_v23, %v5241_v43  ;;  %v2077_v33 = vadd.f32 %v2003_v14, %v1865_v22  ;;  %v2080_v38 = vadd.f32 %v2011_v27, %v1868_v26  ;;  %v2081_v39 = vadd.f32 %v2011_v27, %v1869_v30 }
 0x30a   :  { %v2105_v18 = vpack.c.bf16 %v2075_v8, %v2074_v7  ;;  %4547 = vtanh.bf16 %v2104_v12  ;;  %v2088_v40 = vadd.f32 %v2027_v29, %v1876_v34  ;;  %v2089_v41 = vadd.f32 %v2027_v29, %v1877_v35  ;;  %v1880_v7 = vld [vmem:[#allocation11 + $0xa0] sm:$0xff]  ;;  %v1881_v8 = vld [vmem:[#allocation11 + $0xa8] sm:$0xff] }
 0x30b   :  { %v1991_v36 = vcombine.high %v5280_v28, %v5280_v28  ;;  %v2106_v42 = vpack.c.bf16 %v2077_v33, %v2076_v31  ;;  %v1988_v44 = vcombine.high %v1966_v13, %v1966_v13  ;;  %v2031_v46 = vrot.slane %v5284_v9, %v5217_v17 }
 0x30c   :  { %4549 = vtanh.bf16 %v2105_v18  ;;  %v1941_v59 = vcombine.high %v5258_v58, %v5258_v58  ;;  %v2108_v60 = vpack.c.bf16 %v2081_v39, %v2080_v38  ;;  %v2112_v61 = vpack.c.bf16 %v2089_v41, %v2088_v40  ;;  %v1866_v18 = vld [vmem:[#allocation11 + $0x30] sm:$0xff]  ;;  %v1884_v41 = vld [vmem:[#allocation11 + $0xc0] sm:$0xff] }
 0x30d   :  { %v2055_v54 = vrot.slane %v1991_v36, %v5217_v17  ;;  %4551 = vtanh.bf16 %v2106_v42  ;;  %v2035_v63 = vrot.slane %v1988_v44, %v5217_v17  ;;  %v2090_v0 = vadd.f32 %v2031_v46, %v1878_v49  ;;  %v1885_v42 = vld [vmem:[#allocation11 + $0xc8] sm:$0xff] }
 0x30e   :  { %v2091_v1 = vadd.f32 %v2031_v46, %v1879_v51  ;;  %4553 = vtanh.bf16 %v2112_v61  ;;  %v1910_v58 = vcombine.high %v5264_v2, %v5264_v2  ;;  %v2007_v13 = vrot.slane %v1941_v59, %v5217_v17 }
 0x30f   :  { %v2102_v4 = vadd.f32 %v2055_v54, %v1890_v56  ;;  %v2103_v5 = vadd.f32 %v2055_v54, %v1891_v57  ;;  %v5303_v20 = vrot.slane %v1957_v10, %v5241_v43  ;;  %4555 = vtanh.bf16 %v2108_v60  ;;  %v1870_v54 = vld [vmem:[#allocation11 + $0x50] sm:$0xff]  ;;  %v1871_v60 = vld [vmem:[#allocation11 + $0x58] sm:$0xff] }
 0x310   :  { %v2113_v21 = vpack.c.bf16 %v2091_v1, %v2090_v0  ;;  %v2092_v26 = vadd.f32 %v2035_v63, %v1880_v7  ;;  %v2093_v27 = vadd.f32 %v2035_v63, %v1881_v8  ;;  %v5308_v33 = vrot.slane %v1910_v58, %v5241_v43 }
 0x311   :  { %v2119_v30 = vpack.c.bf16 %v2103_v5, %v2102_v4  ;;  %v2078_v34 = vadd.f32 %v2007_v13, %v1866_v18  ;;  %v2079_v36 = vadd.f32 %v2007_v13, %v1867_v25  ;;  %v2043_v39 = vrot.slane %v5303_v20, %v5217_v17  ;;  %v1873_v4 = vld [vmem:[#allocation11 + $0x68] sm:$0xff] }
 0x312   :  { %4557 = vtanh.bf16 %v2113_v21  ;;  %v2114_v40 = vpack.c.bf16 %v2093_v27, %v2092_v26  ;;  %v1940_v46 = vcombine.high %v5270_v11, %v5270_v11  ;;  %v2015_v49 = vrot.slane %v5308_v33, %v5217_v17  ;;  %v1872_v11 = vld [vmem:[#allocation11 + $0x60] sm:$0xff]  ;;  %v1883_v26 = vld [vmem:[#allocation11 + $0xb8] sm:$0xff] }
 0x313   :  { %4559 = vtanh.bf16 %v2119_v30  ;;  %v2107_v51 = vpack.c.bf16 %v2079_v36, %v2078_v34  ;;  %v2096_v56 = vadd.f32 %v2043_v39, %v1884_v41  ;;  %v2097_v57 = vadd.f32 %v2043_v39, %v1885_v42  ;;  %v1886_v39 = vld [vmem:[#allocation11 + $0xd0] sm:$0xff] }
 0x314   :  { %4561 = vtanh.bf16 %v2114_v40  ;;  %v2019_v1 = vrot.slane %v1940_v46, %v5217_v17  ;;  %v2083_v5 = vadd.f32 %v2015_v49, %v1871_v60  ;;  %v1887_v40 = vld [vmem:[#allocation11 + $0xd8] sm:$0xff]  ;;  %v1942_v46 = vcombine.high %v5308_v33, %v5308_v33 }
 0x315   :  { %v4548_v62 = vpop.eup %4547  ;;  %4563 = vtanh.bf16 %v2107_v51  ;;  %v2116_v7 = vpack.c.bf16 %v2097_v57, %v2096_v56  ;;  %v1889_v56 = vld [vmem:[#allocation11 + $0xe8] sm:$0xff] }
 0x316   :  { %v2144_v6 = vmul.bf16 %v4548_v62, %v5292_v55  ;;  %v2084_v18 = vadd.f32 %v2019_v1, %v1872_v11  ;;  %v2085_v21 = vadd.f32 %v2019_v1, %v1873_v4  ;;  %v1874_v1 = vld [vmem:[#allocation11 + $0x70] sm:$0xff] }
 0x317   :  { %v4550_v3 = vpop.eup %4549  ;;  %4565 = vtanh.bf16 %v2116_v7 }
 0x318   :  { %v2145_v12 = vmul.bf16 %v4550_v3, %v5292_v55  ;;  %v2160_v14 = vunpack.c.l.bf16 %v2144_v6  ;;  %v2161_v10 = vunpack.c.h.bf16 %v2144_v6  ;;  %v4552_v44 = vpop.eup %4551  ;;  %v2082_v3 = vadd.f32 %v2015_v49, %v1870_v54  ;;  %v1888_v54 = vld [vmem:[#allocation11 + $0xe0] sm:$0xff] }
 0x319   :  { %v4554_v43 = vpop.eup %4553  ;;  %v2146_v63 = vmul.bf16 %v4552_v44, %v5292_v55  ;;  %v1990_v6 = vcombine.high %v5284_v9, %v5284_v9  ;;  %v1882_v9 = vld [vmem:[#allocation11 + $0xb0] sm:$0xff]  ;;  %v2110_v34 = vpack.c.bf16 %v2085_v21, %v2084_v18 }
 0x31a   :  { %v2162_v23 = vunpack.c.l.bf16 %v2145_v12  ;;  %2192 = vadd.xlane.f32.xlu0 %v2160_v14  ;;  %v2163_v38 = vunpack.c.h.bf16 %v2145_v12  ;;  %v2152_v59 = vmul.bf16 %v4554_v43, %v5292_v55  ;;  %v4556_v0 = vpop.eup %4555 }
 0x31b   :  { %v2164_v12 = vunpack.c.l.bf16 %v2146_v63  ;;  %v2165_v58 = vunpack.c.h.bf16 %v2146_v63  ;;  %v2148_v13 = vmul.bf16 %v4556_v0, %v5292_v55 }
 0x31c   :  { %2196 = vadd.xlane.f32.xlu1 %v2162_v23  ;;  %v2176_v61 = vunpack.c.l.bf16 %v2152_v59  ;;  %v2177_v62 = vunpack.c.h.bf16 %v2152_v59  ;;  %v2039_v23 = vrot.slane %v1990_v6, %v5217_v17 }
 0x31d   :  { %v4120_v22 = vpop.f32.mrb[8].mxu0  ;;  %v4558_v8 = vpop.eup %4557  ;;  %v2168_v27 = vunpack.c.l.bf16 %v2148_v13 }
 0x31e   :  { %v4121_v29 = vpop.f32.mrb[9].mxu0  ;;  %2194 = vadd.xlane.f32.xlu0 %v2161_v10  ;;  %v4560_v14 = vpop.eup %4559  ;;  %v2153_v30 = vmul.bf16 %v4558_v8, %v5292_v55  ;;  %v1989_v10 = vcombine.high %v5303_v20, %v5303_v20  ;;  %v2094_v36 = vadd.f32 %v2039_v23, %v1882_v9 }
 0x31f   :  { %v5305_v31 = vadd.f32 %v4121_v29, %v4120_v22  ;;  %v4123_v2 = vpop.f32.mrb[10].mxu0  ;;  %v2109_v22 = vpack.c.bf16 %v2083_v5, %v2082_v3  ;;  %v5326_v25 = vmul.bf16 %v4560_v14, %v5292_v55  ;;  %v2169_v29 = vunpack.c.h.bf16 %v2148_v13  ;;  %v1875_v3 = vld [vmem:[#allocation11 + $0x78] sm:$0xff] }
 0x320   :  { %v4124_v35 = vpop.f32.mrb[11].mxu0  ;;  %2198 = vadd.xlane.f32.xlu1 %v2163_v38  ;;  %v2095_v38 = vadd.f32 %v2039_v23, %v1883_v26  ;;  %v2178_v41 = vunpack.c.l.bf16 %v2153_v30  ;;  %v2179_v42 = vunpack.c.h.bf16 %v2153_v30  ;;  %v2051_v20 = vrot.slane %v1989_v10, %v5217_v17 }
 0x321   :  { %5900 = vst [vmem:[#allocation33_spill] sm:$0xff] %v5305_v31  ;;  %v5310_v37 = vadd.f32 %v4124_v35, %v4123_v2  ;;  %v4562_v2 = vpop.eup %4561  ;;  %4567 = vtanh.bf16 %v2109_v22  ;;  %v2047_v35 = vrot.slane %v5280_v28, %v5217_v17 }
 0x322   :  { %2224 = vadd.xlane.f32.xlu0 %v2176_v61  ;;  %v2154_v44 = vmul.bf16 %v4562_v2, %v5292_v55  ;;  %v4564_v43 = vpop.eup %4563  ;;  %4569 = vtanh.bf16 %v2110_v34  ;;  %v2115_v28 = vpack.c.bf16 %v2095_v38, %v2094_v36  ;;  %v2100_v63 = vadd.f32 %v2051_v20, %v1888_v54 }
 0x323   :  { %5901 = vst [vmem:[#allocation34_spill] sm:$0xff] %v5310_v37  ;;  %v2098_v49 = vadd.f32 %v2047_v35, %v1886_v39  ;;  %v2099_v51 = vadd.f32 %v2047_v35, %v1887_v40  ;;  %v2147_v60 = vmul.bf16 %v4564_v43, %v5292_v55  ;;  %v4566_v61 = vpop.eup %4565  ;;  %v2101_v0 = vadd.f32 %v2051_v20, %v1889_v56 }
 0x324   :  { %2226 = vadd.xlane.f32.xlu1 %v2177_v62  ;;  %v2180_v57 = vunpack.c.l.bf16 %v2154_v44  ;;  %v2181_v59 = vunpack.c.h.bf16 %v2154_v44  ;;  %v2023_v62 = vrot.slane %v1942_v46, %v5217_v17  ;;  %4571 = vtanh.bf16 %v2115_v28 }
 0x325   :  { %v2117_v33 = vpack.c.bf16 %v2099_v51, %v2098_v49  ;;  %v2166_v11 = vunpack.c.l.bf16 %v2147_v60  ;;  %v2167_v4 = vunpack.c.h.bf16 %v2147_v60  ;;  %v2156_v5 = vmul.bf16 %v4566_v61, %v5292_v55 }
 0x326   :  { %2200 = vadd.xlane.f32.xlu0 %v2164_v12  ;;  %v2086_v7 = vadd.f32 %v2023_v62, %v1874_v1  ;;  %v2087_v8 = vadd.f32 %v2023_v62, %v1875_v3  ;;  %v2118_v12 = vpack.c.bf16 %v2101_v0, %v2100_v63  ;;  %v2190_v49 = vunpack.c.l.bf16 %v5326_v25 }
 0x327   :  { %4573 = vtanh.bf16 %v2117_v33  ;;  %v2185_v13 = vunpack.c.h.bf16 %v2156_v5  ;;  %v2191_v51 = vunpack.c.h.bf16 %v5326_v25 }
 0x328   :  { %2202 = vadd.xlane.f32.xlu1 %v2165_v58  ;;  %v2184_v58 = vunpack.c.l.bf16 %v2156_v5  ;;  %4575 = vtanh.bf16 %v2118_v12  ;;  %v2111_v21 = vpack.c.bf16 %v2087_v8, %v2086_v7 }
 0x32a   :  { %2208 = vadd.xlane.f32.xlu0 %v2168_v27  ;;  %4577 = vtanh.bf16 %v2111_v21 }
 0x32c   :  { %2210 = vadd.xlane.f32.xlu1 %v2169_v29  ;;  %v4568_v6 = vpop.eup %4567 }
 0x32d   :  { %v2149_v14 = vmul.bf16 %v4568_v6, %v5292_v55  ;;  %v4570_v18 = vpop.eup %4569  ;;  %v2289_v6 = vand.u32 127, %v311_v15 }
 0x32e   :  { %2228 = vadd.xlane.f32.xlu0 %v2178_v41  ;;  %v2150_v9 = vmul.bf16 %v4570_v18, %v5292_v55 }
 0x32f   :  { %v2170_v22 = vunpack.c.l.bf16 %v2149_v14  ;;  %v2171_v23 = vunpack.c.h.bf16 %v2149_v14  ;;  %v4572_v26 = vpop.eup %4571  ;;  %v2294_v7 = vadd.s32 4294967288, %v2289_v6  ;;  %v5397_v18 = vsub.s32 %v2289_v6, %v5214_v16 }
 0x330   :  { %2230 = vadd.xlane.f32.xlu1 %v2179_v42  ;;  %v2172_v27 = vunpack.c.l.bf16 %v2150_v9  ;;  %v2173_v29 = vunpack.c.h.bf16 %v2150_v9  ;;  %v2155_v30 = vmul.bf16 %v4572_v26, %v5292_v55 }
 0x332   :  { %2232 = vadd.xlane.f32.xlu0 %v2180_v57  ;;  %v4574_v2 = vpop.eup %4573  ;;  %v2182_v34 = vunpack.c.l.bf16 %v2155_v30  ;;  %v2183_v10 = vunpack.c.h.bf16 %v2155_v30 }
 0x333   :  { %v2157_v35 = vmul.bf16 %v4574_v2, %v5292_v55  ;;  %v4576_v36 = vpop.eup %4575 }
 0x334   :  { %2234 = vadd.xlane.f32.xlu1 %v2181_v59  ;;  %v2158_v40 = vmul.bf16 %v4576_v36, %v5292_v55 }
 0x335   :  { %v2186_v38 = vunpack.c.l.bf16 %v2157_v35  ;;  %v2187_v39 = vunpack.c.h.bf16 %v2157_v35  ;;  %v4578_v41 = vpop.eup %4577 }
 0x336   :  { %2204 = vadd.xlane.f32.xlu0 %v2166_v11  ;;  %v2188_v42 = vunpack.c.l.bf16 %v2158_v40  ;;  %v2189_v44 = vunpack.c.h.bf16 %v2158_v40  ;;  %v2151_v43 = vmul.bf16 %v4578_v41, %v5292_v55 }
 0x338   :  { %2206 = vadd.xlane.f32.xlu1 %v2167_v4  ;;  %v2174_v46 = vunpack.c.l.bf16 %v2151_v43  ;;  %v2175_v20 = vunpack.c.h.bf16 %v2151_v43 }
 0x33a   :  { %2240 = vadd.xlane.f32.xlu0 %v2184_v58  ;;  %v5390_v58 = vsub.s32 %v2294_v7, %v5214_v16 }
 0x33c   :  { %2242 = vadd.xlane.f32.xlu1 %v2185_v13 }
 0x33e   :  { %2212 = vadd.xlane.f32.xlu0 %v2170_v22 }
 0x340   :  { %2214 = vadd.xlane.f32.xlu1 %v2171_v23 }
 0x342   :  { %2216 = vadd.xlane.f32.xlu0 %v2172_v27 }
 0x344   :  { %2218 = vadd.xlane.f32.xlu1 %v2173_v29 }
 0x346   :  { %2236 = vadd.xlane.f32.xlu0 %v2182_v34 }
 0x348   :  { %2238 = vadd.xlane.f32.xlu1 %v2183_v10 }
 0x34a   :  { %2244 = vadd.xlane.f32.xlu0 %v2186_v38 }
 0x34c   :  { %2246 = vadd.xlane.f32.xlu1 %v2187_v39 }
 0x34e   :  { %2248 = vadd.xlane.f32.xlu0 %v2188_v42 }
 0x350   :  { %2250 = vadd.xlane.f32.xlu1 %v2189_v44 }
 0x352   :  { %2220 = vadd.xlane.f32.xlu0 %v2174_v46 }
 0x354   :  { %2222 = vadd.xlane.f32.xlu1 %v2175_v20 }
 0x356   :  { %2252 = vadd.xlane.f32.xlu0 %v2190_v49 }
 0x358   :  { %2254 = vadd.xlane.f32.xlu1 %v2191_v51 }
 0x3a7   :  { %v5348_v28 = vpop.xlane.xlu0 %2192 }
 0x3a8   :  { %v2293_v26 = vrot.slane %v5348_v28, %v5397_v18 }
 0x3a9   :  { %v5350_v54 = vpop.xlane.xlu1 %2196 }
 0x3aa   :  { %v2304_v15 = vrot.slane %v5350_v54, %v5397_v18 }
 0x3ab   :  { %v5352_v56 = vpop.xlane.xlu0 %2194 }
 0x3ac   :  { %v2298_v22 = vrot.slane %v5352_v56, %v5390_v58 }
 0x3ad   :  { %v5354_v57 = vpop.xlane.xlu1 %2198 }
 0x3ae   :  { %v2308_v21 = vrot.slane %v5354_v57, %v5390_v58  ;;  %v2300_v2 = vsel %vm2299_vm0, %v2298_v22, %v2293_v26 }
 0x3af   :  { %v5356_v55 = vpop.xlane.xlu0 %2224 }
 0x3b0   :  { %v2309_v27 = vsel %vm2299_vm0, %v2308_v21, %v2304_v15  ;;  %v2367_v6 = vrot.slane %v5356_v55, %v5397_v18 }
 0x3b1   :  { %v5358_v59 = vpop.xlane.xlu1 %2226  ;;  %v2437_v38 = vsel %vm2436_vm1, %v2309_v27, %v2300_v2 }
 0x3b2   :  { %v2371_v41 = vrot.slane %v5358_v59, %v5390_v58 }
 0x3b3   :  { %v5360_v60 = vpop.xlane.xlu0 %2200 }
 0x3b4   :  { %v2313_v34 = vrot.slane %v5360_v60, %v5397_v18 }
 0x3b5   :  { %v5362_v61 = vpop.xlane.xlu1 %2202 }
 0x3b6   :  { %v2317_v29 = vrot.slane %v5362_v61, %v5390_v58 }
 0x3b7   :  { %v5364_v62 = vpop.xlane.xlu0 %2208 }
 0x3b8   :  { %v2318_v42 = vsel %vm2299_vm0, %v2317_v29, %v2313_v34  ;;  %v2331_v7 = vrot.slane %v5364_v62, %v5397_v18  ;;  %v2372_v34 = vsel %vm2299_vm0, %v2371_v41, %v2367_v6 }
 0x3b9   :  { %v5366_v25 = vpop.xlane.xlu1 %2210  ;;  %v2439_v27 = vsel %vm2438_vm2, %v2318_v42, %v2437_v38 }
 0x3ba   :  { %v2335_v44 = vrot.slane %v5366_v25, %v5390_v58 }
 0x3bb   :  { %v5368_v63 = vpop.xlane.xlu0 %2228 }
 0x3bc   :  { %v2376_v43 = vrot.slane %v5368_v63, %v5397_v18 }
 0x3bd   :  { %v5370_v0 = vpop.xlane.xlu1 %2230 }
 0x3be   :  { %v2380_v10 = vrot.slane %v5370_v0, %v5390_v58 }
 0x3bf   :  { %v5372_v33 = vpop.xlane.xlu0 %2232 }
 0x3c0   :  { %v2385_v46 = vrot.slane %v5372_v33, %v5397_v18  ;;  %v2381_v21 = vsel %vm2299_vm0, %v2380_v10, %v2376_v43  ;;  %v2336_v10 = vsel %vm2299_vm0, %v2335_v44, %v2331_v7 }
 0x3c1   :  { %v5374_v1 = vpop.xlane.xlu1 %2234  ;;  %v2450_v37 = vsel %vm2436_vm1, %v2381_v21, %v2372_v34 }
 0x3c2   :  { %v2389_v39 = vrot.slane %v5374_v1, %v5390_v58 }
 0x3c3   :  { %v5376_v3 = vpop.xlane.xlu0 %2204 }
 0x3c4   :  { %v2322_v40 = vrot.slane %v5376_v3, %v5397_v18  ;;  %v2390_v29 = vsel %vm2299_vm0, %v2389_v39, %v2385_v46 }
 0x3c5   :  { %v5378_v11 = vpop.xlane.xlu1 %2206  ;;  %v2451_v46 = vsel %vm2438_vm2, %v2390_v29, %v2450_v37 }
 0x3c6   :  { %v2326_v30 = vrot.slane %v5378_v11, %v5390_v58 }
 0x3c7   :  { %v5380_v4 = vpop.xlane.xlu0 %2240 }
 0x3c8   :  { %v2327_v20 = vsel %vm2299_vm0, %v2326_v30, %v2322_v40 }
 0x3c9   :  { %v5382_v5 = vpop.xlane.xlu1 %2242  ;;  %v2441_v40 = vsel %vm2440_vm3, %v2327_v20, %v2439_v27  ;;  %v2403_v27 = vrot.slane %v5380_v4, %v5397_v18 }
 0x3ca   :  { %v2407_v41 = vrot.slane %v5382_v5, %v5390_v58  ;;  %v2443_v21 = vsel %vm2442_vm4, %v2336_v10, %v2441_v40 }
 0x3cb   :  { %v5385_v8 = vpop.xlane.xlu0 %2212 }
 0x3cc   :  { %v2340_v30 = vrot.slane %v5385_v8, %v5397_v18  ;;  %v2408_v50 = vsel %vm2299_vm0, %v2407_v41, %v2403_v27 }
 0x3cd   :  { %v5387_v12 = vpop.xlane.xlu1 %2214 }
 0x3ce   :  { %v2344_v49 = vrot.slane %v5387_v12, %v5390_v58 }
 0x3cf   :  { %v5392_v13 = vpop.xlane.xlu0 %2216 }
 0x3d0   :  { %v2349_v43 = vrot.slane %v5392_v13, %v5397_v18  ;;  %v2345_v38 = vsel %vm2299_vm0, %v2344_v49, %v2340_v30 }
 0x3d1   :  { %v5394_v14 = vpop.xlane.xlu1 %2218 }
 0x3d2   :  { %v2353_v15 = vrot.slane %v5394_v14, %v5390_v58 }
 0x3d3   :  { %v5405_v23 = vpop.xlane.xlu0 %2236 }
 0x3d4   :  { %v2394_v2 = vrot.slane %v5405_v23, %v5397_v18  ;;  %v2354_v7 = vsel %vm2299_vm0, %v2353_v15, %v2349_v43  ;;  %v2445_v15 = vsel %vm2444_vm5, %v2345_v38, %v2443_v21  ;;  %v4980_v21 = vmov 0  }
 0x3d5   :  { %v5407_v9 = vpop.xlane.xlu1 %2238  ;;  %v2447_v43 = vsel %vm2446_vm6, %v2354_v7, %v2445_v15  ;;  %4162 = vset.pattern.permute.xlu1 %v4980_v21  ;;  %4161 = vset.pattern.permute.xlu0 %v4980_v21 }
 0x3d6   :  { %v2398_v51 = vrot.slane %v5407_v9, %v5390_v58  ;;  %3692 = vmatprep.mubr.bf16.mxu1 %v4980_v21  ;;  %3735 = vmatprep.mubr.bf16.mxu0 %v4980_v21  ;;  %v5539_v21 = vsub.s32 7, %v5214_v16 }
 0x3d7   :  { %v5421_v35 = vpop.xlane.xlu0 %2244 }
 0x3d8   :  { %v2399_v39 = vsel %vm2299_vm0, %v2398_v51, %v2394_v2  ;;  %v2412_v49 = vrot.slane %v5421_v35, %v5397_v18 }
 0x3d9   :  { %v5423_v36 = vpop.xlane.xlu1 %2246  ;;  %v2452_v29 = vsel %vm2440_vm3, %v2399_v39, %v2451_v46 }
 0x3da   :  { %v2416_v42 = vrot.slane %v5423_v36, %v5390_v58  ;;  %v2453_v7 = vsel %vm2442_vm4, %v2408_v50, %v2452_v29 }
 0x3db   :  { %v5451_v22 = vpop.xlane.xlu0 %2248 }
 0x3dc   :  { %v2421_v30 = vrot.slane %v5451_v22, %v5397_v18  ;;  %v2417_v2 = vsel %vm2299_vm0, %v2416_v42, %v2412_v49 }
 0x3dd   :  { %v5453_v26 = vpop.xlane.xlu1 %2250  ;;  %v2454_v41 = vsel %vm2444_vm5, %v2417_v2, %v2453_v7 }
 0x3de   :  { %v2425_v44 = vrot.slane %v5453_v26, %v5390_v58 }
 0x3df   :  { %v5476_v20 = vpop.xlane.xlu0 %2220 }
 0x3e0   :  { %v2358_v51 = vrot.slane %v5476_v20, %v5397_v18  ;;  %v2426_v39 = vsel %vm2299_vm0, %v2425_v44, %v2421_v30 }
 0x3e1   :  { %v5478_v6 = vpop.xlane.xlu1 %2222 }
 0x3e2   :  { %v2362_v37 = vrot.slane %v5478_v6, %v5390_v58 }
 0x3e3   :  { %v5498_v53 = vpop.xlane.xlu0 %2252 }
 0x3e4   :  { %v2363_v34 = vsel %vm2299_vm0, %v2362_v37, %v2358_v51  ;;  %v2430_v46 = vrot.slane %v5498_v53, %v5397_v18  ;;  %v2455_v51 = vsel %vm2446_vm6, %v2426_v39, %v2454_v41 }
 0x3e5   :  { %v5500_v10 = vpop.xlane.xlu1 %2254  ;;  %v2449_v40 = vsel %vm2448_vm7, %v2363_v34, %v2447_v43 }
 0x3e6   :  { %v2434_v38 = vrot.slane %v5500_v10, %v5390_v58  ;;  %v2460_v42 = vsel %vm2459_vm8, %v2449_v40, -inf }
 0x3e7   :  { %2461 = vmax.xlane.f32.xlu0 %v2460_v42  ;;  %v5527_v42 = vsub.s32 5, %v5214_v16 }
 0x3e8   :  { %v2435_v49 = vsel %vm2299_vm0, %v2434_v38, %v2430_v46  ;;  %v5524_v38 = vsub.s32 4, %v5214_v16 }
 0x3e9   :  { %v2456_v37 = vsel %vm2448_vm7, %v2435_v49, %v2455_v51 }
 0x3ea   :  { %v2463_v44 = vsel %vm2459_vm8, %v2456_v37, -inf }
 0x3eb   :  { %2464 = vmax.xlane.f32.xlu1 %v2463_v44 }
 0x474   :  { %v2462_v27 = vpop.xlane.xlu0 %2461 }
 0x475   :  { %v2471_v50 = vrot.slane %v2462_v27, %v5217_v17  ;;  %v2475_v29 = vrot.slane %v2462_v27, %v5223_v19  ;;  %v2479_v30 = vrot.slane %v2462_v27, %v5231_v32  ;;  %v2483_v43 = vrot.slane %v2462_v27, %v5228_v24 }
 0x476   :  { %v2491_v37 = vrot.slane %v2462_v27, %v5527_v42 }
 0x477   :  { %v2548_v15 = vsub.f32 %v5348_v28, %v2471_v50  ;;  %v2549_v2 = vsub.f32 %v5352_v56, %v2471_v50  ;;  %v2550_v34 = vsub.f32 %v5350_v54, %v2475_v29  ;;  %v2553_v40 = vsub.f32 %v5362_v61, %v2479_v30 }
 0x478   :  { %v2551_v7 = vsub.f32 %v5354_v57, %v2475_v29  ;;  %v2487_v56 = vrot.slane %v2462_v27, %v5524_v38  ;;  %v2555_v54 = vsub.f32 %v5378_v11, %v2483_v43  ;;  %v5533_v61 = vsub.s32 6, %v5214_v16 }
 0x479   :  { %v2580_v39 = vmul.f32 1.442695, %v2548_v15  ;;  %v2582_v46 = vmul.f32 1.442695, %v2549_v2  ;;  %v2584_v28 = vmul.f32 1.442695, %v2550_v34  ;;  %v2552_v49 = vsub.f32 %v5360_v60, %v2479_v30 }
 0x47a   :  { %v2590_v41 = vmul.f32 1.442695, %v2553_v40  ;;  %v2586_v51 = vmul.f32 1.442695, %v2551_v7  ;;  %v2557_v44 = vsub.f32 %v5366_v25, %v2487_v56  ;;  %v2594_v57 = vmul.f32 1.442695, %v2555_v54  ;;  %v5555_v40 = vpop.xlane.xlu1 %2464 }
 0x47b   :  { %4579 = vpow2.f32 %v2580_v39  ;;  %v2554_v11 = vsub.f32 %v5376_v3, %v2483_v43  ;;  %v2588_v50 = vmul.f32 1.442695, %v2552_v49  ;;  %v2495_v29 = vrot.slane %v2462_v27, %v5533_v61 }
 0x47c   :  { %4581 = vpow2.f32 %v2582_v46  ;;  %v2559_v15 = vsub.f32 %v5387_v12, %v2491_v37  ;;  %v2598_v60 = vmul.f32 1.442695, %v2557_v44  ;;  %v2556_v25 = vsub.f32 %v5364_v62, %v2487_v56 }
 0x47d   :  { %4583 = vpow2.f32 %v2584_v28  ;;  %v2592_v16 = vmul.f32 1.442695, %v2554_v11  ;;  %v2499_v3 = vrot.slane %v2462_v27, %v5539_v21  ;;  %v2561_v34 = vsub.f32 %v5394_v14, %v2495_v29 }
 0x47e   :  { %4585 = vpow2.f32 %v2590_v41  ;;  %v2602_v12 = vmul.f32 1.442695, %v2559_v15  ;;  %v2558_v46 = vsub.f32 %v5385_v8, %v2491_v37  ;;  %v2596_v62 = vmul.f32 1.442695, %v2556_v25 }
 0x47f   :  { %4587 = vpow2.f32 %v2586_v51  ;;  %v2563_v27 = vsub.f32 %v5478_v6, %v2499_v3  ;;  %v2606_v14 = vmul.f32 1.442695, %v2561_v34  ;;  %v5565_v7 = vrot.slane %v5555_v40, %v5231_v32 }
 0x480   :  { %4589 = vpow2.f32 %v2594_v57  ;;  %v2560_v8 = vsub.f32 %v5392_v13, %v2495_v29  ;;  %v2600_v54 = vmul.f32 1.442695, %v2558_v46  ;;  %v5576_v41 = vrot.slane %v5555_v40, %v5228_v24 }
 0x481   :  { %4591 = vpow2.f32 %v2588_v50  ;;  %v2610_v6 = vmul.f32 1.442695, %v2563_v27  ;;  %v2569_v49 = vsub.f32 %v5374_v1, %v5565_v7  ;;  %v2562_v13 = vsub.f32 %v5476_v20, %v2499_v3 }
 0x482   :  { %4593 = vpow2.f32 %v2598_v60  ;;  %v2604_v44 = vmul.f32 1.442695, %v2560_v8  ;;  %v2503_v57 = vrot.slane %v5555_v40, %v5217_v17  ;;  %v5591_v11 = vrot.slane %v5555_v40, %v5524_v38 }
 0x483   :  { %4595 = vpow2.f32 %v2592_v16  ;;  %v2571_v1 = vsub.f32 %v5407_v9, %v5576_v41  ;;  %v2622_v50 = vmul.f32 1.442695, %v2569_v49  ;;  %v2608_v15 = vmul.f32 1.442695, %v2562_v13 }
 0x484   :  { %4597 = vpow2.f32 %v2602_v12  ;;  %v2564_v60 = vsub.f32 %v5356_v55, %v2503_v57  ;;  %v5604_v25 = vrot.slane %v5555_v40, %v5527_v42  ;;  %v2573_v9 = vsub.f32 %v5382_v5, %v5591_v11 }
 0x485   :  { %v5544_v30 = vpop.eup %4579  ;;  %4599 = vpow2.f32 %v2596_v62  ;;  %v2626_v16 = vmul.f32 1.442695, %v2571_v1  ;;  %v2507_v55 = vrot.slane %v5555_v40, %v5223_v19  ;;  %v2565_v12 = vsub.f32 %v5358_v59, %v2503_v57 }
 0x486   :  { %v5546_v2 = vpop.eup %4581  ;;  %2677 = vperm.xlu0 %4161, %v5544_v30   ;;  %4601 = vpow2.f32 %v2606_v14  ;;  %v2612_v46 = vmul.f32 1.442695, %v2564_v60  ;;  %v5619_v5 = vrot.slane %v5555_v40, %v5533_v61  ;;  %v2575_v62 = vsub.f32 %v5423_v36, %v5604_v25 }
 0x487   :  { %2680 = vperm.xlu1 %4162, %v5546_v2   ;;  %v5553_v43 = vpop.eup %4583  ;;  %4603 = vpow2.f32 %v2600_v54  ;;  %v2630_v27 = vmul.f32 1.442695, %v2573_v9  ;;  %v2566_v59 = vsub.f32 %v5368_v63, %v2507_v55  ;;  %v2614_v54 = vmul.f32 1.442695, %v2565_v12 }
 0x488   :  { %v5557_v39 = vpop.eup %4585  ;;  %4605 = vpow2.f32 %v2610_v6  ;;  %v2531_v6 = vrot.slane %v5555_v40, %v5539_v21  ;;  %v2577_v36 = vsub.f32 %v5453_v26, %v5619_v5  ;;  %v2634_v49 = vmul.f32 1.442695, %v2575_v62 }
 0x489   :  { %v5567_v28 = vpop.eup %4587  ;;  %4607 = vpow2.f32 %v2604_v44  ;;  %v2567_v63 = vsub.f32 %v5370_v0, %v2507_v55  ;;  %v2616_v57 = vmul.f32 1.442695, %v2566_v59  ;;  %v2568_v0 = vsub.f32 %v5372_v33, %v5565_v7 }
 0x48a   :  { %2692 = vperm.xlu0 %4161, %v5557_v39   ;;  %v5569_v56 = vpop.eup %4589  ;;  %4609 = vpow2.f32 %v2622_v50  ;;  %v2579_v1 = vsub.f32 %v5500_v10, %v2531_v6  ;;  %v2638_v40 = vmul.f32 1.442695, %v2577_v36  ;;  %v2572_v33 = vsub.f32 %v5380_v4, %v5591_v11 }
 0x48b   :  { %2683 = vperm.xlu1 %4162, %v5553_v43   ;;  %v5580_v51 = vpop.eup %4591  ;;  %4611 = vpow2.f32 %v2608_v15  ;;  %v2618_v15 = vmul.f32 1.442695, %v2567_v63  ;;  %v2620_v55 = vmul.f32 1.442695, %v2568_v0  ;;  %v2576_v4 = vsub.f32 %v5451_v22, %v5619_v5 }
 0x48c   :  { %v5582_v37 = vpop.eup %4593  ;;  %4613 = vpow2.f32 %v2626_v16  ;;  %v2642_v60 = vmul.f32 1.442695, %v2579_v1  ;;  %v2570_v16 = vsub.f32 %v5405_v23, %v5576_v41  ;;  %v2574_v23 = vsub.f32 %v5421_v35, %v5604_v25 }
 0x48d   :  { %v5595_v29 = vpop.eup %4595  ;;  %4615 = vpow2.f32 %v2612_v46  ;;  %v2628_v41 = vmul.f32 1.442695, %v2572_v33  ;;  %v2578_v35 = vsub.f32 %v5498_v53, %v2531_v6  ;;  %v2636_v25 = vmul.f32 1.442695, %v2576_v4 }
 0x48e   :  { %2698 = vperm.xlu0 %4161, %v5569_v56   ;;  %v5597_v20 = vpop.eup %4597  ;;  %4617 = vpow2.f32 %v2630_v27  ;;  %v2624_v7 = vmul.f32 1.442695, %v2570_v16  ;;  %v2632_v11 = vmul.f32 1.442695, %v2574_v23 }
 0x48f   :  { %2686 = vperm.xlu1 %4162, %v5567_v28   ;;  %v5608_v3 = vpop.eup %4599  ;;  %4619 = vpow2.f32 %v2614_v54  ;;  %v2640_v63 = vmul.f32 1.442695, %v2578_v35 }
 0x490   :  { %v5610_v34 = vpop.eup %4601  ;;  %4621 = vpow2.f32 %v2634_v49 }
 0x491   :  { %v5623_v14 = vpop.eup %4603  ;;  %4623 = vpow2.f32 %v2616_v57 }
 0x492   :  { %2704 = vperm.xlu0 %4161, %v5582_v37   ;;  %v5625_v8 = vpop.eup %4605  ;;  %4625 = vpow2.f32 %v2638_v40 }
 0x493   :  { %2689 = vperm.xlu1 %4162, %v5580_v51   ;;  %v5634_v13 = vpop.eup %4607  ;;  %4627 = vpow2.f32 %v2618_v15 }
 0x494   :  { %v5636_v44 = vpop.eup %4609  ;;  %4629 = vpow2.f32 %v2642_v60 }
 0x495   :  { %v5642_v50 = vpop.eup %4611  ;;  %4631 = vpow2.f32 %v2620_v55 }
 0x496   :  { %2710 = vperm.xlu0 %4161, %v5597_v20   ;;  %v5644_v26 = vpop.eup %4613  ;;  %4633 = vpow2.f32 %v2624_v7 }
 0x497   :  { %2695 = vperm.xlu1 %4162, %v5595_v29   ;;  %v5650_v9 = vpop.eup %4615  ;;  %4635 = vpow2.f32 %v2628_v41 }
 0x498   :  { %v5652_v10 = vpop.eup %4617  ;;  %4637 = vpow2.f32 %v2632_v11 }
 0x499   :  { %v5658_v12 = vpop.eup %4619  ;;  %4639 = vpow2.f32 %v2636_v25 }
 0x49a   :  { %2716 = vperm.xlu0 %4161, %v5610_v34   ;;  %v5660_v46 = vpop.eup %4621  ;;  %4641 = vpow2.f32 %v2640_v63 }
 0x49b   :  { %2701 = vperm.xlu1 %4162, %v5608_v3   ;;  %v5666_v62 = vpop.eup %4623 }
 0x49c   :  { %v5668_v27 = vpop.eup %4625 }
 0x49d   :  { %v5674_v59 = vpop.eup %4627 }
 0x49e   :  { %2722 = vperm.xlu0 %4161, %v5625_v8   ;;  %v5676_v54 = vpop.eup %4629 }
 0x49f   :  { %2707 = vperm.xlu1 %4162, %v5623_v14   ;;  %5902 = vst [vmem:[#allocation35_spill] sm:$0xff] %v5676_v54  ;;  %v5682_v36 = vpop.eup %4631 }
 0x4a0   :  { %v5686_v49 = vpop.eup %4633 }
 0x4a1   :  { %v5689_v57 = vpop.eup %4635 }
 0x4a2   :  { %2740 = vperm.xlu0 %4161, %v5636_v44   ;;  %v5692_v22 = vpop.eup %4637 }
 0x4a3   :  { %2713 = vperm.xlu1 %4162, %v5634_v13   ;;  %v5695_v5 = vpop.eup %4639 }
 0x4a4   :  { %v5698_v53 = vpop.eup %4641 }
 0x4a5   :  { %5903 = vst [vmem:[#allocation36_spill] sm:$0xff] %v5698_v53 }
 0x4a6   :  { %2746 = vperm.xlu0 %4161, %v5644_v26  }
 0x4a7   :  { %2719 = vperm.xlu1 %4162, %v5642_v50  }
 0x4aa   :  { %2752 = vperm.xlu0 %4161, %v5652_v10  }
 0x4ab   :  { %2725 = vperm.xlu1 %4162, %v5650_v9  }
 0x4ae   :  { %2758 = vperm.xlu0 %4161, %v5660_v46  }
 0x4af   :  { %2728 = vperm.xlu1 %4162, %v5658_v12  }
 0x4b2   :  { %2764 = vperm.xlu0 %4161, %v5668_v27  }
 0x4b3   :  { %2731 = vperm.xlu1 %4162, %v5666_v62  }
 0x4b6   :  { %2770 = vperm.xlu0 %4161, %v5676_v54  }
 0x4b7   :  { %2734 = vperm.xlu1 %4162, %v5674_v59  }
 0x4bb   :  { %2737 = vperm.xlu1 %4162, %v5682_v36  }
 0x4bf   :  { %2743 = vperm.xlu1 %4162, %v5686_v49  }
 0x4c3   :  { %2749 = vperm.xlu1 %4162, %v5689_v57  }
 0x4c7   :  { %2755 = vperm.xlu1 %4162, %v5692_v22  }
 0x4cb   :  { %2761 = vperm.xlu1 %4162, %v5695_v5  }
 0x4cf   :  { %2767 = vperm.xlu1 %4162, %v5698_v53  }
 0x505   :  { %v2678_v6 = vpop.permute.xlu0 %2677 }
 0x506   :  { %v2681_v1 = vpop.permute.xlu1 %2680  ;;  %v2775_v63 = vrot.slane %v2678_v6, %v5397_v18 }
 0x507   :  { %v2779_v25 = vrot.slane %v2681_v1, %v5390_v58 }
 0x509   :  { %v2693_v15 = vpop.permute.xlu0 %2692  ;;  %v2780_v6 = vsel %vm2299_vm0, %v2779_v25, %v2775_v63 }
 0x50a   :  { %v2684_v40 = vpop.permute.xlu1 %2683  ;;  %v2797_v45 = vrot.slane %v2693_v15, %v5390_v58 }
 0x50b   :  { %v2784_v52 = vrot.slane %v2684_v40, %v5397_v18 }
 0x50d   :  { %v2699_v60 = vpop.permute.xlu0 %2698 }
 0x50e   :  { %v2687_v0 = vpop.permute.xlu1 %2686 }
 0x50f   :  { %v2788_v41 = vrot.slane %v2687_v0, %v5390_v58  ;;  %v2806_v0 = vrot.slane %v2699_v60, %v5390_v58 }
 0x511   :  { %v2705_v55 = vpop.permute.xlu0 %2704  ;;  %v2789_v47 = vsel %vm2299_vm0, %v2788_v41, %v2784_v52 }
 0x512   :  { %v2690_v16 = vpop.permute.xlu1 %2689  ;;  %v2815_v1 = vrot.slane %v2705_v55, %v5390_v58 }
 0x513   :  { %v2793_v4 = vrot.slane %v2690_v16, %v5397_v18 }
 0x515   :  { %v2711_v7 = vpop.permute.xlu0 %2710  ;;  %v2798_v53 = vsel %vm2299_vm0, %v2797_v45, %v2793_v4 }
 0x516   :  { %v2696_v33 = vpop.permute.xlu1 %2695 }
 0x517   :  { %v2802_v31 = vrot.slane %v2696_v33, %v5397_v18  ;;  %v2824_v33 = vrot.slane %v2711_v7, %v5390_v58 }
 0x519   :  { %v2717_v11 = vpop.permute.xlu0 %2716  ;;  %v2807_v40 = vsel %vm2299_vm0, %v2806_v0, %v2802_v31 }
 0x51a   :  { %v2702_v23 = vpop.permute.xlu1 %2701  ;;  %v2833_v60 = vrot.slane %v2717_v11, %v5390_v58 }
 0x51b   :  { %v2811_v48 = vrot.slane %v2702_v23, %v5397_v18  ;;  %v2916_v23 = vsel %vm2436_vm1, %v2789_v47, %v2780_v6 }
 0x51c   :  { %v2917_v45 = vsel %vm2438_vm2, %v2798_v53, %v2916_v23 }
 0x51d   :  { %v2816_v52 = vsel %vm2299_vm0, %v2815_v1, %v2811_v48  ;;  %v2723_v41 = vpop.permute.xlu0 %2722  ;;  %v2918_v4 = vsel %vm2440_vm3, %v2807_v40, %v2917_v45 }
 0x51e   :  { %v2708_v35 = vpop.permute.xlu1 %2707  ;;  %v2919_v7 = vsel %vm2442_vm4, %v2816_v52, %v2918_v4 }
 0x51f   :  { %v2820_v16 = vrot.slane %v2708_v35, %v5397_v18 }
 0x521   :  { %v2825_v55 = vsel %vm2299_vm0, %v2824_v33, %v2820_v16  ;;  %v2741_v16 = vpop.permute.xlu0 %2740 }
 0x522   :  { %v2714_v54 = vpop.permute.xlu1 %2713  ;;  %v2920_v48 = vsel %vm2444_vm5, %v2825_v55, %v2919_v7 }
 0x523   :  { %v2829_v15 = vrot.slane %v2714_v54, %v5397_v18  ;;  %v2842_v54 = vrot.slane %v2723_v41, %v5390_v58 }
 0x525   :  { %v2834_v35 = vsel %vm2299_vm0, %v2833_v60, %v2829_v15  ;;  %v2747_v40 = vpop.permute.xlu0 %2746 }
 0x526   :  { %v2720_v31 = vpop.permute.xlu1 %2719  ;;  %v2921_v25 = vsel %vm2446_vm6, %v2834_v35, %v2920_v48 }
 0x527   :  { %v2838_v47 = vrot.slane %v2720_v31, %v5397_v18 }
 0x529   :  { %v2843_v11 = vsel %vm2299_vm0, %v2842_v54, %v2838_v47  ;;  %v2753_v15 = vpop.permute.xlu0 %2752  ;;  %v2869_v47 = vrot.slane %v2741_v16, %v5390_v58 }
 0x52a   :  { %v2726_v53 = vpop.permute.xlu1 %2725  ;;  %v2922_v63 = vsel %vm2448_vm7, %v2843_v11, %v2921_v25  ;;  %v2878_v11 = vrot.slane %v2747_v40, %v5390_v58 }
 0x52b   :  { %v2932_v0 = vsel %vm2459_vm8, %v2922_v63, 0.0  ;;  %v2847_v25 = vrot.slane %v2726_v53, %v5397_v18 }
 0x52c   :  { %2933 = vadd.xlane.f32.xlu1 %v2932_v0 }
 0x52d   :  { %v2759_v60 = vpop.permute.xlu0 %2758 }
 0x52e   :  { %v2729_v1 = vpop.permute.xlu1 %2728 }
 0x52f   :  { %v2851_v31 = vrot.slane %v2729_v1, %v5390_v58 }
 0x531   :  { %v2765_v55 = vpop.permute.xlu0 %2764 }
 0x532   :  { %v2732_v6 = vpop.permute.xlu1 %2731  ;;  %v2905_v40 = vrot.slane %v2765_v55, %v5390_v58 }
 0x533   :  { %v2856_v7 = vrot.slane %v2732_v6, %v5397_v18  ;;  %v2852_v6 = vsel %vm2299_vm0, %v2851_v31, %v2847_v25 }
 0x536   :  { %v2735_v33 = vpop.permute.xlu1 %2734 }
 0x537   :  { %v2860_v45 = vrot.slane %v2735_v33, %v5390_v58  ;;  %v2887_v33 = vrot.slane %v2753_v15, %v5390_v58 }
 0x539   :  { %v2861_v63 = vsel %vm2299_vm0, %v2860_v45, %v2856_v7  ;;  %v2771_v45 = vpop.permute.xlu0 %2770 }
 0x53a   :  { %v2738_v23 = vpop.permute.xlu1 %2737  ;;  %v2923_v53 = vsel %vm2436_vm1, %v2861_v63, %v2852_v6 }
 0x53b   :  { %v2865_v4 = vrot.slane %v2738_v23, %v5397_v18 }
 0x53d   :  { %v2870_v1 = vsel %vm2299_vm0, %v2869_v47, %v2865_v4 }
 0x53e   :  { %v2744_v52 = vpop.permute.xlu1 %2743  ;;  %v2924_v15 = vsel %vm2438_vm2, %v2870_v1, %v2923_v53 }
 0x53f   :  { %v2874_v54 = vrot.slane %v2744_v52, %v5397_v18  ;;  %v2896_v52 = vrot.slane %v2759_v60, %v5390_v58 }
 0x541   :  { %v2879_v16 = vsel %vm2299_vm0, %v2878_v11, %v2874_v54  ;;  %v2914_v54 = vrot.slane %v2771_v45, %v5390_v58 }
 0x542   :  { %v2750_v41 = vpop.permute.xlu1 %2749  ;;  %v2925_v7 = vsel %vm2440_vm3, %v2879_v16, %v2924_v15 }
 0x543   :  { %v2883_v48 = vrot.slane %v2750_v41, %v5397_v18 }
 0x546   :  { %v2756_v35 = vpop.permute.xlu1 %2755 }
 0x547   :  { %v2892_v0 = vrot.slane %v2756_v35, %v5397_v18  ;;  %v2888_v35 = vsel %vm2299_vm0, %v2887_v33, %v2883_v48 }
 0x548   :  { %v2926_v47 = vsel %vm2442_vm4, %v2888_v35, %v2925_v7 }
 0x549   :  { %v2897_v4 = vsel %vm2299_vm0, %v2896_v52, %v2892_v0 }
 0x54a   :  { %v2762_v23 = vpop.permute.xlu1 %2761  ;;  %v2927_v11 = vsel %vm2444_vm5, %v2897_v4, %v2926_v47 }
 0x54b   :  { %v2901_v41 = vrot.slane %v2762_v23, %v5397_v18 }
 0x54d   :  { %v2906_v31 = vsel %vm2299_vm0, %v2905_v40, %v2901_v41 }
 0x54e   :  { %v2768_v60 = vpop.permute.xlu1 %2767  ;;  %v2928_v48 = vsel %vm2446_vm6, %v2906_v31, %v2927_v11 }
 0x54f   :  { %v2910_v55 = vrot.slane %v2768_v60, %v5397_v18 }
 0x551   :  { %v2915_v25 = vsel %vm2299_vm0, %v2914_v54, %v2910_v55 }
 0x552   :  { %v2929_v63 = vsel %vm2448_vm7, %v2915_v25, %v2928_v48 }
 0x553   :  { %v2935_v0 = vsel %vm2459_vm8, %v2929_v63, 0.0 }
 0x554   :  { %2936 = vadd.xlane.f32.xlu0 %v2935_v0 }
 0x5b9   :  { %v2934_v33 = vpop.xlane.xlu1 %2933 }
 0x5ba   :  { %v2943_v1 = vrot.slane %v2934_v33, %v5217_v17  ;;  %v2947_v58 = vrot.slane %v2934_v33, %v5223_v19  ;;  %v2951_v18 = vrot.slane %v2934_v33, %v5231_v32  ;;  %v2955_v23 = vrot.slane %v2934_v33, %v5228_v24 }
 0x5bb   :  { %v2959_v52 = vrot.slane %v2934_v33, %v5524_v38  ;;  %v2963_v53 = vrot.slane %v2934_v33, %v5527_v42  ;;  %v2967_v4 = vrot.slane %v2934_v33, %v5533_v61  ;;  %v2971_v31 = vrot.slane %v2934_v33, %v5539_v21 }
 0x5bc   :  { %4643 = vrcp.f32 %v2943_v1 }
 0x5bd   :  { %4645 = vrcp.f32 %v2947_v58 }
 0x5be   :  { %4647 = vrcp.f32 %v2951_v18 }
 0x5bf   :  { %4649 = vrcp.f32 %v2955_v23 }
 0x5c0   :  { %4651 = vrcp.f32 %v2959_v52 }
 0x5c1   :  { %4653 = vrcp.f32 %v2963_v53 }
 0x5c2   :  { %4655 = vrcp.f32 %v2967_v4  ;;  %v4475_v4 = vld [vmem:[#allocation16 + $0x24] ss:$16 sps:$4 sm:$0xff]  }
 0x5c3   :  { %4657 = vrcp.f32 %v2971_v31  ;;  %v4484_v31 = vld [vmem:[#allocation16 + $0x4c] ss:$16 sps:$4 sm:$0xff]  }
 0x5c6   :  { %v4644_v6 = vpop.eup %4643 }
 0x5c7   :  { %v3022_v16 = vmul.f32 %v4644_v6, %v5546_v2  ;;  %v3021_v41 = vmul.f32 %v4644_v6, %v5544_v30  ;;  %v4646_v40 = vpop.eup %4645 }
 0x5c8   :  { %v3024_v45 = vmul.f32 %v4646_v40, %v5553_v43  ;;  %v3025_v35 = vmul.f32 %v4646_v40, %v5567_v28  ;;  %v4648_v15 = vpop.eup %4647 }
 0x5c9   :  { %3107 = vperm.xlu1 %4162, %v3022_v16   ;;  %3102 = vperm.xlu0 %4161, %v3021_v41   ;;  %v3027_v2 = vmul.f32 %v4648_v15, %v5580_v51  ;;  %v3028_v30 = vmul.f32 %v4648_v15, %v5557_v39  ;;  %v4650_v7 = vpop.eup %4649  ;;  %v4470_v15 = vld [vmem:[#allocation16 + $0x8] ss:$16 sps:$4 sm:$0xff]  }
 0x5ca   :  { %v3030_v43 = vmul.f32 %v4650_v7, %v5595_v29  ;;  %v3031_v28 = vmul.f32 %v4650_v7, %v5569_v56  ;;  %v4652_v60 = vpop.eup %4651  ;;  %v4479_v7 = vld [vmem:[#allocation16 + $0x40] ss:$16 sps:$4 sm:$0xff]  }
 0x5cb   :  { %v3033_v54 = vmul.f32 %v4652_v60, %v5608_v3  ;;  %v3034_v51 = vmul.f32 %v4652_v60, %v5582_v37  ;;  %v4654_v47 = vpop.eup %4653  ;;  %v4490_v60 = vld [vmem:[#allocation16 + $0x6c] ss:$16 sps:$4 sm:$0xff]  }
 0x5cc   :  { %v3036_v39 = vmul.f32 %v4654_v47, %v5623_v14  ;;  %v3037_v55 = vmul.f32 %v4654_v47, %v5597_v20  ;;  %v4656_v11 = vpop.eup %4655  ;;  %v4493_v47 = vld [vmem:[#allocation16 + $0x84] ss:$16 sps:$4 sm:$0xff]  }
 0x5cd   :  { %3112 = vperm.xlu1 %4162, %v3024_v45   ;;  %3117 = vperm.xlu0 %4161, %v3025_v35   ;;  %v3039_v56 = vmul.f32 %v4656_v11, %v5634_v13  ;;  %v3040_v29 = vmul.f32 %v4656_v11, %v5610_v34  ;;  %v4658_v25 = vpop.eup %4657  ;;  %v4467_v35 = vld [vmem:[#allocation16] ss:$16 sps:$4 sm:$0xff]   ;;  %v4494_v11 = vld [vmem:[#allocation16 + $0x88] ss:$16 sps:$4 sm:$0xff]  }
 0x5ce   :  { %v3042_v63 = vmul.f32 %v4658_v25, %v5642_v50  ;;  %v3043_v14 = vmul.f32 %v4658_v25, %v5625_v8  ;;  %v4497_v25 = vld [vmem:[#allocation16 + $0xa0] ss:$16 sps:$4 sm:$0xff]  }
 0x5d1   :  { %3122 = vperm.xlu1 %4162, %v3027_v2   ;;  %3127 = vperm.xlu0 %4161, %v3028_v30   ;;  %v4478_v2 = vld [vmem:[#allocation16 + $0x2c] ss:$16 sps:$4 sm:$0xff]   ;;  %v4481_v30 = vld [vmem:[#allocation16 + $0x44] ss:$16 sps:$4 sm:$0xff]  }
 0x5d5   :  { %3132 = vperm.xlu1 %4162, %v3030_v43   ;;  %3137 = vperm.xlu0 %4161, %v3031_v28   ;;  %v4482_v43 = vld [vmem:[#allocation16 + $0x48] ss:$16 sps:$4 sm:$0xff]   ;;  %v4487_v28 = vld [vmem:[#allocation16 + $0x64] ss:$16 sps:$4 sm:$0xff]  }
 0x5d9   :  { %3142 = vperm.xlu1 %4162, %v3033_v54   ;;  %3147 = vperm.xlu0 %4161, %v3034_v51   ;;  %v4485_v54 = vld [vmem:[#allocation16 + $0x60] ss:$16 sps:$4 sm:$0xff]   ;;  %v4488_v51 = vld [vmem:[#allocation16 + $0x68] ss:$16 sps:$4 sm:$0xff]  }
 0x5dd   :  { %3152 = vperm.xlu1 %4162, %v3036_v39   ;;  %3157 = vperm.xlu0 %4161, %v3037_v55   ;;  %v4496_v39 = vld [vmem:[#allocation16 + $0x8c] ss:$16 sps:$4 sm:$0xff]   ;;  %v4491_v55 = vld [vmem:[#allocation16 + $0x80] ss:$16 sps:$4 sm:$0xff]  }
 0x5e1   :  { %3162 = vperm.xlu1 %4162, %v3039_v56   ;;  %3167 = vperm.xlu0 %4161, %v3040_v29   ;;  %v2937_v3 = vpop.xlane.xlu0 %2936  ;;  %v4499_v56 = vld [vmem:[#allocation16 + $0xa4] ss:$16 sps:$4 sm:$0xff]   ;;  %v4502_v29 = vld [vmem:[#allocation16 + $0xac] ss:$16 sps:$4 sm:$0xff]  }
 0x5e2   :  { %v2975_v37 = vrot.slane %v2937_v3, %v5217_v17  ;;  %v2979_v48 = vrot.slane %v2937_v3, %v5223_v19  ;;  %v2983_v20 = vrot.slane %v2937_v3, %v5231_v32  ;;  %v2987_v34 = vrot.slane %v2937_v3, %v5228_v24 }
 0x5e3   :  { %v2991_v0 = vrot.slane %v2937_v3, %v5524_v38  ;;  %v2995_v8 = vrot.slane %v2937_v3, %v5527_v42  ;;  %v2999_v23 = vrot.slane %v2937_v3, %v5533_v61  ;;  %v3003_v42 = vrot.slane %v2937_v3, %v5539_v21  ;;  %v4500_v3 = vld [vmem:[#allocation16 + $0xa8] ss:$16 sps:$4 sm:$0xff]  }
 0x5e4   :  { %4659 = vrcp.f32 %v2975_v37  ;;  %v4505_v37 = vld [vmem:[#allocation16 + $0xc4] ss:$16 sps:$4 sm:$0xff]  }
 0x5e5   :  { %3172 = vperm.xlu1 %4162, %v3042_v63   ;;  %3177 = vperm.xlu0 %4161, %v3043_v14   ;;  %4661 = vrcp.f32 %v2979_v48  ;;  %v4508_v48 = vld [vmem:[#allocation16 + $0xcc] ss:$16 sps:$4 sm:$0xff]   ;;  %v4503_v63 = vld [vmem:[#allocation16 + $0xc0] ss:$16 sps:$4 sm:$0xff]   ;;  %v4506_v14 = vld [vmem:[#allocation16 + $0xc8] ss:$16 sps:$4 sm:$0xff]  }
 0x5e6   :  { %4663 = vrcp.f32 %v2983_v20  ;;  %v4511_v20 = vld [vmem:[#allocation16 + $0xe4] ss:$16 sps:$4 sm:$0xff]  }
 0x5e7   :  { %4665 = vrcp.f32 %v2987_v34  ;;  %v4514_v34 = vld [vmem:[#allocation16 + $0xec] ss:$16 sps:$4 sm:$0xff]  }
 0x5e8   :  { %4667 = vrcp.f32 %v2991_v0  ;;  %v4512_v0 = vld [vmem:[#allocation16 + $0xe8] ss:$16 sps:$4 sm:$0xff]  }
 0x5e9   :  { %4669 = vrcp.f32 %v2995_v8 }
 0x5ea   :  { %4671 = vrcp.f32 %v2999_v23 }
 0x5eb   :  { %4673 = vrcp.f32 %v3003_v42 }
 0x5ee   :  { %v4660_v13 = vpop.eup %4659 }
 0x5ef   :  { %v3046_v17 = vmul.f32 %v4660_v13, %v5658_v12  ;;  %v3045_v33 = vmul.f32 %v4660_v13, %v5650_v9  ;;  %v4662_v50 = vpop.eup %4661  ;;  %v4509_v13 = vld [vmem:[#allocation16 + $0xe0] ss:$16 sps:$4 sm:$0xff]  }
 0x5f0   :  { %v3049_v1 = vmul.f32 %v4662_v50, %v5674_v59  ;;  %v3048_v58 = vmul.f32 %v4662_v50, %v5666_v62  ;;  %v4664_v18 = vpop.eup %4663 }
 0x5f1   :  { %3187 = vperm.xlu0 %4161, %v3046_v17   ;;  %3182 = vperm.xlu1 %4162, %v3045_v33   ;;  %v3052_v12 = vmul.f32 %v4664_v18, %v5636_v44  ;;  %v3051_v9 = vmul.f32 %v4664_v18, %v5682_v36  ;;  %v4666_v6 = vpop.eup %4665 }
 0x5f2   :  { %v3055_v59 = vmul.f32 %v4666_v6, %v5644_v26  ;;  %v3054_v62 = vmul.f32 %v4666_v6, %v5686_v49  ;;  %v4668_v52 = vpop.eup %4667 }
 0x5f3   :  { %v3058_v61 = vmul.f32 %v4668_v52, %v5652_v10  ;;  %v3057_v44 = vmul.f32 %v4668_v52, %v5689_v57  ;;  %v4670_v16 = vpop.eup %4669  ;;  %v5904_v10 = vld [vmem:[#allocation35_spill] sm:$0xff]  ;;  %v5905_v57 = vld [vmem:[#allocation36_spill] sm:$0xff]  ;;  %v3070_v52 = vld [vmem:[#allocation10 + $0x10] sm:$0xff] }
 0x5f4   :  { %v3061_v36 = vmul.f32 %v4670_v16, %v5660_v46  ;;  %v3060_v41 = vmul.f32 %v4670_v16, %v5692_v22  ;;  %v4672_v21 = vpop.eup %4671  ;;  %v4469_v46 = vld [vmem:[#allocation16 + $0x4] ss:$16 sps:$4 sm:$0xff]   ;;  %v4472_v22 = vld [vmem:[#allocation16 + $0xc] ss:$16 sps:$4 sm:$0xff]  }
 0x5f5   :  { %3197 = vperm.xlu0 %4161, %v3049_v1   ;;  %3192 = vperm.xlu1 %4162, %v3048_v58   ;;  %v3064_v26 = vmul.f32 %v4672_v21, %v5668_v27  ;;  %v3063_v49 = vmul.f32 %v4672_v21, %v5695_v5  ;;  %v4674_v40 = vpop.eup %4673  ;;  %v4473_v27 = vld [vmem:[#allocation16 + $0x20] ss:$16 sps:$4 sm:$0xff]   ;;  %v4476_v5 = vld [vmem:[#allocation16 + $0x28] ss:$16 sps:$4 sm:$0xff]  }
 0x5f6   :  { %v3067_v53 = vmul.f32 %v4674_v40, %v5904_v10  ;;  %v3066_v45 = vmul.f32 %v4674_v40, %v5905_v57  ;;  %3660 = vmatprep.subr.bf16.mxu1 %v4469_v46  ;;  %3703 = vmatprep.subr.bf16.mxu0 %v4472_v22  ;;  %v3072_v40 = vld [vmem:[#allocation10 + $0x20] sm:$0xff]  ;;  %v3073_v10 = vld [vmem:[#allocation10 + $0x28] sm:$0xff] }
 0x5f7   :  { %3661 = vmatpush1.bf16.msra.mxu1 %v4467_v35  ;;  %3704 = vmatpush1.bf16.msra.mxu0 %v4470_v15 }
 0x5f8   :  { %3662 = vmatprep.subr.bf16.mxu1 %v4475_v4  ;;  %3705 = vmatprep.subr.bf16.mxu0 %v4478_v2 }
 0x5f9   :  { %3207 = vperm.xlu0 %4161, %v3052_v12   ;;  %3202 = vperm.xlu1 %4162, %v3051_v9   ;;  %v3069_v12 = vld [vmem:[#allocation10 + $0x8] sm:$0xff]  ;;  %v3068_v9 = vld [vmem:[#allocation10] sm:$0xff] }
 0x5fb   :  { %3663 = vmatpush1.bf16.msra.mxu1 %v4473_v27  ;;  %3706 = vmatpush1.bf16.msra.mxu0 %v4476_v5 }
 0x5fc   :  { %3664 = vmatprep.subr.bf16.mxu1 %v4481_v30  ;;  %3707 = vmatprep.subr.bf16.mxu0 %v4484_v31  ;;  %v3074_v30 = vld [vmem:[#allocation10 + $0x30] sm:$0xff] }
 0x5fd   :  { %3217 = vperm.xlu0 %4161, %v3055_v59   ;;  %3212 = vperm.xlu1 %4162, %v3054_v62  }
 0x5ff   :  { %3665 = vmatpush1.bf16.msra.mxu1 %v4479_v7  ;;  %3708 = vmatpush1.bf16.msra.mxu0 %v4482_v43  ;;  %v3075_v7 = vld [vmem:[#allocation10 + $0x38] sm:$0xff] }
 0x600   :  { %3666 = vmatprep.subr.bf16.mxu1 %v4487_v28  ;;  %3709 = vmatprep.subr.bf16.mxu0 %v4490_v60 }
 0x601   :  { %3227 = vperm.xlu0 %4161, %v3058_v61   ;;  %3222 = vperm.xlu1 %4162, %v3057_v44   ;;  %v3071_v61 = vld [vmem:[#allocation10 + $0x18] sm:$0xff] }
 0x603   :  { %3667 = vmatpush1.bf16.msra.mxu1 %v4485_v54  ;;  %3710 = vmatpush1.bf16.msra.mxu0 %v4488_v51 }
 0x604   :  { %3668 = vmatprep.subr.bf16.mxu1 %v4493_v47  ;;  %3711 = vmatprep.subr.bf16.mxu0 %v4496_v39  ;;  %v3076_v39 = vld [vmem:[#allocation10 + $0x40] sm:$0xff] }
 0x605   :  { %3237 = vperm.xlu0 %4161, %v3061_v36   ;;  %3232 = vperm.xlu1 %4162, %v3060_v41  }
 0x607   :  { %3669 = vmatpush1.bf16.msra.mxu1 %v4491_v55  ;;  %3712 = vmatpush1.bf16.msra.mxu0 %v4494_v11  ;;  %v3084_v55 = vld [vmem:[#allocation10 + $0x80] sm:$0xff]  ;;  %v3085_v11 = vld [vmem:[#allocation10 + $0x88] sm:$0xff] }
 0x608   :  { %3670 = vmatprep.subr.bf16.mxu1 %v4499_v56  ;;  %3713 = vmatprep.subr.bf16.mxu0 %v4502_v29  ;;  %v3077_v56 = vld [vmem:[#allocation10 + $0x48] sm:$0xff]  ;;  %v3086_v29 = vld [vmem:[#allocation10 + $0x90] sm:$0xff] }
 0x609   :  { %3247 = vperm.xlu0 %4161, %v3064_v26   ;;  %3242 = vperm.xlu1 %4162, %v3063_v49  }
 0x60b   :  { %3671 = vmatpush1.bf16.msra.mxu1 %v4497_v25  ;;  %3714 = vmatpush1.bf16.msra.mxu0 %v4500_v3  ;;  %v3087_v25 = vld [vmem:[#allocation10 + $0x98] sm:$0xff] }
 0x60c   :  { %3672 = vmatprep.subr.bf16.mxu1 %v4505_v37  ;;  %3715 = vmatprep.subr.bf16.mxu0 %v4508_v48  ;;  %v3078_v37 = vld [vmem:[#allocation10 + $0x50] sm:$0xff]  ;;  %v3079_v48 = vld [vmem:[#allocation10 + $0x58] sm:$0xff] }
 0x60d   :  { %3257 = vperm.xlu0 %4161, %v3067_v53   ;;  %3252 = vperm.xlu1 %4162, %v3066_v45  }
 0x60f   :  { %3673 = vmatpush1.bf16.msra.mxu1 %v4503_v63  ;;  %3716 = vmatpush1.bf16.msra.mxu0 %v4506_v14  ;;  %v3080_v63 = vld [vmem:[#allocation10 + $0x60] sm:$0xff] }
 0x610   :  { %3674 = vmatprep.subr.bf16.mxu1 %v4511_v20  ;;  %3717 = vmatprep.subr.bf16.mxu0 %v4514_v34  ;;  %v3081_v34 = vld [vmem:[#allocation10 + $0x68] sm:$0xff] }
 0x613   :  { %3675 = vmatpush1.bf16.msra.mxu1 %v4509_v13  ;;  %3718 = vmatpush1.bf16.msra.mxu0 %v4512_v0  ;;  %v3082_v13 = vld [vmem:[#allocation10 + $0x70] sm:$0xff]  ;;  %v3083_v0 = vld [vmem:[#allocation10 + $0x78] sm:$0xff] }
 0x648   :  { %v3108_v17 = vpop.permute.xlu1 %3107  ;;  %v3103_v33 = vpop.permute.xlu0 %3102 }
 0x649   :  { %v3261_v59 = vmul.f32 %v3108_v17, %v3069_v12  ;;  %v3260_v62 = vmul.f32 %v3103_v33, %v3068_v9 }
 0x64b   :  { %v3292_v44 = vadd.f32 %v3261_v59, %v3260_v62 }
 0x64c   :  { %v3113_v50 = vpop.permute.xlu1 %3112  ;;  %v3118_v8 = vpop.permute.xlu0 %3117 }
 0x64d   :  { %v3262_v16 = vmul.f32 %v3113_v50, %v3070_v52  ;;  %v3263_v36 = vmul.f32 %v3118_v8, %v3071_v61  ;;  %v3293_v26 = vrot.slane %v3292_v44, 4  ;;  %v3088_v52 = vld [vmem:[#allocation10 + $0xa0] sm:$0xff]  ;;  %v3089_v61 = vld [vmem:[#allocation10 + $0xa8] sm:$0xff] }
 0x64f   :  { %v3299_v49 = vadd.f32 %v3263_v36, %v3262_v16  ;;  %v3294_v45 = vadd.f32 %v3293_v26, %v3292_v44 }
 0x650   :  { %v3123_v1 = vpop.permute.xlu1 %3122  ;;  %v3128_v58 = vpop.permute.xlu0 %3127 }
 0x651   :  { %v3300_v35 = vrot.slane %v3299_v49, 4  ;;  %v3264_v46 = vmul.f32 %v3123_v1, %v3072_v40  ;;  %v3265_v15 = vmul.f32 %v3128_v58, %v3073_v10  ;;  %v3295_v22 = vrot.slane %v3294_v45, 2 }
 0x653   :  { %v3301_v4 = vadd.f32 %v3300_v35, %v3299_v49  ;;  %v3306_v27 = vadd.f32 %v3265_v15, %v3264_v46  ;;  %v3296_v31 = vadd.f32 %v3295_v22, %v3294_v45 }
 0x654   :  { %v3133_v18 = vpop.permute.xlu1 %3132  ;;  %v3138_v23 = vpop.permute.xlu0 %3137 }
 0x655   :  { %v3302_v43 = vrot.slane %v3301_v4, 2  ;;  %v3307_v28 = vrot.slane %v3306_v27, 4  ;;  %v3266_v51 = vmul.f32 %v3133_v18, %v3074_v30  ;;  %v3267_v47 = vmul.f32 %v3138_v23, %v3075_v7 }
 0x656   :  { %v3297_v3 = vrot.slane %v3296_v31, 1 }
 0x657   :  { %v3303_v14 = vadd.f32 %v3302_v43, %v3301_v4  ;;  %v3308_v20 = vadd.f32 %v3307_v28, %v3306_v27  ;;  %v3313_v1 = vadd.f32 %v3267_v47, %v3266_v51 }
 0x658   :  { %v3143_v6 = vpop.permute.xlu1 %3142  ;;  %v3148_v42 = vpop.permute.xlu0 %3147  ;;  %v3298_v49 = vadd.f32 %v3297_v3, %v3296_v31  ;;  %v3093_v3 = vld [vmem:[#allocation10 + $0xc8] sm:$0xff] }
 0x659   :  { %v3268_v58 = vmul.f32 %v3143_v6, %v3076_v39  ;;  %v3269_v12 = vmul.f32 %v3148_v42, %v3077_v56  ;;  %v3304_v35 = vrot.slane %v3303_v14, 1  ;;  %v3314_v46 = vrot.slane %v3313_v1, 4 }
 0x65a   :  { %v3309_v22 = vrot.slane %v3308_v20, 2 }
 0x65b   :  { %v3320_v4 = vadd.f32 %v3269_v12, %v3268_v58  ;;  %v3305_v43 = vadd.f32 %v3304_v35, %v3303_v14  ;;  %v3315_v28 = vadd.f32 %v3314_v46, %v3313_v1 }
 0x65c   :  { %v3153_v41 = vpop.permute.xlu1 %3152  ;;  %v3158_v21 = vpop.permute.xlu0 %3157 }
 0x65d   :  { %v3270_v9 = vmul.f32 %v3153_v41, %v3078_v37  ;;  %v3271_v59 = vmul.f32 %v3158_v21, %v3079_v48  ;;  %v3090_v41 = vld [vmem:[#allocation10 + $0xb0] sm:$0xff]  ;;  %v3321_v51 = vrot.slane %v3320_v4, 4  ;;  %v3405_v14 = vpack.c.bf16 %v3305_v43, %v3305_v43 }
 0x65f   :  { %v3327_v42 = vadd.f32 %v3271_v59, %v3270_v9 }
 0x660   :  { %v3163_v53 = vpop.permute.xlu1 %3162  ;;  %v3168_v57 = vpop.permute.xlu0 %3167 }
 0x661   :  { %v3272_v62 = vmul.f32 %v3163_v53, %v3080_v63  ;;  %v3273_v44 = vmul.f32 %v3168_v57, %v3081_v34  ;;  %v3091_v57 = vld [vmem:[#allocation10 + $0xb8] sm:$0xff]  ;;  %v3328_v47 = vrot.slane %v3327_v42, 4 }
 0x663   :  { %v3334_v21 = vadd.f32 %v3273_v44, %v3272_v62 }
 0x664   :  { %v3173_v2 = vpop.permute.xlu1 %3172  ;;  %v3178_v5 = vpop.permute.xlu0 %3177 }
 0x665   :  { %v3274_v16 = vmul.f32 %v3173_v2, %v3082_v13  ;;  %v3275_v36 = vmul.f32 %v3178_v5, %v3083_v0  ;;  %v3404_v2 = vpack.c.bf16 %v3298_v49, %v3298_v49  ;;  %v3335_v56 = vrot.slane %v3334_v21, 4 }
 0x667   :  { %v3341_v53 = vadd.f32 %v3275_v36, %v3274_v16  ;;  %v5813_v0 = vunpack.c.l.b16 %v3404_v2  ;;  %v3336_v12 = vadd.f32 %v3335_v56, %v3334_v21  ;;  %v3097_v21 = vld [vmem:[#allocation10 + $0xe8] sm:$0xff] }
 0x670   :  { %v3183_v60 = vpop.permute.xlu1 %3182  ;;  %v3188_v54 = vpop.permute.xlu0 %3187 }
 0x671   :  { %v3276_v17 = vmul.f32 %v3183_v60, %v3084_v55  ;;  %v3277_v33 = vmul.f32 %v3188_v54, %v3085_v11  ;;  %v3092_v55 = vld [vmem:[#allocation10 + $0xc0] sm:$0xff]  ;;  %v3310_v11 = vadd.f32 %v3309_v22, %v3308_v20  ;;  %v3095_v20 = vld [vmem:[#allocation10 + $0xd8] sm:$0xff]  ;;  %v3337_v22 = vrot.slane %v3336_v12, 2 }
 0x673   :  { %v3348_v40 = vadd.f32 %v3277_v33, %v3276_v17  ;;  %v3316_v17 = vrot.slane %v3315_v28, 2  ;;  %v3338_v56 = vadd.f32 %v3337_v22, %v3336_v12 }
 0x674   :  { %v3193_v50 = vpop.permute.xlu1 %3192  ;;  %v3198_v8 = vpop.permute.xlu0 %3197 }
 0x675   :  { %v3278_v18 = vmul.f32 %v3193_v50, %v3086_v29  ;;  %v3279_v23 = vmul.f32 %v3198_v8, %v3087_v25  ;;  %v3349_v5 = vrot.slane %v3348_v40, 4  ;;  %v3342_v29 = vrot.slane %v3341_v53, 4 }
 0x676   :  { %v3322_v50 = vadd.f32 %v3321_v51, %v3320_v4  ;;  %v3329_v8 = vadd.f32 %v3328_v47, %v3327_v42  ;;  %v3317_v49 = vadd.f32 %v3316_v17, %v3315_v28 }
 0x677   :  { %v3355_v26 = vadd.f32 %v3279_v23, %v3278_v18  ;;  %v3350_v37 = vadd.f32 %v3349_v5, %v3348_v40  ;;  %v3094_v18 = vld [vmem:[#allocation10 + $0xd0] sm:$0xff]  ;;  %v3311_v23 = vrot.slane %v3310_v11, 1  ;;  %v3343_v9 = vadd.f32 %v3342_v29, %v3341_v53 }
 0x678   :  { %v3203_v10 = vpop.permute.xlu1 %3202  ;;  %v3208_v45 = vpop.permute.xlu0 %3207  ;;  %v3330_v35 = vrot.slane %v3329_v8, 2 }
 0x679   :  { %v3280_v15 = vmul.f32 %v3203_v10, %v3088_v52  ;;  %v3281_v6 = vmul.f32 %v3208_v45, %v3089_v61  ;;  %v3356_v27 = vrot.slane %v3355_v26, 4  ;;  %v3351_v62 = vrot.slane %v3350_v37, 2 }
 0x67a   :  { %v3323_v45 = vrot.slane %v3322_v50, 2  ;;  %v3344_v4 = vrot.slane %v3343_v9, 2  ;;  %v3312_v53 = vadd.f32 %v3311_v23, %v3310_v11 }
 0x67b   :  { %v3362_v30 = vadd.f32 %v3281_v6, %v3280_v15  ;;  %v3357_v25 = vadd.f32 %v3356_v27, %v3355_v26  ;;  %v5815_v26 = vunpack.c.l.b16 %v3405_v14  ;;  %v3096_v6 = vld [vmem:[#allocation10 + $0xe0] sm:$0xff]  ;;  %v3352_v27 = vadd.f32 %v3351_v62, %v3350_v37 }
 0x67c   :  { %v3213_v7 = vpop.permute.xlu1 %3212  ;;  %v3218_v31 = vpop.permute.xlu0 %3217  ;;  %v3345_v29 = vadd.f32 %v3344_v4, %v3343_v9 }
 0x67d   :  { %v3363_v60 = vrot.slane %v3362_v30, 4  ;;  %v3282_v54 = vmul.f32 %v3213_v7, %v3090_v41  ;;  %v3283_v39 = vmul.f32 %v3218_v31, %v3091_v57  ;;  %v3358_v59 = vrot.slane %v3357_v25, 2 }
 0x67e   :  { %v3318_v7 = vrot.slane %v3317_v49, 1  ;;  %v3353_v11 = vrot.slane %v3352_v27, 1  ;;  %v3346_v62 = vrot.slane %v3345_v29, 1 }
 0x67f   :  { %v3364_v48 = vadd.f32 %v3363_v60, %v3362_v30  ;;  %v3369_v63 = vadd.f32 %v3283_v39, %v3282_v54  ;;  %v3359_v42 = vadd.f32 %v3358_v59, %v3357_v25  ;;  %v3324_v60 = vadd.f32 %v3323_v45, %v3322_v50  ;;  %v3098_v39 = vld [vmem:[#allocation10 + $0xf0] sm:$0xff] }
 0x680   :  { %v3223_v34 = vpop.permute.xlu1 %3222  ;;  %v3228_v13 = vpop.permute.xlu0 %3227  ;;  %v3331_v54 = vadd.f32 %v3330_v35, %v3329_v8  ;;  %v3319_v50 = vadd.f32 %v3318_v7, %v3317_v49  ;;  %v3339_v59 = vrot.slane %v3338_v56, 1 }
 0x681   :  { %v3284_v33 = vmul.f32 %v3223_v34, %v3092_v55  ;;  %v3370_v1 = vrot.slane %v3369_v63, 4  ;;  %v3285_v58 = vmul.f32 %v3228_v13, %v3093_v3  ;;  %v3365_v52 = vrot.slane %v3364_v48, 2  ;;  %v3099_v55 = vld [vmem:[#allocation10 + $0xf8] sm:$0xff] }
 0x682   :  { %v3360_v25 = vrot.slane %v3359_v42, 1  ;;  %v3325_v8 = vrot.slane %v3324_v60, 1  ;;  %v3407_v4 = vpack.c.bf16 %v3319_v50, %v3319_v50 }
 0x683   :  { %v3371_v61 = vadd.f32 %v3370_v1, %v3369_v63  ;;  %v3376_v44 = vadd.f32 %v3285_v58, %v3284_v33  ;;  %v3366_v30 = vadd.f32 %v3365_v52, %v3364_v48 }
 0x684   :  { %v3233_v16 = vpop.permute.xlu1 %3232  ;;  %v3238_v36 = vpop.permute.xlu0 %3237  ;;  %v3361_v23 = vadd.f32 %v3360_v25, %v3359_v42  ;;  %v3326_v45 = vadd.f32 %v3325_v8, %v3324_v60  ;;  %v3340_v42 = vadd.f32 %v3339_v59, %v3338_v56 }
 0x685   :  { %v3286_v40 = vmul.f32 %v3233_v16, %v3094_v18  ;;  %v3287_v10 = vmul.f32 %v3238_v36, %v3095_v20  ;;  %v3372_v46 = vrot.slane %v3371_v61, 2  ;;  %v3377_v15 = vrot.slane %v3376_v44, 4 }
 0x686   :  { %v3367_v37 = vrot.slane %v3366_v30, 1  ;;  %v3332_v20 = vrot.slane %v3331_v54, 1  ;;  %v3408_v7 = vpack.c.bf16 %v3326_v45, %v3326_v45 }
 0x687   :  { %v3383_v41 = vadd.f32 %v3287_v10, %v3286_v40  ;;  %v3378_v57 = vadd.f32 %v3377_v15, %v3376_v44  ;;  %v3373_v31 = vadd.f32 %v3372_v46, %v3371_v61  ;;  %v3354_v44 = vadd.f32 %v3353_v11, %v3352_v27 }
 0x688   :  { %v3243_v2 = vpop.permute.xlu1 %3242  ;;  %v3248_v5 = vpop.permute.xlu0 %3247  ;;  %v3368_v52 = vadd.f32 %v3367_v37, %v3366_v30  ;;  %v3406_v10 = vpack.c.bf16 %v3312_v53, %v3312_v53  ;;  %v3333_v49 = vadd.f32 %v3332_v20, %v3331_v54  ;;  %v3413_v15 = vpack.c.bf16 %v3361_v23, %v3361_v23 }
 0x689   :  { %v3384_v43 = vrot.slane %v3383_v41, 4  ;;  %v3288_v28 = vmul.f32 %v3243_v2, %v3096_v6  ;;  %v3379_v51 = vrot.slane %v3378_v57, 2  ;;  %v3289_v47 = vmul.f32 %v3248_v5, %v3097_v21 }
 0x68a   :  { %v3374_v14 = vrot.slane %v3373_v31, 1  ;;  %v3412_v2 = vpack.c.bf16 %v3354_v44, %v3354_v44  ;;  %v3470_v27 = vunpack.c.l.b16 %v3406_v10  ;;  %v3409_v53 = vpack.c.bf16 %v3333_v49, %v3333_v49 }
 0x68b   :  { %v3385_v3 = vadd.f32 %v3384_v43, %v3383_v41  ;;  %v3380_v48 = vadd.f32 %v3379_v51, %v3378_v57  ;;  %v3390_v63 = vadd.f32 %v3289_v47, %v3288_v28  ;;  %v3414_v41 = vpack.c.bf16 %v3368_v52, %v3368_v52 }
 0x68c   :  { %v3253_v34 = vpop.permute.xlu1 %3252  ;;  %v3258_v13 = vpop.permute.xlu0 %3257  ;;  %v3375_v16 = vadd.f32 %v3374_v14, %v3373_v31  ;;  %v3347_v57 = vadd.f32 %v3346_v62, %v3345_v29  ;;  %v3477_v28 = vunpack.c.l.b16 %v3413_v15  ;;  %v3471_v54 = vunpack.c.l.b16 %v3407_v4  ;;  %v5907_v15 = vld [vmem:[#allocation29_spill] sm:$0xff] }
 0x68d   :  { %v3386_v17 = vrot.slane %v3385_v3, 2  ;;  %v3290_v33 = vmul.f32 %v3253_v34, %v3098_v39  ;;  %v3291_v1 = vmul.f32 %v3258_v13, %v3099_v55  ;;  %v3381_v58 = vrot.slane %v3380_v48, 1 }
 0x68e   :  { %v3391_v18 = vrot.slane %v3390_v63, 4  ;;  %v3415_v30 = vpack.c.bf16 %v3375_v16, %v3375_v16  ;;  %v3410_v47 = vpack.c.bf16 %v3340_v42, %v3340_v42  ;;  %v3478_v39 = vunpack.c.l.b16 %v3414_v41 }
 0x68f   :  { %v3387_v12 = vadd.f32 %v3386_v17, %v3385_v3  ;;  %v3397_v9 = vadd.f32 %v3291_v1, %v3290_v33  ;;  %v3382_v35 = vadd.f32 %v3381_v58, %v3380_v48  ;;  %v3411_v25 = vpack.c.bf16 %v3347_v57, %v3347_v57 }
 0x690   :  { %v3392_v61 = vadd.f32 %v3391_v18, %v3390_v63  ;;  %v3476_v56 = vunpack.c.l.b16 %v3412_v2  ;;  %v3479_v3 = vunpack.c.l.b16 %v3415_v30  ;;  %v3484_v29 = vsel %vm2436_vm1, %v5815_v26, %v5813_v0  ;;  %v5910_v2 = vld [vmem:[#allocation31_spill] sm:$0xff] }
 0x691   :  { %v3388_v36 = vrot.slane %v3387_v12, 1  ;;  %v3398_v40 = vrot.slane %v3397_v9, 4  ;;  %v3416_v31 = vpack.c.bf16 %v3382_v35, %v3382_v35  ;;  %v3472_v37 = vunpack.c.l.b16 %v3408_v7 }
 0x692   :  { %v3393_v46 = vrot.slane %v3392_v61, 2  ;;  %v3473_v34 = vunpack.c.l.b16 %v3409_v53  ;;  %v3491_v13 = vsel %vm2436_vm1, %v3477_v28, %v3476_v56  ;;  %v3485_v33 = vsel %vm2438_vm2, %v3470_v27, %v3484_v29 }
 0x693   :  { %v3389_v6 = vadd.f32 %v3388_v36, %v3387_v12  ;;  %v3399_v22 = vadd.f32 %v3398_v40, %v3397_v9  ;;  %v3480_v48 = vunpack.c.l.b16 %v3416_v31  ;;  %v3474_v1 = vunpack.c.l.b16 %v3410_v47  ;;  %v4707_v36 = vld [vmem:[%s5887_s9] sm:$0x1f]  ;;  %v5912_v31 = vld [vmem:[#allocation30_spill] sm:$0xff]  ;;  %s4981_s9 = smov [#allocation18]  }
 0x694   :  { %v3394_v21 = vadd.f32 %v3393_v46, %v3392_v61  ;;  %v3492_v50 = vsel %vm2438_vm2, %v3478_v39, %v3491_v13  ;;  %v3486_v58 = vsel %vm2440_vm3, %v3471_v54, %v3485_v33  ;;  %v3475_v18 = vunpack.c.l.b16 %v3411_v25  ;;  %v5906_v46 = vld [vmem:[#allocation28_spill] sm:$0xff]  ;;  %s3832_s14 = sshll.u32 %s4981_s9, 4  ;;  %s3833_s14 = int_to_ptr.vmem [resolvable:$true] %s3832_s14 }
 0x695   :  { %v3400_v5 = vrot.slane %v3399_v22, 2  ;;  %v3417_v60 = vpack.c.bf16 %v3389_v6, %v3389_v6  ;;  %v3493_v20 = vsel %vm2440_vm3, %v3479_v3, %v3492_v50  ;;  %v3487_v26 = vsel %vm2442_vm4, %v3472_v37, %v3486_v58  ;;  %s4906_s16 = scalar_lea.vmem %s3833_s14, 512  ;;  %p4911_p3 = scmp.lt.s32.totalorder %s3833_s14, %s3833_s14 }
 0x696   :  { %v3395_v43 = vrot.slane %v3394_v21, 1  ;;  %v3494_v23 = vsel %vm2442_vm4, %v3480_v48, %v3493_v20  ;;  %v3488_v9 = vsel %vm2444_vm5, %v3473_v34, %v3487_v26  ;;  %v1299_v40 = vrot.slane %v4707_v36, %v5223_v19  ;;  %v3793_v26 = vld [vmem:[#allocation8 + $0x10] sm:$0xff]  ;;  %p4907_p2 = scmp.ne.s32.totalorder %s3833_s14, %s4906_s16  ;;  %p4912_p4 = scmp.lt.s32.totalorder %s4906_s16, %s4906_s16 }
 0x697   :  { %v3401_v51 = vadd.f32 %v3400_v5, %v3399_v22  ;;  %v3481_v14 = vunpack.c.l.b16 %v3417_v60  ;;  %v3489_v62 = vsel %vm2446_vm6, %v3474_v1, %v3488_v9  ;;  %v1307_v10 = vrot.slane %v4707_v36, %v5228_v24  ;;  %v5908_v22 = vld [vmem:[#allocation27_spill] sm:$0xff]  ;;  %v5911_v5 = vld [vmem:[#allocation32_spill] sm:$0xff] }
 0x698   :  { %v3396_v55 = vadd.f32 %v3395_v43, %v3394_v21  ;;  %v3490_v61 = vsel %vm2448_vm7, %v3475_v18, %v3489_v62  ;;  %v1303_v45 = vrot.slane %v4707_v36, %v5231_v32  ;;  %v1311_v35 = vrot.slane %v4707_v36, %v5524_v38  ;;  %v5909_v21 = vld [vmem:[#allocation33_spill] sm:$0xff]  ;;  %p4913_p5 = por %p4912_p4, %p4911_p3 }
 0x699   :  { %v3402_v11 = vrot.slane %v3401_v51, 1  ;;  %v3495_v59 = vsel %vm2444_vm5, %v3481_v14, %v3494_v23  ;;  %v1770_v49 = vadd.f32 %v5906_v46, %v1299_v40  ;;  %v1813_v6 = vadd.f32 %v5907_v15, %v1307_v10 }
 0x69a   :  { %v3418_v63 = vpack.c.bf16 %v3396_v55, %v3396_v55  ;;  %v1811_v4 = vadd.f32 %v5908_v22, %v1303_v45  ;;  %v1854_v57 = vadd.f32 %v5909_v21, %v1311_v35  ;;  %v1774_v30 = vadd.f32 %v5910_v2, %v1299_v40  ;;  %p4914_p6 = pnand %p4913_p5, %p4907_p2 }
 0x69b   :  { %v3403_v17 = vadd.f32 %v3402_v11, %v3401_v51  ;;  %v1817_v19 = vadd.f32 %v5911_v5, %v1307_v10  ;;  %v1815_v38 = vadd.f32 %v5912_v31, %v1303_v45  ;;  %v5913_v51 = vld [vmem:[#allocation34_spill] sm:$0xff] }
 0x69c   :  { %v3482_v8 = vunpack.c.l.b16 %v3418_v63  ;;  %v1857_v54 = vadd.f32 %v5913_v51, %v1311_v35 }
 0x69d   :  { %v3419_v0 = vpack.c.bf16 %v3403_v17, %v3403_v17 }
 0x69e   :  { %v3496_v52 = vsel %vm2446_vm6, %v3482_v8, %v3495_v59 }
 0x69f   :  { %v3483_v12 = vunpack.c.l.b16 %v3419_v0 }
 0x6a1   :  { %v3497_v44 = vsel %vm2448_vm7, %v3483_v12, %v3496_v52 }
 0x6a2   :  { %v3498_v16 = vpack.c.b16 %v3497_v44, %v3490_v61  ;;  %v3794_v44 = vld [vmem:[#allocation8 + $0x18] sm:$0xff] }
 0x6a4   :  { %3693 = vmatmul.mubr.bf16.vlgmr.msra.gmra.mrb[8].mxu1 %v3498_v16  ;;  %3736 = vmatmul.mubr.bf16.vlgmr.msra.gmra.mrb[12].mxu0 %v3498_v16 }
 0x777   :  { %v3694_v42 = vpop.f32.mrb[8].mxu1  ;;  %v3737_v41 = vpop.f32.mrb[12].mxu0 }
 0x778   :  { %v3746_v27 = vadd.f32 %v3694_v42, %v1770_v49  ;;  %v3748_v24 = vadd.f32 %v3737_v41, %v1813_v6  ;;  %v3696_v7 = vpop.f32.mrb[9].mxu1  ;;  %v3739_v32 = vpop.f32.mrb[13].mxu0 }
 0x779   :  { %v3747_v43 = vadd.f32 %v3696_v7, %v1811_v4  ;;  %v3749_v53 = vadd.f32 %v3739_v32, %v1854_v57  ;;  %v3698_v28 = vpop.f32.mrb[10].mxu1  ;;  %v3741_v60 = vpop.f32.mrb[14].mxu0 }
 0x77a   :  { %v4098_v47 = vmul.f32 -1.442695, %v3746_v27  ;;  %v3750_v39 = vadd.f32 %v3698_v28, %v1774_v30  ;;  %v3752_v55 = vadd.f32 %v3741_v60, %v1817_v19  ;;  %v3700_v25 = vpop.f32.mrb[11].mxu1  ;;  %v3743_v56 = vpop.f32.mrb[15].mxu0 }
 0x77b   :  { %v4100_v3 = vmul.f32 -1.442695, %v3747_v43  ;;  %v3751_v11 = vadd.f32 %v3700_v25, %v1815_v38  ;;  %v3753_v29 = vadd.f32 %v3743_v56, %v1857_v54  ;;  %v4102_v63 = vmul.f32 -1.442695, %v3749_v53 }
 0x77c   :  { %4675 = vpow2.f32 %v4098_v47  ;;  %v4099_v37 = vmul.f32 -1.442695, %v3750_v39 }
 0x77d   :  { %4677 = vpow2.f32 %v4100_v3  ;;  %v4101_v48 = vmul.f32 -1.442695, %v3751_v11  ;;  %v4103_v17 = vmul.f32 -1.442695, %v3753_v29 }
 0x77e   :  { %4679 = vpow2.f32 %v4099_v37 }
 0x77f   :  { %4681 = vpow2.f32 %v4101_v48 }
 0x780   :  { %4683 = vtanh.f32 %v3748_v24 }
 0x781   :  { %4685 = vpow2.f32 %v4102_v63 }
 0x782   :  { %4687 = vtanh.f32 %v3752_v55 }
 0x786   :  { %v4676_v34 = vpop.eup %4675 }
 0x787   :  { %v4678_v13 = vpop.eup %4677  ;;  %v3760_v14 = vadd.f32 1.0, %v4676_v34 }
 0x788   :  { %v3772_v33 = vadd.f32 1.0, %v4678_v13  ;;  %v4680_v1 = vpop.eup %4679 }
 0x789   :  { %4689 = vrcp.f32 %v3760_v14  ;;  %v3761_v50 = vadd.f32 1.0, %v4680_v1  ;;  %v4682_v8 = vpop.eup %4681 }
 0x78a   :  { %4691 = vrcp.f32 %v3772_v33  ;;  %v3773_v58 = vadd.f32 1.0, %v4682_v8  ;;  %v4684_v18 = vpop.eup %4683 }
 0x78b   :  { %4693 = vpow2.f32 %v4103_v17  ;;  %v4686_v20 = vpop.eup %4685 }
 0x78c   :  { %4695 = vrcp.f32 %v3761_v50  ;;  %v4688_v0 = vpop.eup %4687  ;;  %v3786_v59 = vadd.f32 1.0, %v4686_v20 }
 0x78d   :  { %4697 = vrcp.f32 %v3773_v58 }
 0x78e   :  { %4699 = vrcp.f32 %v3786_v59 }
 0x793   :  { %v4690_v23 = vpop.eup %4689 }
 0x794   :  { %v4692_v12 = vpop.eup %4691  ;;  %v3797_v9 = vmul.f32 %v4690_v23, %v4684_v18 }
 0x795   :  { %v4694_v62 = vpop.eup %4693  ;;  %v3795_v52 = vmul.f32 %v4692_v12, %v3793_v26 }
 0x796   :  { %v4696_v61 = vpop.eup %4695  ;;  %v3787_v10 = vadd.f32 1.0, %v4694_v62 }
 0x797   :  { %v3799_v16 = vadd.f32 %v3797_v9, %v3795_v52  ;;  %v3798_v36 = vmul.f32 %v4696_v61, %v4688_v0  ;;  %v4698_v40 = vpop.eup %4697 }
 0x798   :  { %v3796_v45 = vmul.f32 %v4698_v40, %v3794_v44 }
 0x799   :  { %4701 = vtanh.f32 %v3799_v16  ;;  %3813 = vst [vmem:[#allocation18 + $0x10] sm:$0xff] %v3799_v16 }
 0x79a   :  { %v3800_v35 = vadd.f32 %v3798_v36, %v3796_v45  ;;  %4703 = vrcp.f32 %v3787_v10 }
 0x79c   :  { %4705 = vtanh.f32 %v3800_v35  ;;  %3814 = vst [vmem:[#allocation18 + $0x18] sm:$0xff] %v3800_v35 }
 0x79d   :  { %4917 = shalt.err (!%p4914_p6)
}
 0x79e   :  { %s4918_s26 = scalar_lea.hbm %s5891_s13, 512 }
 0x79f   :  { %p4919_p7 = scmp.ne.s32.totalorder %s5891_s13, %s4918_s26  ;;  %p4922_p8 = scmp.lt.u32.totalorder %s4918_s26, %s5891_s13 }
 0x7a1   :  { %p4924_p9 = pnand %p4922_p8, %p4919_p7 }
 0x7a3   :  { %4927 = shalt.err (!%p4924_p9)
}
 0x7a4   :  { %3838 = dma.vmem_to_hbm [thread:$0]  %s3833_s14, 512, %s5891_s13, [#allocation19], %s4966_s20, %s4966_s20, %s4967_s21   ;;  %v4700_v46 = vpop.eup %4699 }
 0x7a5   :  { %v4702_v49 = vpop.eup %4701  ;;  %s4982_s5 = smov [#allocation17]  }
 0x7a6   :  { %v3803_v15 = vmul.f32 %v4702_v49, %v4700_v46  ;;  %s3820_s2 = sshll.u32 %s4982_s5, 4  ;;  %v4704_v6 = vpop.eup %4703  ;;  %s3821_s2 = int_to_ptr.vmem [resolvable:$true] %s3820_s2 }
 0x7a7   :  { %v4706_v22 = vpop.eup %4705  ;;  %s4928_s28 = scalar_lea.vmem %s3821_s2, 512  ;;  %p4933_p11 = scmp.lt.s32.totalorder %s3821_s2, %s3821_s2 }
 0x7a8   :  { %3808 = vst [vmem:[#allocation17 + $0x10] sm:$0xff] %v3803_v15  ;;  %v3804_v4 = vmul.f32 %v4706_v22, %v4704_v6  ;;  %p4929_p10 = scmp.ne.s32.totalorder %s3821_s2, %s4928_s28  ;;  %p4934_p12 = scmp.lt.s32.totalorder %s4928_s28, %s4928_s28 }
 0x7aa   :  { %3809 = vst [vmem:[#allocation17 + $0x18] sm:$0xff] %v3804_v4  ;;  %p4935_p13 = por %p4934_p12, %p4933_p11 }
 0x7ac   :  { %p4936_p0 = pnand %p4935_p13, %p4929_p10 }
 0x7ae   :  { %4939 = shalt.err (!%p4936_p0)
}
 0x7af   :  { %s4940_s27 = scalar_lea.hbm %s5890_s12, 512 }
 0x7b0   :  { %p4941_p1 = scmp.ne.s32.totalorder %s5890_s12, %s4940_s27  ;;  %p4944_p2 = scmp.lt.u32.totalorder %s4940_s27, %s5890_s12 }
 0x7b2   :  { %p4946_p3 = pnand %p4944_p2, %p4941_p1 }
 0x7b4   :  { %4949 = shalt.err (!%p4946_p3)
}
 0x7b5   :  { %3826 = dma.vmem_to_hbm [thread:$0]  %s3821_s2, 512, %s5890_s12, [#allocation4], %s4966_s20, %s4966_s20, %s4967_s21  }
 0x7b6   :  { %4960 = dma.done.wait [#allocation4], 512  }
 0x7b7   :  { %4961 = vsyncadd [#allocation4], 4294966784 }
 0x7b8   :  { %4962 = dma.done.wait [#allocation19], 512  }
 0x7b9   :  { %4963 = vsyncadd [#allocation19], 4294966784 }
 0x7ba   :  { %3845 = vsyncpa [#allocation3], 1 }
 0x7bb   :  { %3846 = vsyncpa [#allocation6], 1 }
 0x7bc   :  { %3847 = vsyncpa [#allocation9], 1 }
 0x7bd   :  { %3848 = vsyncpa [#allocation12], 1 }
 0x7be   :  { %3849 = vsyncpa [#allocation15], 1 }
 0x7bf   :  { %3850 = vsyncpa [#allocation4], 1 }
 0x7c0   :  { %3851 = vsyncpa [#allocation19], 1 }

</bundles_post_ra>
